<compile_context>
chip_gen: v7x
topology: tpu7x:2x2x1
jax: 0.10.0
libtpu: 0.0.40
codegen_flags: <defaults>
</compile_context>

<pallas_src>
import functools
import math

import jax
import jax.numpy as jnp
from jax.experimental import pallas as pl
from jax.experimental.pallas import tpu as pltpu

# ----------------------------- model config ---------------------------------
BATCH = 256          # batch rows processed per call
LATENT_DIM = 32
HIDDEN = 128
DEPTH = 4
TIME_DIM = 128
OUT_PAD = 128        # lane-dense padded output width (>= LATENT_DIM)


def _num_tensorcores_per_chip() -> int:
    """2 on v7x (two TensorCores share a chip), 1 on v5e/v6e.  Safe fallback 1."""
    try:
        kind = jax.devices()[0].device_kind.lower()
    except Exception:
        return 1
    return 2 if ("v7" in kind or "7x" in kind) else 1


def _pick_tile_m(batch: int) -> int:
    # 2-TC chips: even grid so both cores get a tile; 1-TC chips: one grid step.
    if _num_tensorcores_per_chip() >= 2 and batch % 2 == 0 and (batch // 2) % 8 == 0:
        return batch // 2
    return batch


TILE_M = _pick_tile_m(BATCH)


# --------------------- wrapper-side embedding constants ----------------------
def make_freq_phase(time_dim: int) -> jnp.ndarray:
    """(2, time_dim) f32: row 0 = frequencies (duplicated sin/cos halves),
    row 1 = phase (0 for sin half, pi/2 for cos half).  Then the whole
    embedding is sin(t * freqs + phase)."""
    half = time_dim // 2
    k = jnp.arange(half, dtype=jnp.float32)
    f = jnp.exp(-math.log(10000.0) * k / half)
    freqs = jnp.concatenate([f, f])
    phase = jnp.concatenate(
        [jnp.zeros((half,), jnp.float32), jnp.full((half,), math.pi / 2, jnp.float32)]
    )
    return jnp.stack([freqs, phase], axis=0)   # (2, time_dim)


FREQ_PHASE = make_freq_phase(TIME_DIM)


# ------------------------- reference embedding (spec) -------------------------
def sinusoidal_embedding(timesteps: jnp.ndarray, dim: int) -> jnp.ndarray:
    """Transformer-style sqrt(10000) sinusoidal embedding (matches PyTorch ref)."""
    half_dim = dim // 2
    freqs = jnp.exp(
        -math.log(10000.0) * jnp.arange(half_dim, dtype=jnp.float32) / half_dim
    )
    angles = timesteps.astype(jnp.float32)[:, None] * freqs[None, :]
    emb = jnp.concatenate([jnp.sin(angles), jnp.cos(angles)], axis=-1)
    if dim % 2:
        emb = jnp.pad(emb, ((0, 0), (0, 1)))
    return emb


# ------------------------------ Pallas kernel --------------------------------
def _silu(x):
    # sigmoid(x) = 0.5 * (tanh(0.5 x) + 1): single EUP op per vreg.
    return x * (0.5 * jnp.tanh(0.5 * x) + 0.5)


def ldm_kernel(
    x_ref,        # (TILE_M, latent_dim)    bf16
    t_ref,        # (TILE_M, 1)             f32 timesteps
    fp_ref,       # (2, time_dim)           f32 (freqs row, phase row)
    w_in_ref,     # (latent_dim, hidden)    bf16
    b_in_ref,     # (1, hidden)             f32
    w_t_ref,      # (time_dim, hidden)      bf16
    b_t_ref,      # (1, hidden)             f32
    w_blk_ref,    # (depth, hidden, hidden) bf16
    b_blk_ref,    # (depth, 1, hidden)      f32
    w_out_ref,    # (hidden, OUT_PAD)       bf16 (zero-padded past latent_dim)
    b_out_ref,    # (1, OUT_PAD)            f32  (zero-padded past latent_dim)
    out_ref,      # (TILE_M, OUT_PAD)       f32
    *,
    depth: int,
):
    bf16 = jnp.bfloat16
    f32 = jnp.float32

    t = t_ref[...]                        # (TM, 1) f32
    freqs = fp_ref[0:1, :]                # (1, time_dim)
    phase = fp_ref[1:2, :]                # (1, time_dim)

    # ---- sinusoidal embedding: one sin pass (cos via +pi/2 phase), f32 ------
    temb = jnp.sin(t * freqs + phase)     # (TM, time_dim)

    # ---- h = in_proj(x) ------------------------------------------------------
    h = (
        jnp.dot(x_ref[...], w_in_ref[...], preferred_element_type=f32)
        + b_in_ref[...]
    )

    # ---- h += SiLU(time_proj(temb)) ------------------------------------------
    tproj = (
        jnp.dot(temb.astype(bf16), w_t_ref[...], preferred_element_type=f32)
        + b_t_ref[...]
    )
    h = h + _silu(tproj)

    # ---- residual blocks: h = h + Linear(SiLU(h)) ----------------------------
    for i in range(depth):  # static unroll (depth is a compile-time constant)
        a = _silu(h)
        h = h + (
            jnp.dot(a.astype(bf16), w_blk_ref[i], preferred_element_type=f32)
            + b_blk_ref[i]
        )

    # ---- out_proj into lane-dense padded slab --------------------------------
    out_ref[...] = (
        jnp.dot(h.astype(bf16), w_out_ref[...], preferred_element_type=f32)
        + b_out_ref[...]
    )


# ------------------------------ wrapper --------------------------------------
@jax.jit
def latent_diffusion_forward(x, t, params):
    b = x.shape[0]
    assert b % TILE_M == 0, "batch must be a multiple of TILE_M"
    x_in = x.astype(jnp.bfloat16)
    t_in = t.astype(jnp.float32).reshape(b, 1)

    grid_spec = pltpu.PrefetchScalarGridSpec(
        num_scalar_prefetch=0,
        grid=(b // TILE_M,),
        in_specs=[
            pl.BlockSpec((TILE_M, LATENT_DIM), lambda i: (i, 0)),        # x
            pl.BlockSpec((TILE_M, 1), lambda i: (i, 0)),                 # t
            pl.BlockSpec((2, TIME_DIM), lambda i: (0, 0)),               # freqs/phase
            pl.BlockSpec((LATENT_DIM, HIDDEN), lambda i: (0, 0)),        # w_in
            pl.BlockSpec((1, HIDDEN), lambda i: (0, 0)),                 # b_in
            pl.BlockSpec((TIME_DIM, HIDDEN), lambda i: (0, 0)),          # w_t
            pl.BlockSpec((1, HIDDEN), lambda i: (0, 0)),                 # b_t
            pl.BlockSpec((DEPTH, HIDDEN, HIDDEN), lambda i: (0, 0, 0)),  # w_blk
            pl.BlockSpec((DEPTH, 1, HIDDEN), lambda i: (0, 0, 0)),       # b_blk
            pl.BlockSpec((HIDDEN, OUT_PAD), lambda i: (0, 0)),           # w_out (pad)
            pl.BlockSpec((1, OUT_PAD), lambda i: (0, 0)),                # b_out (pad)
        ],
        out_specs=pl.BlockSpec((TILE_M, OUT_PAD), lambda i: (i, 0)),
    )

    out_padded = pl.pallas_call(
        functools.partial(ldm_kernel, depth=DEPTH),
        out_shape=jax.ShapeDtypeStruct((b, OUT_PAD), jnp.float32),
        grid_spec=grid_spec,
        compiler_params=pltpu.CompilerParams(
            dimension_semantics=("parallel",),  # batch tiles are independent
        ),
    )(
        x_in,
        t_in,
        FREQ_PHASE,
        params["w_in"],
        params["b_in"],
        params["w_t"],
        params["b_t"],
        params["w_blk"],
        params["b_blk"],
        params["w_out_p"],
        params["b_out_p"],
    )
    return out_padded[:, :LATENT_DIM]


# ------------------------------ pure-JAX reference ---------------------------
def reference_forward(x, t, params):
    """True module math (standard sin/cos embedding, standard SiLU), mirroring
    the kernel's mixed precision (bf16 matmul operands, f32 accumulation)."""
    bf16 = jnp.bfloat16
    f32 = jnp.float32
    temb = sinusoidal_embedding(t, TIME_DIM)
    h = (
        jnp.dot(x.astype(bf16), params["w_in"], preferred_element_type=f32)
        + params["b_in"]
    )
    tp = (
        jnp.dot(temb.astype(bf16), params["w_t"], preferred_element_type=f32)
        + params["b_t"]
    )
    h = h + jax.nn.silu(tp)
    for i in range(DEPTH):
        h = h + (
            jnp.dot(
                jax.nn.silu(h).astype(bf16),
                params["w_blk"][i],
                preferred_element_type=f32,
            )
            + params["b_blk"][i]
        )
    out = (
        jnp.dot(h.astype(bf16), params["w_out_p"], preferred_element_type=f32)
        + params["b_out_p"]
    )
    return out[:, :LATENT_DIM]


# ------------------------------ param init -----------------------------------
def init_params(key):
    ks = jax.random.split(key, 8)
    scale = 0.05
    bf16 = jnp.bfloat16

    w_out = scale * jax.random.normal(ks[6], (HIDDEN, LATENT_DIM), jnp.float32)
    b_out = scale * jax.random.normal(ks[7], (1, LATENT_DIM), jnp.float32)
    # Lane-dense padded copies (zeros beyond LATENT_DIM -> padded output cols
    # are exact zeros; wrapper slices them off).
    w_out_p = jnp.zeros((HIDDEN, OUT_PAD), jnp.float32).at[:, :LATENT_DIM].set(w_out)
    b_out_p = jnp.zeros((1, OUT_PAD), jnp.float32).at[:, :LATENT_DIM].set(b_out)

    params = {
        "w_in": (scale * jax.random.normal(ks[0], (LATENT_DIM, HIDDEN), jnp.float32)).astype(bf16),
        "b_in": scale * jax.random.normal(ks[1], (1, HIDDEN), jnp.float32),
        "w_t": (scale * jax.random.normal(ks[2], (TIME_DIM, HIDDEN), jnp.float32)).astype(bf16),
        "b_t": scale * jax.random.normal(ks[3], (1, HIDDEN), jnp.float32),
        "w_blk": (scale * jax.random.normal(ks[4], (DEPTH, HIDDEN, HIDDEN), jnp.float32)).astype(bf16),
        "b_blk": scale * jax.random.normal(ks[5], (DEPTH, 1, HIDDEN), jnp.float32),
        "w_out_p": w_out_p.astype(bf16),
        "b_out_p": b_out_p,
    }
    return params


# ------------------------------ main ------------------------------------------
if __name__ == "__main__":
    key = jax.random.PRNGKey(0)
    kx, kt, kp = jax.random.split(key, 3)

    x = jax.random.normal(kx, (BATCH, LATENT_DIM), jnp.float32)
    t = jax.random.randint(kt, (BATCH,), 0, 1000)
    params = init_params(kp)

    out = jax.block_until_ready(latent_diffusion_forward(x, t, params))
    ref = reference_forward(x, t, params)

    assert out.shape == (BATCH, LATENT_DIM)
    max_err = float(jnp.max(jnp.abs(out - ref)))
    assert jnp.allclose(out, ref, atol=5e-3, rtol=5e-3), (
        f"mismatch vs JAX reference (max abs err {max_err})"
    )

    print("KERNEL_OK")
</pallas_src>

<mosaic_0001>
module attributes {stable_mosaic.version = 11 : i64} {
  func.func @ldm_kernel(%arg0: i32, %arg1: memref<256x32xbf16, #tpu.memory_space<vmem>>, %arg2: memref<256x1xf32, #tpu.memory_space<vmem>>, %arg3: memref<2x128xf32, #tpu.memory_space<vmem>>, %arg4: memref<32x128xbf16, #tpu.memory_space<vmem>>, %arg5: memref<1x128xf32, #tpu.memory_space<vmem>>, %arg6: memref<128x128xbf16, #tpu.memory_space<vmem>>, %arg7: memref<1x128xf32, #tpu.memory_space<vmem>>, %arg8: memref<4x128x128xbf16, #tpu.memory_space<vmem>>, %arg9: memref<4x1x128xf32, #tpu.memory_space<vmem>>, %arg10: memref<128x128xbf16, #tpu.memory_space<vmem>>, %arg11: memref<1x128xf32, #tpu.memory_space<vmem>>, %arg12: memref<256x128xf32, #tpu.memory_space<vmem>>) attributes {dimension_semantics = [#tpu.dimension_semantics<parallel>], iteration_bounds = array<i64: 1>, scalar_prefetch = 0 : i64, scratch_operands = 0 : i64, tpu.core_type = #tpu.core_type<tc>, window_params = [{transform_indices = @transform_0, window_bounds = array<i64: 256, 32>}, {transform_indices = @transform_1, window_bounds = array<i64: 256, 1>}, {pipeline_mode = #tpu.pipeline_mode<synchronous>, transform_indices = @transform_2, window_bounds = array<i64: 2, 128>}, {pipeline_mode = #tpu.pipeline_mode<synchronous>, transform_indices = @transform_3, window_bounds = array<i64: 32, 128>}, {pipeline_mode = #tpu.pipeline_mode<synchronous>, transform_indices = @transform_4, window_bounds = array<i64: 1, 128>}, {pipeline_mode = #tpu.pipeline_mode<synchronous>, transform_indices = @transform_5, window_bounds = array<i64: 128, 128>}, {pipeline_mode = #tpu.pipeline_mode<synchronous>, transform_indices = @transform_6, window_bounds = array<i64: 1, 128>}, {pipeline_mode = #tpu.pipeline_mode<synchronous>, transform_indices = @transform_7, window_bounds = array<i64: 4, 128, 128>}, {pipeline_mode = #tpu.pipeline_mode<synchronous>, transform_indices = @transform_8, window_bounds = array<i64: 4, 1, 128>}, {pipeline_mode = #tpu.pipeline_mode<synchronous>, transform_indices = @transform_9, window_bounds = array<i64: 128, 128>}, {pipeline_mode = #tpu.pipeline_mode<synchronous>, transform_indices = @transform_10, window_bounds = array<i64: 1, 128>}, {transform_indices = @transform_11, window_bounds = array<i64: 256, 128>}]} {
    %c0 = arith.constant 0 : index
    %c0_0 = arith.constant 0 : index
    %0 = vector.load %arg2[%c0, %c0_0] : memref<256x1xf32, #tpu.memory_space<vmem>>, vector<256x1xf32>
    %c0_1 = arith.constant 0 : index
    %c0_2 = arith.constant 0 : index
    %1 = vector.load %arg3[%c0_1, %c0_2] : memref<2x128xf32, #tpu.memory_space<vmem>>, vector<1x128xf32>
    %c1 = arith.constant 1 : index
    %c0_3 = arith.constant 0 : index
    %2 = vector.load %arg3[%c1, %c0_3] : memref<2x128xf32, #tpu.memory_space<vmem>>, vector<1x128xf32>
    %3 = vector.broadcast %0 : vector<256x1xf32> to vector<256x128xf32>
    %4 = vector.broadcast %1 : vector<1x128xf32> to vector<256x128xf32>
    %5 = arith.mulf %3, %4 : vector<256x128xf32>
    %6 = vector.broadcast %2 : vector<1x128xf32> to vector<256x128xf32>
    %7 = arith.addf %5, %6 : vector<256x128xf32>
    %8 = math.sin %7 : vector<256x128xf32>
    %c0_4 = arith.constant 0 : index
    %c0_5 = arith.constant 0 : index
    %9 = vector.load %arg1[%c0_4, %c0_5] : memref<256x32xbf16, #tpu.memory_space<vmem>>, vector<256x32xbf16>
    %c0_6 = arith.constant 0 : index
    %c0_7 = arith.constant 0 : index
    %10 = vector.load %arg4[%c0_6, %c0_7] : memref<32x128xbf16, #tpu.memory_space<vmem>>, vector<32x128xbf16>
    %cst = arith.constant dense<0.000000e+00> : vector<256x128xf32>
    %11 = tpu.matmul %9, %10, %cst {dimension_numbers = #tpu.dot_dimension_numbers<[1], [0], [0], [1], [0, 0, 1, 1], [], []>} : vector<256x32xbf16>, vector<32x128xbf16>, vector<256x128xf32> -> vector<256x128xf32>
    %c0_8 = arith.constant 0 : index
    %c0_9 = arith.constant 0 : index
    %12 = vector.load %arg5[%c0_8, %c0_9] : memref<1x128xf32, #tpu.memory_space<vmem>>, vector<1x128xf32>
    %13 = vector.broadcast %12 : vector<1x128xf32> to vector<256x128xf32>
    %14 = arith.addf %11, %13 : vector<256x128xf32>
    %15 = arith.truncf %8 : vector<256x128xf32> to vector<256x128xbf16>
    %c0_10 = arith.constant 0 : index
    %c0_11 = arith.constant 0 : index
    %16 = vector.load %arg6[%c0_10, %c0_11] : memref<128x128xbf16, #tpu.memory_space<vmem>>, vector<128x128xbf16>
    %cst_12 = arith.constant dense<0.000000e+00> : vector<256x128xf32>
    %17 = tpu.matmul %15, %16, %cst_12 {dimension_numbers = #tpu.dot_dimension_numbers<[1], [0], [0], [1], [0, 0, 1, 1], [], []>} : vector<256x128xbf16>, vector<128x128xbf16>, vector<256x128xf32> -> vector<256x128xf32>
    %c0_13 = arith.constant 0 : index
    %c0_14 = arith.constant 0 : index
    %18 = vector.load %arg7[%c0_13, %c0_14] : memref<1x128xf32, #tpu.memory_space<vmem>>, vector<1x128xf32>
    %19 = vector.broadcast %18 : vector<1x128xf32> to vector<256x128xf32>
    %20 = arith.addf %17, %19 : vector<256x128xf32>
    %cst_15 = arith.constant 5.000000e-01 : f32
    %21 = vector.broadcast %cst_15 : f32 to vector<256x128xf32>
    %22 = arith.mulf %21, %20 : vector<256x128xf32>
    %23 = math.tanh %22 : vector<256x128xf32>
    %cst_16 = arith.constant 5.000000e-01 : f32
    %24 = vector.broadcast %cst_16 : f32 to vector<256x128xf32>
    %25 = arith.mulf %24, %23 : vector<256x128xf32>
    %cst_17 = arith.constant 5.000000e-01 : f32
    %26 = vector.broadcast %cst_17 : f32 to vector<256x128xf32>
    %27 = arith.addf %25, %26 : vector<256x128xf32>
    %28 = arith.mulf %20, %27 : vector<256x128xf32>
    %29 = arith.addf %14, %28 : vector<256x128xf32>
    %cst_18 = arith.constant 5.000000e-01 : f32
    %30 = vector.broadcast %cst_18 : f32 to vector<256x128xf32>
    %31 = arith.mulf %30, %29 : vector<256x128xf32>
    %32 = math.tanh %31 : vector<256x128xf32>
    %cst_19 = arith.constant 5.000000e-01 : f32
    %33 = vector.broadcast %cst_19 : f32 to vector<256x128xf32>
    %34 = arith.mulf %33, %32 : vector<256x128xf32>
    %cst_20 = arith.constant 5.000000e-01 : f32
    %35 = vector.broadcast %cst_20 : f32 to vector<256x128xf32>
    %36 = arith.addf %34, %35 : vector<256x128xf32>
    %37 = arith.mulf %29, %36 : vector<256x128xf32>
    %38 = arith.truncf %37 : vector<256x128xf32> to vector<256x128xbf16>
    %c0_21 = arith.constant 0 : index
    %c0_22 = arith.constant 0 : index
    %c0_23 = arith.constant 0 : index
    %39 = vector.load %arg8[%c0_21, %c0_22, %c0_23] : memref<4x128x128xbf16, #tpu.memory_space<vmem>>, vector<1x128x128xbf16>
    %40 = vector.shape_cast %39 : vector<1x128x128xbf16> to vector<128x128xbf16>
    %cst_24 = arith.constant dense<0.000000e+00> : vector<256x128xf32>
    %41 = tpu.matmul %38, %40, %cst_24 {dimension_numbers = #tpu.dot_dimension_numbers<[1], [0], [0], [1], [0, 0, 1, 1], [], []>} : vector<256x128xbf16>, vector<128x128xbf16>, vector<256x128xf32> -> vector<256x128xf32>
    %c0_25 = arith.constant 0 : index
    %c0_26 = arith.constant 0 : index
    %c0_27 = arith.constant 0 : index
    %42 = vector.load %arg9[%c0_25, %c0_26, %c0_27] : memref<4x1x128xf32, #tpu.memory_space<vmem>>, vector<1x1x128xf32>
    %43 = vector.shape_cast %42 : vector<1x1x128xf32> to vector<1x128xf32>
    %44 = vector.broadcast %43 : vector<1x128xf32> to vector<256x128xf32>
    %45 = arith.addf %41, %44 : vector<256x128xf32>
    %46 = arith.addf %29, %45 : vector<256x128xf32>
    %cst_28 = arith.constant 5.000000e-01 : f32
    %47 = vector.broadcast %cst_28 : f32 to vector<256x128xf32>
    %48 = arith.mulf %47, %46 : vector<256x128xf32>
    %49 = math.tanh %48 : vector<256x128xf32>
    %cst_29 = arith.constant 5.000000e-01 : f32
    %50 = vector.broadcast %cst_29 : f32 to vector<256x128xf32>
    %51 = arith.mulf %50, %49 : vector<256x128xf32>
    %cst_30 = arith.constant 5.000000e-01 : f32
    %52 = vector.broadcast %cst_30 : f32 to vector<256x128xf32>
    %53 = arith.addf %51, %52 : vector<256x128xf32>
    %54 = arith.mulf %46, %53 : vector<256x128xf32>
    %55 = arith.truncf %54 : vector<256x128xf32> to vector<256x128xbf16>
    %c1_31 = arith.constant 1 : index
    %c0_32 = arith.constant 0 : index
    %c0_33 = arith.constant 0 : index
    %56 = vector.load %arg8[%c1_31, %c0_32, %c0_33] : memref<4x128x128xbf16, #tpu.memory_space<vmem>>, vector<1x128x128xbf16>
    %57 = vector.shape_cast %56 : vector<1x128x128xbf16> to vector<128x128xbf16>
    %cst_34 = arith.constant dense<0.000000e+00> : vector<256x128xf32>
    %58 = tpu.matmul %55, %57, %cst_34 {dimension_numbers = #tpu.dot_dimension_numbers<[1], [0], [0], [1], [0, 0, 1, 1], [], []>} : vector<256x128xbf16>, vector<128x128xbf16>, vector<256x128xf32> -> vector<256x128xf32>
    %c1_35 = arith.constant 1 : index
    %c0_36 = arith.constant 0 : index
    %c0_37 = arith.constant 0 : index
    %59 = vector.load %arg9[%c1_35, %c0_36, %c0_37] : memref<4x1x128xf32, #tpu.memory_space<vmem>>, vector<1x1x128xf32>
    %60 = vector.shape_cast %59 : vector<1x1x128xf32> to vector<1x128xf32>
    %61 = vector.broadcast %60 : vector<1x128xf32> to vector<256x128xf32>
    %62 = arith.addf %58, %61 : vector<256x128xf32>
    %63 = arith.addf %46, %62 : vector<256x128xf32>
    %cst_38 = arith.constant 5.000000e-01 : f32
    %64 = vector.broadcast %cst_38 : f32 to vector<256x128xf32>
    %65 = arith.mulf %64, %63 : vector<256x128xf32>
    %66 = math.tanh %65 : vector<256x128xf32>
    %cst_39 = arith.constant 5.000000e-01 : f32
    %67 = vector.broadcast %cst_39 : f32 to vector<256x128xf32>
    %68 = arith.mulf %67, %66 : vector<256x128xf32>
    %cst_40 = arith.constant 5.000000e-01 : f32
    %69 = vector.broadcast %cst_40 : f32 to vector<256x128xf32>
    %70 = arith.addf %68, %69 : vector<256x128xf32>
    %71 = arith.mulf %63, %70 : vector<256x128xf32>
    %72 = arith.truncf %71 : vector<256x128xf32> to vector<256x128xbf16>
    %c2 = arith.constant 2 : index
    %c0_41 = arith.constant 0 : index
    %c0_42 = arith.constant 0 : index
    %73 = vector.load %arg8[%c2, %c0_41, %c0_42] : memref<4x128x128xbf16, #tpu.memory_space<vmem>>, vector<1x128x128xbf16>
    %74 = vector.shape_cast %73 : vector<1x128x128xbf16> to vector<128x128xbf16>
    %cst_43 = arith.constant dense<0.000000e+00> : vector<256x128xf32>
    %75 = tpu.matmul %72, %74, %cst_43 {dimension_numbers = #tpu.dot_dimension_numbers<[1], [0], [0], [1], [0, 0, 1, 1], [], []>} : vector<256x128xbf16>, vector<128x128xbf16>, vector<256x128xf32> -> vector<256x128xf32>
    %c2_44 = arith.constant 2 : index
    %c0_45 = arith.constant 0 : index
    %c0_46 = arith.constant 0 : index
    %76 = vector.load %arg9[%c2_44, %c0_45, %c0_46] : memref<4x1x128xf32, #tpu.memory_space<vmem>>, vector<1x1x128xf32>
    %77 = vector.shape_cast %76 : vector<1x1x128xf32> to vector<1x128xf32>
    %78 = vector.broadcast %77 : vector<1x128xf32> to vector<256x128xf32>
    %79 = arith.addf %75, %78 : vector<256x128xf32>
    %80 = arith.addf %63, %79 : vector<256x128xf32>
    %cst_47 = arith.constant 5.000000e-01 : f32
    %81 = vector.broadcast %cst_47 : f32 to vector<256x128xf32>
    %82 = arith.mulf %81, %80 : vector<256x128xf32>
    %83 = math.tanh %82 : vector<256x128xf32>
    %cst_48 = arith.constant 5.000000e-01 : f32
    %84 = vector.broadcast %cst_48 : f32 to vector<256x128xf32>
    %85 = arith.mulf %84, %83 : vector<256x128xf32>
    %cst_49 = arith.constant 5.000000e-01 : f32
    %86 = vector.broadcast %cst_49 : f32 to vector<256x128xf32>
    %87 = arith.addf %85, %86 : vector<256x128xf32>
    %88 = arith.mulf %80, %87 : vector<256x128xf32>
    %89 = arith.truncf %88 : vector<256x128xf32> to vector<256x128xbf16>
    %c3 = arith.constant 3 : index
    %c0_50 = arith.constant 0 : index
    %c0_51 = arith.constant 0 : index
    %90 = vector.load %arg8[%c3, %c0_50, %c0_51] : memref<4x128x128xbf16, #tpu.memory_space<vmem>>, vector<1x128x128xbf16>
    %91 = vector.shape_cast %90 : vector<1x128x128xbf16> to vector<128x128xbf16>
    %cst_52 = arith.constant dense<0.000000e+00> : vector<256x128xf32>
    %92 = tpu.matmul %89, %91, %cst_52 {dimension_numbers = #tpu.dot_dimension_numbers<[1], [0], [0], [1], [0, 0, 1, 1], [], []>} : vector<256x128xbf16>, vector<128x128xbf16>, vector<256x128xf32> -> vector<256x128xf32>
    %c3_53 = arith.constant 3 : index
    %c0_54 = arith.constant 0 : index
    %c0_55 = arith.constant 0 : index
    %93 = vector.load %arg9[%c3_53, %c0_54, %c0_55] : memref<4x1x128xf32, #tpu.memory_space<vmem>>, vector<1x1x128xf32>
    %94 = vector.shape_cast %93 : vector<1x1x128xf32> to vector<1x128xf32>
    %95 = vector.broadcast %94 : vector<1x128xf32> to vector<256x128xf32>
    %96 = arith.addf %92, %95 : vector<256x128xf32>
    %97 = arith.addf %80, %96 : vector<256x128xf32>
    %98 = arith.truncf %97 : vector<256x128xf32> to vector<256x128xbf16>
    %c0_56 = arith.constant 0 : index
    %c0_57 = arith.constant 0 : index
    %99 = vector.load %arg10[%c0_56, %c0_57] : memref<128x128xbf16, #tpu.memory_space<vmem>>, vector<128x128xbf16>
    %cst_58 = arith.constant dense<0.000000e+00> : vector<256x128xf32>
    %100 = tpu.matmul %98, %99, %cst_58 {dimension_numbers = #tpu.dot_dimension_numbers<[1], [0], [0], [1], [0, 0, 1, 1], [], []>} : vector<256x128xbf16>, vector<128x128xbf16>, vector<256x128xf32> -> vector<256x128xf32>
    %c0_59 = arith.constant 0 : index
    %c0_60 = arith.constant 0 : index
    %101 = vector.load %arg11[%c0_59, %c0_60] : memref<1x128xf32, #tpu.memory_space<vmem>>, vector<1x128xf32>
    %102 = vector.broadcast %101 : vector<1x128xf32> to vector<256x128xf32>
    %103 = arith.addf %100, %102 : vector<256x128xf32>
    %c0_61 = arith.constant 0 : index
    %c0_62 = arith.constant 0 : index
    %104 = vector.load %arg12[%c0_61, %c0_62] : memref<256x128xf32, #tpu.memory_space<vmem>>, vector<256x128xf32>
    tpu.vector_store %arg12[%c0_61, %c0_62], %103 {strides = array<i32>} : memref<256x128xf32, #tpu.memory_space<vmem>>, vector<256x128xf32>,
    return
  }
  func.func @transform_0(%arg0: i32) -> (i32, i32) {
    %c0_i32 = arith.constant 0 : i32
    %c0_i32_0 = arith.constant 0 : i32
    return %arg0, %c0_i32 : i32, i32
  }
  func.func @transform_1(%arg0: i32) -> (i32, i32) {
    %c0_i32 = arith.constant 0 : i32
    %c0_i32_0 = arith.constant 0 : i32
    return %arg0, %c0_i32 : i32, i32
  }
  func.func @transform_2(%arg0: i32) -> (i32, i32) {
    %c0_i32 = arith.constant 0 : i32
    %c0_i32_0 = arith.constant 0 : i32
    %c0_i32_1 = arith.constant 0 : i32
    return %c0_i32, %c0_i32_0 : i32, i32
  }
  func.func @transform_3(%arg0: i32) -> (i32, i32) {
    %c0_i32 = arith.constant 0 : i32
    %c0_i32_0 = arith.constant 0 : i32
    %c0_i32_1 = arith.constant 0 : i32
    return %c0_i32, %c0_i32_0 : i32, i32
  }
  func.func @transform_4(%arg0: i32) -> (i32, i32) {
    %c0_i32 = arith.constant 0 : i32
    %c0_i32_0 = arith.constant 0 : i32
    %c0_i32_1 = arith.constant 0 : i32
    return %c0_i32, %c0_i32_0 : i32, i32
  }
  func.func @transform_5(%arg0: i32) -> (i32, i32) {
    %c0_i32 = arith.constant 0 : i32
    %c0_i32_0 = arith.constant 0 : i32
    %c0_i32_1 = arith.constant 0 : i32
    return %c0_i32, %c0_i32_0 : i32, i32
  }
  func.func @transform_6(%arg0: i32) -> (i32, i32) {
    %c0_i32 = arith.constant 0 : i32
    %c0_i32_0 = arith.constant 0 : i32
    %c0_i32_1 = arith.constant 0 : i32
    return %c0_i32, %c0_i32_0 : i32, i32
  }
  func.func @transform_7(%arg0: i32) -> (i32, i32, i32) {
    %c0_i32 = arith.constant 0 : i32
    %c0_i32_0 = arith.constant 0 : i32
    %c0_i32_1 = arith.constant 0 : i32
    %c0_i32_2 = arith.constant 0 : i32
    return %c0_i32, %c0_i32_0, %c0_i32_1 : i32, i32, i32
  }
  func.func @transform_8(%arg0: i32) -> (i32, i32, i32) {
    %c0_i32 = arith.constant 0 : i32
    %c0_i32_0 = arith.constant 0 : i32
    %c0_i32_1 = arith.constant 0 : i32
    %c0_i32_2 = arith.constant 0 : i32
    return %c0_i32, %c0_i32_0, %c0_i32_1 : i32, i32, i32
  }
  func.func @transform_9(%arg0: i32) -> (i32, i32) {
    %c0_i32 = arith.constant 0 : i32
    %c0_i32_0 = arith.constant 0 : i32
    %c0_i32_1 = arith.constant 0 : i32
    return %c0_i32, %c0_i32_0 : i32, i32
  }
  func.func @transform_10(%arg0: i32) -> (i32, i32) {
    %c0_i32 = arith.constant 0 : i32
    %c0_i32_0 = arith.constant 0 : i32
    %c0_i32_1 = arith.constant 0 : i32
    return %c0_i32, %c0_i32_0 : i32, i32
  }
  func.func @transform_11(%arg0: i32) -> (i32, i32) {
    %c0_i32 = arith.constant 0 : i32
    %c0_i32_0 = arith.constant 0 : i32
    return %arg0, %c0_i32 : i32, i32
  }
}

</mosaic_0001>

<bundles_post_ra>
// kernel: latent_diffusion_forward.1
= control target key start
LH: loop header
LB: loop body
LE: loop exit
PB: predicated region body
PF: predicated region fallthrough
CT: control target
= control target key end

     0   :  { %v7887_v0 = vmov 0   ;;  %s12440_s1 = inlined_call_operand.vmem [shape: f32[256,1], index: 1, kind: input, shape index: {}]   ;;  %s12441_s2 = inlined_call_operand.vmem [shape: f32[2,128], index: 2, kind: input, shape index: {}]   ;;  %s12442_s3 = inlined_call_operand.vmem [shape: bf16[32,128], index: 3, kind: input, shape index: {}]   ;;  %s12443_s0 = inlined_call_operand.vmem [shape: bf16[256,32], index: 0, kind: input, shape index: {}]   ;;  %s12444_s5 = inlined_call_operand.vmem [shape: bf16[128,128], index: 5, kind: input, shape index: {}]   ;;  %s12445_s7 = inlined_call_operand.vmem [shape: bf16[4,128,128], index: 7, kind: input, shape index: {}]   ;;  %s12446_s6 = inlined_call_operand.vmem [shape: f32[1,128], index: 6, kind: input, shape index: {}]   ;;  %s12447_s4 = inlined_call_operand.vmem [shape: f32[1,128], index: 4, kind: input, shape index: {}]   ;;  %s12448_s8 = inlined_call_operand.vmem [shape: f32[4,1,128], index: 8, kind: input, shape index: {}]   ;;  %s12449_s9 = inlined_call_operand.vmem [shape: bf16[128,128], index: 9, kind: input, shape index: {}]   ;;  %s12450_s10 = inlined_call_operand.vmem [shape: f32[1,128], index: 10, kind: input, shape index: {}]   ;;  %s12451_s11 = inlined_call_operand.vmem [shape: f32[256,128], index: 11, kind: output, shape index: {}]  }
   0x1   :  { %7364 = vset.pattern.permute.xlu1 %v7887_v0  ;;  %7363 = vset.pattern.permute.xlu0 %v7887_v0  ;;  %v41_v1 = vld [vmem:[%s12440_s1 + $0x10] sm:$0xff]  ;;  %v39_v2 = vld [vmem:[%s12440_s1] sm:$0xff]  ;;  %v42_v3 = vld [vmem:[%s12440_s1 + $0x18] sm:$0xff] }
   0x2   :  { %85 = vperm.xlu1 %7364, %v41_v1   ;;  %75 = vperm.xlu0 %7363, %v39_v2   ;;  %v40_v4 = vld [vmem:[%s12440_s1 + $0x8] sm:$0xff]  ;;  %v43_v6 = vld [vmem:[%s12440_s1 + $0x20] sm:$0xff]  ;;  %v46_v7 = vld [vmem:[%s12440_s1 + $0x38] sm:$0xff] }
   0x3   :  { %v44_v5 = vld [vmem:[%s12440_s1 + $0x28] sm:$0xff]  ;;  %v45_v8 = vld [vmem:[%s12440_s1 + $0x30] sm:$0xff]  ;;  %v47_v10 = vld [vmem:[%s12440_s1 + $0x40] sm:$0xff] }
   0x4   :  { %v48_v9 = vld [vmem:[%s12440_s1 + $0x48] sm:$0xff]  ;;  %v50_v11 = vld [vmem:[%s12440_s1 + $0x58] sm:$0xff]  ;;  %v49_v12 = vld [vmem:[%s12440_s1 + $0x50] sm:$0xff] }
   0x5   :  { %v52_v13 = vld [vmem:[%s12440_s1 + $0x68] sm:$0xff]  ;;  %v51_v14 = vld [vmem:[%s12440_s1 + $0x60] sm:$0xff]  ;;  %v54_v15 = vld [vmem:[%s12440_s1 + $0x78] sm:$0xff] }
   0x6   :  { %90 = vperm.xlu1 %7364, %v42_v3   ;;  %80 = vperm.xlu0 %7363, %v40_v4   ;;  %v53_v16 = vld [vmem:[%s12440_s1 + $0x70] sm:$0xff]  ;;  %v56_v17 = vld [vmem:[%s12440_s1 + $0x88] sm:$0xff]  ;;  %v55_v18 = vld [vmem:[%s12440_s1 + $0x80] sm:$0xff] }
   0x7   :  { %v58_v19 = vld [vmem:[%s12440_s1 + $0x98] sm:$0xff]  ;;  %v57_v20 = vld [vmem:[%s12440_s1 + $0x90] sm:$0xff]  ;;  %v60_v21 = vld [vmem:[%s12440_s1 + $0xa8] sm:$0xff] }
   0x8   :  { %v59_v22 = vld [vmem:[%s12440_s1 + $0xa0] sm:$0xff]  ;;  %v62_v23 = vld [vmem:[%s12440_s1 + $0xb8] sm:$0xff]  ;;  %v61_v24 = vld [vmem:[%s12440_s1 + $0xb0] sm:$0xff] }
   0x9   :  { %v64_v25 = vld [vmem:[%s12440_s1 + $0xc8] sm:$0xff]  ;;  %v63_v26 = vld [vmem:[%s12440_s1 + $0xc0] sm:$0xff]  ;;  %v66_v27 = vld [vmem:[%s12440_s1 + $0xd8] sm:$0xff] }
   0xa   :  { %100 = vperm.xlu1 %7364, %v44_v5   ;;  %95 = vperm.xlu0 %7363, %v43_v6   ;;  %v65_v28 = vld [vmem:[%s12440_s1 + $0xd0] sm:$0xff]  ;;  %v68_v29 = vld [vmem:[%s12440_s1 + $0xe8] sm:$0xff]  ;;  %v67_v30 = vld [vmem:[%s12440_s1 + $0xe0] sm:$0xff] }
   0xb   :  { %v70_v31 = vld [vmem:[%s12440_s1 + $0xf8] sm:$0xff]  ;;  %v69_v32 = vld [vmem:[%s12440_s1 + $0xf0] sm:$0xff]  ;;  %v8053_v33 = vld [vmem:[%s12441_s2] ss:$0 sm:$0xff] }
   0xc   :  { %v8058_v34 = vld [vmem:[%s12441_s2 + $0x1] ss:$0 sm:$0xff] }
   0xe   :  { %110 = vperm.xlu1 %7364, %v46_v7   ;;  %105 = vperm.xlu0 %7363, %v45_v8   ;;  %v12469_v7 = vmov 683565275  }
  0x12   :  { %120 = vperm.xlu1 %7364, %v48_v9   ;;  %115 = vperm.xlu0 %7363, %v47_v10  }
  0x16   :  { %130 = vperm.xlu1 %7364, %v50_v11   ;;  %125 = vperm.xlu0 %7363, %v49_v12   ;;  %v12467_v11 = vmov 2475754826  }
  0x1a   :  { %140 = vperm.xlu1 %7364, %v52_v13   ;;  %135 = vperm.xlu0 %7363, %v51_v14   ;;  %v12464_v13 = vmov 2131351028  }
  0x1e   :  { %150 = vperm.xlu1 %7364, %v54_v15   ;;  %145 = vperm.xlu0 %7363, %v53_v16   ;;  %v12462_v15 = vmov 2102212464  }
  0x22   :  { %160 = vperm.xlu1 %7364, %v56_v17   ;;  %155 = vperm.xlu0 %7363, %v55_v18   ;;  %v12460_v17 = vmov 920167782  }
  0x26   :  { %170 = vperm.xlu1 %7364, %v58_v19   ;;  %165 = vperm.xlu0 %7363, %v57_v20  }
  0x2a   :  { %180 = vperm.xlu1 %7364, %v60_v21   ;;  %175 = vperm.xlu0 %7363, %v59_v22  }
  0x2e   :  { %190 = vperm.xlu1 %7364, %v62_v23   ;;  %185 = vperm.xlu0 %7363, %v61_v24   ;;  %v12458_v24 = vmov 1326507024  }
  0x32   :  { %200 = vperm.xlu1 %7364, %v64_v25   ;;  %195 = vperm.xlu0 %7363, %v63_v26  }
  0x36   :  { %210 = vperm.xlu1 %7364, %v66_v27   ;;  %205 = vperm.xlu0 %7363, %v65_v28  }
  0x3a   :  { %220 = vperm.xlu1 %7364, %v68_v29   ;;  %215 = vperm.xlu0 %7363, %v67_v30  }
  0x3e   :  { %230 = vperm.xlu1 %7364, %v70_v31   ;;  %225 = vperm.xlu0 %7363, %v69_v32  }
  0x81   :  { %v86_v35 = vpop.permute.xlu1 %85  ;;  %v76_v36 = vpop.permute.xlu0 %75 }
  0x82   :  { %v239_v37 = vmul.f32 %v8053_v33, %v86_v35  ;;  %v237_v38 = vmul.f32 %v8053_v33, %v76_v36 }
  0x84   :  { %v8063_v39 = vadd.f32 %v8058_v34, %v239_v37  ;;  %v8066_v40 = vadd.f32 %v8058_v34, %v237_v38 }
  0x85   :  { %v91_v41 = vpop.permute.xlu1 %90  ;;  %v81_v53 = vpop.permute.xlu0 %80 }
  0x86   :  { %12592 = vst [vmem:[#allocation2_spill] sm:$0xff] %v8063_v39  ;;  %v513_v42 = vand.u32 2147483647, %v8063_v39  ;;  %v516_v43 = vand.u32 2139095040, %v8063_v39  ;;  %v12456_v44 = vand.u32 2147483647, %v8066_v40  ;;  %v240_v46 = vmul.f32 %v8053_v33, %v91_v41 }
  0x87   :  { %v308_v45 = vand.u32 2139095040, %v8066_v40  ;;  %v238_v60 = vmul.f32 %v8053_v33, %v81_v53 }
  0x88   :  { %v517_v47 = vshrl.u32 %v516_v43, 23  ;;  %v520_v48 = vand.u32 8388607, %v513_v42  ;;  %v312_v50 = vand.u32 8388607, %v12456_v44  ;;  %v8078_v51 = vadd.f32 %v8058_v34, %v240_v46 }
  0x89   :  { %v309_v49 = vshrl.u32 %v308_v45, 23  ;;  %v8089_v5 = vadd.f32 %v8058_v34, %v238_v60 }
  0x8a   :  { %12593 = vst [vmem:[#allocation3_spill] sm:$0xff] %v8078_v51  ;;  %v6478_v52 = vadd.s32 4294967169, %v517_v47  ;;  %v620_v56 = vand.u32 2139095040, %v8078_v51  ;;  %v521_v57 = vor.u32 8388608, %v520_v48  ;;  %v313_v58 = vor.u32 8388608, %v312_v50 }
  0x8b   :  { %v6470_v54 = vadd.s32 4294967169, %v309_v49  ;;  %12594 = vst [vmem:[#allocation4_spill] sm:$0xff] %v8089_v5 }
  0x8c   :  { %v523_v55 = vadd.s32 1, %v6478_v52  ;;  %v621_v61 = vshrl.u32 %v620_v56, 23  ;;  %v8082_v2 = vshll.u32 %v521_v57, 8  ;;  %v8084_v3 = vshll.u32 %v313_v58, 8 }
  0x8d   :  { %v315_v59 = vadd.s32 1, %v6470_v54 }
  0x8e   :  { %vm524_vm0 = vcmp.gt.s32.totalorder %v523_v55, 0  ;;  %v8086_v4 = vadd.s32 4294967169, %v621_v61 }
  0x8f   :  { %v525_v62 = vsel %vm524_vm0, %v523_v55, 0  ;;  %vm316_vm1 = vcmp.gt.s32.totalorder %v315_v59, 0 }
  0x90   :  { %v526_v63 = vshrl.u32 %v525_v62, 5  ;;  %v527_v0 = vand.u32 31, %v525_v62  ;;  %v317_v1 = vsel %vm316_vm1, %v315_v59, 0 }
  0x91   :  { %v8092_v9 = vshrl.u32 %v317_v1, 5  ;;  %v319_v10 = vand.u32 31, %v317_v1 }
  0x92   :  { %v528_v6 = vsub.s32 32, %v527_v0  ;;  %v530_v8 = vshll.u32 %v12469_v7, %v527_v0  ;;  %v533_v12 = vshll.u32 %v12467_v11, %v527_v0  ;;  %v536_v14 = vshll.u32 %v12464_v13, %v527_v0 }
  0x93   :  { %v539_v16 = vshll.u32 %v12462_v15, %v527_v0  ;;  %v542_v18 = vshll.u32 %v12460_v17, %v527_v0  ;;  %vm545_vm2 = vcmp.lt.s32.totalorder %v526_v63, 1  ;;  %vm546_vm3 = vcmp.lt.s32.totalorder %v526_v63, 2 }
  0x94   :  { %v531_v19 = vshrl.u32 %v12467_v11, %v528_v6  ;;  %v534_v20 = vshrl.u32 %v12464_v13, %v528_v6  ;;  %v537_v21 = vshrl.u32 %v12462_v15, %v528_v6  ;;  %v529_v22 = vshrl.u32 %v12469_v7, %v528_v6 }
  0x95   :  { %v540_v23 = vshrl.u32 %v12460_v17, %v528_v6  ;;  %v543_v25 = vshrl.u32 %v12458_v24, %v528_v6  ;;  %v320_v29 = vsub.s32 32, %v319_v10  ;;  %vm547_vm4 = vcmp.lt.s32.totalorder %v526_v63, 3 }
  0x96   :  { %v532_v26 = vor.u32 %v531_v19, %v530_v8  ;;  %v535_v27 = vor.u32 %v534_v20, %v533_v12  ;;  %v538_v28 = vor.u32 %v537_v21, %v536_v14  ;;  %vm548_vm5 = vcmp.lt.s32.totalorder %v526_v63, 4 }
  0x97   :  { %v541_v30 = vor.u32 %v540_v23, %v539_v16  ;;  %v544_v31 = vor.u32 %v543_v25, %v542_v18  ;;  %v322_v45 = vshll.u32 %v12469_v7, %v319_v10  ;;  %v323_v48 = vshrl.u32 %v12467_v11, %v320_v29 }
  0x98   :  { %v549_v32 = vsel %vm545_vm2, %v529_v22, %v532_v26  ;;  %v550_v35 = vsel %vm548_vm5, %v538_v28, 2102212464  ;;  %v553_v36 = vsel %vm545_vm2, %v532_v26, %v535_v27  ;;  %v557_v37 = vsel %vm545_vm2, %v535_v27, %v538_v28 }
  0x99   :  { %v551_v38 = vsel %vm547_vm4, %v535_v27, %v550_v35  ;;  %v554_v41 = vsel %vm548_vm5, %v541_v30, 920167782  ;;  %v558_v43 = vsel %vm548_vm5, %v544_v31, 1326507024  ;;  %v325_v49 = vshll.u32 %v12467_v11, %v319_v10 }
  0x9a   :  { %v555_v46 = vsel %vm547_vm4, %v538_v28, %v554_v41  ;;  %v559_v47 = vsel %vm547_vm4, %v541_v30, %v558_v43  ;;  %v552_v50 = vsel %vm546_vm3, %v549_v32, %v551_v38  ;;  %v326_v54 = vshrl.u32 %v12464_v13, %v320_v29 }
  0x9b   :  { %v556_v52 = vsel %vm546_vm3, %v553_v36, %v555_v46  ;;  %v560_v53 = vsel %vm546_vm3, %v557_v37, %v559_v47  ;;  %v324_v59 = vor.u32 %v323_v48, %v322_v45  ;;  %v328_v61 = vshll.u32 %v12464_v13, %v319_v10 }
  0x9c   :  { %v8115_v55 = vmul.u32.u64.low %v8082_v2, %v560_v53  ;;  %v8116_v56 = vmul.u32.u64.high %v8082_v2, %v560_v53, %v8115_v55  ;;  %v8119_v57 = vmul.u32.u64.low %v8082_v2, %v556_v52  ;;  %v8120_v58 = vmul.u32.u64.high %v8082_v2, %v556_v52, %v8119_v57 }
  0x9d   :  { %v327_v60 = vor.u32 %v326_v54, %v325_v49  ;;  %v329_v62 = vshrl.u32 %v12462_v15, %v320_v29  ;;  %v321_v63 = vshrl.u32 %v12469_v7, %v320_v29  ;;  %v331_v0 = vshll.u32 %v12462_v15, %v319_v10 }
  0x9e   :  { %v332_v1 = vshrl.u32 %v12460_v17, %v320_v29  ;;  %v335_v6 = vshrl.u32 %v12458_v24, %v320_v29  ;;  %v568_v8 = vmul.u32 %v8082_v2, %v552_v50  ;;  %v334_v14 = vshll.u32 %v12460_v17, %v319_v10 }
  0x9f   :  { %v330_v12 = vor.u32 %v329_v62, %v328_v61  ;;  %vm337_vm6 = vcmp.lt.s32.totalorder %v8092_v9, 1  ;;  %vm570_vm7 = vc.u32 %v8116_v56, %v8119_v57  ;;  %v571_v16 = vadd.s32 1, %v8120_v58 }
  0xa0   :  { %v333_v18 = vor.u32 %v332_v1, %v331_v0  ;;  %vm338_vm8 = vcmp.lt.s32.totalorder %v8092_v9, 2  ;;  %v336_v19 = vor.u32 %v335_v6, %v334_v14  ;;  %vm339_vm9 = vcmp.lt.s32.totalorder %v8092_v9, 3 }
  0xa1   :  { %vm340_vm10 = vcmp.lt.s32.totalorder %v8092_v9, 4  ;;  %v345_v20 = vsel %vm337_vm6, %v324_v59, %v327_v60  ;;  %v572_v2 = vsel %vm570_vm7, %v571_v16, %v8120_v58  ;;  %v349_v22 = vsel %vm337_vm6, %v327_v60, %v330_v12 }
  0xa2   :  { %v342_v21 = vsel %vm340_vm10, %v330_v12, 2102212464  ;;  %v346_v10 = vsel %vm340_vm10, %v333_v18, 920167782  ;;  %v573_v23 = vadd.s32 %v572_v2, %v568_v8  ;;  %v341_v25 = vsel %vm337_vm6, %v321_v63, %v324_v59 }
  0xa3   :  { %v347_v26 = vsel %vm339_vm9, %v330_v12, %v346_v10  ;;  %v350_v27 = vsel %vm340_vm10, %v336_v19, 1326507024  ;;  %v343_v28 = vsel %vm339_vm9, %v327_v60, %v342_v21  ;;  %v627_v31 = vadd.s32 1, %v8086_v4 }
  0xa4   :  { %v348_v29 = vsel %vm338_vm8, %v345_v20, %v347_v26  ;;  %v351_v30 = vsel %vm339_vm9, %v333_v18, %v350_v27  ;;  %v574_v32 = vadd.s32 536870912, %v573_v23  ;;  %v344_v45 = vsel %vm338_vm8, %v341_v25, %v343_v28 }
  0xa5   :  { %v352_v35 = vsel %vm338_vm8, %v349_v22, %v351_v30  ;;  %v8145_v36 = vmul.u32.u64.low %v8084_v3, %v348_v29  ;;  %v8146_v37 = vmul.u32.u64.high %v8084_v3, %v348_v29, %v8145_v36  ;;  %vm628_vm11 = vcmp.gt.s32.totalorder %v627_v31, 0 }
  0xa6   :  { %v8150_v38 = vmul.u32.u64.low %v8084_v3, %v352_v35  ;;  %v8151_v41 = vmul.u32.u64.high %v8084_v3, %v352_v35, %v8150_v38  ;;  %v8153_v43 = vshrl.u32 %v574_v32, 30  ;;  %v617_v4 = vand.u32 2147483647, %v8078_v51 }
  0xa7   :  { %v629_v46 = vsel %vm628_vm11, %v627_v31, 0  ;;  %v412_v48 = vand.u32 2139095040, %v8089_v5  ;;  %v363_v50 = vadd.s32 1, %v8146_v37  ;;  %v360_v52 = vmul.u32 %v8084_v3, %v344_v45 }
  0xa8   :  { %v631_v47 = vand.u32 31, %v629_v46  ;;  %v576_v49 = vshll.u32 %v8153_v43, 30  ;;  %vm362_vm12 = vc.u32 %v8151_v41, %v8145_v36  ;;  %v624_v55 = vand.u32 8388607, %v617_v4 }
  0xa9   :  { %v364_v9 = vsel %vm362_vm12, %v363_v50, %v8146_v37  ;;  %v413_v61 = vshrl.u32 %v412_v48, 23  ;;  %v630_v3 = vshrl.u32 %v629_v46, 5  ;;  %vm515_vm9 = vcmp.lt.s32.totalorder %v8063_v39, 0 }
  0xaa   :  { %v632_v53 = vsub.s32 32, %v631_v47  ;;  %v8164_v54 = vsub.s32 %v573_v23, %v576_v49  ;;  %v365_v58 = vadd.s32 %v364_v9, %v360_v52  ;;  %v634_v59 = vshll.u32 %v12469_v7, %v631_v47 }
  0xab   :  { %v637_v63 = vshll.u32 %v12467_v11, %v631_v47  ;;  %v640_v8 = vshll.u32 %v12464_v13, %v631_v47  ;;  %v643_v18 = vshll.u32 %v12462_v15, %v631_v47  ;;  %v646_v21 = vshll.u32 %v12460_v17, %v631_v47 }
  0xac   :  { %v635_v60 = vshrl.u32 %v12467_v11, %v632_v53  ;;  %v579_v62 = vsub.s32 0, %v8164_v54  ;;  %v638_v0 = vshrl.u32 %v12464_v13, %v632_v53  ;;  %v366_v1 = vadd.s32 536870912, %v365_v58 }
  0xad   :  { %v641_v12 = vshrl.u32 %v12462_v15, %v632_v53  ;;  %v644_v19 = vshrl.u32 %v12460_v17, %v632_v53  ;;  %v647_v10 = vshrl.u32 %v12458_v24, %v632_v53  ;;  %v625_v23 = vor.u32 8388608, %v624_v55 }
  0xae   :  { %v636_v6 = vor.u32 %v635_v60, %v634_v59  ;;  %v6479_v14 = vmin.u32 %v579_v62, %v8164_v54  ;;  %v639_v16 = vor.u32 %v638_v0, %v637_v63  ;;  %v8179_v20 = vshrl.u32 %v366_v1, 30 }
  0xaf   :  { %v642_v2 = vor.u32 %v641_v12, %v640_v8  ;;  %v645_v25 = vor.u32 %v644_v19, %v643_v18  ;;  %v6474_v26 = vadd.s32 4294967169, %v413_v61  ;;  %v633_v28 = vshrl.u32 %v12469_v7, %v632_v53 }
  0xb0   :  { %v581_v22 = vclz %v6479_v14  ;;  %v368_v27 = vshll.u32 %v8179_v20, 30  ;;  %v648_v29 = vor.u32 %v647_v10, %v646_v21  ;;  %vm649_vm13 = vcmp.lt.s32.totalorder %v630_v3, 1  ;;  %v101_v14 = vpop.permute.xlu1 %100 }
  0xb1   :  { %vm651_vm14 = vcmp.lt.s32.totalorder %v630_v3, 3  ;;  %vm652_vm15 = vcmp.lt.s32.totalorder %v630_v3, 4  ;;  %v657_v31 = vsel %vm649_vm13, %v636_v6, %v639_v16  ;;  %v661_v38 = vsel %vm649_vm13, %v639_v16, %v642_v2 }
  0xb2   :  { %v6480_v30 = vadd.s32 4294967294, %v581_v22  ;;  %v8186_v32 = vsub.s32 %v365_v58, %v368_v27  ;;  %v654_v35 = vsel %vm652_vm15, %v642_v2, 2102212464  ;;  %v658_v37 = vsel %vm652_vm15, %v645_v25, 920167782 }
  0xb3   :  { %vm650_vm1 = vcmp.lt.s32.totalorder %v630_v3, 2  ;;  %v659_v45 = vsel %vm651_vm14, %v642_v2, %v658_v37  ;;  %v662_v46 = vsel %vm652_vm15, %v648_v29, 1326507024  ;;  %v665_v49 = vshll.u32 %v625_v23, 8 }
  0xb4   :  { %vm6481_vm0 = vcmp.lt.s32.totalorder %v6480_v30, 0  ;;  %v660_v47 = vsel %vm650_vm1, %v657_v31, %v659_v45  ;;  %v663_v48 = vsel %vm651_vm14, %v645_v25, %v662_v46  ;;  %v419_v50 = vadd.s32 1, %v6474_v26  ;;  %v96_v25 = vpop.permute.xlu0 %95 }
  0xb5   :  { %v653_v52 = vsel %vm649_vm13, %v633_v28, %v636_v6  ;;  %v655_v53 = vsel %vm651_vm14, %v639_v16, %v654_v35  ;;  %v664_v9 = vsel %vm650_vm1, %v661_v38, %v663_v48  ;;  %v584_v55 = vsel %vm6481_vm0, 0, %v6480_v30 }
  0xb6   :  { %v371_v58 = vsub.s32 0, %v8186_v32  ;;  %v8196_v59 = vmul.u32.u64.low %v665_v49, %v664_v9  ;;  %v8197_v60 = vmul.u32.u64.high %v665_v49, %v664_v9, %v8196_v59  ;;  %v12455_v63 = vand.u32 2147483647, %v8089_v5 }
  0xb7   :  { %v8199_v61 = vmul.u32.u64.low %v665_v49, %v660_v47  ;;  %v8200_v62 = vmul.u32.u64.high %v665_v49, %v660_v47, %v8199_v61  ;;  %vm420_vm2 = vcmp.gt.s32.totalorder %v419_v50, 0  ;;  %v585_v0 = vsub.s32 32, %v584_v55 }
  0xb8   :  { %v656_v1 = vsel %vm650_vm1, %v653_v52, %v655_v53  ;;  %v421_v6 = vsel %vm420_vm2, %v419_v50, 0  ;;  %v589_v8 = vsub.s32 4294967266, %v584_v55  ;;  %v6471_v12 = vmin.u32 %v371_v58, %v8186_v32 }
  0xb9   :  { %vm674_vm3 = vc.u32 %v8197_v60, %v8199_v61  ;;  %v569_v16 = vadd.s32 %v8119_v57, %v8116_v56  ;;  %v675_v18 = vadd.s32 1, %v8200_v62  ;;  %v423_v19 = vand.u32 31, %v421_v6 }
  0xba   :  { %v672_v2 = vmul.u32 %v665_v49, %v656_v1  ;;  %v416_v21 = vand.u32 8388607, %v12455_v63  ;;  %v242_v23 = vmul.f32 %v8053_v33, %v101_v14  ;;  %v590_v26 = vadd.s32 127, %v589_v8 }
  0xbb   :  { %v587_v3 = vshrl.u32 %v569_v16, %v585_v0  ;;  %v676_v10 = vsel %vm674_vm3, %v675_v18, %v8200_v62  ;;  %v424_v22 = vsub.s32 32, %v423_v19  ;;  %v373_v27 = vclz %v6471_v12 }
  0xbc   :  { %v677_v28 = vadd.s32 %v676_v10, %v672_v2  ;;  %v586_v29 = vshll.u32 %v8164_v54, %v584_v55  ;;  %v417_v57 = vor.u32 8388608, %v416_v21  ;;  %v241_v30 = vmul.f32 %v8053_v33, %v96_v25 }
  0xbd   :  { %v427_v35 = vshrl.u32 %v12467_v11, %v424_v22  ;;  %v430_v37 = vshrl.u32 %v12464_v13, %v424_v22  ;;  %v8220_v38 = vadd.f32 %v8058_v34, %v242_v23  ;;  %v591_v45 = vshll.u32 %v590_v26, 23 }
  0xbe   :  { %v678_v56 = vadd.s32 536870912, %v677_v28  ;;  %v588_v31 = vor.u32 %v587_v3, %v586_v29  ;;  %v6472_v46 = vadd.s32 4294967294, %v373_v27  ;;  %v433_v48 = vshrl.u32 %v12462_v15, %v424_v22 }
  0xbf   :  { %12595 = vst [vmem:[#allocation5_spill] sm:$0xff] %v8220_v38  ;;  %v426_v54 = vshll.u32 %v12469_v7, %v423_v19  ;;  %v429_v49 = vshll.u32 %v12467_v11, %v423_v19  ;;  %v432_v50 = vshll.u32 %v12464_v13, %v423_v19  ;;  %v436_v52 = vshrl.u32 %v12460_v17, %v424_v22 }
  0xc0   :  { %v8222_v47 = vshrl.u32 %v678_v56, 30  ;;  %v422_v9 = vshrl.u32 %v421_v6, 5  ;;  %v435_v55 = vshll.u32 %v12462_v15, %v423_v19  ;;  %v8232_v58 = vadd.f32 %v8058_v34, %v241_v30 }
  0xc1   :  { %v599_v59 = vsub.s32 4, %v8153_v43  ;;  %v428_v62 = vor.u32 %v427_v35, %v426_v54  ;;  %v431_v0 = vor.u32 %v430_v37, %v429_v49  ;;  %v434_v1 = vor.u32 %v433_v48, %v432_v50 }
  0xc2   :  { %v680_v53 = vshll.u32 %v8222_v47, 30  ;;  %12596 = vst [vmem:[#allocation6_spill] sm:$0xff] %v8232_v58  ;;  %v592_v8 = vor.u32 4788187, %v591_v45  ;;  %v437_v14 = vor.u32 %v436_v52, %v435_v55  ;;  %v457_v16 = vshll.u32 %v417_v57, 8 }
  0xc3   :  { %v595_v18 = vcvt.s32.f32 %v588_v31  ;;  %vm6473_vm4 = vcmp.lt.s32.totalorder %v6472_v46, 0  ;;  %v438_v2 = vshll.u32 %v12460_v17, %v423_v19  ;;  %v439_v6 = vshrl.u32 %v12458_v24, %v424_v22 }
  0xc4   :  { %v8235_v12 = vsub.s32 %v677_v28, %v680_v53  ;;  %vm441_vm5 = vcmp.lt.s32.totalorder %v422_v9, 1  ;;  %vm442_vm6 = vcmp.lt.s32.totalorder %v422_v9, 2  ;;  %vm444_vm7 = vcmp.lt.s32.totalorder %v422_v9, 4 }
  0xc5   :  { %v440_v3 = vor.u32 %v439_v6, %v438_v2  ;;  %vm443_vm8 = vcmp.lt.s32.totalorder %v422_v9, 3  ;;  %v446_v10 = vsel %vm444_vm7, %v434_v1, 2102212464  ;;  %v449_v23 = vsel %vm441_vm5, %v428_v62, %v431_v0 }
  0xc6   :  { %v683_v21 = vsub.s32 0, %v8235_v12  ;;  %v593_v25 = vand.u32 2147483647, %v592_v8  ;;  %v376_v26 = vsel %vm6473_vm4, 0, %v6472_v46  ;;  %v425_v27 = vshrl.u32 %v12469_v7, %v424_v22 }
  0xc7   :  { %v450_v28 = vsel %vm444_vm7, %v437_v14, 920167782  ;;  %v453_v19 = vsel %vm441_vm5, %v431_v0, %v434_v1  ;;  %v454_v57 = vsel %vm444_vm7, %v440_v3, 1326507024  ;;  %v447_v31 = vsel %vm443_vm8, %v431_v0, %v446_v10 }
  0xc8   :  { %v6483_v29 = vmin.u32 %v683_v21, %v8235_v12  ;;  %v451_v56 = vsel %vm443_vm8, %v434_v1, %v450_v28  ;;  %v445_v30 = vsel %vm441_vm5, %v425_v27, %v428_v62  ;;  %v455_v37 = vsel %vm443_vm8, %v437_v14, %v454_v57 }
  0xc9   :  { %v452_v35 = vsel %vm442_vm6, %v449_v23, %v451_v56  ;;  %v381_v45 = vsub.s32 4294967266, %v376_v26  ;;  %v456_v48 = vsel %vm442_vm6, %v453_v19, %v455_v37  ;;  %v596_v46 = vmul.f32 %v595_v18, %v593_v25 }
  0xca   :  { %v8244_v54 = vmul.u32.u64.low %v457_v16, %v452_v35  ;;  %v8245_v49 = vmul.u32.u64.high %v457_v16, %v452_v35, %v8244_v54  ;;  %v8248_v22 = vmul.u32.u64.low %v457_v16, %v456_v48  ;;  %v8249_v50 = vmul.u32.u64.high %v457_v16, %v456_v48, %v8248_v22 }
  0xcb   :  { %v828_v52 = vand.u32 2139095040, %v8220_v38  ;;  %v685_v53 = vclz %v6483_v29  ;;  %v448_v55 = vsel %vm442_vm6, %v445_v30, %v447_v31  ;;  %v724_v62 = vand.u32 2139095040, %v8232_v58 }
  0xcc   :  { %v600_v1 = vsel %vm515_vm9, %v599_v59, %v8153_v43  ;;  %v467_v8 = vadd.s32 1, %v8245_v49  ;;  %v12453_v14 = vand.u32 2147483647, %v8220_v38  ;;  %v597_v2 = vxor.u32 2147483648, %v596_v46 }
  0xcd   :  { %v829_v0 = vshrl.u32 %v828_v52, 23  ;;  %v725_v18 = vshrl.u32 %v724_v62, 23  ;;  %v377_v6 = vsub.s32 32, %v376_v26  ;;  %v382_v21 = vadd.s32 127, %v381_v45 }
  0xce   :  { %v464_v3 = vmul.u32 %v457_v16, %v448_v55  ;;  %v6484_v9 = vadd.s32 4294967294, %v685_v53  ;;  %vm466_vm10 = vc.u32 %v8249_v50, %v8244_v54  ;;  %v361_v25 = vadd.s32 %v8145_v36, %v8151_v41 }
  0xcf   :  { %v6490_v10 = vadd.s32 4294967169, %v829_v0  ;;  %v6486_v23 = vadd.s32 4294967169, %v725_v18  ;;  %v468_v43 = vsel %vm466_vm10, %v467_v8, %v8245_v49  ;;  %vm8267_vm11 = vcmp.le.f32.partialorder %v513_v42, 0.7853982  ;;  %v111_v0 = vpop.permute.xlu1 %110 }
  0xd0   :  { %v469_v27 = vadd.s32 %v468_v43, %v464_v3  ;;  %v598_v29 = vsel %vm515_vm9, %v597_v2, %v596_v46  ;;  %v602_v56 = vsel %vm8267_vm11, 0, %v600_v1  ;;  %v379_v19 = vshrl.u32 %v361_v25, %v377_v6 }
  0xd1   :  { %v835_v28 = vadd.s32 1, %v6490_v10  ;;  %v731_v16 = vadd.s32 1, %v6486_v23  ;;  %v383_v57 = vshll.u32 %v382_v21, 23  ;;  %vm6485_vm12 = vcmp.lt.s32.totalorder %v6484_v9, 0 }
  0xd2   :  { %v470_v36 = vadd.s32 536870912, %v469_v27  ;;  %v832_v41 = vand.u32 8388607, %v12453_v14  ;;  %v378_v42 = vshll.u32 %v8186_v32, %v376_v26  ;;  %v8278_v31 = vadd.s32 3, %v602_v56 }
  0xd3   :  { %vm836_vm13 = vcmp.gt.s32.totalorder %v835_v28, 0  ;;  %vm732_vm14 = vcmp.gt.s32.totalorder %v731_v16, 0  ;;  %v8282_v35 = vadd.s32 %v8199_v61, %v8197_v60  ;;  %v8289_v48 = vsel %vm8267_vm11, %v8063_v39, %v598_v29 }
  0xd4   :  { %v837_v30 = vsel %vm836_vm13, %v835_v28, 0  ;;  %v8284_v37 = vshrl.u32 %v470_v36, 30  ;;  %v8291_v49 = vor.u32 %v379_v19, %v378_v42  ;;  %v8293_v46 = vor.u32 4788187, %v383_v57 }
  0xd5   :  { %v839_v45 = vand.u32 31, %v837_v30  ;;  %v8295_v32 = vsel %vm6485_vm12, 0, %v6484_v9  ;;  %v833_v22 = vor.u32 8388608, %v832_v41  ;;  %v8298_v60 = vsel %vm732_vm14, %v731_v16, 0 }
  0xd6   :  { %12599 = vst [vmem:[#allocation7_spill] sm:$0xff] %v8284_v37  ;;  %v472_v26 = vshll.u32 %v8284_v37, 30  ;;  %v838_v61 = vshrl.u32 %v837_v30, 5  ;;  %v12454_v25 = vand.u32 2147483647, %v8232_v58  ;;  %v244_v43 = vmul.f32 %v8053_v33, %v111_v0 }
  0xd7   :  { %v840_v52 = vsub.s32 32, %v839_v45  ;;  %v842_v53 = vshll.u32 %v12469_v7, %v839_v45  ;;  %v845_v55 = vshll.u32 %v12467_v11, %v839_v45  ;;  %v848_v62 = vshll.u32 %v12464_v13, %v839_v45 }
  0xd8   :  { %v851_v18 = vshll.u32 %v12462_v15, %v839_v45  ;;  %v854_v2 = vshll.u32 %v12460_v17, %v839_v45  ;;  %v8307_v6 = vsub.s32 %v469_v27, %v472_v26  ;;  %v693_v59 = vsub.s32 4294967266, %v8295_v32 }
  0xd9   :  { %v843_v1 = vshrl.u32 %v12467_v11, %v840_v52  ;;  %v846_v8 = vshrl.u32 %v12464_v13, %v840_v52  ;;  %v849_v21 = vshrl.u32 %v12462_v15, %v840_v52  ;;  %v852_v3 = vshrl.u32 %v12460_v17, %v840_v52 }
  0xda   :  { %v855_v9 = vshrl.u32 %v12458_v24, %v840_v52  ;;  %v841_v27 = vshrl.u32 %v12469_v7, %v840_v52  ;;  %vm857_vm15 = vcmp.lt.s32.totalorder %v838_v61, 1  ;;  %v873_v56 = vshll.u32 %v833_v22, 8 }
  0xdb   :  { %v844_v10 = vor.u32 %v843_v1, %v842_v53  ;;  %v847_v23 = vor.u32 %v846_v8, %v845_v55  ;;  %v850_v28 = vor.u32 %v849_v21, %v848_v62  ;;  %v853_v16 = vor.u32 %v852_v3, %v851_v18  ;;  %v106_v1 = vpop.permute.xlu0 %105 }
  0xdc   :  { %v856_v29 = vor.u32 %v855_v9, %v854_v2  ;;  %v735_v19 = vand.u32 31, %v8298_v60  ;;  %v475_v57 = vsub.s32 0, %v8307_v6  ;;  %vm858_vm0 = vcmp.lt.s32.totalorder %v838_v61, 2 }
  0xdd   :  { %vm860_vm1 = vcmp.lt.s32.totalorder %v838_v61, 4  ;;  %v865_v36 = vsel %vm857_vm15, %v844_v10, %v847_v23  ;;  %vm859_vm2 = vcmp.lt.s32.totalorder %v838_v61, 3  ;;  %v861_v41 = vsel %vm857_vm15, %v841_v27, %v844_v10 }
  0xde   :  { %v862_v42 = vsel %vm860_vm1, %v850_v28, 2102212464  ;;  %v866_v30 = vsel %vm860_vm1, %v853_v16, 920167782  ;;  %v869_v53 = vsel %vm857_vm15, %v847_v23, %v850_v28  ;;  %v870_v55 = vsel %vm860_vm1, %v856_v29, 1326507024 }
  0xdf   :  { %v863_v45 = vsel %vm859_vm2, %v847_v23, %v862_v42  ;;  %v867_v26 = vsel %vm859_vm2, %v850_v28, %v866_v30  ;;  %v689_v62 = vsub.s32 32, %v8295_v32  ;;  %v694_v52 = vadd.s32 127, %v693_v59 }
  0xe0   :  { %v868_v22 = vsel %vm858_vm0, %v865_v36, %v867_v26  ;;  %v871_v0 = vsel %vm859_vm2, %v853_v16, %v870_v55  ;;  %v864_v8 = vsel %vm858_vm0, %v861_v41, %v863_v45  ;;  %v703_v3 = vsub.s32 4, %v8222_v47 }
  0xe1   :  { %v872_v18 = vsel %vm858_vm0, %v869_v53, %v871_v0  ;;  %v8322_v2 = vmul.u32.u64.low %v873_v56, %v868_v22  ;;  %v8323_v21 = vmul.u32.u64.high %v873_v56, %v868_v22, %v8322_v2  ;;  %v736_v23 = vsub.s32 32, %v735_v19 }
  0xe2   :  { %v8327_v9 = vmul.u32.u64.low %v873_v56, %v872_v18  ;;  %v8328_v10 = vmul.u32.u64.high %v873_v56, %v872_v18, %v8327_v9  ;;  %v690_v59 = vshll.u32 %v8235_v12, %v8295_v32  ;;  %v6475_v28 = vmin.u32 %v475_v57, %v8307_v6 }
  0xe3   :  { %v728_v16 = vand.u32 8388607, %v12454_v25  ;;  %v243_v61 = vmul.f32 %v8053_v33, %v106_v1  ;;  %v691_v29 = vshrl.u32 %v8282_v35, %v689_v62  ;;  %v695_v27 = vshll.u32 %v694_v52, 23 }
  0xe4   :  { %v880_v36 = vmul.u32 %v873_v56, %v864_v8  ;;  %v8338_v41 = vadd.f32 %v8058_v34, %v244_v43  ;;  %v883_v42 = vadd.s32 1, %v8323_v21  ;;  %v739_v30 = vshrl.u32 %v12467_v11, %v736_v23 }
  0xe5   :  { %v742_v12 = vshrl.u32 %v12464_v13, %v736_v23  ;;  %v745_v32 = vshrl.u32 %v12462_v15, %v736_v23  ;;  %vm882_vm3 = vc.u32 %v8328_v10, %v8322_v2  ;;  %v738_v57 = vshll.u32 %v12469_v7, %v735_v19 }
  0xe6   :  { %12600 = vst [vmem:[#allocation8_spill] sm:$0xff] %v8338_v41  ;;  %v741_v35 = vshll.u32 %v12467_v11, %v735_v19  ;;  %v744_v56 = vshll.u32 %v12464_v13, %v735_v19  ;;  %v477_v45 = vclz %v6475_v28  ;;  %v884_v43 = vsel %vm882_vm3, %v883_v42, %v8323_v21 }
  0xe7   :  { %v729_v26 = vor.u32 8388608, %v728_v16  ;;  %v734_v53 = vshrl.u32 %v8298_v60, 5  ;;  %v885_v55 = vadd.s32 %v884_v43, %v880_v36  ;;  %v740_v62 = vor.u32 %v739_v30, %v738_v57 }
  0xe8   :  { %v743_v52 = vor.u32 %v742_v12, %v741_v35  ;;  %v746_v22 = vor.u32 %v745_v32, %v744_v56  ;;  %v747_v0 = vshll.u32 %v12462_v15, %v735_v19  ;;  %v748_v1 = vshrl.u32 %v12460_v17, %v736_v23 }
  0xe9   :  { %v750_v8 = vshll.u32 %v12460_v17, %v735_v19  ;;  %v751_v18 = vshrl.u32 %v12458_v24, %v736_v23  ;;  %vm619_vm4 = vcmp.lt.s32.totalorder %v8078_v51, 0  ;;  %v692_v9 = vor.u32 %v691_v29, %v690_v59 }
  0xea   :  { %v696_v28 = vor.u32 4788187, %v695_v27  ;;  %v886_v21 = vadd.s32 536870912, %v885_v55  ;;  %v8357_v16 = vadd.f32 %v8058_v34, %v243_v61  ;;  %v6476_v60 = vadd.s32 4294967294, %v477_v45 }
  0xeb   :  { %v749_v36 = vor.u32 %v748_v1, %v747_v0  ;;  %v752_v42 = vor.u32 %v751_v18, %v750_v8  ;;  %v769_v30 = vshll.u32 %v729_v26, 8  ;;  %v737_v32 = vshrl.u32 %v12469_v7, %v736_v23 }
  0xec   :  { %12601 = vst [vmem:[#allocation9_spill] sm:$0xff] %v8357_v16  ;;  %v8359_v12 = vshrl.u32 %v886_v21, 30  ;;  %vm753_vm5 = vcmp.lt.s32.totalorder %v734_v53, 1  ;;  %vm756_vm6 = vcmp.lt.s32.totalorder %v734_v53, 4  ;;  %vm8364_vm7 = vcmp.le.f32.partialorder %v617_v4, 0.7853982 }
  0xed   :  { %vm755_vm8 = vcmp.lt.s32.totalorder %v734_v53, 3  ;;  %v758_v59 = vsel %vm756_vm6, %v746_v22, 2102212464  ;;  %v761_v34 = vsel %vm753_vm5, %v740_v62, %v743_v52  ;;  %v762_v61 = vsel %vm756_vm6, %v749_v36, 920167782 }
  0xee   :  { %12602 = vst [vmem:[#allocation10_spill] sm:$0xff] %v8359_v12  ;;  %v888_v29 = vshll.u32 %v8359_v12, 30  ;;  %vm754_vm9 = vcmp.lt.s32.totalorder %v734_v53, 2  ;;  %v763_v27 = vsel %vm755_vm8, %v746_v22, %v762_v61  ;;  %v765_v57 = vsel %vm753_vm5, %v743_v52, %v746_v22 }
  0xef   :  { %vm6477_vm10 = vcmp.lt.s32.totalorder %v6476_v60, 0  ;;  %v764_v23 = vsel %vm754_vm9, %v761_v34, %v763_v27  ;;  %v766_v35 = vsel %vm756_vm6, %v752_v42, 1326507024  ;;  %v1036_v4 = vand.u32 2139095040, %v8338_v41 }
  0xf0   :  { %v8373_v56 = vsub.s32 %v885_v55, %v888_v29  ;;  %v757_v45 = vsel %vm753_vm5, %v737_v32, %v740_v62  ;;  %v759_v43 = vsel %vm755_vm8, %v743_v52, %v758_v59  ;;  %v767_v26 = vsel %vm755_vm8, %v749_v36, %v766_v35 }
  0xf1   :  { %v768_v0 = vsel %vm754_vm9, %v765_v57, %v767_v26  ;;  %v8377_v1 = vmul.u32.u64.low %v769_v30, %v764_v23  ;;  %v8378_v8 = vmul.u32.u64.high %v769_v30, %v764_v23, %v8377_v1  ;;  %v1037_v18 = vshrl.u32 %v1036_v4, 23 }
  0xf2   :  { %v385_v22 = vand.u32 2147483647, %v8293_v46  ;;  %v891_v21 = vsub.s32 0, %v8373_v56  ;;  %v8383_v42 = vmul.u32.u64.low %v769_v30, %v768_v0  ;;  %v8384_v34 = vmul.u32.u64.high %v769_v30, %v768_v0, %v8383_v42 }
  0xf3   :  { %v697_v55 = vand.u32 2147483647, %v696_v28  ;;  %v704_v62 = vsel %vm619_vm4, %v703_v3, %v8222_v47  ;;  %v760_v52 = vsel %vm754_vm9, %v757_v45, %v759_v43  ;;  %v6498_v36 = vadd.s32 4294967169, %v1037_v18 }
  0xf4   :  { %v387_v32 = vcvt.s32.f32 %v8291_v49  ;;  %v699_v59 = vcvt.s32.f32 %v692_v9  ;;  %v8394_v46 = vsel %vm6477_vm10, 0, %v6476_v60  ;;  %v12452_v61 = vand.u32 2147483647, %v8338_v41 }
  0xf5   :  { %v6491_v29 = vmin.u32 %v891_v21, %v8373_v56  ;;  %v779_v28 = vadd.s32 1, %v8378_v8  ;;  %v1043_v27 = vadd.s32 1, %v6498_v36  ;;  %v932_v57 = vand.u32 2139095040, %v8357_v16 }
  0xf6   :  { %v8400_v23 = vmul.f32 %v387_v32, %v385_v22  ;;  %v706_v47 = vsel %vm8364_vm7, 0, %v704_v62  ;;  %v776_v3 = vmul.u32 %v769_v30, %v760_v52  ;;  %vm778_vm11 = vc.u32 %v8384_v34, %v8377_v1 }
  0xf7   :  { %v8406_v49 = vmul.f32 %v699_v59, %v697_v55  ;;  %v481_v53 = vsub.s32 32, %v8394_v46  ;;  %v780_v9 = vsel %vm778_vm11, %v779_v28, %v8378_v8  ;;  %vm1044_vm12 = vcmp.gt.s32.totalorder %v1043_v27, 0 }
  0xf8   :  { %v485_v60 = vsub.s32 4294967266, %v8394_v46  ;;  %v781_v35 = vadd.s32 %v780_v9, %v776_v3  ;;  %v1040_v4 = vand.u32 8388607, %v12452_v61  ;;  %v1045_v45 = vsel %vm1044_vm12, %v1043_v27, 0  ;;  %v121_v9 = vpop.permute.xlu1 %120 }
  0xf9   :  { %7431 = vcosq.f32 %v8289_v48  ;;  %v893_v30 = vclz %v6491_v29  ;;  %v1047_v43 = vand.u32 31, %v1045_v45  ;;  %v933_v26 = vshrl.u32 %v932_v57, 23 }
  0xfa   :  { %7433 = vsinq.f32 %v8289_v48  ;;  %v8416_v0 = vand.u32 3, %v8278_v31  ;;  %v465_v8 = vadd.s32 %v8244_v54, %v8249_v50  ;;  %v782_v18 = vadd.s32 536870912, %v781_v35 }
  0xfb   :  { %v701_v21 = vxor.u32 2147483648, %v8406_v49  ;;  %v710_v42 = vadd.s32 3, %v706_v47  ;;  %v1048_v55 = vsub.s32 32, %v1047_v43  ;;  %v8424_v52 = vadd.s32 127, %v485_v60 }
  0xfc   :  { %12605 = vst [vmem:[#allocation11_spill] sm:$0xff] %v8416_v0  ;;  %v8422_v62 = vshrl.u32 %v465_v8, %v481_v53  ;;  %v8426_v36 = vshrl.u32 %v782_v18, 30  ;;  %v1041_v48 = vor.u32 8388608, %v1040_v4  ;;  %v6492_v32 = vadd.s32 4294967294, %v893_v30 }
  0xfd   :  { %v1051_v31 = vshrl.u32 %v12467_v11, %v1048_v55  ;;  %v1054_v59 = vshrl.u32 %v12464_v13, %v1048_v55  ;;  %v6494_v54 = vadd.s32 4294967169, %v933_v26  ;;  %v1050_v29 = vshll.u32 %v12469_v7, %v1047_v43 }
  0xfe   :  { %12606 = vst [vmem:[#allocation12_spill] sm:$0xff] %v8426_v36  ;;  %v784_v50 = vshll.u32 %v8426_v36, 30  ;;  %v1053_v28 = vshll.u32 %v12467_v11, %v1047_v43  ;;  %v1057_v27 = vshrl.u32 %v12462_v15, %v1048_v55  ;;  %v1046_v57 = vshrl.u32 %v1045_v45, 5 }
  0xff   :  { %v1056_v47 = vshll.u32 %v12464_v13, %v1047_v43  ;;  %v1059_v3 = vshll.u32 %v12462_v15, %v1047_v43  ;;  %v1060_v53 = vshrl.u32 %v12460_v17, %v1048_v55  ;;  %v1052_v4 = vor.u32 %v1051_v31, %v1050_v29 }
 0x100   :  { %v8437_v60 = vsub.s32 %v781_v35, %v784_v50  ;;  %v1055_v30 = vor.u32 %v1054_v59, %v1053_v28  ;;  %v12457_v26 = vand.u32 2147483647, %v8357_v16  ;;  %v1062_v61 = vshll.u32 %v12460_v17, %v1047_v43 }
 0x101   :  { %v1058_v8 = vor.u32 %v1057_v27, %v1056_v47  ;;  %v1061_v18 = vor.u32 %v1060_v53, %v1059_v3  ;;  %v1063_v14 = vshrl.u32 %v12458_v24, %v1048_v55  ;;  %v487_v45 = vshll.u32 %v8424_v52, 23 }
 0x102   :  { %vm6493_vm13 = vcmp.lt.s32.totalorder %v6492_v32, 0  ;;  %v1081_v25 = vshll.u32 %v1041_v48, 8  ;;  %v246_v63 = vmul.f32 %v8053_v33, %v121_v9  ;;  %v787_v35 = vsub.s32 0, %v8437_v60 }
 0x103   :  { %v8444_v44 = vpop.eup %7431  ;;  %v1064_v31 = vor.u32 %v1063_v14, %v1062_v61  ;;  %vm1065_vm14 = vcmp.lt.s32.totalorder %v1046_v57, 1  ;;  %v939_v59 = vadd.s32 1, %v6494_v54  ;;  %vm1067_vm15 = vcmp.lt.s32.totalorder %v1046_v57, 3 }
 0x104   :  { %12607 = vst [vmem:[#allocation13_spill] sm:$0xff] %v8444_v44  ;;  %v8447_v50 = vpop.eup %7433  ;;  %vm1068_vm0 = vcmp.lt.s32.totalorder %v1046_v57, 4  ;;  %v1073_v43 = vsel %vm1065_vm14, %v1052_v4, %v1055_v30  ;;  %v936_v52 = vand.u32 8388607, %v12457_v26  ;;  %v1077_v33 = vsel %vm1065_vm14, %v1055_v30, %v1058_v8 }
 0x105   :  { %12608 = vst [vmem:[#allocation14_spill] sm:$0xff] %v8447_v50  ;;  %v1070_v29 = vsel %vm1068_vm0, %v1058_v8, 2102212464  ;;  %v1074_v48 = vsel %vm1068_vm0, %v1061_v18, 920167782  ;;  %v8454_v27 = vsel %vm6493_vm13, 0, %v6492_v32  ;;  %v1049_v14 = vshrl.u32 %v12469_v7, %v1048_v55 }
 0x106   :  { %v1078_v28 = vsel %vm1068_vm0, %v1064_v31, 1326507024  ;;  %vm1066_vm1 = vcmp.lt.s32.totalorder %v1046_v57, 2  ;;  %v1075_v61 = vsel %vm1067_vm15, %v1058_v8, %v1074_v48  ;;  %v6487_v54 = vmin.u32 %v787_v35, %v8437_v60 }
 0x107   :  { %v1076_v47 = vsel %vm1066_vm1, %v1073_v43, %v1075_v61  ;;  %v1079_v3 = vsel %vm1067_vm15, %v1061_v18, %v1078_v28  ;;  %vm940_vm2 = vcmp.gt.s32.totalorder %v939_v59, 0  ;;  %v1069_v53 = vsel %vm1065_vm14, %v1049_v14, %v1052_v4  ;;  %v116_v61 = vpop.permute.xlu0 %115 }
 0x108   :  { %v1071_v9 = vsel %vm1067_vm15, %v1055_v30, %v1070_v29  ;;  %v1080_v31 = vsel %vm1066_vm1, %v1077_v33, %v1079_v3  ;;  %v941_v32 = vsel %vm940_vm2, %v939_v59, 0  ;;  %v8471_v8 = vand.u32 3, %v710_v42 }
 0x109   :  { %v8464_v26 = vmul.u32.u64.low %v1081_v25, %v1080_v31  ;;  %v8465_v22 = vmul.u32.u64.high %v1081_v25, %v1080_v31, %v8464_v26  ;;  %v8467_v55 = vmul.u32.u64.low %v1081_v25, %v1076_v47  ;;  %v8468_v24 = vmul.u32.u64.high %v1081_v25, %v1076_v47, %v8467_v55 }
 0x10a   :  { %12609 = vst [vmem:[#allocation15_spill] sm:$0xff] %v8471_v8  ;;  %v482_v18 = vshll.u32 %v8307_v6, %v8394_v46  ;;  %v901_v35 = vsub.s32 4294967266, %v8454_v27  ;;  %v943_v4 = vand.u32 31, %v941_v32  ;;  %v8481_v30 = vsel %vm619_vm4, %v701_v21, %v8406_v49 }
 0x10b   :  { %v881_v26 = vadd.s32 %v8322_v2, %v8328_v10  ;;  %v789_v59 = vclz %v6487_v54  ;;  %v1072_v42 = vsel %vm1066_vm1, %v1069_v53, %v1071_v9  ;;  %v8489_v6 = vor.u32 4788187, %v487_v45  ;;  %v8498_v2 = vld [vmem:[%s12441_s2 + $0x1] ss:$0 sm:$0xff] }
 0x10c   :  { %v8487_v43 = vor.u32 %v8422_v62, %v482_v18  ;;  %v937_v46 = vor.u32 8388608, %v936_v52  ;;  %v944_v29 = vsub.s32 32, %v943_v4  ;;  %v897_v48 = vsub.s32 32, %v8454_v27 }
 0x10d   :  { %vm1090_vm3 = vc.u32 %v8465_v22, %v8467_v55  ;;  %v1091_v49 = vadd.s32 1, %v8468_v24  ;;  %v8501_v10 = vadd.f32 %v8498_v2, %v246_v63  ;;  %v902_v21 = vadd.s32 127, %v901_v35 }
 0x10e   :  { %v1088_v62 = vmul.u32 %v1081_v25, %v1072_v42  ;;  %v946_v57 = vshll.u32 %v12469_v7, %v943_v4  ;;  %v947_v45 = vshrl.u32 %v12467_v11, %v944_v29  ;;  %v6488_v52 = vadd.s32 4294967294, %v789_v59  ;;  %v8517_v59 = vld [vmem:[%s12441_s2] ss:$0 sm:$0xff] }
 0x10f   :  { %12610 = vst [vmem:[#allocation16_spill] sm:$0xff] %v8501_v10  ;;  %v1092_v33 = vsel %vm1090_vm3, %v1091_v49, %v8468_v24  ;;  %v949_v28 = vshll.u32 %v12467_v11, %v943_v4  ;;  %v950_v14 = vshrl.u32 %v12464_v13, %v944_v29  ;;  %v942_v47 = vshrl.u32 %v941_v32, 5 }
 0x110   :  { %v1093_v54 = vadd.s32 %v1092_v33, %v1088_v62  ;;  %v948_v3 = vor.u32 %v947_v45, %v946_v57  ;;  %v952_v63 = vshll.u32 %v12464_v13, %v943_v4  ;;  %v953_v25 = vshrl.u32 %v12462_v15, %v944_v29 }
 0x111   :  { %v951_v53 = vor.u32 %v950_v14, %v949_v28  ;;  %v955_v9 = vshll.u32 %v12462_v15, %v943_v4  ;;  %v956_v31 = vshrl.u32 %v12460_v17, %v944_v29  ;;  %v899_v18 = vshrl.u32 %v881_v26, %v897_v48 }
 0x112   :  { %v1094_v35 = vadd.s32 536870912, %v1093_v54  ;;  %v8512_v24 = vshll.u32 %v937_v46, 8  ;;  %v245_v32 = vmul.f32 %v8517_v59, %v116_v61  ;;  %vm307_vm4 = vcmp.lt.s32.totalorder %v8066_v40, 0 }
 0x113   :  { %v954_v42 = vor.u32 %v953_v25, %v952_v63  ;;  %v957_v49 = vor.u32 %v956_v31, %v955_v9  ;;  %v958_v62 = vshll.u32 %v12460_v17, %v943_v4  ;;  %v12611_v57 = vmov 1326507024  }
 0x114   :  { %v959_v45 = vshrl.u32 %v12611_v57, %v944_v29  ;;  %v903_v33 = vshll.u32 %v902_v21, 23  ;;  %vm6489_vm5 = vcmp.lt.s32.totalorder %v6488_v52, 0  ;;  %v8523_v26 = vshrl.u32 %v1094_v35, 30 }
 0x115   :  { %vm961_vm6 = vcmp.lt.s32.totalorder %v942_v47, 1  ;;  %vm964_vm8 = vcmp.lt.s32.totalorder %v942_v47, 4  ;;  %v1244_v28 = vand.u32 2139095040, %v8501_v10  ;;  %v945_v14 = vshrl.u32 %v12469_v7, %v944_v29 }
 0x116   :  { %12612 = vst [vmem:[#allocation17_spill] sm:$0xff] %v8523_v26  ;;  %v960_v46 = vor.u32 %v959_v45, %v958_v62  ;;  %v969_v48 = vsel %vm961_vm6, %v948_v3, %v951_v53  ;;  %vm963_vm9 = vcmp.lt.s32.totalorder %v942_v47, 3  ;;  %v966_v61 = vsel %vm964_vm8, %v954_v42, 2102212464 }
 0x117   :  { %v970_v63 = vsel %vm964_vm8, %v957_v49, 920167782  ;;  %vm962_vm10 = vcmp.lt.s32.totalorder %v942_v47, 2  ;;  %v973_v4 = vsel %vm961_vm6, %v951_v53, %v954_v42  ;;  %v898_v21 = vshll.u32 %v8373_v56, %v8454_v27 }
 0x118   :  { %v971_v25 = vsel %vm963_vm9, %v954_v42, %v970_v63  ;;  %v974_v9 = vsel %vm964_vm8, %v960_v46, 1326507024  ;;  %v1096_v31 = vshll.u32 %v8523_v26, 30  ;;  %v965_v35 = vsel %vm961_vm6, %v945_v14, %v948_v3 }
 0x119   :  { %v972_v62 = vsel %vm962_vm10, %v969_v48, %v971_v25  ;;  %v967_v45 = vsel %vm963_vm9, %v951_v53, %v966_v61  ;;  %v975_v17 = vsel %vm963_vm9, %v957_v49, %v974_v9  ;;  %v8537_v13 = vsel %vm6489_vm5, 0, %v6488_v52 }
 0x11a   :  { %v8532_v15 = vmul.u32.u64.low %v8512_v24, %v972_v62  ;;  %v8533_v29 = vmul.u32.u64.high %v8512_v24, %v972_v62, %v8532_v15  ;;  %v976_v42 = vsel %vm962_vm10, %v973_v4, %v975_v17  ;;  %v1245_v46 = vshrl.u32 %v1244_v28, 23 }
 0x11b   :  { %v8541_v56 = vadd.f32 %v8498_v2, %v245_v32  ;;  %v900_v27 = vor.u32 %v899_v18, %v898_v21  ;;  %v904_v3 = vor.u32 4788187, %v903_v33  ;;  %v12614_v49 = vxor.u32 2147483648, %v8400_v23 }
 0x11c   :  { %v8544_v48 = vmul.u32.u64.low %v8512_v24, %v976_v42  ;;  %v8545_v53 = vmul.u32.u64.high %v8512_v24, %v976_v42, %v8544_v48  ;;  %v968_v52 = vsel %vm962_vm10, %v965_v35, %v967_v45  ;;  %v12466_v17 = vand.u32 2147483647, %v8501_v10 }
 0x11d   :  { %12613 = vst [vmem:[#allocation18_spill] sm:$0xff] %v8541_v56  ;;  %v8552_v14 = vsel %vm307_vm4, %v12614_v49, %v8400_v23  ;;  %v6506_v28 = vadd.s32 4294967169, %v1245_v46  ;;  %v705_v18 = vsel %vm8364_vm7, %v8078_v51, %v8481_v30  ;;  %v797_v32 = vsub.s32 4294967266, %v8537_v13 }
 0x11e   :  { %v8561_v33 = vsub.s32 %v1093_v54, %v1096_v31  ;;  %v987_v61 = vadd.s32 1, %v8533_v29  ;;  %v489_v63 = vand.u32 2147483647, %v8489_v6  ;;  %v491_v23 = vcvt.s32.f32 %v8487_v43 }
 0x11f   :  { %v1251_v47 = vadd.s32 1, %v6506_v28  ;;  %v1140_v25 = vand.u32 2139095040, %v8541_v56  ;;  %v905_v4 = vand.u32 2147483647, %v904_v3  ;;  %v907_v9 = vcvt.s32.f32 %v900_v27 }
 0x120   :  { %v984_v21 = vmul.u32 %v8512_v24, %v968_v52  ;;  %vm986_vm7 = vc.u32 %v8545_v53, %v8532_v15  ;;  %v793_v19 = vsub.s32 32, %v8537_v13  ;;  %v1248_v54 = vand.u32 8388607, %v12466_v17 }
 0x121   :  { %v988_v30 = vsel %vm986_vm7, %v987_v61, %v8533_v29  ;;  %vm1252_vm11 = vcmp.gt.s32.totalorder %v1251_v47, 0  ;;  %v8574_v6 = vadd.s32 127, %v797_v32  ;;  %v1099_v43 = vsub.s32 0, %v8561_v33 }
 0x122   :  { %v989_v31 = vadd.s32 %v988_v30, %v984_v21  ;;  %v1253_v35 = vsel %vm1252_vm11, %v1251_v47, 0  ;;  %7435 = vcosq.f32 %v705_v18  ;;  %v777_v24 = vadd.s32 %v8377_v1, %v8384_v34 }
 0x123   :  { %v1255_v62 = vand.u32 31, %v1253_v35  ;;  %v1141_v45 = vshrl.u32 %v1140_v25, 23  ;;  %7437 = vsinq.f32 %v705_v18  ;;  %v8579_v42 = vmul.f32 %v491_v23, %v489_v63 }
 0x124   :  { %v8581_v29 = vmul.f32 %v907_v9, %v905_v4  ;;  %v990_v46 = vadd.s32 536870912, %v989_v31  ;;  %v794_v27 = vshll.u32 %v8437_v60, %v8537_v13  ;;  %v795_v3 = vshrl.u32 %v777_v24, %v793_v19 }
 0x125   :  { %v1249_v48 = vor.u32 8388608, %v1248_v54  ;;  %v1256_v49 = vsub.s32 32, %v1255_v62  ;;  %v799_v52 = vshll.u32 %v8574_v6, 23  ;;  %v6499_v28 = vmin.u32 %v1099_v43, %v8561_v33  ;;  %v131_v6 = vpop.permute.xlu1 %130 }
 0x126   :  { %v8587_v32 = vshrl.u32 %v990_v46, 30  ;;  %v12479_v1 = vand.u32 2147483647, %v8541_v56  ;;  %v1258_v34 = vshll.u32 %v12469_v7, %v1255_v62  ;;  %v1261_v61 = vshll.u32 %v12467_v11, %v1255_v62 }
 0x127   :  { %v1259_v18 = vshrl.u32 %v12467_v11, %v1256_v49  ;;  %v6502_v63 = vadd.s32 4294967169, %v1141_v45  ;;  %v12616_v60 = vmov 2131351028   ;;  %v12617_v25 = vmov 2102212464  }
 0x128   :  { %12615 = vst [vmem:[#allocation19_spill] sm:$0xff] %v8587_v32  ;;  %v992_v13 = vshll.u32 %v8587_v32, 30  ;;  %v1262_v23 = vshrl.u32 %v12616_v60, %v1256_v49  ;;  %v1264_v47 = vshll.u32 %v12616_v60, %v1255_v62  ;;  %v1265_v4 = vshrl.u32 %v12617_v25, %v1256_v49 }
 0x129   :  { %v1254_v9 = vshrl.u32 %v1253_v35, 5  ;;  %v1267_v21 = vshll.u32 %v12617_v25, %v1255_v62  ;;  %v12618_v19 = vmov 920167782   ;;  %v8599_v54 = vshll.u32 %v1249_v48, 8 }
 0x12a   :  { %v1268_v30 = vshrl.u32 %v12618_v19, %v1256_v49  ;;  %v8601_v43 = vsub.s32 %v989_v31, %v992_v13  ;;  %v1260_v24 = vor.u32 %v1259_v18, %v1258_v34  ;;  %v1263_v45 = vor.u32 %v1262_v23, %v1261_v61 }
 0x12b   :  { %v1266_v46 = vor.u32 %v1265_v4, %v1264_v47  ;;  %v1270_v11 = vshll.u32 %v12618_v19, %v1255_v62  ;;  %v1271_v7 = vshrl.u32 %v12611_v57, %v1256_v49  ;;  %v1144_v35 = vand.u32 8388607, %v12479_v1 }
 0x12c   :  { %v1269_v17 = vor.u32 %v1268_v30, %v1267_v21  ;;  %v1101_v26 = vclz %v6499_v28  ;;  %v995_v32 = vsub.s32 0, %v8601_v43  ;;  %v1147_v12 = vadd.s32 1, %v6502_v63  ;;  %v8609_v36 = vpop.eup %7435 }
 0x12d   :  { %v248_v48 = vmul.f32 %v8517_v59, %v131_v6  ;;  %12619 = vst [vmem:[#allocation20_spill] sm:$0xff] %v8609_v36  ;;  %v12620_v31 = vmov 683565275   ;;  %v1272_v18 = vor.u32 %v1271_v7, %v1270_v11  ;;  %vm1273_vm12 = vcmp.lt.s32.totalorder %v1254_v9, 1  ;;  %v8612_v61 = vpop.eup %7437 }
 0x12e   :  { %v1257_v34 = vshrl.u32 %v12620_v31, %v1256_v49  ;;  %vm1276_vm13 = vcmp.lt.s32.totalorder %v1254_v9, 4  ;;  %12621 = vst [vmem:[#allocation21_spill] sm:$0xff] %v8612_v61  ;;  %vm1275_vm14 = vcmp.lt.s32.totalorder %v1254_v9, 3  ;;  %v1281_v13 = vsel %vm1273_vm12, %v1260_v24, %v1263_v45 }
 0x12f   :  { %v1278_v62 = vsel %vm1276_vm13, %v1266_v46, 2102212464  ;;  %v1282_v23 = vsel %vm1276_vm13, %v1269_v17, 920167782  ;;  %v6495_v28 = vmin.u32 %v995_v32, %v8601_v43  ;;  %vm1274_vm15 = vcmp.lt.s32.totalorder %v1254_v9, 2 }
 0x130   :  { %v1283_v47 = vsel %vm1275_vm14, %v1266_v46, %v1282_v23  ;;  %v1285_v63 = vsel %vm1273_vm12, %v1263_v45, %v1266_v46  ;;  %v6500_v4 = vadd.s32 4294967294, %v1101_v26  ;;  %v1277_v21 = vsel %vm1273_vm12, %v1257_v34, %v1260_v24 }
 0x131   :  { %v1284_v30 = vsel %vm1274_vm15, %v1281_v13, %v1283_v47  ;;  %v1286_v6 = vsel %vm1276_vm13, %v1272_v18, 1326507024  ;;  %v1279_v49 = vsel %vm1275_vm14, %v1263_v45, %v1278_v62  ;;  %v8621_v36 = vor.u32 %v795_v3, %v794_v27  ;;  %v126_v27 = vpop.permute.xlu0 %125 }
 0x132   :  { %v1287_v7 = vsel %vm1275_vm14, %v1269_v17, %v1286_v6  ;;  %v8617_v11 = vmul.u32.u64.low %v8599_v54, %v1284_v30  ;;  %v8618_v1 = vmul.u32.u64.high %v8599_v54, %v1284_v30, %v8617_v11  ;;  %v8623_v61 = vor.u32 4788187, %v799_v52 }
 0x133   :  { %v1288_v32 = vsel %vm1274_vm15, %v1285_v63, %v1287_v7  ;;  %vm1148_vm0 = vcmp.gt.s32.totalorder %v1147_v12, 0  ;;  %v997_v46 = vclz %v6495_v28  ;;  %v1280_v17 = vsel %vm1274_vm15, %v1277_v21, %v1279_v49 }
 0x134   :  { %v8627_v26 = vmul.u32.u64.low %v8599_v54, %v1288_v32  ;;  %v8628_v24 = vmul.u32.u64.high %v8599_v54, %v1288_v32, %v8627_v26  ;;  %v1149_v34 = vsel %vm1148_vm0, %v1147_v12, 0  ;;  %v1145_v45 = vor.u32 8388608, %v1144_v35 }
 0x135   :  { %v1151_v18 = vand.u32 31, %v1149_v34  ;;  %v8632_v62 = vadd.f32 %v8498_v2, %v248_v48  ;;  %vm6501_vm1 = vcmp.lt.s32.totalorder %v6500_v4, 0  ;;  %v1299_v13 = vadd.s32 1, %v8618_v1 }
 0x136   :  { %v8641_v12 = vadd.s32 %v8467_v55, %v8465_v22  ;;  %v6496_v35 = vadd.s32 4294967294, %v997_v46  ;;  %v1296_v48 = vmul.u32 %v8599_v54, %v1280_v17  ;;  %vm1298_vm2 = vc.u32 %v8628_v24, %v8617_v11 }
 0x137   :  { %12622 = vst [vmem:[#allocation22_spill] sm:$0xff] %v8632_v62  ;;  %v1152_v9 = vsub.s32 32, %v1151_v18  ;;  %v247_v47 = vmul.f32 %v8517_v59, %v126_v27  ;;  %v8647_v63 = vsel %vm6501_vm1, 0, %v6500_v4  ;;  %v1300_v21 = vsel %vm1298_vm2, %v1299_v13, %v8618_v1 }
 0x138   :  { %v8650_v30 = vshll.u32 %v1145_v45, 8  ;;  %v1452_v6 = vand.u32 2139095040, %v8632_v62  ;;  %v1301_v49 = vadd.s32 %v1300_v21, %v1296_v48  ;;  %v1150_v22 = vshrl.u32 %v1149_v34, 5 }
 0x139   :  { %v12623_v55 = vmov 2475754826   ;;  %v1158_v32 = vshrl.u32 %v12616_v60, %v1152_v9  ;;  %v1154_v54 = vshll.u32 %v12620_v31, %v1151_v18  ;;  %v1160_v26 = vshll.u32 %v12616_v60, %v1151_v18 }
 0x13a   :  { %v1155_v7 = vshrl.u32 %v12623_v55, %v1152_v9  ;;  %v1157_v46 = vshll.u32 %v12623_v55, %v1151_v18  ;;  %v1161_v4 = vshrl.u32 %v12617_v25, %v1152_v9  ;;  %vm6497_vm3 = vcmp.lt.s32.totalorder %v6496_v35, 0 }
 0x13b   :  { %v1302_v1 = vadd.s32 536870912, %v1301_v49  ;;  %v1163_v17 = vshll.u32 %v12617_v25, %v1151_v18  ;;  %v1164_v45 = vshrl.u32 %v12618_v19, %v1152_v9  ;;  %v1105_v34 = vsub.s32 32, %v8647_v63 }
 0x13c   :  { %v1156_v27 = vor.u32 %v1155_v7, %v1154_v54  ;;  %v1159_v13 = vor.u32 %v1158_v32, %v1157_v46  ;;  %v1162_v48 = vor.u32 %v1161_v4, %v1160_v26  ;;  %v1166_v23 = vshll.u32 %v12618_v19, %v1151_v18 }
 0x13d   :  { %v8662_v21 = vshrl.u32 %v1302_v1, 30  ;;  %v1165_v28 = vor.u32 %v1164_v45, %v1163_v17  ;;  %v1167_v52 = vshrl.u32 %v12611_v57, %v1152_v9  ;;  %v1109_v3 = vsub.s32 4294967266, %v8647_v63 }
 0x13e   :  { %v1000_v8 = vsel %vm6497_vm3, 0, %v6496_v35  ;;  %vm1172_vm5 = vcmp.lt.s32.totalorder %v1150_v22, 4  ;;  %v1453_v51 = vshrl.u32 %v1452_v6, 23  ;;  %vm1169_vm6 = vcmp.lt.s32.totalorder %v1150_v22, 1 }
 0x13f   :  { %12624 = vst [vmem:[#allocation23_spill] sm:$0xff] %v8662_v21  ;;  %v1304_v44 = vshll.u32 %v8662_v21, 30  ;;  %v1168_v50 = vor.u32 %v1167_v52, %v1166_v23  ;;  %v1174_v7 = vsel %vm1172_vm5, %v1162_v48, 2102212464  ;;  %v1153_v32 = vshrl.u32 %v12620_v31, %v1152_v9 }
 0x140   :  { %vm1171_vm8 = vcmp.lt.s32.totalorder %v1150_v22, 3  ;;  %v1177_v54 = vsel %vm1169_vm6, %v1156_v27, %v1159_v13  ;;  %v1178_v46 = vsel %vm1172_vm5, %v1165_v28, 920167782  ;;  %vm1170_vm9 = vcmp.lt.s32.totalorder %v1150_v22, 2 }
 0x141   :  { %v8671_v18 = vsub.s32 %v1301_v49, %v1304_v44  ;;  %v1179_v26 = vsel %vm1171_vm8, %v1162_v48, %v1178_v46  ;;  %v1181_v4 = vsel %vm1169_vm6, %v1159_v13, %v1162_v48  ;;  %vm411_vm10 = vcmp.lt.s32.totalorder %v8089_v5, 0 }
 0x142   :  { %vm827_vm7 = vcmp.lt.s32.totalorder %v8220_v38, 0  ;;  %v1173_v35 = vsel %vm1169_vm6, %v1153_v32, %v1156_v27  ;;  %v1175_v52 = vsel %vm1171_vm8, %v1159_v13, %v1174_v7  ;;  %v1180_v23 = vsel %vm1170_vm9, %v1177_v54, %v1179_v26 }
 0x143   :  { %v1182_v6 = vsel %vm1172_vm5, %v1168_v50, 1326507024  ;;  %v1307_v9 = vsub.s32 0, %v8671_v18  ;;  %v8679_v17 = vmul.u32.u64.low %v8650_v30, %v1180_v23  ;;  %v8680_v44 = vmul.u32.u64.high %v8650_v30, %v1180_v23, %v8679_v17 }
 0x144   :  { %v1183_v1 = vsel %vm1171_vm8, %v1165_v28, %v1182_v6  ;;  %v1110_v49 = vadd.s32 127, %v1109_v3  ;;  %v1001_v45 = vsub.s32 32, %v1000_v8  ;;  %v6514_v46 = vadd.s32 4294967169, %v1453_v51 }
 0x145   :  { %v1184_v48 = vsel %vm1170_vm9, %v1181_v4, %v1183_v1  ;;  %v1005_v21 = vsub.s32 4294967266, %v1000_v8  ;;  %v6507_v27 = vmin.u32 %v1307_v9, %v8671_v18  ;;  %v985_v50 = vadd.s32 %v8532_v15, %v8545_v53 }
 0x146   :  { %v8686_v13 = vmul.u32.u64.low %v8650_v30, %v1184_v48  ;;  %v8687_v7 = vmul.u32.u64.high %v8650_v30, %v1184_v48, %v8686_v13  ;;  %v1176_v28 = vsel %vm1170_vm9, %v1173_v35, %v1175_v52  ;;  %v1459_v32 = vadd.s32 1, %v6514_v46 }
 0x147   :  { %v8693_v54 = vadd.f32 %v8498_v2, %v247_v47  ;;  %v1106_v3 = vshll.u32 %v8561_v33, %v8647_v63  ;;  %v1309_v51 = vclz %v6507_v27  ;;  %v1195_v26 = vadd.s32 1, %v8680_v44 }
 0x148   :  { %v12489_v4 = vand.u32 2147483647, %v8632_v62  ;;  %v1107_v23 = vshrl.u32 %v8641_v12, %v1105_v34  ;;  %v1111_v6 = vshll.u32 %v1110_v49, 23  ;;  %v1003_v9 = vshrl.u32 %v985_v50, %v1001_v45 }
 0x149   :  { %12625 = vst [vmem:[#allocation24_spill] sm:$0xff] %v8693_v54  ;;  %vm1460_vm11 = vcmp.gt.s32.totalorder %v1459_v32, 0  ;;  %v1006_v15 = vadd.s32 127, %v1005_v21  ;;  %v1192_v53 = vmul.u32 %v8650_v30, %v1176_v28  ;;  %vm1194_vm12 = vc.u32 %v8687_v7, %v8679_v17 }
 0x14a   :  { %v1461_v47 = vsel %vm1460_vm11, %v1459_v32, 0  ;;  %v6508_v22 = vadd.s32 4294967294, %v1309_v51  ;;  %v1196_v33 = vsel %vm1194_vm12, %v1195_v26, %v8680_v44  ;;  %v1348_v35 = vand.u32 2139095040, %v8693_v54 }
 0x14b   :  { %v1463_v63 = vand.u32 31, %v1461_v47  ;;  %v12626_v52 = vxor.u32 2147483648, %v8579_v42  ;;  %v12628_v30 = vxor.u32 2147483648, %v8581_v29  ;;  %v1002_v21 = vshll.u32 %v8601_v43, %v1000_v8 }
 0x14c   :  { %v1197_v1 = vadd.s32 %v1196_v33, %v1192_v53  ;;  %v12630_v44 = vand.u32 2147483647, %v8623_v61  ;;  %v12631_v49 = vcvt.s32.f32 %v8621_v36  ;;  %v8726_v48 = vor.u32 %v1107_v23, %v1106_v3 }
 0x14d   :  { %v8710_v12 = vsel %vm411_vm10, %v12626_v52, %v8579_v42  ;;  %v8717_v34 = vsel %vm827_vm7, %v12628_v30, %v8581_v29  ;;  %v8728_v42 = vor.u32 4788187, %v1111_v6  ;;  %v1464_v46 = vsub.s32 32, %v1463_v63 }
 0x14e   :  { %12627 = vst [vmem:[#allocation25_spill] sm:$0xff] %v8710_v12  ;;  %12629 = vst [vmem:[#allocation26_spill] sm:$0xff] %v8717_v34  ;;  %v8724_v45 = vmul.f32 %v12631_v49, %v12630_v44  ;;  %v8730_v27 = vor.u32 %v1003_v9, %v1002_v21  ;;  %v1007_v13 = vshll.u32 %v1006_v15, 23  ;;  %v1198_v50 = vadd.s32 536870912, %v1197_v1 }
 0x14f   :  { %v1456_v29 = vand.u32 8388607, %v12489_v4  ;;  %vm6509_vm13 = vcmp.lt.s32.totalorder %v6508_v22, 0  ;;  %v1467_v8 = vshrl.u32 %v12623_v55, %v1464_v46  ;;  %v1470_v43 = vshrl.u32 %v12616_v60, %v1464_v46 }
 0x150   :  { %v1349_v36 = vshrl.u32 %v1348_v35, 23  ;;  %v8736_v61 = vshrl.u32 %v1198_v50, 30  ;;  %v1466_v28 = vshll.u32 %v12620_v31, %v1463_v63  ;;  %v1469_v32 = vshll.u32 %v12623_v55, %v1463_v63 }
 0x151   :  { %v1473_v3 = vshrl.u32 %v12617_v25, %v1464_v46  ;;  %v1462_v51 = vshrl.u32 %v1461_v47, 5  ;;  %v1472_v26 = vshll.u32 %v12616_v60, %v1463_v63  ;;  %v1475_v23 = vshll.u32 %v12617_v25, %v1463_v63 }
 0x152   :  { %12632 = vst [vmem:[#allocation27_spill] sm:$0xff] %v8736_v61  ;;  %v1476_v6 = vshrl.u32 %v12618_v19, %v1464_v46  ;;  %v8744_v9 = vsel %vm6509_vm13, 0, %v6508_v22  ;;  %v1200_v15 = vshll.u32 %v8736_v61, 30  ;;  %v1468_v53 = vor.u32 %v1467_v8, %v1466_v28 }
 0x153   :  { %v1471_v33 = vor.u32 %v1470_v43, %v1469_v32  ;;  %v1474_v35 = vor.u32 %v1473_v3, %v1472_v26  ;;  %v1478_v30 = vshll.u32 %v12618_v19, %v1463_v63  ;;  %v1479_v21 = vshrl.u32 %v12611_v57, %v1464_v46 }
 0x154   :  { %v1477_v52 = vor.u32 %v1476_v6, %v1475_v23  ;;  %v8749_v44 = vor.u32 4788187, %v1007_v13  ;;  %v8751_v47 = vsub.s32 %v1197_v1, %v1200_v15  ;;  %v1457_v49 = vor.u32 8388608, %v1456_v29  ;;  %v141_v15 = vpop.permute.xlu1 %140 }
 0x155   :  { %v1317_v22 = vsub.s32 4294967266, %v8744_v9  ;;  %v1480_v4 = vor.u32 %v1479_v21, %v1478_v30  ;;  %vm1481_vm14 = vcmp.lt.s32.totalorder %v1462_v51, 1  ;;  %v6510_v61 = vadd.s32 4294967169, %v1349_v36 }
 0x156   :  { %v1203_v8 = vsub.s32 0, %v8751_v47  ;;  %vm1483_vm15 = vcmp.lt.s32.totalorder %v1462_v51, 3  ;;  %vm1484_vm0 = vcmp.lt.s32.totalorder %v1462_v51, 4  ;;  %v1489_v63 = vsel %vm1481_vm14, %v1468_v53, %v1471_v33 }
 0x157   :  { %v1486_v43 = vsel %vm1484_vm0, %v1474_v35, 2102212464  ;;  %v1490_v28 = vsel %vm1484_vm0, %v1477_v52, 920167782  ;;  %v1493_v13 = vsel %vm1481_vm14, %v1471_v33, %v1474_v35  ;;  %v1494_v1 = vsel %vm1484_vm0, %v1480_v4, 1326507024 }
 0x158   :  { %v1465_v29 = vshrl.u32 %v12620_v31, %v1464_v46  ;;  %vm1482_vm1 = vcmp.lt.s32.totalorder %v1462_v51, 2  ;;  %v1491_v32 = vsel %vm1483_vm15, %v1474_v35, %v1490_v28  ;;  %v1497_v3 = vshll.u32 %v1457_v49, 8 }
 0x159   :  { %v1318_v26 = vadd.s32 127, %v1317_v22  ;;  %v1492_v36 = vsel %vm1482_vm1, %v1489_v63, %v1491_v32  ;;  %v1495_v23 = vsel %vm1483_vm15, %v1477_v52, %v1494_v1  ;;  %v1355_v6 = vadd.s32 1, %v6510_v61 }
 0x15a   :  { %v6503_v30 = vmin.u32 %v1203_v8, %v8751_v47  ;;  %v1485_v21 = vsel %vm1481_vm14, %v1465_v29, %v1468_v53  ;;  %v1487_v50 = vsel %vm1483_vm15, %v1471_v33, %v1486_v43  ;;  %v1496_v4 = vsel %vm1482_vm1, %v1493_v13, %v1495_v23  ;;  %v136_v43 = vpop.permute.xlu0 %135 }
 0x15b   :  { %v8766_v46 = vmul.u32.u64.low %v1497_v3, %v1496_v4  ;;  %v8767_v34 = vmul.u32.u64.high %v1497_v3, %v1496_v4, %v8766_v46  ;;  %v8769_v35 = vmul.u32.u64.low %v1497_v3, %v1492_v36  ;;  %v8770_v49 = vmul.u32.u64.high %v1497_v3, %v1492_v36, %v8769_v35 }
 0x15c   :  { %vm1356_vm2 = vcmp.gt.s32.totalorder %v1355_v6, 0  ;;  %v250_v52 = vmul.f32 %v8517_v59, %v141_v15  ;;  %v1313_v53 = vsub.s32 32, %v8744_v9  ;;  %v1319_v8 = vshll.u32 %v1318_v26, 23 }
 0x15d   :  { %v1488_v33 = vsel %vm1482_vm1, %v1485_v21, %v1487_v50  ;;  %v1357_v63 = vsel %vm1356_vm2, %v1355_v6, 0  ;;  %v1297_v13 = vadd.s32 %v8617_v11, %v8628_v24  ;;  %v1205_v1 = vclz %v6503_v30 }
 0x15e   :  { %v1359_v29 = vand.u32 31, %v1357_v63  ;;  %vm1506_vm3 = vc.u32 %v8767_v34, %v8769_v35  ;;  %v1507_v36 = vadd.s32 1, %v8770_v49  ;;  %v12633_v26 = vand.u32 2147483647, %v8693_v54 }
 0x15f   :  { %v1504_v50 = vmul.u32 %v1497_v3, %v1488_v33  ;;  %v8788_v6 = vadd.f32 %v8498_v2, %v250_v52  ;;  %v8791_v15 = vmul.f32 %v8517_v59, %v136_v43  ;;  %v1314_v11 = vshll.u32 %v8671_v18, %v8744_v9 }
 0x160   :  { %v1352_v51 = vand.u32 8388607, %v12633_v26  ;;  %v1360_v23 = vsub.s32 32, %v1359_v29  ;;  %v1315_v24 = vshrl.u32 %v1297_v13, %v1313_v53  ;;  %v8795_v30 = vor.u32 4788187, %v1319_v8 }
 0x161   :  { %12634 = vst [vmem:[#allocation28_spill] sm:$0xff] %v8788_v6  ;;  %v1508_v21 = vsel %vm1506_vm3, %v1507_v36, %v8770_v49  ;;  %v6504_v4 = vadd.s32 4294967294, %v1205_v1  ;;  %v1362_v26 = vshll.u32 %v12620_v31, %v1359_v29  ;;  %v1365_v3 = vshll.u32 %v12623_v55, %v1359_v29 }
 0x162   :  { %v1509_v46 = vadd.s32 %v1508_v21, %v1504_v50  ;;  %v1363_v52 = vshrl.u32 %v12623_v55, %v1360_v23  ;;  %v1366_v33 = vshrl.u32 %v12616_v60, %v1360_v23  ;;  %v1368_v43 = vshll.u32 %v12616_v60, %v1359_v29 }
 0x163   :  { %v1369_v28 = vshrl.u32 %v12617_v25, %v1360_v23  ;;  %v1358_v9 = vshrl.u32 %v1357_v63, 5  ;;  %v1371_v53 = vshll.u32 %v12617_v25, %v1359_v29  ;;  %v1372_v49 = vshrl.u32 %v12618_v19, %v1360_v23 }
 0x164   :  { %v1510_v18 = vadd.s32 536870912, %v1509_v46  ;;  %v1353_v8 = vor.u32 8388608, %v1352_v51  ;;  %v1364_v13 = vor.u32 %v1363_v52, %v1362_v26  ;;  %v1367_v1 = vor.u32 %v1366_v33, %v1365_v3 }
 0x165   :  { %v1370_v36 = vor.u32 %v1369_v28, %v1368_v43  ;;  %v1316_v50 = vor.u32 %v1315_v24, %v1314_v11  ;;  %v1321_v21 = vand.u32 2147483647, %v8795_v30  ;;  %v1373_v61 = vor.u32 %v1372_v49, %v1371_v53 }
 0x166   :  { %v8807_v32 = vshrl.u32 %v1510_v18, 30  ;;  %vm6505_vm5 = vcmp.lt.s32.totalorder %v6504_v4, 0  ;;  %v1374_v22 = vshll.u32 %v12618_v19, %v1359_v29  ;;  %v1375_v38 = vshrl.u32 %v12611_v57, %v1360_v23 }
 0x167   :  { %v1660_v63 = vand.u32 2139095040, %v8788_v6  ;;  %vm1377_vm6 = vcmp.lt.s32.totalorder %v1358_v9, 1  ;;  %vm1379_vm8 = vcmp.lt.s32.totalorder %v1358_v9, 3  ;;  %vm1380_vm9 = vcmp.lt.s32.totalorder %v1358_v9, 4 }
 0x168   :  { %12635 = vst [vmem:[#allocation29_spill] sm:$0xff] %v8807_v32  ;;  %v1512_v0 = vshll.u32 %v8807_v32, 30  ;;  %v1376_v51 = vor.u32 %v1375_v38, %v1374_v22  ;;  %v1382_v28 = vsel %vm1380_vm9, %v1370_v36, 2102212464  ;;  %v1385_v11 = vsel %vm1377_vm6, %v1364_v13, %v1367_v1 }
 0x169   :  { %v1386_v24 = vsel %vm1380_vm9, %v1373_v61, 920167782  ;;  %v1361_v30 = vshrl.u32 %v12620_v31, %v1360_v23  ;;  %vm1378_vm11 = vcmp.lt.s32.totalorder %v1358_v9, 2  ;;  %v1393_v29 = vshll.u32 %v1353_v8, 8 }
 0x16a   :  { %v1387_v26 = vsel %vm1379_vm8, %v1370_v36, %v1386_v24  ;;  %vm723_vm12 = vcmp.lt.s32.totalorder %v8232_v58, 0  ;;  %v8817_v3 = vsub.s32 %v1509_v46, %v1512_v0  ;;  %v1389_v33 = vsel %vm1377_vm6, %v1367_v1, %v1370_v36 }
 0x16b   :  { %v1388_v52 = vsel %vm1378_vm11, %v1385_v11, %v1387_v26  ;;  %v1390_v43 = vsel %vm1380_vm9, %v1376_v51, 1326507024  ;;  %v1208_v38 = vsel %vm6505_vm5, 0, %v6504_v4  ;;  %v1381_v22 = vsel %vm1377_vm6, %v1361_v30, %v1364_v13 }
 0x16c   :  { %v1383_v18 = vsel %vm1379_vm8, %v1367_v1, %v1382_v28  ;;  %v1391_v23 = vsel %vm1379_vm8, %v1373_v61, %v1390_v43  ;;  %v8826_v49 = vmul.u32.u64.low %v1393_v29, %v1388_v52  ;;  %v8827_v8 = vmul.u32.u64.high %v1393_v29, %v1388_v52, %v8826_v49 }
 0x16d   :  { %v1392_v53 = vsel %vm1378_vm11, %v1389_v33, %v1391_v23  ;;  %v1661_v0 = vshrl.u32 %v1660_v63, 23  ;;  %v1323_v46 = vcvt.s32.f32 %v1316_v50  ;;  %v12495_v36 = vand.u32 2147483647, %v8788_v6  ;;  %v151_v23 = vpop.permute.xlu1 %150 }
 0x16e   :  { %v8830_v11 = vmul.u32.u64.low %v1393_v29, %v1392_v53  ;;  %v8831_v24 = vmul.u32.u64.high %v1393_v29, %v1392_v53, %v8830_v11  ;;  %v1209_v4 = vsub.s32 32, %v1208_v38  ;;  %v1515_v13 = vsub.s32 0, %v8817_v3 }
 0x16f   :  { %v1384_v1 = vsel %vm1378_vm11, %v1381_v22, %v1383_v18  ;;  %v6522_v51 = vadd.s32 4294967169, %v1661_v0  ;;  %v805_v61 = vxor.u32 2147483648, %v8724_v45  ;;  %v12636_v28 = vand.u32 2147483647, %v8728_v42 }
 0x170   :  { %v12637_v30 = vcvt.s32.f32 %v8726_v48  ;;  %v12638_v50 = vand.u32 2147483647, %v8749_v44  ;;  %v12639_v63 = vcvt.s32.f32 %v8730_v27  ;;  %v8851_v33 = vadd.f32 %v8498_v2, %v8791_v15 }
 0x171   :  { %v8853_v9 = vmul.f32 %v1323_v46, %v1321_v21  ;;  %v1193_v43 = vadd.s32 %v8679_v17, %v8687_v7  ;;  %v1403_v42 = vadd.s32 1, %v8827_v8  ;;  %v1667_v48 = vadd.s32 1, %v6522_v51 }
 0x172   :  { %v8841_v26 = vmul.f32 %v12637_v30, %v12636_v28  ;;  %v8847_v52 = vmul.f32 %v12639_v63, %v12638_v50  ;;  %12640 = vst [vmem:[#allocation30_spill] sm:$0xff] %v8851_v33  ;;  %v1213_v22 = vsub.s32 4294967266, %v1208_v38  ;;  %v1400_v18 = vmul.u32 %v1393_v29, %v1384_v1 }
 0x173   :  { %vm1402_vm13 = vc.u32 %v8831_v24, %v8826_v49  ;;  %v1664_v27 = vand.u32 8388607, %v12495_v36  ;;  %v1211_v44 = vshrl.u32 %v1193_v43, %v1209_v4  ;;  %v6515_v15 = vmin.u32 %v1515_v13, %v8817_v3 }
 0x174   :  { %v1404_v21 = vsel %vm1402_vm13, %v1403_v42, %v8827_v8  ;;  %vm1668_vm14 = vcmp.gt.s32.totalorder %v1667_v48, 0  ;;  %v8867_v17 = vsel %vm723_vm12, %v805_v61, %v8724_v45  ;;  %v1556_v53 = vand.u32 2139095040, %v8851_v33 }
 0x175   :  { %12641 = vst [vmem:[#allocation31_spill] sm:$0xff] %v8867_v17  ;;  %v1405_v7 = vadd.s32 %v1404_v21, %v1400_v18  ;;  %v1669_v29 = vsel %vm1668_vm14, %v1667_v48, 0  ;;  %v1210_v11 = vshll.u32 %v8751_v47, %v1208_v38  ;;  %v1214_v13 = vadd.s32 127, %v1213_v22 }
 0x176   :  { %v1671_v4 = vand.u32 31, %v1669_v29  ;;  %v8875_v51 = vmul.f32 %v8517_v59, %v151_v23  ;;  %v1517_v61 = vclz %v6515_v15  ;;  %v1665_v28 = vor.u32 8388608, %v1664_v27 }
 0x177   :  { %v1406_v1 = vadd.s32 536870912, %v1405_v7  ;;  %v8877_v45 = vor.u32 %v1211_v44, %v1210_v11  ;;  %v1557_v47 = vshrl.u32 %v1556_v53, 23  ;;  %v1670_v44 = vshrl.u32 %v1669_v29, 5 }
 0x178   :  { %v1672_v30 = vsub.s32 32, %v1671_v4  ;;  %v1674_v63 = vshll.u32 %v12620_v31, %v1671_v4  ;;  %v1677_v43 = vshll.u32 %v12623_v55, %v1671_v4  ;;  %v1680_v48 = vshll.u32 %v12616_v60, %v1671_v4 }
 0x179   :  { %v8879_v50 = vshrl.u32 %v1406_v1, 30  ;;  %v1683_v27 = vshll.u32 %v12617_v25, %v1671_v4  ;;  %v1215_v21 = vshll.u32 %v1214_v13, 23  ;;  %vm1035_vm15 = vcmp.lt.s32.totalorder %v8338_v41, 0 }
 0x17a   :  { %v1675_v38 = vshrl.u32 %v12623_v55, %v1672_v30  ;;  %v1678_v42 = vshrl.u32 %v12616_v60, %v1672_v30  ;;  %v1681_v22 = vshrl.u32 %v12617_v25, %v1672_v30  ;;  %v1684_v15 = vshrl.u32 %v12618_v19, %v1672_v30 }
 0x17b   :  { %12642 = vst [vmem:[#allocation32_spill] sm:$0xff] %v8879_v50  ;;  %v1408_v18 = vshll.u32 %v8879_v50, 30  ;;  %vm931_vm0 = vcmp.lt.s32.totalorder %v8357_v16, 0  ;;  %v1705_v8 = vshll.u32 %v1665_v28, 8  ;;  %v12500_v46 = vand.u32 2147483647, %v8851_v33 }
 0x17c   :  { %v1676_v23 = vor.u32 %v1675_v38, %v1674_v63  ;;  %v1679_v11 = vor.u32 %v1678_v42, %v1677_v43  ;;  %v1682_v1 = vor.u32 %v1681_v22, %v1680_v48  ;;  %v1685_v36 = vor.u32 %v1684_v15, %v1683_v27 }
 0x17d   :  { %v8892_v53 = vsub.s32 %v1405_v7, %v1408_v18  ;;  %vm12590_vm1 = vcmp.lt.s32.totalorder %v8501_v10, 0  ;;  %v6516_v29 = vadd.s32 4294967294, %v1517_v61  ;;  %v1686_v0 = vshll.u32 %v12618_v19, %v1671_v4 }
 0x17e   :  { %v1687_v13 = vshrl.u32 %v12611_v57, %v1672_v30  ;;  %v6518_v63 = vadd.s32 4294967169, %v1557_v47  ;;  %vm1689_vm2 = vcmp.lt.s32.totalorder %v1670_v44, 1  ;;  %vm1691_vm3 = vcmp.lt.s32.totalorder %v1670_v44, 3 }
 0x17f   :  { %v1411_v43 = vsub.s32 0, %v8892_v53  ;;  %vm1692_vm5 = vcmp.lt.s32.totalorder %v1670_v44, 4  ;;  %v1697_v42 = vsel %vm1689_vm2, %v1676_v23, %v1679_v11  ;;  %v1673_v22 = vshrl.u32 %v12620_v31, %v1672_v30 }
 0x180   :  { %v1688_v38 = vor.u32 %v1687_v13, %v1686_v0  ;;  %v1694_v7 = vsel %vm1692_vm5, %v1682_v1, 2102212464  ;;  %v1698_v28 = vsel %vm1692_vm5, %v1685_v36, 920167782  ;;  %vm1690_vm6 = vcmp.lt.s32.totalorder %v1670_v44, 2 }
 0x181   :  { %v6511_v48 = vmin.u32 %v1411_v43, %v8892_v53  ;;  %v1699_v4 = vsel %vm1691_vm3, %v1682_v1, %v1698_v28  ;;  %v1701_v47 = vsel %vm1689_vm2, %v1679_v11, %v1682_v1  ;;  %v1560_v27 = vand.u32 8388607, %v12500_v46 }
 0x182   :  { %v1700_v61 = vsel %vm1690_vm6, %v1697_v42, %v1699_v4  ;;  %v1702_v18 = vsel %vm1692_vm5, %v1688_v38, 1326507024  ;;  %v1693_v15 = vsel %vm1689_vm2, %v1673_v22, %v1676_v23  ;;  %v1695_v13 = vsel %vm1691_vm3, %v1679_v11, %v1694_v7 }
 0x183   :  { %v1413_v0 = vclz %v6511_v48  ;;  %v1703_v43 = vsel %vm1691_vm3, %v1685_v36, %v1702_v18  ;;  %v8911_v32 = vmul.u32.u64.low %v1705_v8, %v1700_v61  ;;  %v8912_v50 = vmul.u32.u64.high %v1705_v8, %v1700_v61, %v8911_v32 }
 0x184   :  { %v1704_v30 = vsel %vm1690_vm6, %v1701_v47, %v1703_v43  ;;  %v1563_v42 = vadd.s32 1, %v6518_v63  ;;  %v8915_v28 = vor.u32 4788187, %v1215_v21  ;;  %vm6517_vm8 = vcmp.lt.s32.totalorder %v6516_v29, 0  ;;  %v146_v63 = vpop.permute.xlu0 %145 }
 0x185   :  { %v8917_v1 = vmul.u32.u64.low %v1705_v8, %v1704_v30  ;;  %v8918_v38 = vmul.u32.u64.high %v1705_v8, %v1704_v30, %v8917_v1  ;;  %v12643_v23 = vxor.u32 2147483648, %v8841_v26  ;;  %v12645_v36 = vxor.u32 2147483648, %v8847_v52 }
 0x186   :  { %v1561_v21 = vor.u32 8388608, %v1560_v27  ;;  %vm1564_vm9 = vcmp.gt.s32.totalorder %v1563_v42, 0  ;;  %v12647_v48 = vxor.u32 2147483648, %v8853_v9  ;;  %v6512_v4 = vadd.s32 4294967294, %v1413_v0 }
 0x187   :  { %v8925_v11 = vsel %vm1035_vm15, %v12643_v23, %v8841_v26  ;;  %v8932_v7 = vsel %vm931_vm0, %v12645_v36, %v8847_v52  ;;  %v1696_v26 = vsel %vm1690_vm6, %v1693_v15, %v1695_v13  ;;  %v1565_v61 = vsel %vm1564_vm9, %v1563_v42, 0 }
 0x188   :  { %12644 = vst [vmem:[#allocation33_spill] sm:$0xff] %v8925_v11  ;;  %12646 = vst [vmem:[#allocation34_spill] sm:$0xff] %v8932_v7  ;;  %v8939_v22 = vsel %vm12590_vm1, %v12647_v48, %v8853_v9  ;;  %v8944_v47 = vadd.s32 %v8769_v35, %v8767_v34  ;;  %v8946_v52 = vsel %vm6517_vm8, 0, %v6516_v29  ;;  %v1715_v18 = vadd.s32 1, %v8912_v50 }
 0x189   :  { %12648 = vst [vmem:[#allocation35_spill] sm:$0xff] %v8939_v22  ;;  %v1567_v27 = vand.u32 31, %v1565_v61  ;;  %v8953_v9 = vadd.f32 %v8498_v2, %v8875_v51  ;;  %v251_v44 = vmul.f32 %v8517_v59, %v146_v63  ;;  %v1712_v0 = vmul.u32 %v1705_v8, %v1696_v26  ;;  %v8982_v22 = vld [vmem:[%s12441_s2 + $0x1] ss:$0 sm:$0xff] }
 0x18a   :  { %vm1714_vm11 = vc.u32 %v8918_v38, %v8911_v32  ;;  %v8958_v35 = vshll.u32 %v1561_v21, 8  ;;  %v1525_v15 = vsub.s32 4294967266, %v8946_v52  ;;  %vm6513_vm13 = vcmp.lt.s32.totalorder %v6512_v4, 0 }
 0x18b   :  { %v1568_v34 = vsub.s32 32, %v1567_v27  ;;  %v1716_v13 = vsel %vm1714_vm11, %v1715_v18, %v8912_v50  ;;  %v1566_v1 = vshrl.u32 %v1565_v61, 5  ;;  %v1570_v8 = vshll.u32 %v12620_v31, %v1567_v27 }
 0x18c   :  { %v1717_v42 = vadd.s32 %v1716_v13, %v1712_v0  ;;  %v1573_v51 = vshll.u32 %v12623_v55, %v1567_v27  ;;  %v1576_v23 = vshll.u32 %v12616_v60, %v1567_v27  ;;  %v8969_v21 = vsel %vm6513_vm13, 0, %v6512_v4 }
 0x18d   :  { %v1571_v2 = vshrl.u32 %v12623_v55, %v1568_v34  ;;  %v1574_v59 = vshrl.u32 %v12616_v60, %v1568_v34  ;;  %v1577_v36 = vshrl.u32 %v12617_v25, %v1568_v34  ;;  %v1579_v48 = vshll.u32 %v12617_v25, %v1567_v27 }
 0x18e   :  { %v1718_v63 = vadd.s32 536870912, %v1717_v42  ;;  %v1580_v50 = vshrl.u32 %v12618_v19, %v1568_v34  ;;  %v1526_v26 = vadd.s32 127, %v1525_v15  ;;  %v1582_v29 = vshll.u32 %v12618_v19, %v1567_v27 }
 0x18f   :  { %v1572_v61 = vor.u32 %v1571_v2, %v1570_v8  ;;  %v1575_v18 = vor.u32 %v1574_v59, %v1573_v51  ;;  %v1578_v0 = vor.u32 %v1577_v36, %v1576_v23  ;;  %v1583_v30 = vshrl.u32 %v12611_v57, %v1568_v34 }
 0x190   :  { %v8973_v13 = vshrl.u32 %v1718_v63, 30  ;;  %v1581_v46 = vor.u32 %v1580_v50, %v1579_v48  ;;  %v1421_v43 = vsub.s32 4294967266, %v8969_v21  ;;  %vm1588_vm14 = vcmp.lt.s32.totalorder %v1566_v1, 4 }
 0x191   :  { %v1868_v4 = vand.u32 2139095040, %v8953_v9  ;;  %v8985_v15 = vadd.f32 %v8982_v22, %v251_v44  ;;  %v1584_v59 = vor.u32 %v1583_v30, %v1582_v29  ;;  %vm1585_vm2 = vcmp.lt.s32.totalorder %v1566_v1, 1 }
 0x192   :  { %12649 = vst [vmem:[#allocation36_spill] sm:$0xff] %v8973_v13  ;;  %v1720_v2 = vshll.u32 %v8973_v13, 30  ;;  %v1590_v27 = vsel %vm1588_vm14, %v1578_v0, 2102212464  ;;  %v1569_v8 = vshrl.u32 %v12620_v31, %v1568_v34  ;;  %vm1587_vm3 = vcmp.lt.s32.totalorder %v1566_v1, 3 }
 0x193   :  { %v1593_v51 = vsel %vm1585_vm2, %v1572_v61, %v1575_v18  ;;  %v1594_v23 = vsel %vm1588_vm14, %v1581_v46, 920167782  ;;  %vm1586_vm5 = vcmp.lt.s32.totalorder %v1566_v1, 2  ;;  %v1597_v48 = vsel %vm1585_vm2, %v1575_v18, %v1578_v0 }
 0x194   :  { %v8991_v36 = vsub.s32 %v1717_v42, %v1720_v2  ;;  %v1595_v63 = vsel %vm1587_vm3, %v1578_v0, %v1594_v23  ;;  %v1589_v50 = vsel %vm1585_vm2, %v1569_v8, %v1572_v61  ;;  %v1591_v44 = vsel %vm1587_vm3, %v1575_v18, %v1590_v27 }
 0x195   :  { %v1596_v10 = vsel %vm1586_vm5, %v1593_v51, %v1595_v63  ;;  %v1598_v30 = vsel %vm1588_vm14, %v1584_v59, 1326507024  ;;  %v1527_v41 = vshll.u32 %v1526_v26, 23  ;;  %v1417_v42 = vsub.s32 32, %v8969_v21 }
 0x196   :  { %v1723_v29 = vsub.s32 0, %v8991_v36  ;;  %v1599_v13 = vsel %vm1587_vm3, %v1581_v46, %v1598_v30  ;;  %v8997_v34 = vmul.u32.u64.low %v8958_v35, %v1596_v10  ;;  %v8998_v11 = vmul.u32.u64.high %v8958_v35, %v1596_v10, %v8997_v34 }
 0x197   :  { %v1600_v2 = vsel %vm1586_vm5, %v1597_v48, %v1599_v13  ;;  %v1869_v0 = vshrl.u32 %v1868_v4, 23  ;;  %v1422_v61 = vadd.s32 127, %v1421_v43  ;;  %v1592_v46 = vsel %vm1586_vm5, %v1589_v50, %v1591_v44 }
 0x198   :  { %v6523_v18 = vmin.u32 %v1723_v29, %v8991_v36  ;;  %v9005_v27 = vmul.u32.u64.low %v8958_v35, %v1600_v2  ;;  %v9006_v59 = vmul.u32.u64.high %v8958_v35, %v1600_v2, %v9005_v27  ;;  %v12507_v8 = vand.u32 2147483647, %v8953_v9 }
 0x199   :  { %v6530_v10 = vadd.s32 4294967169, %v1869_v0  ;;  %v1764_v51 = vand.u32 2139095040, %v8985_v15  ;;  %v12650_v26 = vand.u32 2147483647, %v8915_v28  ;;  %v12651_v23 = vcvt.s32.f32 %v8877_v45 }
 0x19a   :  { %v1401_v43 = vadd.s32 %v8826_v49, %v8831_v24  ;;  %v1725_v4 = vclz %v6523_v18  ;;  %v1611_v63 = vadd.s32 1, %v8998_v11  ;;  %v1522_v1 = vshll.u32 %v8817_v3, %v8946_v52 }
 0x19b   :  { %v9015_v13 = vmul.f32 %v12651_v23, %v12650_v26  ;;  %v12652_v48 = vsub.s32 32, %v8946_v52  ;;  %v9025_v44 = vor.u32 4788187, %v1527_v41  ;;  %v1875_v28 = vadd.s32 1, %v6530_v10  ;;  %v161_v52 = vpop.permute.xlu1 %160  ;;  %v9046_v10 = vld [vmem:[%s12441_s2] ss:$0 sm:$0xff] }
 0x19c   :  { %v1419_v30 = vshrl.u32 %v1401_v43, %v1417_v42  ;;  %v1423_v45 = vshll.u32 %v1422_v61, 23  ;;  %v1608_v29 = vmul.u32 %v8958_v35, %v1592_v46  ;;  %vm1610_vm6 = vc.u32 %v9006_v59, %v8997_v34 }
 0x19d   :  { %v1523_v50 = vshrl.u32 %v8944_v47, %v12652_v48  ;;  %v1612_v49 = vsel %vm1610_vm6, %v1611_v63, %v8998_v11  ;;  %v1872_v24 = vand.u32 8388607, %v12507_v8  ;;  %vm1876_vm8 = vcmp.gt.s32.totalorder %v1875_v28, 0 }
 0x19e   :  { %v1765_v3 = vshrl.u32 %v1764_v51, 23  ;;  %v1418_v41 = vshll.u32 %v8892_v53, %v8969_v21  ;;  %v6524_v47 = vadd.s32 4294967294, %v1725_v4  ;;  %v1613_v2 = vadd.s32 %v1612_v49, %v1608_v29 }
 0x19f   :  { %v1877_v42 = vsel %vm1876_vm8, %v1875_v28, 0  ;;  %v9036_v35 = vor.u32 %v1523_v50, %v1522_v1  ;;  %v9041_v27 = vor.u32 4788187, %v1423_v45  ;;  %v254_v53 = vmul.f32 %v9046_v10, %v161_v52 }
 0x1a0   :  { %v1879_v18 = vand.u32 31, %v1877_v42  ;;  %v9039_v11 = vor.u32 %v1419_v30, %v1418_v41  ;;  %v1614_v46 = vadd.s32 536870912, %v1613_v2  ;;  %v1873_v21 = vor.u32 8388608, %v1872_v24 }
 0x1a1   :  { %v12510_v26 = vand.u32 2147483647, %v8985_v15  ;;  %v6526_v23 = vadd.s32 4294967169, %v1765_v3  ;;  %vm6525_vm9 = vcmp.lt.s32.totalorder %v6524_v47, 0  ;;  %v1878_v45 = vshrl.u32 %v1877_v42, 5 }
 0x1a2   :  { %v1880_v51 = vsub.s32 32, %v1879_v18  ;;  %v9050_v43 = vshrl.u32 %v1614_v46, 30  ;;  %v1882_v4 = vshll.u32 %v12620_v31, %v1879_v18  ;;  %v1885_v63 = vshll.u32 %v12623_v55, %v1879_v18 }
 0x1a3   :  { %v1888_v50 = vshll.u32 %v12616_v60, %v1879_v18  ;;  %v1891_v29 = vshll.u32 %v12617_v25, %v1879_v18  ;;  %v1425_v24 = vand.u32 2147483647, %v9041_v27  ;;  %vm12591_vm11 = vcmp.lt.s32.totalorder %v8541_v56, 0 }
 0x1a4   :  { %12653 = vst [vmem:[#allocation37_spill] sm:$0xff] %v9050_v43  ;;  %v1883_v1 = vshrl.u32 %v12623_v55, %v1880_v51  ;;  %v1886_v48 = vshrl.u32 %v12616_v60, %v1880_v51  ;;  %v1889_v28 = vshrl.u32 %v12617_v25, %v1880_v51  ;;  %v1616_v30 = vshll.u32 %v9050_v43, 30 }
 0x1a5   :  { %v1892_v49 = vshrl.u32 %v12618_v19, %v1880_v51  ;;  %v1913_v61 = vshll.u32 %v1873_v21, 8  ;;  %v1768_v0 = vand.u32 8388607, %v12510_v26  ;;  %v9068_v42 = vsel %vm6525_vm9, 0, %v6524_v47 }
 0x1a6   :  { %v1884_v3 = vor.u32 %v1883_v1, %v1882_v4  ;;  %v1887_v52 = vor.u32 %v1886_v48, %v1885_v63  ;;  %v1890_v41 = vor.u32 %v1889_v28, %v1888_v50  ;;  %v9063_v46 = vsub.s32 %v1613_v2, %v1616_v30 }
 0x1a7   :  { %v1893_v8 = vor.u32 %v1892_v49, %v1891_v29  ;;  %v1894_v43 = vshll.u32 %v12618_v19, %v1879_v18  ;;  %v1895_v7 = vshrl.u32 %v12611_v57, %v1880_v51  ;;  %v1771_v27 = vadd.s32 1, %v6526_v23 }
 0x1a8   :  { %v1619_v4 = vsub.s32 0, %v9063_v46  ;;  %vm1897_vm13 = vcmp.lt.s32.totalorder %v1878_v45, 1  ;;  %vm1899_vm14 = vcmp.lt.s32.totalorder %v1878_v45, 3  ;;  %vm1900_vm2 = vcmp.lt.s32.totalorder %v1878_v45, 4 }
 0x1a9   :  { %v1896_v2 = vor.u32 %v1895_v7, %v1894_v43  ;;  %v1902_v63 = vsel %vm1900_vm2, %v1890_v41, 2102212464  ;;  %v1905_v21 = vsel %vm1897_vm13, %v1884_v3, %v1887_v52  ;;  %v1906_v1 = vsel %vm1900_vm2, %v1893_v8, 920167782 }
 0x1aa   :  { %v6519_v48 = vmin.u32 %v1619_v4, %v9063_v46  ;;  %v1881_v47 = vshrl.u32 %v12620_v31, %v1880_v51  ;;  %vm1898_vm3 = vcmp.lt.s32.totalorder %v1878_v45, 2  ;;  %v1907_v18 = vsel %vm1899_vm14, %v1890_v41, %v1906_v1 }
 0x1ab   :  { %v1733_v50 = vsub.s32 4294967266, %v9068_v42  ;;  %v1908_v23 = vsel %vm1898_vm3, %v1905_v21, %v1907_v18  ;;  %v1909_v28 = vsel %vm1897_vm13, %v1887_v52, %v1890_v41  ;;  %v1910_v30 = vsel %vm1900_vm2, %v1896_v2, 1326507024 }
 0x1ac   :  { %v1621_v29 = vclz %v6519_v48  ;;  %v1901_v7 = vsel %vm1897_vm13, %v1881_v47, %v1884_v3  ;;  %v1903_v43 = vsel %vm1899_vm14, %v1887_v52, %v1902_v63  ;;  %v1911_v49 = vsel %vm1899_vm14, %v1893_v8, %v1910_v30  ;;  %v156_v48 = vpop.permute.xlu0 %155 }
 0x1ad   :  { %v1912_v4 = vsel %vm1898_vm3, %v1909_v28, %v1911_v49  ;;  %v9084_v51 = vmul.u32.u64.low %v1913_v61, %v1908_v23  ;;  %v9085_v26 = vmul.u32.u64.high %v1913_v61, %v1908_v23, %v9084_v51  ;;  %vm1772_vm5 = vcmp.gt.s32.totalorder %v1771_v27, 0 }
 0x1ae   :  { %v9088_v1 = vmul.u32.u64.low %v1913_v61, %v1912_v4  ;;  %v9089_v16 = vmul.u32.u64.high %v1913_v61, %v1912_v4, %v9088_v1  ;;  %v1769_v21 = vor.u32 8388608, %v1768_v0  ;;  %v9092_v41 = vadd.f32 %v8982_v22, %v254_v53 }
 0x1af   :  { %v12654_v3 = vxor.u32 2147483648, %v9015_v13  ;;  %v1531_v52 = vcvt.s32.f32 %v9036_v35  ;;  %v1427_v2 = vcvt.s32.f32 %v9039_v11  ;;  %v1773_v63 = vsel %vm1772_vm5, %v1771_v27, 0 }
 0x1b0   :  { %v1734_v47 = vadd.s32 127, %v1733_v50  ;;  %v6520_v18 = vadd.s32 4294967294, %v1621_v29  ;;  %v1904_v0 = vsel %vm1898_vm3, %v1901_v7, %v1903_v43  ;;  %v1775_v23 = vand.u32 31, %v1773_v63 }
 0x1b1   :  { %v9099_v8 = vsel %vm12591_vm11, %v12654_v3, %v9015_v13  ;;  %v12656_v53 = vand.u32 2147483647, %v9025_v44  ;;  %v9108_v30 = vmul.f32 %v1427_v2, %v1425_v24  ;;  %v1713_v13 = vadd.s32 %v8911_v32, %v8918_v38 }
 0x1b2   :  { %12655 = vst [vmem:[#allocation38_spill] sm:$0xff] %v9099_v8  ;;  %v1923_v35 = vadd.s32 1, %v9085_v26  ;;  %v1729_v11 = vsub.s32 32, %v9068_v42  ;;  %v9114_v27 = vshll.u32 %v1769_v21, 8  ;;  %v9118_v45 = vmul.f32 %v9046_v10, %v156_v48 }
 0x1b3   :  { %v9106_v28 = vmul.f32 %v1531_v52, %v12656_v53  ;;  %v1730_v44 = vshll.u32 %v8991_v36, %v9068_v42  ;;  %v1920_v29 = vmul.u32 %v1913_v61, %v1904_v0  ;;  %vm1922_vm6 = vc.u32 %v9089_v16, %v9084_v51 }
 0x1b4   :  { %v1776_v24 = vsub.s32 32, %v1775_v23  ;;  %v1735_v32 = vshll.u32 %v1734_v47, 23  ;;  %vm6521_vm8 = vcmp.lt.s32.totalorder %v6520_v18, 0  ;;  %v1924_v38 = vsel %vm1922_vm6, %v1923_v35, %v9085_v26 }
 0x1b5   :  { %v2076_v7 = vand.u32 2139095040, %v9092_v41  ;;  %v1925_v43 = vadd.s32 %v1924_v38, %v1920_v29  ;;  %v1774_v49 = vshrl.u32 %v1773_v63, 5  ;;  %v1778_v21 = vshll.u32 %v12620_v31, %v1775_v23 }
 0x1b6   :  { %v1779_v4 = vshrl.u32 %v12623_v55, %v1776_v24  ;;  %v1782_v1 = vshrl.u32 %v12616_v60, %v1776_v24  ;;  %v1781_v36 = vshll.u32 %v12623_v55, %v1775_v23  ;;  %v1784_v61 = vshll.u32 %v12616_v60, %v1775_v23 }
 0x1b7   :  { %v1785_v42 = vshrl.u32 %v12617_v25, %v1776_v24  ;;  %v9132_v3 = vsel %vm6521_vm8, 0, %v6520_v18  ;;  %v1926_v52 = vadd.s32 536870912, %v1925_v43  ;;  %v1787_v26 = vshll.u32 %v12617_v25, %v1775_v23 }
 0x1b8   :  { %v1788_v2 = vshrl.u32 %v12618_v19, %v1776_v24  ;;  %v1731_v63 = vshrl.u32 %v1713_v13, %v1729_v11  ;;  %v1780_v48 = vor.u32 %v1779_v4, %v1778_v21  ;;  %v1783_v47 = vor.u32 %v1782_v1, %v1781_v36 }
 0x1b9   :  { %v1786_v0 = vor.u32 %v1785_v42, %v1784_v61  ;;  %v9136_v53 = vshrl.u32 %v1926_v52, 30  ;;  %v1790_v29 = vshll.u32 %v12618_v19, %v1775_v23  ;;  %v1791_v38 = vshrl.u32 %v12611_v57, %v1776_v24 }
 0x1ba   :  { %v1789_v35 = vor.u32 %v1788_v2, %v1787_v26  ;;  %v1736_v50 = vor.u32 4788187, %v1735_v32  ;;  %v1629_v18 = vsub.s32 4294967266, %v9132_v3  ;;  %vm1796_vm9 = vcmp.lt.s32.totalorder %v1774_v49, 4 }
 0x1bb   :  { %12657 = vst [vmem:[#allocation39_spill] sm:$0xff] %v9136_v53  ;;  %v2077_v8 = vshrl.u32 %v2076_v7, 23  ;;  %v1928_v56 = vshll.u32 %v9136_v53, 30  ;;  %v1792_v17 = vor.u32 %v1791_v38, %v1790_v29  ;;  %vm1793_vm13 = vcmp.lt.s32.totalorder %v1774_v49, 1 }
 0x1bc   :  { %v1798_v13 = vsel %vm1796_vm9, %v1786_v0, 2102212464  ;;  %v1777_v11 = vshrl.u32 %v12620_v31, %v1776_v24  ;;  %vm1795_vm14 = vcmp.lt.s32.totalorder %v1774_v49, 3  ;;  %v1801_v4 = vsel %vm1793_vm13, %v1780_v48, %v1783_v47 }
 0x1bd   :  { %v1802_v1 = vsel %vm1796_vm9, %v1789_v35, 920167782  ;;  %v9145_v23 = vsub.s32 %v1925_v43, %v1928_v56  ;;  %vm1794_vm2 = vcmp.lt.s32.totalorder %v1774_v49, 2  ;;  %v1805_v21 = vsel %vm1793_vm13, %v1783_v47, %v1786_v0 }
 0x1be   :  { %v1803_v32 = vsel %vm1795_vm14, %v1786_v0, %v1802_v1  ;;  %vm12548_vm3 = vcmp.lt.s32.totalorder %v8632_v62, 0  ;;  %vm12549_vm5 = vcmp.lt.s32.totalorder %v8693_v54, 0  ;;  %v1797_v7 = vsel %vm1793_vm13, %v1777_v11, %v1780_v48 }
 0x1bf   :  { %v1799_v36 = vsel %vm1795_vm14, %v1783_v47, %v1798_v13  ;;  %v1804_v61 = vsel %vm1794_vm2, %v1801_v4, %v1803_v32  ;;  %v1806_v42 = vsel %vm1796_vm9, %v1792_v17, 1326507024  ;;  %v1931_v24 = vsub.s32 0, %v9145_v23 }
 0x1c0   :  { %v1807_v52 = vsel %vm1795_vm14, %v1789_v35, %v1806_v42  ;;  %v9153_v26 = vmul.u32.u64.low %v9114_v27, %v1804_v61  ;;  %v9154_v56 = vmul.u32.u64.high %v9114_v27, %v1804_v61, %v9153_v26  ;;  %v1625_v43 = vsub.s32 32, %v9132_v3 }
 0x1c1   :  { %v1630_v2 = vadd.s32 127, %v1629_v18  ;;  %v1808_v0 = vsel %vm1794_vm2, %v1805_v21, %v1807_v52  ;;  %v6538_v29 = vadd.s32 4294967169, %v2077_v8  ;;  %v1609_v48 = vadd.s32 %v8997_v34, %v9006_v59 }
 0x1c2   :  { %v6531_v47 = vmin.u32 %v1931_v24, %v9145_v23  ;;  %v9163_v17 = vmul.u32.u64.low %v9114_v27, %v1808_v0  ;;  %v9164_v38 = vmul.u32.u64.high %v9114_v27, %v1808_v0, %v9163_v17  ;;  %v1732_v35 = vor.u32 %v1731_v63, %v1730_v44  ;;  %v171_v63 = vpop.permute.xlu1 %170 }
 0x1c3   :  { %v1800_v13 = vsel %vm1794_vm2, %v1797_v7, %v1799_v36  ;;  %v2083_v11 = vadd.s32 1, %v6538_v29  ;;  %v9169_v4 = vadd.f32 %v8982_v22, %v9118_v45  ;;  %v1533_v18 = vxor.u32 2147483648, %v9106_v28 }
 0x1c4   :  { %v1429_v8 = vxor.u32 2147483648, %v9108_v30  ;;  %v1737_v1 = vand.u32 2147483647, %v1736_v50  ;;  %v1819_v34 = vadd.s32 1, %v9154_v56  ;;  %v1627_v59 = vshrl.u32 %v1609_v48, %v1625_v43 }
 0x1c5   :  { %v1631_v32 = vshll.u32 %v1630_v2, 23  ;;  %v12658_v21 = vand.u32 2147483647, %v9092_v41  ;;  %vm2084_vm6 = vcmp.gt.s32.totalorder %v2083_v11, 0  ;;  %v1933_v44 = vclz %v6531_v47 }
 0x1c6   :  { %v1816_v49 = vmul.u32 %v9114_v27, %v1800_v13  ;;  %vm1818_vm8 = vc.u32 %v9164_v38, %v9153_v26  ;;  %v2085_v45 = vsel %vm2084_vm6, %v2083_v11, 0  ;;  %v1739_v7 = vcvt.s32.f32 %v1732_v35 }
 0x1c7   :  { %v2080_v61 = vand.u32 8388607, %v12658_v21  ;;  %v1820_v36 = vsel %vm1818_vm8, %v1819_v34, %v9154_v56  ;;  %v2087_v50 = vand.u32 31, %v2085_v45  ;;  %v1972_v42 = vand.u32 2139095040, %v9169_v4 }
 0x1c8   :  { %v9184_v24 = vsel %vm12548_vm3, %v1533_v18, %v9106_v28  ;;  %v9189_v27 = vsel %vm12549_vm5, %v1429_v8, %v9108_v30  ;;  %v1626_v52 = vshll.u32 %v9063_v46, %v9132_v3  ;;  %v1821_v43 = vadd.s32 %v1820_v36, %v1816_v49 }
 0x1c9   :  { %12659 = vst [vmem:[#allocation40_spill] sm:$0xff] %v9184_v24  ;;  %12660 = vst [vmem:[#allocation41_spill] sm:$0xff] %v9189_v27  ;;  %v9193_v2 = vmul.f32 %v1739_v7, %v1737_v1  ;;  %v2081_v56 = vor.u32 8388608, %v2080_v61  ;;  %v2088_v0 = vsub.s32 32, %v2087_v50  ;;  %v256_v29 = vmul.f32 %v9046_v10, %v171_v63 }
 0x1ca   :  { %v9196_v48 = vor.u32 %v1627_v59, %v1626_v52  ;;  %v9198_v47 = vor.u32 4788187, %v1631_v32  ;;  %v6532_v28 = vadd.s32 4294967294, %v1933_v44  ;;  %v1822_v17 = vadd.s32 536870912, %v1821_v43 }
 0x1cb   :  { %v2091_v35 = vshrl.u32 %v12623_v55, %v2088_v0  ;;  %v2094_v30 = vshrl.u32 %v12616_v60, %v2088_v0  ;;  %v12517_v13 = vand.u32 2147483647, %v9169_v4  ;;  %v1973_v46 = vshrl.u32 %v1972_v42, 23 }
 0x1cc   :  { %v9203_v3 = vshrl.u32 %v1822_v17, 30  ;;  %v2090_v11 = vshll.u32 %v12620_v31, %v2087_v50  ;;  %v2093_v18 = vshll.u32 %v12623_v55, %v2087_v50  ;;  %v2097_v8 = vshrl.u32 %v12617_v25, %v2088_v0 }
 0x1cd   :  { %v2086_v1 = vshrl.u32 %v2085_v45, 5  ;;  %v2096_v34 = vshll.u32 %v12616_v60, %v2087_v50  ;;  %v2099_v59 = vshll.u32 %v12617_v25, %v2087_v50  ;;  %v2100_v32 = vshrl.u32 %v12618_v19, %v2088_v0 }
 0x1ce   :  { %12661 = vst [vmem:[#allocation42_spill] sm:$0xff] %v9203_v3  ;;  %vm6533_vm9 = vcmp.lt.s32.totalorder %v6532_v28, 0  ;;  %v1824_v21 = vshll.u32 %v9203_v3, 30  ;;  %v2092_v61 = vor.u32 %v2091_v35, %v2090_v11  ;;  %v2095_v44 = vor.u32 %v2094_v30, %v2093_v18 }
 0x1cf   :  { %v2098_v49 = vor.u32 %v2097_v8, %v2096_v34  ;;  %v2101_v63 = vor.u32 %v2100_v32, %v2099_v59  ;;  %v2102_v7 = vshll.u32 %v12618_v19, %v2087_v50  ;;  %v2103_v36 = vshrl.u32 %v12611_v57, %v2088_v0 }
 0x1d0   :  { %v9214_v42 = vsub.s32 %v1821_v43, %v1824_v21  ;;  %v2121_v45 = vshll.u32 %v2081_v56, 8  ;;  %v9218_v52 = vand.u32 8388607, %v12517_v13  ;;  %v9221_v17 = vadd.f32 %v8982_v22, %v256_v29 }
 0x1d1   :  { %v9223_v53 = vsel %vm6533_vm9, 0, %v6532_v28  ;;  %v2104_v35 = vor.u32 %v2103_v36, %v2102_v7  ;;  %vm2105_vm13 = vcmp.lt.s32.totalorder %v2086_v1, 1  ;;  %v6534_v30 = vadd.s32 4294967169, %v1973_v46 }
 0x1d2   :  { %12662 = vst [vmem:[#allocation43_spill] sm:$0xff] %v9221_v17  ;;  %v1827_v11 = vsub.s32 0, %v9214_v42  ;;  %vm2107_vm14 = vcmp.lt.s32.totalorder %v2086_v1, 3  ;;  %vm2108_vm2 = vcmp.lt.s32.totalorder %v2086_v1, 4  ;;  %v2113_v50 = vsel %vm2105_vm13, %v2092_v61, %v2095_v44 }
 0x1d3   :  { %v2110_v43 = vsel %vm2108_vm2, %v2098_v49, 2102212464  ;;  %v2114_v56 = vsel %vm2108_vm2, %v2101_v63, 920167782  ;;  %v2117_v18 = vsel %vm2105_vm13, %v2095_v44, %v2098_v49  ;;  %v2118_v8 = vsel %vm2108_vm2, %v2104_v35, 1326507024 }
 0x1d4   :  { %v6527_v34 = vmin.u32 %v1827_v11, %v9214_v42  ;;  %v2089_v29 = vshrl.u32 %v12620_v31, %v2088_v0  ;;  %vm2106_vm6 = vcmp.lt.s32.totalorder %v2086_v1, 2  ;;  %v2115_v28 = vsel %vm2107_vm14, %v2098_v49, %v2114_v56 }
 0x1d5   :  { %v1941_v46 = vsub.s32 4294967266, %v9223_v53  ;;  %v2116_v59 = vsel %vm2106_vm6, %v2113_v50, %v2115_v28  ;;  %v2119_v32 = vsel %vm2107_vm14, %v2101_v63, %v2118_v8  ;;  %v1979_v21 = vadd.s32 1, %v6534_v30 }
 0x1d6   :  { %v1829_v7 = vclz %v6527_v34  ;;  %v2109_v36 = vsel %vm2105_vm13, %v2089_v29, %v2092_v61  ;;  %v2111_v13 = vsel %vm2107_vm14, %v2095_v44, %v2110_v43  ;;  %v2120_v35 = vsel %vm2106_vm6, %v2117_v18, %v2119_v32 }
 0x1d7   :  { %v9237_v11 = vmul.u32.u64.low %v2121_v45, %v2120_v35  ;;  %v9238_v3 = vmul.u32.u64.high %v2121_v45, %v2120_v35, %v9237_v11  ;;  %v9240_v0 = vmul.u32.u64.low %v2121_v45, %v2116_v59  ;;  %v9241_v24 = vmul.u32.u64.high %v2121_v45, %v2116_v59, %v9240_v0 }
 0x1d8   :  { %v1921_v49 = vadd.s32 %v9084_v51, %v9089_v16  ;;  %v1937_v63 = vsub.s32 32, %v9223_v53  ;;  %vm1980_vm8 = vcmp.gt.s32.totalorder %v1979_v21, 0  ;;  %v2284_v30 = vand.u32 2139095040, %v9221_v17 }
 0x1d9   :  { %v1942_v61 = vadd.s32 127, %v1941_v46  ;;  %v6528_v50 = vadd.s32 4294967294, %v1829_v7  ;;  %v2112_v44 = vsel %vm2106_vm6, %v2109_v36, %v2111_v13  ;;  %v1981_v43 = vsel %vm1980_vm8, %v1979_v21, 0 }
 0x1da   :  { %v1983_v8 = vand.u32 31, %v1981_v43  ;;  %v1817_v16 = vadd.s32 %v9153_v26, %v9164_v38  ;;  %vm2130_vm9 = vc.u32 %v9238_v3, %v9240_v0  ;;  %v2131_v51 = vadd.s32 1, %v9241_v24 }
 0x1db   :  { %v1977_v29 = vor.u32 8388608, %v9218_v52  ;;  %v1938_v13 = vshll.u32 %v9145_v23, %v9223_v53  ;;  %v1939_v1 = vshrl.u32 %v1921_v49, %v1937_v63  ;;  %v2128_v28 = vmul.u32 %v2121_v45, %v2112_v44 }
 0x1dc   :  { %v1984_v46 = vsub.s32 32, %v1983_v8  ;;  %v1943_v59 = vshll.u32 %v1942_v61, 23  ;;  %vm6529_vm13 = vcmp.lt.s32.totalorder %v6528_v50, 0  ;;  %v2132_v32 = vsel %vm2130_vm9, %v2131_v51, %v9241_v24 }
 0x1dd   :  { %v2285_v21 = vshrl.u32 %v2284_v30, 23  ;;  %v2133_v7 = vadd.s32 %v2132_v32, %v2128_v28  ;;  %v1982_v26 = vshrl.u32 %v1981_v43, 5  ;;  %v1986_v38 = vshll.u32 %v12620_v31, %v1983_v8 }
 0x1de   :  { %v1989_v36 = vshll.u32 %v12623_v55, %v1983_v8  ;;  %v1987_v35 = vshrl.u32 %v12623_v55, %v1984_v46  ;;  %v1990_v52 = vshrl.u32 %v12616_v60, %v1984_v46  ;;  %v1992_v53 = vshll.u32 %v12616_v60, %v1983_v8 }
 0x1df   :  { %v1993_v23 = vshrl.u32 %v12617_v25, %v1984_v46  ;;  %v1832_v45 = vsel %vm6529_vm13, 0, %v6528_v50  ;;  %v2134_v11 = vadd.s32 536870912, %v2133_v7  ;;  %v1995_v49 = vshll.u32 %v12617_v25, %v1983_v8 }
 0x1e0   :  { %v1996_v24 = vshrl.u32 %v12618_v19, %v1984_v46  ;;  %v9269_v63 = vor.u32 4788187, %v1943_v59  ;;  %v1988_v30 = vor.u32 %v1987_v35, %v1986_v38  ;;  %v1991_v61 = vor.u32 %v1990_v52, %v1989_v36 }
 0x1e1   :  { %v1994_v44 = vor.u32 %v1993_v23, %v1992_v53  ;;  %v9271_v43 = vshrl.u32 %v2134_v11, 30  ;;  %v2017_v28 = vshll.u32 %v1977_v29, 8  ;;  %v6546_v32 = vadd.s32 4294967169, %v2285_v21 }
 0x1e2   :  { %v1997_v51 = vor.u32 %v1996_v24, %v1995_v49  ;;  %v1833_v34 = vsub.s32 32, %v1832_v45  ;;  %v1837_v18 = vsub.s32 4294967266, %v1832_v45  ;;  %v1998_v56 = vshll.u32 %v12618_v19, %v1983_v8  ;;  %v166_v49 = vpop.permute.xlu0 %165 }
 0x1e3   :  { %12663 = vst [vmem:[#allocation44_spill] sm:$0xff] %v9271_v43  ;;  %v1999_v50 = vshrl.u32 %v12611_v57, %v1984_v46  ;;  %v2136_v62 = vshll.u32 %v9271_v43, 30  ;;  %vm2001_vm14 = vcmp.lt.s32.totalorder %v1982_v26, 1  ;;  %vm2003_vm2 = vcmp.lt.s32.totalorder %v1982_v26, 3 }
 0x1e4   :  { %vm2004_vm6 = vcmp.lt.s32.totalorder %v1982_v26, 4  ;;  %v2009_v36 = vsel %vm2001_vm14, %v1988_v30, %v1991_v61  ;;  %v1985_v29 = vshrl.u32 %v12620_v31, %v1984_v46  ;;  %vm2002_vm8 = vcmp.lt.s32.totalorder %v1982_v26, 2 }
 0x1e5   :  { %v2000_v59 = vor.u32 %v1999_v50, %v1998_v56  ;;  %v2006_v38 = vsel %vm2004_vm6, %v1994_v44, 2102212464  ;;  %v2010_v35 = vsel %vm2004_vm6, %v1997_v51, 920167782  ;;  %v9277_v52 = vsub.s32 %v2133_v7, %v2136_v62 }
 0x1e6   :  { %v2011_v21 = vsel %vm2003_vm2, %v1994_v44, %v2010_v35  ;;  %v1835_v8 = vshrl.u32 %v1817_v16, %v1833_v34  ;;  %v2013_v23 = vsel %vm2001_vm14, %v1991_v61, %v1994_v44  ;;  %v2005_v24 = vsel %vm2001_vm14, %v1985_v29, %v1988_v30 }
 0x1e7   :  { %v2012_v53 = vsel %vm2002_vm8, %v2009_v36, %v2011_v21  ;;  %v2014_v11 = vsel %vm2004_vm6, %v2000_v59, 1326507024  ;;  %v2139_v56 = vsub.s32 0, %v9277_v52  ;;  %v2007_v50 = vsel %vm2003_vm2, %v1991_v61, %v2006_v38 }
 0x1e8   :  { %v2015_v62 = vsel %vm2003_vm2, %v1997_v51, %v2014_v11  ;;  %v1838_v7 = vadd.s32 127, %v1837_v18  ;;  %v9288_v43 = vmul.u32.u64.low %v2017_v28, %v2012_v53  ;;  %v9289_v35 = vmul.u32.u64.high %v2017_v28, %v2012_v53, %v9288_v43 }
 0x1e9   :  { %v2016_v46 = vsel %vm2002_vm8, %v2013_v23, %v2015_v62  ;;  %v6539_v34 = vmin.u32 %v2139_v56, %v9277_v52  ;;  %v255_v59 = vmul.f32 %v9046_v10, %v166_v49  ;;  %v1940_v36 = vor.u32 %v1939_v1, %v1938_v13 }
 0x1ea   :  { %v9293_v16 = vmul.u32.u64.low %v2017_v28, %v2016_v46  ;;  %v9294_v44 = vmul.u32.u64.high %v2017_v28, %v2016_v46, %v9293_v16  ;;  %v1834_v30 = vshll.u32 %v9214_v42, %v1832_v45  ;;  %v2008_v61 = vsel %vm2002_vm8, %v2005_v24, %v2007_v50 }
 0x1eb   :  { %v2291_v51 = vadd.s32 1, %v6546_v32  ;;  %v12664_v18 = vand.u32 2147483647, %v9198_v47  ;;  %v12665_v38 = vcvt.s32.f32 %v9196_v48  ;;  %v1945_v21 = vand.u32 2147483647, %v9269_v63  ;;  %v181_v47 = vpop.permute.xlu1 %180 }
 0x1ec   :  { %v2141_v53 = vclz %v6539_v34  ;;  %v12666_v23 = vand.u32 2147483647, %v9221_v17  ;;  %v9308_v56 = vor.u32 %v1835_v8, %v1834_v30  ;;  %v1839_v13 = vshll.u32 %v1838_v7, 23 }
 0x1ed   :  { %v9303_v29 = vmul.f32 %v12665_v38, %v12664_v18  ;;  %v2027_v42 = vadd.s32 1, %v9289_v35  ;;  %vm2292_vm9 = vcmp.gt.s32.totalorder %v2291_v51, 0  ;;  %v2024_v26 = vmul.u32 %v2017_v28, %v2008_v61 }
 0x1ee   :  { %v2288_v11 = vand.u32 8388607, %v12666_v23  ;;  %v6540_v1 = vadd.s32 4294967294, %v2141_v53  ;;  %vm2026_vm13 = vc.u32 %v9294_v44, %v9288_v43  ;;  %v2293_v48 = vsel %vm2292_vm9, %v2291_v51, 0 }
 0x1ef   :  { %v1947_v45 = vcvt.s32.f32 %v1940_v36  ;;  %v2028_v63 = vsel %vm2026_vm13, %v2027_v42, %v9289_v35  ;;  %v2295_v32 = vand.u32 31, %v2293_v48  ;;  %v9315_v49 = vadd.f32 %v8982_v22, %v255_v59  ;;  %v7365_v35 = vld [vmem:[%s12442_s3] sm:$0xff]  }
 0x1f0   :  { %vm6541_vm14 = vcmp.lt.s32.totalorder %v6540_v1, 0  ;;  %v2029_v50 = vadd.s32 %v2028_v63, %v2024_v26  ;;  %v9321_v28 = vor.u32 4788187, %v1839_v13  ;;  %v9324_v46 = vmul.f32 %v9046_v10, %v181_v47  ;;  %7224 = vmatprep.subr.bf16.mxu1 %v7365_v35  ;;  %6900 = vmatprep.subr.bf16.mxu0 %v7365_v35 }
 0x1f1   :  { %12667 = vst [vmem:[#allocation45_spill] sm:$0xff] %v9315_v49  ;;  %v9319_v62 = vmul.f32 %v1947_v45, %v1945_v21  ;;  %v2296_v7 = vsub.s32 32, %v2295_v32  ;;  %v9327_v34 = vsel %vm6541_vm14, 0, %v6540_v1  ;;  %v2289_v59 = vor.u32 8388608, %v2288_v11  ;;  %7226 = vmatpush3.bf16.msra.mxu1 %v7365_v35  ;;  %6901 = vmatpush3.bf16.msra.mxu0 %v7365_v35 }
 0x1f2   :  { %v2030_v16 = vadd.s32 536870912, %v2029_v50  ;;  %v9329_v36 = vshrl.u32 %v2293_v48, 5  ;;  %v2180_v51 = vand.u32 2139095040, %v9315_v49  ;;  %v2298_v38 = vshll.u32 %v12620_v31, %v2295_v32 }
 0x1f3   :  { %v2299_v30 = vshrl.u32 %v12623_v55, %v2296_v7  ;;  %v2302_v61 = vshrl.u32 %v12616_v60, %v2296_v7  ;;  %v2301_v21 = vshll.u32 %v12623_v55, %v2295_v32  ;;  %v2305_v53 = vshrl.u32 %v12617_v25, %v2296_v7 }
 0x1f4   :  { %v9334_v18 = vshrl.u32 %v2030_v16, 30  ;;  %v2149_v23 = vsub.s32 4294967266, %v9327_v34  ;;  %v2304_v11 = vshll.u32 %v12616_v60, %v2295_v32  ;;  %v2307_v13 = vshll.u32 %v12617_v25, %v2295_v32 }
 0x1f5   :  { %v2308_v42 = vshrl.u32 %v12618_v19, %v2296_v7  ;;  %v1841_v1 = vand.u32 2147483647, %v9321_v28  ;;  %v2300_v48 = vor.u32 %v2299_v30, %v2298_v38  ;;  %v2303_v47 = vor.u32 %v2302_v61, %v2301_v21 }
 0x1f6   :  { %12668 = vst [vmem:[#allocation46_spill] sm:$0xff] %v9334_v18  ;;  %v2032_v26 = vshll.u32 %v9334_v18, 30  ;;  %vm12546_vm2 = vcmp.lt.s32.totalorder %v8788_v6, 0  ;;  %v2306_v45 = vor.u32 %v2305_v53, %v2304_v11  ;;  %v2310_v16 = vshll.u32 %v12618_v19, %v2295_v32 }
 0x1f7   :  { %v2309_v63 = vor.u32 %v2308_v42, %v2307_v13  ;;  %v2311_v24 = vshrl.u32 %v12611_v57, %v2296_v7  ;;  %vm12547_vm6 = vcmp.lt.s32.totalorder %v8851_v33, 0  ;;  %v2329_v28 = vshll.u32 %v2289_v59, 8 }
 0x1f8   :  { %v9352_v8 = vsub.s32 %v2029_v50, %v2032_v26  ;;  %v2181_v61 = vshrl.u32 %v2180_v51, 23  ;;  %v2145_v38 = vsub.s32 32, %v9327_v34  ;;  %v2150_v21 = vadd.s32 127, %v2149_v23 }
 0x1f9   :  { %v2312_v53 = vor.u32 %v2311_v24, %v2310_v16  ;;  %vm2313_vm8 = vcmp.lt.s32.totalorder %v9329_v36, 1  ;;  %vm2315_vm9 = vcmp.lt.s32.totalorder %v9329_v36, 3  ;;  %vm2316_vm13 = vcmp.lt.s32.totalorder %v9329_v36, 4 }
 0x1fa   :  { %v2035_v32 = vsub.s32 0, %v9352_v8  ;;  %v2321_v50 = vsel %vm2313_vm8, %v2300_v48, %v2303_v47  ;;  %v2318_v59 = vsel %vm2316_vm13, %v2306_v45, 2102212464  ;;  %v2322_v51 = vsel %vm2316_vm13, %v2309_v63, 920167782 }
 0x1fb   :  { %v2325_v24 = vsel %vm2313_vm8, %v2303_v47, %v2306_v45  ;;  %v2326_v23 = vsel %vm2316_vm13, %v2312_v53, 1326507024  ;;  %v2297_v13 = vshrl.u32 %v12620_v31, %v2296_v7  ;;  %vm2314_vm14 = vcmp.lt.s32.totalorder %v9329_v36, 2 }
 0x1fc   :  { %v6535_v11 = vmin.u32 %v2035_v32, %v9352_v8  ;;  %v2323_v42 = vsel %vm2315_vm9, %v2306_v45, %v2322_v51  ;;  %v2151_v26 = vshll.u32 %v2150_v21, 23  ;;  %v2327_v35 = vsel %vm2315_vm9, %v2309_v63, %v2326_v23 }
 0x1fd   :  { %v2324_v16 = vsel %vm2314_vm14, %v2321_v50, %v2323_v42  ;;  %v6542_v30 = vadd.s32 4294967169, %v2181_v61  ;;  %v2317_v53 = vsel %vm2313_vm8, %v2297_v13, %v2300_v48  ;;  %v2319_v7 = vsel %vm2315_vm9, %v2303_v47, %v2318_v59 }
 0x1fe   :  { %v2037_v18 = vclz %v6535_v11  ;;  %v2328_v32 = vsel %vm2314_vm14, %v2325_v24, %v2327_v35  ;;  %v9382_v21 = vmul.u32.u64.low %v2329_v28, %v2324_v16  ;;  %v9383_v51 = vmul.u32.u64.high %v2329_v28, %v2324_v16, %v9382_v21 }
 0x1ff   :  { %v9379_v27 = vmul.u32.u64.low %v2329_v28, %v2328_v32  ;;  %v9380_v45 = vmul.u32.u64.high %v2329_v28, %v2328_v32, %v9379_v27  ;;  %v12669_v63 = vxor.u32 2147483648, %v9193_v2  ;;  %v12671_v48 = vcvt.s32.f32 %v9308_v56  ;;  %v176_v56 = vpop.permute.xlu0 %175 }
 0x200   :  { %v6536_v50 = vadd.s32 4294967294, %v2037_v18  ;;  %v2187_v59 = vadd.s32 1, %v6542_v30  ;;  %v12672_v27 = vxor.u32 2147483648, %v9303_v29  ;;  %v2129_v11 = vadd.s32 %v9240_v0, %v9238_v3 }
 0x201   :  { %v9391_v61 = vsel %vm12546_vm2, %v12669_v63, %v9193_v2  ;;  %v9395_v47 = vmul.f32 %v12671_v48, %v1841_v1  ;;  %v2320_v2 = vsel %vm2314_vm14, %v2317_v53, %v2319_v7  ;;  %v12674_v18 = vand.u32 2147483647, %v9315_v49 }
 0x202   :  { %12670 = vst [vmem:[#allocation47_spill] sm:$0xff] %v9391_v61  ;;  %v9402_v24 = vsel %vm12547_vm6, %v12672_v27, %v9303_v29  ;;  %vm6537_vm8 = vcmp.lt.s32.totalorder %v6536_v50, 0  ;;  %vm2188_vm9 = vcmp.gt.s32.totalorder %v2187_v59, 0  ;;  %v9413_v30 = vadd.f32 %v8982_v22, %v9324_v46 }
 0x203   :  { %12673 = vst [vmem:[#allocation48_spill] sm:$0xff] %v9402_v24  ;;  %v2184_v1 = vand.u32 8388607, %v12674_v18  ;;  %v2147_v29 = vshrl.u32 %v2129_v11, %v2145_v38  ;;  %v9415_v13 = vor.u32 4788187, %v2151_v26  ;;  %vm2338_vm13 = vc.u32 %v9380_v45, %v9382_v21 }
 0x204   :  { %12675 = vst [vmem:[#allocation49_spill] sm:$0xff] %v9413_v30  ;;  %v2339_v3 = vadd.s32 1, %v9383_v51  ;;  %v2336_v36 = vmul.u32 %v2329_v28, %v2320_v2  ;;  %v2189_v42 = vsel %vm2188_vm9, %v2187_v59, 0  ;;  %v9422_v16 = vmul.f32 %v9046_v10, %v176_v56 }
 0x205   :  { %v2146_v35 = vshll.u32 %v9277_v52, %v9327_v34  ;;  %v9426_v22 = vsel %vm6537_vm8, 0, %v6536_v50  ;;  %v2191_v38 = vand.u32 31, %v2189_v42  ;;  %v2025_v26 = vadd.s32 %v9288_v43, %v9294_v44 }
 0x206   :  { %v2340_v46 = vsel %vm2338_vm13, %v2339_v3, %v9383_v51  ;;  %v2185_v7 = vor.u32 8388608, %v2184_v1  ;;  %v2492_v59 = vand.u32 2139095040, %v9413_v30  ;;  %v2041_v52 = vsub.s32 32, %v9426_v22 }
 0x207   :  { %v2341_v53 = vadd.s32 %v2340_v46, %v2336_v36  ;;  %v9432_v28 = vor.u32 %v2147_v29, %v2146_v35  ;;  %v2192_v48 = vsub.s32 32, %v2191_v38  ;;  %v2194_v51 = vshll.u32 %v12620_v31, %v2191_v38 }
 0x208   :  { %v2197_v50 = vshll.u32 %v12623_v55, %v2191_v38  ;;  %v2200_v27 = vshll.u32 %v12616_v60, %v2191_v38  ;;  %v2190_v56 = vshrl.u32 %v2189_v42, 5  ;;  %v2203_v18 = vshll.u32 %v12617_v25, %v2191_v38 }
 0x209   :  { %v2342_v34 = vadd.s32 536870912, %v2341_v53  ;;  %v2195_v43 = vshrl.u32 %v12623_v55, %v2192_v48  ;;  %v2198_v44 = vshrl.u32 %v12616_v60, %v2192_v48  ;;  %v2201_v11 = vshrl.u32 %v12617_v25, %v2192_v48 }
 0x20a   :  { %v2204_v1 = vshrl.u32 %v12618_v19, %v2192_v48  ;;  %v2225_v35 = vshll.u32 %v2185_v7, 8  ;;  %v2206_v23 = vshll.u32 %v12618_v19, %v2191_v38  ;;  %v2207_v63 = vshrl.u32 %v12611_v57, %v2192_v48 }
 0x20b   :  { %v9443_v2 = vshrl.u32 %v2342_v34, 30  ;;  %v2196_v29 = vor.u32 %v2195_v43, %v2194_v51  ;;  %v2199_v3 = vor.u32 %v2198_v44, %v2197_v50  ;;  %v2202_v36 = vor.u32 %v2201_v11, %v2200_v27 }
 0x20c   :  { %v2205_v0 = vor.u32 %v2204_v1, %v2203_v18  ;;  %v2043_v32 = vshrl.u32 %v2025_v26, %v2041_v52  ;;  %v2045_v34 = vsub.s32 4294967266, %v9426_v22  ;;  %v2193_v42 = vshrl.u32 %v12620_v31, %v2192_v48 }
 0x20d   :  { %12676 = vst [vmem:[#allocation50_spill] sm:$0xff] %v9443_v2  ;;  %v2344_v46 = vshll.u32 %v9443_v2, 30  ;;  %v2493_v61 = vshrl.u32 %v2492_v59, 23  ;;  %v2208_v24 = vor.u32 %v2207_v63, %v2206_v23  ;;  %vm2209_vm14 = vcmp.lt.s32.totalorder %v2190_v56, 1 }
 0x20e   :  { %vm2212_vm8 = vcmp.lt.s32.totalorder %v2190_v56, 4  ;;  %vm2211_vm9 = vcmp.lt.s32.totalorder %v2190_v56, 3  ;;  %v2217_v51 = vsel %vm2209_vm14, %v2196_v29, %v2199_v3  ;;  %vm2210_vm13 = vcmp.lt.s32.totalorder %v2190_v56, 2 }
 0x20f   :  { %v9452_v6 = vsub.s32 %v2341_v53, %v2344_v46  ;;  %v2214_v7 = vsel %vm2212_vm8, %v2202_v36, 2102212464  ;;  %v2218_v50 = vsel %vm2212_vm8, %v2205_v0, 920167782  ;;  %v2221_v44 = vsel %vm2209_vm14, %v2199_v3, %v2202_v36 }
 0x210   :  { %v2219_v38 = vsel %vm2211_vm9, %v2202_v36, %v2218_v50  ;;  %v2046_v26 = vadd.s32 127, %v2045_v34  ;;  %v2222_v27 = vsel %vm2212_vm8, %v2208_v24, 1326507024  ;;  %v6554_v48 = vadd.s32 4294967169, %v2493_v61  ;;  %v191_v61 = vpop.permute.xlu1 %190 }
 0x211   :  { %v2347_v43 = vsub.s32 0, %v9452_v6  ;;  %v2220_v52 = vsel %vm2210_vm13, %v2217_v51, %v2219_v38  ;;  %v2213_v59 = vsel %vm2209_vm14, %v2193_v42, %v2196_v29  ;;  %v2215_v23 = vsel %vm2211_vm9, %v2199_v3, %v2214_v7 }
 0x212   :  { %v2223_v63 = vsel %vm2211_vm9, %v2205_v0, %v2222_v27  ;;  %v9458_v18 = vmul.u32.u64.low %v2225_v35, %v2220_v52  ;;  %v9459_v1 = vmul.u32.u64.high %v2225_v35, %v2220_v52, %v9458_v18  ;;  %v2499_v46 = vadd.s32 1, %v6554_v48 }
 0x213   :  { %v6547_v53 = vmin.u32 %v2347_v43, %v9452_v6  ;;  %v2224_v11 = vsel %vm2210_vm13, %v2221_v44, %v2223_v63  ;;  %v2042_v36 = vshll.u32 %v9352_v8, %v9426_v22  ;;  %v2155_v24 = vcvt.s32.f32 %v9432_v28  ;;  %v9477_v44 = vld [vmem:[%s12441_s2 + $0x1] ss:$0 sm:$0xff] }
 0x214   :  { %v9464_v50 = vmul.u32.u64.low %v2225_v35, %v2224_v11  ;;  %v9465_v51 = vmul.u32.u64.high %v2225_v35, %v2224_v11, %v9464_v50  ;;  %v2216_v29 = vsel %vm2210_vm13, %v2213_v59, %v2215_v23  ;;  %v12677_v0 = vand.u32 2147483647, %v9413_v30 }
 0x215   :  { %v2349_v34 = vclz %v6547_v53  ;;  %vm2500_vm14 = vcmp.gt.s32.totalorder %v2499_v46, 0  ;;  %v9471_v42 = vor.u32 %v2043_v32, %v2042_v36  ;;  %v2047_v7 = vshll.u32 %v2046_v26, 23 }
 0x216   :  { %v2496_v3 = vand.u32 8388607, %v12677_v0  ;;  %v2501_v38 = vsel %vm2500_vm14, %v2499_v46, 0  ;;  %v2235_v8 = vadd.s32 1, %v9459_v1  ;;  %v9481_v28 = vadd.f32 %v9477_v44, %v9422_v16 }
 0x217   :  { %v6548_v43 = vadd.s32 4294967294, %v2349_v34  ;;  %v2503_v22 = vand.u32 31, %v2501_v38  ;;  %v9484_v56 = vmul.f32 %v9046_v10, %v191_v61  ;;  %v12679_v32 = vand.u32 2147483647, %v9415_v13 }
 0x218   :  { %12678 = vst [vmem:[#allocation51_spill] sm:$0xff] %v9481_v28  ;;  %v2232_v52 = vmul.u32 %v2225_v35, %v2216_v29  ;;  %vm2234_vm9 = vc.u32 %v9465_v51, %v9458_v18  ;;  %v2337_v27 = vadd.s32 %v9382_v21, %v9380_v45  ;;  %v9497_v59 = vor.u32 4788187, %v2047_v7  ;;  %v7366_v29 = vld [vmem:[%s12442_s3 + $0x8] sm:$0xff]  }
 0x219   :  { %v9488_v26 = vmul.f32 %v2155_v24, %v12679_v32  ;;  %vm6549_vm8 = vcmp.lt.s32.totalorder %v6548_v43, 0  ;;  %v2236_v16 = vsel %vm2234_vm9, %v2235_v8, %v9459_v1  ;;  %v2504_v53 = vsub.s32 32, %v2503_v22  ;;  %7225 = vmatprep.subr.bf16.mxu1 %v7366_v29  ;;  %6902 = vmatprep.subr.bf16.mxu0 %v7366_v29 }
 0x21a   :  { %v9494_v48 = vsel %vm6549_vm8, 0, %v6548_v43  ;;  %v2237_v13 = vadd.s32 %v2236_v16, %v2232_v52  ;;  %v2497_v23 = vor.u32 8388608, %v2496_v3  ;;  %v2506_v63 = vshll.u32 %v12620_v31, %v2503_v22  ;;  %7227 = vmatpush3.bf16.msra.mxu1 %v7366_v29  ;;  %6903 = vmatpush3.bf16.msra.mxu0 %v7366_v29 }
 0x21b   :  { %v2507_v35 = vshrl.u32 %v12623_v55, %v2504_v53  ;;  %v2510_v11 = vshrl.u32 %v12616_v60, %v2504_v53  ;;  %v2388_v46 = vand.u32 2139095040, %v9481_v28  ;;  %v2353_v45 = vsub.s32 32, %v9494_v48 }
 0x21c   :  { %v2238_v21 = vadd.s32 536870912, %v2237_v13  ;;  %v2502_v36 = vshrl.u32 %v2501_v38, 5  ;;  %v2509_v1 = vshll.u32 %v12623_v55, %v2503_v22  ;;  %v2357_v34 = vsub.s32 4294967266, %v9494_v48 }
 0x21d   :  { %v2508_v50 = vor.u32 %v2507_v35, %v2506_v63  ;;  %v2512_v61 = vshll.u32 %v12616_v60, %v2503_v22  ;;  %v2513_v24 = vshrl.u32 %v12617_v25, %v2504_v53  ;;  %v2515_v7 = vshll.u32 %v12617_v25, %v2503_v22 }
 0x21e   :  { %v9512_v0 = vshrl.u32 %v2238_v21, 30  ;;  %v2511_v3 = vor.u32 %v2510_v11, %v2509_v1  ;;  %v2516_v43 = vshrl.u32 %v12618_v19, %v2504_v53  ;;  %v2049_v38 = vand.u32 2147483647, %v9497_v59 }
 0x21f   :  { %v2514_v8 = vor.u32 %v2513_v24, %v2512_v61  ;;  %v2518_v32 = vshll.u32 %v12618_v19, %v2503_v22  ;;  %v2519_v52 = vshrl.u32 %v12611_v57, %v2504_v53  ;;  %v2537_v35 = vshll.u32 %v2497_v23, 8 }
 0x220   :  { %12680 = vst [vmem:[#allocation52_spill] sm:$0xff] %v9512_v0  ;;  %v2240_v16 = vshll.u32 %v9512_v0, 30  ;;  %v2517_v63 = vor.u32 %v2516_v43, %v2515_v7  ;;  %v2358_v11 = vadd.s32 127, %v2357_v34  ;;  %v2505_v1 = vshrl.u32 %v12620_v31, %v2504_v53 }
 0x221   :  { %v2520_v10 = vor.u32 %v2519_v52, %v2518_v32  ;;  %v2389_v59 = vshrl.u32 %v2388_v46, 23  ;;  %v2355_v61 = vshrl.u32 %v2337_v27, %v2353_v45  ;;  %vm2521_vm13 = vcmp.lt.s32.totalorder %v2502_v36, 1 }
 0x222   :  { %v9522_v24 = vsub.s32 %v2237_v13, %v2240_v16  ;;  %vm2524_vm14 = vcmp.lt.s32.totalorder %v2502_v36, 4  ;;  %vm2523_vm8 = vcmp.lt.s32.totalorder %v2502_v36, 3  ;;  %v2529_v2 = vsel %vm2521_vm13, %v2508_v50, %v2511_v3 }
 0x223   :  { %v2526_v22 = vsel %vm2524_vm14, %v2514_v8, 2102212464  ;;  %v2530_v0 = vsel %vm2524_vm14, %v2517_v63, 920167782  ;;  %vm2522_vm9 = vcmp.lt.s32.totalorder %v2502_v36, 2  ;;  %v2533_v43 = vsel %vm2521_vm13, %v2511_v3, %v2514_v8 }
 0x224   :  { %v2243_v23 = vsub.s32 0, %v9522_v24  ;;  %v2531_v7 = vsel %vm2523_vm8, %v2514_v8, %v2530_v0  ;;  %v2359_v29 = vshll.u32 %v2358_v11, 23  ;;  %v2534_v53 = vsel %vm2524_vm14, %v2520_v10, 1326507024 }
 0x225   :  { %v2532_v34 = vsel %vm2522_vm9, %v2529_v2, %v2531_v7  ;;  %v6550_v32 = vadd.s32 4294967169, %v2389_v59  ;;  %v2525_v13 = vsel %vm2521_vm13, %v2505_v1, %v2508_v50  ;;  %v2527_v46 = vsel %vm2523_vm8, %v2511_v3, %v2526_v22  ;;  %v186_v1 = vpop.permute.xlu0 %185 }
 0x226   :  { %v6543_v27 = vmin.u32 %v2243_v23, %v9522_v24  ;;  %v2535_v45 = vsel %vm2523_vm8, %v2517_v63, %v2534_v53  ;;  %v9528_v16 = vmul.u32.u64.low %v2537_v35, %v2532_v34  ;;  %v9529_v21 = vmul.u32.u64.high %v2537_v35, %v2532_v34, %v9528_v16 }
 0x227   :  { %v2536_v52 = vsel %vm2522_vm9, %v2533_v43, %v2535_v45  ;;  %v2395_v33 = vadd.s32 1, %v6550_v32  ;;  %v2354_v0 = vshll.u32 %v9452_v6, %v9494_v48  ;;  %v12681_v50 = vcvt.s32.f32 %v9471_v42  ;;  %v201_v48 = vpop.permute.xlu1 %200 }
 0x228   :  { %v2245_v8 = vclz %v6543_v27  ;;  %v9534_v11 = vmul.u32.u64.low %v2537_v35, %v2536_v52  ;;  %v9535_v2 = vmul.u32.u64.high %v2537_v35, %v2536_v52, %v9534_v11  ;;  %v2528_v63 = vsel %vm2522_vm9, %v2525_v13, %v2527_v46 }
 0x229   :  { %v9540_v3 = vmul.f32 %v12681_v50, %v2049_v38  ;;  %vm2396_vm13 = vcmp.gt.s32.totalorder %v2395_v33, 0  ;;  %v2356_v59 = vor.u32 %v2355_v61, %v2354_v0  ;;  %v9545_v6 = vadd.f32 %v9477_v44, %v9484_v56 }
 0x22a   :  { %v6544_v22 = vadd.s32 4294967294, %v2245_v8  ;;  %v2397_v23 = vsel %vm2396_vm13, %v2395_v33, 0  ;;  %v2360_v7 = vor.u32 4788187, %v2359_v29  ;;  %v2547_v43 = vadd.s32 1, %v9529_v21 }
 0x22b   :  { %v12682_v34 = vand.u32 2147483647, %v9481_v28  ;;  %v2399_v38 = vand.u32 31, %v2397_v23  ;;  %v2544_v36 = vmul.u32 %v2537_v35, %v2528_v63  ;;  %vm2546_vm8 = vc.u32 %v9535_v2, %v9528_v16  ;;  %v9555_v33 = vld [vmem:[%s12441_s2] ss:$0 sm:$0xff] }
 0x22c   :  { %vm6545_vm14 = vcmp.lt.s32.totalorder %v6544_v22, 0  ;;  %v259_v56 = vmul.f32 %v9555_v33, %v186_v1  ;;  %v2548_v29 = vsel %vm2546_vm8, %v2547_v43, %v9529_v21  ;;  %v9561_v32 = vmul.f32 %v9555_v33, %v201_v48 }
 0x22d   :  { %v2392_v42 = vand.u32 8388607, %v12682_v34  ;;  %v2400_v53 = vsub.s32 32, %v2399_v38  ;;  %v2363_v27 = vcvt.s32.f32 %v2356_v59  ;;  %v9563_v35 = vsel %vm6545_vm14, 0, %v6544_v22 }
 0x22e   :  { %v2549_v13 = vadd.s32 %v2548_v29, %v2544_v36  ;;  %v2361_v45 = vand.u32 2147483647, %v2360_v7  ;;  %v2398_v50 = vshrl.u32 %v2397_v23, 5  ;;  %v2402_v21 = vshll.u32 %v12620_v31, %v2399_v38 }
 0x22f   :  { %v2393_v52 = vor.u32 8388608, %v2392_v42  ;;  %v2403_v0 = vshrl.u32 %v12623_v55, %v2400_v53  ;;  %v2406_v8 = vshrl.u32 %v12616_v60, %v2400_v53  ;;  %v2700_v63 = vand.u32 2139095040, %v9545_v6 }
 0x230   :  { %v2550_v11 = vadd.s32 536870912, %v2549_v13  ;;  %v2253_v1 = vsub.s32 4294967266, %v9563_v35  ;;  %v2405_v59 = vshll.u32 %v12623_v55, %v2399_v38  ;;  %v2408_v22 = vshll.u32 %v12616_v60, %v2399_v38 }
 0x231   :  { %v2409_v48 = vshrl.u32 %v12617_v25, %v2400_v53  ;;  %v2404_v43 = vor.u32 %v2403_v0, %v2402_v21  ;;  %v2411_v34 = vshll.u32 %v12617_v25, %v2399_v38  ;;  %v2412_v42 = vshrl.u32 %v12618_v19, %v2400_v53 }
 0x232   :  { %v9574_v7 = vshrl.u32 %v2550_v11, 30  ;;  %v2407_v23 = vor.u32 %v2406_v8, %v2405_v59  ;;  %v2414_v29 = vshll.u32 %v12618_v19, %v2399_v38  ;;  %v2415_v61 = vshrl.u32 %v12611_v57, %v2400_v53 }
 0x233   :  { %v2410_v36 = vor.u32 %v2409_v48, %v2408_v22  ;;  %v9580_v10 = vmul.f32 %v2363_v27, %v2361_v45  ;;  %v2413_v54 = vor.u32 %v2412_v42, %v2411_v34  ;;  %v2433_v58 = vshll.u32 %v2393_v52, 8 }
 0x234   :  { %12683 = vst [vmem:[#allocation53_spill] sm:$0xff] %v9574_v7  ;;  %v2552_v46 = vshll.u32 %v9574_v7, 30  ;;  %v2254_v39 = vadd.s32 127, %v2253_v1  ;;  %v2416_v11 = vor.u32 %v2415_v61, %v2414_v29  ;;  %v2701_v12 = vshrl.u32 %v2700_v63, 23 }
 0x235   :  { %v12684_v0 = vand.u32 2147483647, %v9545_v6  ;;  %v2401_v8 = vshrl.u32 %v12620_v31, %v2400_v53  ;;  %vm2417_vm9 = vcmp.lt.s32.totalorder %v2398_v50, 1  ;;  %vm2420_vm13 = vcmp.lt.s32.totalorder %v2398_v50, 4 }
 0x236   :  { %v9585_v37 = vsub.s32 %v2549_v13, %v2552_v46  ;;  %vm2419_vm14 = vcmp.lt.s32.totalorder %v2398_v50, 3  ;;  %v2422_v38 = vsel %vm2420_vm13, %v2410_v36, 2102212464  ;;  %v2425_v27 = vsel %vm2417_vm9, %v2404_v43, %v2407_v23 }
 0x237   :  { %v2704_v21 = vand.u32 8388607, %v12684_v0  ;;  %v2426_v45 = vsel %vm2420_vm13, %v2413_v54, 920167782  ;;  %vm2418_vm8 = vcmp.lt.s32.totalorder %v2398_v50, 2  ;;  %v2429_v1 = vsel %vm2417_vm9, %v2407_v23, %v2410_v36 }
 0x238   :  { %v2555_v59 = vsub.s32 0, %v9585_v37  ;;  %v2427_v52 = vsel %vm2419_vm14, %v2410_v36, %v2426_v45  ;;  %v2255_v61 = vshll.u32 %v2254_v39, 23  ;;  %v2430_v22 = vsel %vm2420_vm13, %v2416_v11, 1326507024 }
 0x239   :  { %v2428_v63 = vsel %vm2418_vm8, %v2425_v27, %v2427_v52  ;;  %v6562_v48 = vadd.s32 4294967169, %v2701_v12  ;;  %v2421_v46 = vsel %vm2417_vm9, %v2401_v8, %v2404_v43  ;;  %v2423_v53 = vsel %vm2419_vm14, %v2407_v23, %v2422_v38 }
 0x23a   :  { %v6555_v13 = vmin.u32 %v2555_v59, %v9585_v37  ;;  %v2431_v34 = vsel %vm2419_vm14, %v2413_v54, %v2430_v22  ;;  %v9592_v29 = vmul.u32.u64.low %v2433_v58, %v2428_v63  ;;  %v9593_v0 = vmul.u32.u64.high %v2433_v58, %v2428_v63, %v9592_v29 }
 0x23b   :  { %v2432_v42 = vsel %vm2418_vm8, %v2429_v1, %v2431_v34  ;;  %v2707_v7 = vadd.s32 1, %v6562_v48  ;;  %v9600_v39 = vadd.f32 %v9477_v44, %v259_v56  ;;  %v2233_v12 = vadd.s32 %v9458_v18, %v9465_v51 }
 0x23c   :  { %v2557_v5 = vclz %v6555_v13  ;;  %v9596_v45 = vmul.u32.u64.low %v2433_v58, %v2432_v42  ;;  %v9597_v36 = vmul.u32.u64.high %v2433_v58, %v2432_v42, %v9596_v45  ;;  %v9604_v43 = vor.u32 4788187, %v2255_v61 }
 0x23d   :  { %v2424_v54 = vsel %vm2418_vm8, %v2421_v46, %v2423_v53  ;;  %vm2708_vm9 = vcmp.gt.s32.totalorder %v2707_v7, 0  ;;  %v2705_v8 = vor.u32 8388608, %v2704_v21  ;;  %v2249_v27 = vsub.s32 32, %v9563_v35 }
 0x23e   :  { %v6556_v11 = vadd.s32 4294967294, %v2557_v5  ;;  %v2709_v38 = vsel %vm2708_vm9, %v2707_v7, 0  ;;  %v2443_v59 = vadd.s32 1, %v9593_v0  ;;  %v9612_v56 = vadd.f32 %v9477_v44, %v9561_v32 }
 0x23f   :  { %v2711_v52 = vand.u32 31, %v2709_v38  ;;  %v2440_v18 = vmul.u32 %v2433_v58, %v2424_v54  ;;  %vm2442_vm14 = vc.u32 %v9597_v36, %v9592_v29  ;;  %v2596_v51 = vand.u32 2139095040, %v9600_v39 }
 0x240   :  { %vm6557_vm13 = vcmp.lt.s32.totalorder %v6556_v11, 0  ;;  %v2257_v5 = vand.u32 2147483647, %v9604_v43  ;;  %v9620_v50 = vadd.s32 %v9528_v16, %v9535_v2  ;;  %v2444_v7 = vsel %vm2442_vm14, %v2443_v59, %v9593_v0 }
 0x241   :  { %v2712_v21 = vsub.s32 32, %v2711_v52  ;;  %v9623_v1 = vsel %vm6557_vm13, 0, %v6556_v11  ;;  %v2445_v32 = vadd.s32 %v2444_v7, %v2440_v18  ;;  %v9625_v61 = vshll.u32 %v2705_v8, 8 }
 0x242   :  { %v12550_v58 = vand.u32 2147483647, %v9600_v39  ;;  %v9628_v63 = vshrl.u32 %v2709_v38, 5  ;;  %v2251_v16 = vshrl.u32 %v2233_v12, %v2249_v27  ;;  %v2714_v46 = vshll.u32 %v12620_v31, %v2711_v52 }
 0x243   :  { %v2715_v22 = vshrl.u32 %v12623_v55, %v2712_v21  ;;  %v2718_v48 = vshrl.u32 %v12616_v60, %v2712_v21  ;;  %v2446_v2 = vadd.s32 536870912, %v2445_v32  ;;  %v2597_v53 = vshrl.u32 %v2596_v51, 23 }
 0x244   :  { %v2565_v34 = vsub.s32 4294967266, %v9623_v1  ;;  %v2717_v42 = vshll.u32 %v12623_v55, %v2711_v52  ;;  %v2720_v0 = vshll.u32 %v12616_v60, %v2711_v52  ;;  %v2721_v45 = vshrl.u32 %v12617_v25, %v2712_v21 }
 0x245   :  { %v9638_v54 = vshrl.u32 %v2446_v2, 30  ;;  %v2716_v11 = vor.u32 %v2715_v22, %v2714_v46  ;;  %v2723_v8 = vshll.u32 %v12617_v25, %v2711_v52  ;;  %v2724_v38 = vshrl.u32 %v12618_v19, %v2712_v21  ;;  %v9655_v46 = vld [vmem:[%s12444_s5] sm:$0xff]  }
 0x246   :  { %vm12575_vm8 = vcmp.lt.s32.totalorder %v8953_v9, 0  ;;  %v2719_v12 = vor.u32 %v2718_v48, %v2717_v42  ;;  %v2722_v27 = vor.u32 %v2721_v45, %v2720_v0  ;;  %v2726_v59 = vshll.u32 %v12618_v19, %v2711_v52  ;;  %6936 = vmatprep.subr.bf16.mxu1 %v9655_v46 }
 0x247   :  { %12685 = vst [vmem:[#allocation54_spill] sm:$0xff] %v9638_v54  ;;  %v2727_v18 = vshrl.u32 %v12611_v57, %v2712_v21  ;;  %v2250_v51 = vshll.u32 %v9522_v24, %v9563_v35  ;;  %v2448_v7 = vshll.u32 %v9638_v54, 30  ;;  %v2725_v2 = vor.u32 %v2724_v38, %v2723_v8 }
 0x248   :  { %v9650_v22 = vand.u32 8388607, %v12550_v58  ;;  %vm12589_vm9 = vcmp.lt.s32.totalorder %v8985_v15, 0  ;;  %v2561_v52 = vsub.s32 32, %v9623_v1  ;;  %v2566_v48 = vadd.s32 127, %v2565_v34 }
 0x249   :  { %v2728_v42 = vor.u32 %v2727_v18, %v2726_v59  ;;  %vm2732_vm13 = vcmp.lt.s32.totalorder %v9628_v63, 4  ;;  %v9660_v24 = vsub.s32 %v2445_v32, %v2448_v7  ;;  %vm2729_vm14 = vcmp.lt.s32.totalorder %v9628_v63, 1 }
 0x24a   :  { %vm2731_vm2 = vcmp.lt.s32.totalorder %v9628_v63, 3  ;;  %v2734_v35 = vsel %vm2732_vm13, %v2722_v27, 2102212464  ;;  %v2252_v0 = vor.u32 %v2251_v16, %v2250_v51  ;;  %v2713_v45 = vshrl.u32 %v12620_v31, %v2712_v21 }
 0x24b   :  { %v2737_v34 = vsel %vm2729_vm14, %v2716_v11, %v2719_v12  ;;  %v2738_v8 = vsel %vm2732_vm13, %v2725_v2, 920167782  ;;  %v2451_v32 = vsub.s32 0, %v9660_v24  ;;  %vm2730_vm6 = vcmp.lt.s32.totalorder %v9628_v63, 2 }
 0x24c   :  { %v2739_v38 = vsel %vm2731_vm2, %v2722_v27, %v2738_v8  ;;  %v2741_v59 = vsel %vm2729_vm14, %v2719_v12, %v2722_v27  ;;  %vm12553_vm3 = vcmp.lt.s32.totalorder %v9092_v41, 0  ;;  %v2567_v16 = vshll.u32 %v2566_v48, 23 }
 0x24d   :  { %v2740_v21 = vsel %vm2730_vm6, %v2737_v34, %v2739_v38  ;;  %v2742_v18 = vsel %vm2732_vm13, %v2728_v42, 1326507024  ;;  %v6558_v51 = vadd.s32 4294967169, %v2597_v53  ;;  %vm12554_vm5 = vcmp.lt.s32.totalorder %v9169_v4, 0 }
 0x24e   :  { %v6551_v7 = vmin.u32 %v2451_v32, %v9660_v24  ;;  %v2733_v8 = vsel %vm2729_vm14, %v2713_v45, %v2716_v11  ;;  %v2735_v27 = vsel %vm2731_vm2, %v2719_v12, %v2734_v35  ;;  %v2743_v48 = vsel %vm2731_vm2, %v2725_v2, %v2742_v18 }
 0x24f   :  { %v2744_v34 = vsel %vm2730_vm6, %v2741_v59, %v2743_v48  ;;  %v9694_v38 = vmul.u32.u64.low %v9625_v61, %v2740_v21  ;;  %v9695_v42 = vmul.u32.u64.high %v9625_v61, %v2740_v21, %v9694_v38  ;;  %v2603_v53 = vadd.s32 1, %v6558_v51 }
 0x250   :  { %v12686_v32 = vxor.u32 2147483648, %v9319_v62  ;;  %v2453_v12 = vclz %v6551_v7  ;;  %v9706_v35 = vmul.u32.u64.low %v9625_v61, %v2744_v34  ;;  %v9707_v2 = vmul.u32.u64.high %v9625_v61, %v2744_v34, %v9706_v35 }
 0x251   :  { %v2563_v45 = vshrl.u32 %v9620_v50, %v2561_v52  ;;  %v9710_v59 = vor.u32 4788187, %v2567_v16  ;;  %v2736_v21 = vsel %vm2730_vm6, %v2733_v8, %v2735_v27  ;;  %vm2604_vm2 = vcmp.gt.s32.totalorder %v2603_v53, 0 }
 0x252   :  { %v9703_v11 = vsel %vm12575_vm8, %v12686_v32, %v9319_v62  ;;  %v12687_v18 = vxor.u32 2147483648, %v9395_v47  ;;  %v2259_v51 = vcvt.s32.f32 %v2252_v0  ;;  %v6552_v7 = vadd.s32 4294967294, %v2453_v12 }
 0x253   :  { %v2605_v48 = vsel %vm2604_vm2, %v2603_v53, 0  ;;  %v2562_v34 = vshll.u32 %v9585_v37, %v9623_v1  ;;  %v2755_v50 = vadd.s32 1, %v9695_v42  ;;  %v2601_v52 = vor.u32 8388608, %v9650_v22 }
 0x254   :  { %v9719_v62 = vsel %vm12589_vm9, %v12687_v18, %v9395_v47  ;;  %v2607_v63 = vand.u32 31, %v2605_v48  ;;  %vm6553_vm6 = vcmp.lt.s32.totalorder %v6552_v7, 0  ;;  %v2752_v16 = vmul.u32 %v9625_v61, %v2736_v21 }
 0x255   :  { %vm2754_vm13 = vc.u32 %v9707_v2, %v9694_v38  ;;  %v2908_v47 = vand.u32 2139095040, %v9612_v56  ;;  %v9729_v8 = vor.u32 %v2563_v45, %v2562_v34  ;;  %v9731_v0 = vsel %vm6553_vm6, 0, %v6552_v7 }
 0x256   :  { %v2756_v27 = vsel %vm2754_vm13, %v2755_v50, %v9695_v42  ;;  %v2608_v37 = vsub.s32 32, %v2607_v63  ;;  %v12688_v1 = vxor.u32 2147483648, %v9488_v26  ;;  %v2457_v61 = vsub.s32 32, %v9731_v0 }
 0x257   :  { %v2757_v53 = vadd.s32 %v2756_v27, %v2752_v16  ;;  %v2606_v32 = vshrl.u32 %v2605_v48, 5  ;;  %v12690_v12 = vxor.u32 2147483648, %v9540_v3  ;;  %v9751_v42 = vmul.f32 %v2259_v51, %v2257_v5 }
 0x258   :  { %v9739_v22 = vsel %vm12553_vm3, %v12688_v1, %v9488_v26  ;;  %v2611_v45 = vshrl.u32 %v12623_v55, %v2608_v37  ;;  %v2614_v26 = vshrl.u32 %v12616_v60, %v2608_v37  ;;  %v2441_v21 = vadd.s32 %v9592_v29, %v9597_v36 }
 0x259   :  { %12689 = vst [vmem:[#allocation55_spill] sm:$0xff] %v9739_v22  ;;  %v9747_v35 = vsel %vm12554_vm5, %v12690_v12, %v9540_v3  ;;  %v2461_v18 = vsub.s32 4294967266, %v9731_v0  ;;  %v2758_v7 = vadd.s32 536870912, %v2757_v53  ;;  %v2610_v48 = vshll.u32 %v12620_v31, %v2607_v63 }
 0x25a   :  { %v2571_v34 = vcvt.s32.f32 %v9729_v8  ;;  %v2613_v3 = vshll.u32 %v12623_v55, %v2607_v63  ;;  %v2616_v43 = vshll.u32 %v12616_v60, %v2607_v63  ;;  %v2617_v5 = vshrl.u32 %v12617_v25, %v2608_v37 }
 0x25b   :  { %v9763_v51 = vshrl.u32 %v2758_v7, 30  ;;  %v2612_v50 = vor.u32 %v2611_v45, %v2610_v48  ;;  %v2619_v16 = vshll.u32 %v12617_v25, %v2607_v63  ;;  %v2620_v29 = vshrl.u32 %v12618_v19, %v2608_v37 }
 0x25c   :  { %v2615_v36 = vor.u32 %v2614_v26, %v2613_v3  ;;  %v2618_v27 = vor.u32 %v2617_v5, %v2616_v43  ;;  %v2622_v1 = vshll.u32 %v12618_v19, %v2607_v63  ;;  %v2623_v12 = vshrl.u32 %v12611_v57, %v2608_v37 }
 0x25d   :  { %12691 = vst [vmem:[#allocation56_spill] sm:$0xff] %v9763_v51  ;;  %v2569_v8 = vand.u32 2147483647, %v9710_v59  ;;  %v2760_v58 = vshll.u32 %v9763_v51, 30  ;;  %v2621_v13 = vor.u32 %v2620_v29, %v2619_v16  ;;  %v2641_v23 = vshll.u32 %v2601_v52, 8 }
 0x25e   :  { %vm12557_vm14 = vcmp.lt.s32.totalorder %v9221_v17, 0  ;;  %v2462_v7 = vadd.s32 127, %v2461_v18  ;;  %v2624_v45 = vor.u32 %v2623_v12, %v2622_v1  ;;  %vm2628_vm2 = vcmp.lt.s32.totalorder %v2606_v32, 4 }
 0x25f   :  { %v2909_v48 = vshrl.u32 %v2908_v47, 23  ;;  %v9772_v54 = vsub.s32 %v2757_v53, %v2760_v58  ;;  %vm2625_vm6 = vcmp.lt.s32.totalorder %v2606_v32, 1  ;;  %vm2627_vm13 = vcmp.lt.s32.totalorder %v2606_v32, 3 }
 0x260   :  { %v2630_v63 = vsel %vm2628_vm2, %v2618_v27, 2102212464  ;;  %vm12558_vm3 = vcmp.lt.s32.totalorder %v9315_v49, 0  ;;  %v2459_v26 = vshrl.u32 %v2441_v21, %v2457_v61  ;;  %v2609_v59 = vshrl.u32 %v12620_v31, %v2608_v37 }
 0x261   :  { %v2633_v3 = vsel %vm2625_vm6, %v2612_v50, %v2615_v36  ;;  %v2634_v52 = vsel %vm2628_vm2, %v2621_v13, 920167782  ;;  %v2763_v18 = vsub.s32 0, %v9772_v54  ;;  %vm2626_vm5 = vcmp.lt.s32.totalorder %v2606_v32, 2 }
 0x262   :  { %v2635_v47 = vsel %vm2627_vm13, %v2618_v27, %v2634_v52  ;;  %v2637_v58 = vsel %vm2625_vm6, %v2615_v36, %v2618_v27  ;;  %v2463_v53 = vshll.u32 %v2462_v7, 23  ;;  %v2638_v5 = vsel %vm2628_vm2, %v2624_v45, 1326507024 }
 0x263   :  { %v2636_v43 = vsel %vm2626_vm5, %v2633_v3, %v2635_v47  ;;  %v6570_v16 = vadd.s32 4294967169, %v2909_v48  ;;  %v6563_v61 = vmin.u32 %v2763_v18, %v9772_v54  ;;  %v2629_v37 = vsel %vm2625_vm6, %v2609_v59, %v2612_v50 }
 0x264   :  { %v2631_v21 = vsel %vm2627_vm13, %v2615_v36, %v2630_v63  ;;  %v2639_v29 = vsel %vm2627_vm13, %v2621_v13, %v2638_v5  ;;  %v9789_v12 = vmul.u32.u64.low %v2641_v23, %v2636_v43  ;;  %v9790_v52 = vmul.u32.u64.high %v2641_v23, %v2636_v43, %v9789_v12  ;;  %v196_v36 = vpop.permute.xlu0 %195 }
 0x265   :  { %v2640_v1 = vsel %vm2626_vm5, %v2637_v58, %v2639_v29  ;;  %v2915_v27 = vadd.s32 1, %v6570_v16  ;;  %v2261_v7 = vxor.u32 2147483648, %v9751_v42  ;;  %v2765_v3 = vclz %v6563_v61 }
 0x266   :  { %v9794_v45 = vmul.u32.u64.low %v2641_v23, %v2640_v1  ;;  %v9795_v48 = vmul.u32.u64.high %v2641_v23, %v2640_v1, %v9794_v45  ;;  %v9797_v18 = vmul.f32 %v2571_v34, %v2569_v8  ;;  %v2458_v50 = vshll.u32 %v9660_v24, %v9731_v0  ;;  %v211_v8 = vpop.permute.xlu1 %210 }
 0x267   :  { %v2632_v13 = vsel %vm2626_vm5, %v2629_v37, %v2631_v21  ;;  %vm2916_vm2 = vcmp.gt.s32.totalorder %v2915_v27, 0  ;;  %v12692_v63 = vxor.u32 2147483648, %v9580_v10  ;;  %v6564_v47 = vadd.s32 4294967294, %v2765_v3 }
 0x268   :  { %v12694_v58 = vand.u32 2147483647, %v9612_v56  ;;  %v2917_v34 = vsel %vm2916_vm2, %v2915_v27, 0  ;;  %v2460_v5 = vor.u32 %v2459_v26, %v2458_v50  ;;  %v2464_v16 = vor.u32 4788187, %v2463_v53 }
 0x269   :  { %v9807_v59 = vsel %vm12557_vm14, %v12692_v63, %v9580_v10  ;;  %v2651_v24 = vadd.s32 1, %v9790_v52  ;;  %v2919_v0 = vand.u32 31, %v2917_v34  ;;  %v9815_v32 = vsel %vm12558_vm3, %v2261_v7, %v9751_v42 }
 0x26a   :  { %12693 = vst [vmem:[#allocation57_spill] sm:$0xff] %v9807_v59  ;;  %v2912_v43 = vand.u32 8388607, %v12694_v58  ;;  %12695 = vst [vmem:[#allocation58_spill] sm:$0xff] %v9815_v32  ;;  %v2648_v61 = vmul.u32 %v2641_v23, %v2632_v13  ;;  %vm2650_vm5 = vc.u32 %v9795_v48, %v9789_v12  ;;  %v261_v10 = vmul.f32 %v9555_v33, %v196_v36 }
 0x26b   :  { %v2652_v21 = vsel %vm2650_vm5, %v2651_v24, %v9790_v52  ;;  %v2920_v26 = vsub.s32 32, %v2919_v0  ;;  %v264_v53 = vmul.f32 %v9555_v33, %v211_v8  ;;  %v2753_v29 = vadd.s32 %v9694_v38, %v9707_v2 }
 0x26c   :  { %vm6565_vm6 = vcmp.lt.s32.totalorder %v6564_v47, 0  ;;  %v2653_v1 = vadd.s32 %v2652_v21, %v2648_v61  ;;  %v2913_v42 = vor.u32 8388608, %v2912_v43  ;;  %v2465_v27 = vand.u32 2147483647, %v2464_v16 }
 0x26d   :  { %v2467_v23 = vcvt.s32.f32 %v2460_v5  ;;  %v2923_v7 = vshrl.u32 %v12623_v55, %v2920_v26  ;;  %v2926_v3 = vshrl.u32 %v12616_v60, %v2920_v26  ;;  %v2918_v50 = vshrl.u32 %v2917_v34, 5 }
 0x26e   :  { %v2654_v45 = vadd.s32 536870912, %v2653_v1  ;;  %v2922_v13 = vshll.u32 %v12620_v31, %v2919_v0  ;;  %v9829_v52 = vadd.f32 %v9477_v44, %v261_v10  ;;  %v9831_v36 = vsel %vm6565_vm6, 0, %v6564_v47 }
 0x26f   :  { %v2925_v38 = vshll.u32 %v12623_v55, %v2919_v0  ;;  %v2928_v2 = vshll.u32 %v12616_v60, %v2919_v0  ;;  %v2929_v63 = vshrl.u32 %v12617_v25, %v2920_v26  ;;  %v2931_v8 = vshll.u32 %v12617_v25, %v2919_v0 }
 0x270   :  { %v9836_v58 = vshrl.u32 %v2654_v45, 30  ;;  %v2924_v43 = vor.u32 %v2923_v7, %v2922_v13  ;;  %v2932_v34 = vshrl.u32 %v12618_v19, %v2920_v26  ;;  %v2934_v24 = vshll.u32 %v12618_v19, %v2919_v0 }
 0x271   :  { %v2927_v5 = vor.u32 %v2926_v3, %v2925_v38  ;;  %v2930_v16 = vor.u32 %v2929_v63, %v2928_v2  ;;  %v2935_v47 = vshrl.u32 %v12611_v57, %v2920_v26  ;;  %v9842_v61 = vmul.f32 %v2467_v23, %v2465_v27 }
 0x272   :  { %12696 = vst [vmem:[#allocation59_spill] sm:$0xff] %v9836_v58  ;;  %v2656_v10 = vshll.u32 %v9836_v58, 30  ;;  %v2933_v21 = vor.u32 %v2932_v34, %v2931_v8  ;;  %v2953_v37 = vshll.u32 %v2913_v42, 8  ;;  %v2769_v45 = vsub.s32 32, %v9831_v36 }
 0x273   :  { %v2936_v51 = vor.u32 %v2935_v47, %v2934_v24  ;;  %v9848_v13 = vadd.f32 %v9477_v44, %v264_v53  ;;  %v2921_v0 = vshrl.u32 %v12620_v31, %v2920_v26  ;;  %vm2937_vm13 = vcmp.lt.s32.totalorder %v2918_v50, 1 }
 0x274   :  { %v9850_v3 = vsub.s32 %v2653_v1, %v2656_v10  ;;  %vm2940_vm2 = vcmp.lt.s32.totalorder %v2918_v50, 4  ;;  %vm2939_vm5 = vcmp.lt.s32.totalorder %v2918_v50, 3  ;;  %v2945_v23 = vsel %vm2937_vm13, %v2924_v43, %v2927_v5 }
 0x275   :  { %v2942_v27 = vsel %vm2940_vm2, %v2930_v16, 2102212464  ;;  %v2946_v38 = vsel %vm2940_vm2, %v2933_v21, 920167782  ;;  %vm2938_vm6 = vcmp.lt.s32.totalorder %v2918_v50, 2  ;;  %v2949_v63 = vsel %vm2937_vm13, %v2927_v5, %v2930_v16 }
 0x276   :  { %v2659_v42 = vsub.s32 0, %v9850_v3  ;;  %v2947_v2 = vsel %vm2939_vm5, %v2930_v16, %v2946_v38  ;;  %vm12568_vm14 = vcmp.lt.s32.totalorder %v9413_v30, 0  ;;  %v2773_v53 = vsub.s32 4294967266, %v9831_v36 }
 0x277   :  { %v2948_v26 = vsel %vm2938_vm6, %v2945_v23, %v2947_v2  ;;  %v2950_v1 = vsel %vm2940_vm2, %v2936_v51, 1326507024  ;;  %v2804_v8 = vand.u32 2139095040, %v9829_v52  ;;  %vm12574_vm3 = vcmp.lt.s32.totalorder %v9481_v28, 0  ;;  %v206_v51 = vpop.permute.xlu0 %205 }
 0x278   :  { %v6559_v34 = vmin.u32 %v2659_v42, %v9850_v3  ;;  %v2941_v24 = vsel %vm2937_vm13, %v2921_v0, %v2924_v43  ;;  %v2943_v47 = vsel %vm2939_vm5, %v2927_v5, %v2942_v27  ;;  %v2951_v10 = vsel %vm2939_vm5, %v2933_v21, %v2950_v1 }
 0x279   :  { %v2952_v16 = vsel %vm2938_vm6, %v2949_v63, %v2951_v10  ;;  %v9867_v38 = vmul.u32.u64.low %v2953_v37, %v2948_v26  ;;  %v9868_v7 = vmul.u32.u64.high %v2953_v37, %v2948_v26, %v9867_v38  ;;  %v2805_v23 = vshrl.u32 %v2804_v8, 23 }
 0x27a   :  { %v2771_v2 = vshrl.u32 %v2753_v29, %v2769_v45  ;;  %v2661_v58 = vclz %v6559_v34  ;;  %v9871_v59 = vmul.u32.u64.low %v2953_v37, %v2952_v16  ;;  %v9872_v17 = vmul.u32.u64.high %v2953_v37, %v2952_v16, %v9871_v59  ;;  %v221_v34 = vpop.permute.xlu1 %220 }
 0x27b   :  { %v2469_v42 = vxor.u32 2147483648, %v9842_v61  ;;  %v2774_v43 = vadd.s32 127, %v2773_v53  ;;  %v2944_v5 = vsel %vm2938_vm6, %v2941_v24, %v2943_v47  ;;  %v6566_v0 = vadd.s32 4294967169, %v2805_v23  ;;  %v216_v24 = vpop.permute.xlu0 %215 }
 0x27c   :  { %v2770_v21 = vshll.u32 %v9772_v54, %v9831_v36  ;;  %v6560_v27 = vadd.s32 4294967294, %v2661_v58  ;;  %v12697_v63 = vand.u32 2147483647, %v9829_v52  ;;  %v12563_v1 = vand.u32 2147483647, %v9848_v13 }
 0x27d   :  { %v2963_v29 = vadd.s32 1, %v9868_v7  ;;  %v2811_v45 = vadd.s32 1, %v6566_v0  ;;  %v3116_v59 = vand.u32 2139095040, %v9848_v13  ;;  %v263_v8 = vmul.f32 %v9555_v33, %v206_v51 }
 0x27e   :  { %v2808_v26 = vand.u32 8388607, %v12697_v63  ;;  %v9884_v53 = vor.u32 %v2771_v2, %v2770_v21  ;;  %vm6561_vm13 = vcmp.lt.s32.totalorder %v6560_v27, 0  ;;  %v2960_v50 = vmul.u32 %v2953_v37, %v2944_v5 }
 0x27f   :  { %vm2962_vm2 = vc.u32 %v9872_v17, %v9867_v38  ;;  %v2775_v54 = vshll.u32 %v2774_v43, 23  ;;  %v9888_v36 = vsel %vm6561_vm13, 0, %v6560_v27  ;;  %vm2812_vm5 = vcmp.gt.s32.totalorder %v2811_v45, 0 }
 0x280   :  { %v2964_v58 = vsel %vm2962_vm2, %v2963_v29, %v9868_v7  ;;  %v12698_v47 = vxor.u32 2147483648, %v9797_v18  ;;  %v2809_v37 = vor.u32 8388608, %v2808_v26  ;;  %v9900_v23 = vand.u32 8388607, %v12563_v1 }
 0x281   :  { %v2965_v16 = vadd.s32 %v2964_v58, %v2960_v50  ;;  %v9905_v7 = vsel %vm12574_vm3, %v2469_v42, %v9842_v61  ;;  %v2665_v51 = vsub.s32 32, %v9888_v36  ;;  %v2813_v2 = vsel %vm2812_vm5, %v2811_v45, 0 }
 0x282   :  { %v9896_v10 = vsel %vm12568_vm14, %v12698_v47, %v9797_v18  ;;  %12700 = vst [vmem:[#allocation61_spill] sm:$0xff] %v9905_v7  ;;  %v3117_v43 = vshrl.u32 %v3116_v59, 23  ;;  %v2649_v5 = vadd.s32 %v9789_v12, %v9795_v48  ;;  %v9911_v0 = vmul.f32 %v9555_v33, %v221_v34 }
 0x283   :  { %12699 = vst [vmem:[#allocation60_spill] sm:$0xff] %v9896_v10  ;;  %v2966_v18 = vadd.s32 536870912, %v2965_v16  ;;  %v9914_v21 = vmul.f32 %v9555_v33, %v216_v24  ;;  %v9916_v27 = vor.u32 4788187, %v2775_v54  ;;  %v2815_v61 = vand.u32 31, %v2813_v2 }
 0x284   :  { %v9920_v42 = vadd.f32 %v9477_v44, %v263_v8  ;;  %v2666_v26 = vshll.u32 %v9850_v3, %v9888_v36  ;;  %v9926_v12 = vshll.u32 %v2809_v37, 8  ;;  %v2667_v45 = vshrl.u32 %v2649_v5, %v2665_v51 }
 0x285   :  { %v9924_v29 = vshrl.u32 %v2966_v18, 30  ;;  %v2669_v33 = vsub.s32 4294967266, %v9888_v36  ;;  %v2816_v59 = vsub.s32 32, %v2815_v61  ;;  %v6578_v50 = vadd.s32 4294967169, %v3117_v43 }
 0x286   :  { %v2814_v58 = vshrl.u32 %v2813_v2, 5  ;;  %v2818_v44 = vshll.u32 %v12620_v31, %v2815_v61  ;;  %v2821_v8 = vshll.u32 %v12623_v55, %v2815_v61  ;;  %v2824_v24 = vshll.u32 %v12616_v60, %v2815_v61 }
 0x287   :  { %12701 = vst [vmem:[#allocation62_spill] sm:$0xff] %v9924_v29  ;;  %v2968_v54 = vshll.u32 %v9924_v29, 30  ;;  %v2819_v3 = vshrl.u32 %v12623_v55, %v2816_v59  ;;  %v2822_v34 = vshrl.u32 %v12616_v60, %v2816_v59  ;;  %v2825_v47 = vshrl.u32 %v12617_v25, %v2816_v59 }
 0x288   :  { %v2827_v36 = vshll.u32 %v12617_v25, %v2815_v61  ;;  %v2828_v51 = vshrl.u32 %v12618_v19, %v2816_v59  ;;  %v2830_v2 = vshll.u32 %v12618_v19, %v2815_v61  ;;  %v2831_v1 = vshrl.u32 %v12611_v57, %v2816_v59 }
 0x289   :  { %v9937_v37 = vsub.s32 %v2965_v16, %v2968_v54  ;;  %v2820_v43 = vor.u32 %v2819_v3, %v2818_v44  ;;  %v2823_v5 = vor.u32 %v2822_v34, %v2821_v8  ;;  %v2826_v18 = vor.u32 %v2825_v47, %v2824_v24 }
 0x28a   :  { %v2670_v63 = vadd.s32 127, %v2669_v33  ;;  %v2829_v29 = vor.u32 %v2828_v51, %v2827_v36  ;;  %v3123_v10 = vadd.s32 1, %v6578_v50  ;;  %v2832_v30 = vor.u32 %v2831_v1, %v2830_v2 }
 0x28b   :  { %v2971_v48 = vsub.s32 0, %v9937_v37  ;;  %vm2833_vm6 = vcmp.lt.s32.totalorder %v2814_v58, 1  ;;  %vm2836_vm13 = vcmp.lt.s32.totalorder %v2814_v58, 4  ;;  %v3012_v16 = vand.u32 2139095040, %v9920_v42 }
 0x28c   :  { %v2817_v7 = vshrl.u32 %v12620_v31, %v2816_v59  ;;  %v2838_v61 = vsel %vm2836_vm13, %v2826_v18, 2102212464  ;;  %v2841_v44 = vsel %vm2833_vm6, %v2820_v43, %v2823_v5  ;;  %vm2835_vm2 = vcmp.lt.s32.totalorder %v2814_v58, 3 }
 0x28d   :  { %v6571_v54 = vmin.u32 %v2971_v48, %v9937_v37  ;;  %v2842_v8 = vsel %vm2836_vm13, %v2829_v29, 920167782  ;;  %v2845_v3 = vsel %vm2833_vm6, %v2823_v5, %v2826_v18  ;;  %v2846_v34 = vsel %vm2836_vm13, %v2832_v30, 1326507024 }
 0x28e   :  { %vm2834_vm5 = vcmp.lt.s32.totalorder %v2814_v58, 2  ;;  %v2837_v24 = vsel %vm2833_vm6, %v2817_v7, %v2820_v43  ;;  %v2843_v47 = vsel %vm2835_vm2, %v2826_v18, %v2842_v8  ;;  %v2839_v50 = vsel %vm2835_vm2, %v2823_v5, %v2838_v61 }
 0x28f   :  { %v2973_v33 = vclz %v6571_v54  ;;  %v2844_v1 = vsel %vm2834_vm5, %v2841_v44, %v2843_v47  ;;  %v2847_v36 = vsel %vm2835_vm2, %v2829_v29, %v2846_v34  ;;  %vm3124_vm14 = vcmp.gt.s32.totalorder %v3123_v10, 0 }
 0x290   :  { %v2848_v2 = vsel %vm2834_vm5, %v2845_v3, %v2847_v36  ;;  %v9948_v48 = vmul.u32.u64.low %v9926_v12, %v2844_v1  ;;  %v9949_v28 = vmul.u32.u64.high %v9926_v12, %v2844_v1, %v9948_v48  ;;  %v2671_v59 = vshll.u32 %v2670_v63, 23  ;;  %v9966_v63 = vld [vmem:[%s12441_s2 + $0x1] ss:$0 sm:$0xff] }
 0x291   :  { %v6572_v51 = vadd.s32 4294967294, %v2973_v33  ;;  %v9953_v32 = vmul.u32.u64.low %v9926_v12, %v2848_v2  ;;  %v9954_v49 = vmul.u32.u64.high %v9926_v12, %v2848_v2, %v9953_v32  ;;  %v3125_v30 = vsel %vm3124_vm14, %v3123_v10, 0 }
 0x292   :  { %v9956_v58 = vor.u32 %v2667_v45, %v2666_v26  ;;  %v2840_v7 = vsel %vm2834_vm5, %v2837_v24, %v2839_v50  ;;  %v3127_v43 = vand.u32 31, %v3125_v30  ;;  %v2961_v5 = vadd.s32 %v9867_v38, %v9872_v17 }
 0x293   :  { %vm6573_vm6 = vcmp.lt.s32.totalorder %v6572_v51, 0  ;;  %v9970_v32 = vadd.f32 %v9966_v63, %v9911_v0  ;;  %v2859_v26 = vadd.s32 1, %v9949_v28  ;;  %v12702_v45 = vor.u32 8388608, %v9900_v23 }
 0x294   :  { %v9961_v18 = vsel %vm6573_vm6, 0, %v6572_v51  ;;  %v9979_v38 = vor.u32 4788187, %v2671_v59  ;;  %v2856_v61 = vmul.u32 %v9926_v12, %v2840_v7  ;;  %vm2858_vm14 = vc.u32 %v9954_v49, %v9948_v48 }
 0x295   :  { %v2981_v10 = vsub.s32 4294967266, %v9961_v18  ;;  %v9976_v54 = vshll.u32 %v12702_v45, 8  ;;  %v3128_v44 = vsub.s32 32, %v3127_v43  ;;  %v2675_v0 = vcvt.s32.f32 %v9956_v58 }
 0x296   :  { %v2977_v8 = vsub.s32 32, %v9961_v18  ;;  %v2860_v3 = vsel %vm2858_vm14, %v2859_v26, %v9949_v28  ;;  %v3013_v34 = vshrl.u32 %v3012_v16, 23  ;;  %v3130_v33 = vshll.u32 %v12620_v31, %v3127_v43 }
 0x297   :  { %v2861_v23 = vadd.s32 %v2860_v3, %v2856_v61  ;;  %v3131_v24 = vshrl.u32 %v12623_v55, %v3128_v44  ;;  %v3134_v47 = vshrl.u32 %v12616_v60, %v3128_v44  ;;  %v2982_v50 = vadd.s32 127, %v2981_v10 }
 0x298   :  { %v3133_v12 = vshll.u32 %v12623_v55, %v3127_v43  ;;  %v3136_v1 = vshll.u32 %v12616_v60, %v3127_v43  ;;  %v3137_v36 = vshrl.u32 %v12617_v25, %v3128_v44  ;;  %v2673_v51 = vand.u32 2147483647, %v9979_v38 }
 0x299   :  { %v2862_v2 = vadd.s32 536870912, %v2861_v23  ;;  %v3126_v59 = vshrl.u32 %v3125_v30, 5  ;;  %v3132_v28 = vor.u32 %v3131_v24, %v3130_v33  ;;  %v3139_v7 = vshll.u32 %v12617_v25, %v3127_v43 }
 0x29a   :  { %v3135_v16 = vor.u32 %v3134_v47, %v3133_v12  ;;  %v3138_v58 = vor.u32 %v3137_v36, %v3136_v1  ;;  %v3140_v26 = vshrl.u32 %v12618_v19, %v3128_v44  ;;  %v3142_v10 = vshll.u32 %v12618_v19, %v3127_v43 }
 0x29b   :  { %v9996_v45 = vshrl.u32 %v2862_v2, 30  ;;  %v3143_v61 = vshrl.u32 %v12611_v57, %v3128_v44  ;;  %v6574_v3 = vadd.s32 4294967169, %v3013_v34  ;;  %v2979_v29 = vshrl.u32 %v2961_v5, %v2977_v8 }
 0x29c   :  { %v2983_v17 = vshll.u32 %v2982_v50, 23  ;;  %v3129_v38 = vshrl.u32 %v12620_v31, %v3128_v44  ;;  %v3141_v22 = vor.u32 %v3140_v26, %v3139_v7  ;;  %vm3145_vm13 = vcmp.lt.s32.totalorder %v3126_v59, 1 }
 0x29d   :  { %12703 = vst [vmem:[#allocation63_spill] sm:$0xff] %v9996_v45  ;;  %v2864_v30 = vshll.u32 %v9996_v45, 30  ;;  %v3144_v33 = vor.u32 %v3143_v61, %v3142_v10  ;;  %vm3148_vm2 = vcmp.lt.s32.totalorder %v3126_v59, 4  ;;  %vm3147_vm5 = vcmp.lt.s32.totalorder %v3126_v59, 3 }
 0x29e   :  { %v3150_v24 = vsel %vm3148_vm2, %v3138_v58, 2102212464  ;;  %v3153_v47 = vsel %vm3145_vm13, %v3132_v28, %v3135_v16  ;;  %v3154_v12 = vsel %vm3148_vm2, %v3141_v22, 920167782  ;;  %vm3146_vm6 = vcmp.lt.s32.totalorder %v3126_v59, 2 }
 0x29f   :  { %v10002_v1 = vsub.s32 %v2861_v23, %v2864_v30  ;;  %v3155_v43 = vsel %vm3147_vm5, %v3138_v58, %v3154_v12  ;;  %v3157_v36 = vsel %vm3145_vm13, %v3135_v16, %v3138_v58  ;;  %v3149_v34 = vsel %vm3145_vm13, %v3129_v38, %v3132_v28  ;;  %v7367_v58 = vld [vmem:[%s12443_s0 + $0x40] sm:$0xff]  }
 0x2a0   :  { %v3151_v5 = vsel %vm3147_vm5, %v3135_v16, %v3150_v24  ;;  %v3156_v8 = vsel %vm3146_vm6, %v3153_v47, %v3155_v43  ;;  %v3158_v44 = vsel %vm3148_vm2, %v3144_v33, 1326507024  ;;  %v2978_v23 = vshll.u32 %v9937_v37, %v9961_v18  ;;  %v7368_v37 = vld [vmem:[%s12443_s0 + $0x48] sm:$0xff]  }
 0x2a1   :  { %v2867_v50 = vsub.s32 0, %v10002_v1  ;;  %v3159_v2 = vsel %vm3147_vm5, %v3141_v22, %v3158_v44  ;;  %v10007_v7 = vmul.u32.u64.low %v9976_v54, %v3156_v8  ;;  %v10008_v26 = vmul.u32.u64.high %v9976_v54, %v3156_v8, %v10007_v7 }
 0x2a2   :  { %v2984_v10 = vor.u32 4788187, %v2983_v17  ;;  %v3160_v61 = vsel %vm3146_vm6, %v3157_v36, %v3159_v2  ;;  %v12704_v28 = vand.u32 2147483647, %v9920_v42  ;;  %v3019_v33 = vadd.s32 1, %v6574_v3  ;;  %v7371_v36 = vld [vmem:[%s12443_s0 + $0x50] sm:$0xff]  }
 0x2a3   :  { %v6567_v22 = vmin.u32 %v2867_v50, %v10002_v1  ;;  %v10021_v38 = vmul.u32.u64.low %v9976_v54, %v3160_v61  ;;  %v10022_v30 = vmul.u32.u64.high %v9976_v54, %v3160_v61, %v10021_v38  ;;  %v12705_v18 = vand.u32 2147483647, %v9916_v27 }
 0x2a4   :  { %v3016_v16 = vand.u32 8388607, %v12704_v28  ;;  %v12706_v17 = vcvt.s32.f32 %v9884_v53  ;;  %v10033_v47 = vmul.f32 %v2675_v0, %v2673_v51  ;;  %v2980_v12 = vor.u32 %v2979_v29, %v2978_v23  ;;  %v7370_v53 = vld [vmem:[%s12444_s5 + $0x8] sm:$0xff]   ;;  %v7373_v28 = vld [vmem:[%s12444_s5 + $0x10] sm:$0xff]  }
 0x2a5   :  { %v3152_v43 = vsel %vm3146_vm6, %v3149_v34, %v3151_v5  ;;  %v2869_v3 = vclz %v6567_v22  ;;  %v3171_v8 = vadd.s32 1, %v10008_v26  ;;  %vm3020_vm14 = vcmp.gt.s32.totalorder %v3019_v33, 0 }
 0x2a6   :  { %v10031_v24 = vmul.f32 %v12706_v17, %v12705_v18  ;;  %vm3768_vm13 = vcmask 261120   ;;  %v2985_v27 = vand.u32 2147483647, %v2984_v10  ;;  %v3017_v44 = vor.u32 8388608, %v3016_v16 }
 0x2a7   :  { %v3021_v0 = vsel %vm3020_vm14, %v3019_v33, 0  ;;  %v12573_v29 = vand.u32 2147483647, %v9970_v32  ;;  %6920 = vmatprep.mubr.msk.bf16.mxu1 %vm3768_vm13, %v7367_v58  ;;  %v6568_v51 = vadd.s32 4294967294, %v2869_v3  ;;  %v3168_v59 = vmul.u32 %v9976_v54, %v3152_v43  ;;  %v7375_v43 = vld [vmem:[%s12443_s0 + $0x60] sm:$0xff]  }
 0x2a8   :  { %vm3170_vm2 = vc.u32 %v10022_v30, %v10007_v7  ;;  %v3324_v34 = vand.u32 2139095040, %v9970_v32  ;;  %6921 = vmatmul.mubr.msk.bf16.vlgmr.msra.gmra.mrb[0].mxu1 %vm3768_vm13, %v7368_v37  ;;  %v2781_v5 = vxor.u32 2147483648, %v10031_v24  ;;  %v2987_v50 = vcvt.s32.f32 %v2980_v12 }
 0x2a9   :  { %v3172_v2 = vsel %vm3170_vm2, %v3171_v8, %v10008_v26  ;;  %v3023_v23 = vand.u32 31, %v3021_v0  ;;  %6937 = vmatpush3.bf16.msra.mxu1 %v9655_v46  ;;  %6924 = vmatprep.mubr.msk.bf16.mxu1 %vm3768_vm13, %v7371_v36  ;;  %v2857_v54 = vadd.s32 %v9948_v48, %v9954_v49  ;;  %vm6569_vm5 = vcmp.lt.s32.totalorder %v6568_v51, 0  ;;  %v7372_v48 = vld [vmem:[%s12443_s0 + $0x58] sm:$0xff]  }
 0x2aa   :  { %v3173_v61 = vadd.s32 %v3172_v2, %v3168_v59  ;;  %6938 = vmatprep.subr.bf16.mxu1 %v7370_v53  ;;  %v10060_v16 = vmul.f32 %v2987_v50, %v2985_v27  ;;  %v10062_v26 = vsel %vm6569_vm5, 0, %v6568_v51  ;;  %v10064_v46 = vshll.u32 %v3017_v44, 8  ;;  %v7374_v44 = vld [vmem:[%s12444_s5 + $0x18] sm:$0xff]  }
 0x2ab   :  { %v3024_v58 = vsub.s32 32, %v3023_v23  ;;  %v10066_v38 = vshrl.u32 %v3021_v0, 5  ;;  %v3325_v33 = vshrl.u32 %v3324_v34, 23  ;;  %v10070_v49 = vand.u32 8388607, %v12573_v29 }
 0x2ac   :  { %v3174_v22 = vadd.s32 536870912, %v3173_v61  ;;  %v3026_v37 = vshll.u32 %v12620_v31, %v3023_v23  ;;  %v3029_v17 = vshll.u32 %v12623_v55, %v3023_v23  ;;  %v2877_v36 = vsub.s32 4294967266, %v10062_v26 }
 0x2ad   :  { %v3027_v18 = vshrl.u32 %v12623_v55, %v3024_v58  ;;  %v3030_v12 = vshrl.u32 %v12616_v60, %v3024_v58  ;;  %6939 = vmatpush3.bf16.msra.mxu1 %v7370_v53  ;;  %v3032_v8 = vshll.u32 %v12616_v60, %v3023_v23  ;;  %v3033_v27 = vshrl.u32 %v12617_v25, %v3024_v58 }
 0x2ae   :  { %v10083_v3 = vshrl.u32 %v3174_v22, 30  ;;  %6940 = vmatprep.subr.bf16.mxu1 %v7373_v28  ;;  %v3035_v53 = vshll.u32 %v12617_v25, %v3023_v23  ;;  %v3036_v59 = vshrl.u32 %v12618_v19, %v3024_v58  ;;  %vm12580_vm6 = vcmp.lt.s32.totalorder %v9545_v6, 0 }
 0x2af   :  { %v3028_v0 = vor.u32 %v3027_v18, %v3026_v37  ;;  %v3031_v51 = vor.u32 %v3030_v12, %v3029_v17  ;;  %v2873_v34 = vsub.s32 32, %v10062_v26  ;;  %v3034_v2 = vor.u32 %v3033_v27, %v3032_v8  ;;  %v7376_v27 = vld [vmem:[%s12443_s0 + $0x68] sm:$0xff]  }
 0x2b0   :  { %12707 = vst [vmem:[#allocation64_spill] sm:$0xff] %v10083_v3  ;;  %v3176_v50 = vshll.u32 %v10083_v3, 30  ;;  %v6586_v22 = vadd.s32 4294967169, %v3325_v33  ;;  %6925 = vmatmul.mubr.msk.bf16.gmra.mrb[4].mxu1 %vm3768_vm13, %v7372_v48  ;;  %vm12588_vm14 = vcmp.lt.s32.totalorder %v9600_v39, 0  ;;  %v3037_v29 = vor.u32 %v3036_v59, %v3035_v53 }
 0x2b1   :  { %v3038_v37 = vshll.u32 %v12618_v19, %v3023_v23  ;;  %v3039_v18 = vshrl.u32 %v12611_v57, %v3024_v58  ;;  %vm3041_vm2 = vcmp.lt.s32.totalorder %v10066_v38, 1  ;;  %6941 = vmatpush3.bf16.msra.mxu1 %v7373_v28  ;;  %6928 = vmatprep.mubr.msk.bf16.mxu1 %vm3768_vm13, %v7375_v43  ;;  %v3025_v12 = vshrl.u32 %v12620_v31, %v3024_v58  ;;  %v7377_v23 = vld [vmem:[%s12444_s5 + $0x20] sm:$0xff]  }
 0x2b2   :  { %v10101_v17 = vsub.s32 %v3173_v61, %v3176_v50  ;;  %vm3042_vm5 = vcmp.lt.s32.totalorder %v10066_v38, 2  ;;  %vm3044_vm3 = vcmp.lt.s32.totalorder %v10066_v38, 4  ;;  %6942 = vmatprep.subr.bf16.mxu1 %v7374_v44  ;;  %v2878_v33 = vadd.s32 127, %v2877_v36 }
 0x2b3   :  { %v3040_v48 = vor.u32 %v3039_v18, %v3038_v37  ;;  %v3046_v8 = vsel %vm3044_vm3, %v3034_v2, 2102212464  ;;  %v3049_v28 = vsel %vm3041_vm2, %v3028_v0, %v3031_v51  ;;  %v2875_v43 = vshrl.u32 %v2857_v54, %v2873_v34  ;;  %v7379_v54 = vld [vmem:[%s12443_s0 + $0x70] sm:$0xff]  }
 0x2b4   :  { %v3179_v61 = vsub.s32 0, %v10101_v17  ;;  %vm3043_vm8 = vcmp.lt.s32.totalorder %v10066_v38, 3  ;;  %v3050_v58 = vsel %vm3044_vm3, %v3037_v29, 920167782  ;;  %v3045_v53 = vsel %vm3041_vm2, %v3025_v12, %v3028_v0  ;;  %v7378_v0 = vld [vmem:[%s12444_s5 + $0x28] sm:$0xff]  }
 0x2b5   :  { %v3051_v59 = vsel %vm3043_vm8, %v3034_v2, %v3050_v58  ;;  %v3053_v36 = vsel %vm3041_vm2, %v3031_v51, %v3034_v2  ;;  %v3054_v50 = vsel %vm3044_vm3, %v3040_v48, 1326507024  ;;  %6943 = vmatpush3.bf16.msra.mxu1 %v7374_v44  ;;  %v3047_v37 = vsel %vm3043_vm8, %v3031_v51, %v3046_v8 }
 0x2b6   :  { %v6579_v34 = vmin.u32 %v3179_v61, %v10101_v17  ;;  %v3052_v18 = vsel %vm3042_vm5, %v3049_v28, %v3051_v59  ;;  %v3055_v10 = vsel %vm3043_vm8, %v3037_v29, %v3054_v50  ;;  %6944 = vmatprep.subr.bf16.mxu1 %v7377_v23  ;;  %v2879_v12 = vshll.u32 %v2878_v33, 23 }
 0x2b7   :  { %v3056_v44 = vsel %vm3042_vm5, %v3053_v36, %v3055_v10  ;;  %v10132_v2 = vmul.u32.u64.low %v10064_v46, %v3052_v18  ;;  %v10133_v48 = vmul.u32.u64.high %v10064_v46, %v3052_v18, %v10132_v2  ;;  %v2874_v51 = vshll.u32 %v10002_v1, %v10062_v26  ;;  %v7382_v18 = vld [vmem:[%s12444_s5 + $0x38] sm:$0xff]  }
 0x2b8   :  { %v3181_v8 = vclz %v6579_v34  ;;  %v10139_v29 = vmul.u32.u64.low %v10064_v46, %v3056_v44  ;;  %v10140_v28 = vmul.u32.u64.high %v10064_v46, %v3056_v44, %v10139_v29  ;;  %6929 = vmatmul.mubr.msk.bf16.gmra.mrb[8].mxu1 %vm3768_vm13, %v7376_v27  ;;  %v10148_v10 = vsel %vm12580_vm6, %v2781_v5, %v10031_v24 }
 0x2b9   :  { %12708 = vst [vmem:[#allocation65_spill] sm:$0xff] %v10148_v10  ;;  %v3048_v33 = vsel %vm3042_vm5, %v3045_v53, %v3047_v37  ;;  %v3331_v61 = vadd.s32 1, %v6586_v22  ;;  %v10154_v1 = vadd.f32 %v9966_v63, %v9914_v21  ;;  %6945 = vmatpush3.bf16.msra.mxu1 %v7377_v23  ;;  %6932 = vmatprep.mubr.msk.bf16.mxu1 %vm3768_vm13, %v7379_v54  ;;  %v12709_v26 = vxor.u32 2147483648, %v10033_v47  ;;  %v7381_v21 = vld [vmem:[%s12444_s5 + $0x30] sm:$0xff]  }
 0x2ba   :  { %v2876_v24 = vor.u32 %v2875_v43, %v2874_v51  ;;  %v6580_v5 = vadd.s32 4294967294, %v3181_v8  ;;  %v3329_v38 = vor.u32 8388608, %v10070_v49  ;;  %6946 = vmatprep.subr.bf16.mxu1 %v7378_v0  ;;  %v2880_v23 = vor.u32 4788187, %v2879_v12  ;;  %v7380_v49 = vld [vmem:[%s12443_s0 + $0x78] sm:$0xff]  }
 0x2bb   :  { %v10162_v58 = vsel %vm12588_vm14, %v12709_v26, %v10033_v47  ;;  %v3067_v27 = vadd.s32 1, %v10133_v48  ;;  %vm3332_vm3 = vcmp.gt.s32.totalorder %v3331_v61, 0  ;;  %v3064_v53 = vmul.u32 %v10064_v46, %v3048_v33 }
 0x2bc   :  { %vm6581_vm8 = vcmp.lt.s32.totalorder %v6580_v5, 0  ;;  %vm3066_vm2 = vc.u32 %v10140_v28, %v10132_v2  ;;  %v3333_v47 = vsel %vm3332_vm3, %v3331_v61, 0  ;;  %v2883_v54 = vcvt.s32.f32 %v2876_v24 }
 0x2bd   :  { %v10176_v43 = vsel %vm6581_vm8, 0, %v6580_v5  ;;  %v3068_v59 = vsel %vm3066_vm2, %v3067_v27, %v10133_v48  ;;  %v3335_v36 = vand.u32 31, %v3333_v47  ;;  %6947 = vmatpush3.bf16.msra.mxu1 %v7378_v0  ;;  %v3169_v46 = vadd.s32 %v10007_v7, %v10022_v30 }
 0x2be   :  { %v3069_v34 = vadd.s32 %v3068_v59, %v3064_v53  ;;  %v10182_v37 = vshll.u32 %v3329_v38, 8  ;;  %6948 = vmatprep.subr.bf16.mxu1 %v7381_v21  ;;  %v2881_v12 = vand.u32 2147483647, %v2880_v23  ;;  %v3185_v44 = vsub.s32 32, %v10176_v43 }
 0x2bf   :  { %v3336_v48 = vsub.s32 32, %v3335_v36  ;;  %v3220_v51 = vand.u32 2139095040, %v10154_v1  ;;  %v3189_v0 = vsub.s32 4294967266, %v10176_v43  ;;  %v3338_v29 = vshll.u32 %v12620_v31, %v3335_v36 }
 0x2c0   :  { %v3070_v8 = vadd.s32 536870912, %v3069_v34  ;;  %v3341_v7 = vshll.u32 %v12623_v55, %v3335_v36  ;;  %6933 = vmatmul.mubr.msk.bf16.gmra.mrb[12].mxu1 %vm3768_vm13, %v7380_v49  ;;  %v3344_v61 = vshll.u32 %v12616_v60, %v3335_v36  ;;  %v3334_v5 = vshrl.u32 %v3333_v47, 5 }
 0x2c1   :  { %v3339_v30 = vshrl.u32 %v12623_v55, %v3336_v48  ;;  %v3342_v33 = vshrl.u32 %v12616_v60, %v3336_v48  ;;  %v3345_v26 = vshrl.u32 %v12617_v25, %v3336_v48  ;;  %6949 = vmatpush3.bf16.msra.mxu1 %v7381_v21  ;;  %v3347_v38 = vshll.u32 %v12617_v25, %v3335_v36 }
 0x2c2   :  { %v10197_v24 = vshrl.u32 %v3070_v8, 30  ;;  %v3348_v23 = vshrl.u32 %v12618_v19, %v3336_v48  ;;  %6950 = vmatprep.subr.bf16.mxu1 %v7382_v18  ;;  %v10201_v27 = vmul.f32 %v2883_v54, %v2881_v12  ;;  %vm12587_vm5 = vcmp.lt.s32.totalorder %v9612_v56, 0 }
 0x2c3   :  { %v3340_v53 = vor.u32 %v3339_v30, %v3338_v29  ;;  %v3343_v49 = vor.u32 %v3342_v33, %v3341_v7  ;;  %v3346_v59 = vor.u32 %v3345_v26, %v3344_v61  ;;  %v3221_v3 = vshrl.u32 %v3220_v51, 23 }
 0x2c4   :  { %12710 = vst [vmem:[#allocation66_spill] sm:$0xff] %v10197_v24  ;;  %v3072_v22 = vshll.u32 %v10197_v24, 30  ;;  %v3349_v50 = vor.u32 %v3348_v23, %v3347_v38  ;;  %v12711_v21 = vand.u32 2147483647, %v10154_v1  ;;  %v3187_v47 = vshrl.u32 %v3169_v46, %v3185_v44 }
 0x2c5   :  { %v3190_v45 = vadd.s32 127, %v3189_v0  ;;  %v3350_v10 = vshll.u32 %v12618_v19, %v3335_v36  ;;  %v3351_v54 = vshrl.u32 %v12611_v57, %v3336_v48  ;;  %6951 = vmatpush3.bf16.msra.mxu1 %v7382_v18  ;;  %vm3353_vm3 = vcmp.lt.s32.totalorder %v3334_v5, 1  ;;  %v7384_v0 = vld [vmem:[%s12443_s0 + $0x8] sm:$0xff]  }
 0x2c6   :  { %v10207_v8 = vand.u32 8388607, %v12711_v21  ;;  %v10211_v12 = vsub.s32 %v3069_v34, %v3072_v22  ;;  %vm3355_vm8 = vcmp.lt.s32.totalorder %v3334_v5, 3  ;;  %vm3356_vm2 = vcmp.lt.s32.totalorder %v3334_v5, 4 }
 0x2c7   :  { %v3352_v29 = vor.u32 %v3351_v54, %v3350_v10  ;;  %v3358_v7 = vsel %vm3356_vm2, %v3346_v59, 2102212464  ;;  %v3361_v51 = vsel %vm3353_vm3, %v3340_v53, %v3343_v49  ;;  %v3362_v30 = vsel %vm3356_vm2, %v3349_v50, 920167782  ;;  %v7383_v10 = vld [vmem:[%s12443_s0] sm:$0xff]  }
 0x2c8   :  { %v3075_v33 = vsub.s32 0, %v10211_v12  ;;  %v3337_v46 = vshrl.u32 %v12620_v31, %v3336_v48  ;;  %vm3354_vm6 = vcmp.lt.s32.totalorder %v3334_v5, 2  ;;  %v3363_v36 = vsel %vm3355_vm8, %v3346_v59, %v3362_v30  ;;  %6904 = vmatprep.mubr.msk.bf16.mxu0 %vm3768_vm13, %v7383_v10 }
 0x2c9   :  { %v3191_v44 = vshll.u32 %v3190_v45, 23  ;;  %v3364_v18 = vsel %vm3354_vm6, %v3361_v51, %v3363_v36  ;;  %v3365_v22 = vsel %vm3353_vm3, %v3343_v49, %v3346_v59  ;;  %v3366_v34 = vsel %vm3356_vm2, %v3352_v29, 1326507024  ;;  %6905 = vmatmul.mubr.msk.bf16.vlgmr.msra.gmra.mrb[0].mxu0 %vm3768_vm13, %v7384_v0 }
 0x2ca   :  { %v6575_v61 = vmin.u32 %v3075_v33, %v10211_v12  ;;  %v3357_v48 = vsel %vm3353_vm3, %v3337_v46, %v3340_v53  ;;  %v3359_v26 = vsel %vm3355_vm8, %v3343_v49, %v3358_v7  ;;  %v3367_v45 = vsel %vm3355_vm8, %v3349_v50, %v3366_v34  ;;  %v231_v49 = vpop.permute.xlu1 %230  ;;  %v226_v50 = vpop.permute.xlu0 %225 }
 0x2cb   :  { %v3368_v38 = vsel %vm3354_vm6, %v3365_v22, %v3367_v45  ;;  %v10231_v23 = vmul.u32.u64.low %v10182_v37, %v3364_v18  ;;  %v10232_v59 = vmul.u32.u64.high %v10182_v37, %v3364_v18, %v10231_v23  ;;  %v6582_v21 = vadd.s32 4294967169, %v3221_v3 }
 0x2cc   :  { %v3186_v54 = vshll.u32 %v10101_v17, %v10176_v43  ;;  %v3077_v29 = vclz %v6575_v61  ;;  %v10239_v53 = vmul.u32.u64.low %v10182_v37, %v3368_v38  ;;  %v10240_v51 = vmul.u32.u64.high %v10182_v37, %v3368_v38, %v10239_v53 }
 0x2cd   :  { %v12712_v7 = vxor.u32 2147483648, %v10060_v16  ;;  %v3360_v17 = vsel %vm3354_vm6, %v3357_v48, %v3359_v26  ;;  %v3227_v43 = vadd.s32 1, %v6582_v21  ;;  %v10254_v46 = vor.u32 4788187, %v3191_v44 }
 0x2ce   :  { %v10252_v33 = vor.u32 %v3187_v47, %v3186_v54  ;;  %v6576_v36 = vadd.s32 4294967294, %v3077_v29  ;;  %v3225_v18 = vor.u32 8388608, %v10207_v8  ;;  %v3379_v22 = vadd.s32 1, %v10232_v59 }
 0x2cf   :  { %v10248_v3 = vsel %vm12587_vm5, %v12712_v7, %v10060_v16  ;;  %vm3228_vm3 = vcmp.gt.s32.totalorder %v3227_v43, 0  ;;  %v7886_v16 = vld [vmem:[%s12441_s2] ss:$0 sm:$0xff]  ;;  %v3376_v5 = vmul.u32 %v10182_v37, %v3360_v17  ;;  %vm3378_vm6 = vc.u32 %v10240_v51, %v10231_v23 }
 0x2d0   :  { %12713 = vst [vmem:[#allocation67_spill] sm:$0xff] %v10248_v3  ;;  %v268_v34 = vmul.f32 %v7886_v16, %v231_v49  ;;  %v267_v10 = vmul.f32 %v7886_v16, %v226_v50  ;;  %vm6577_vm8 = vcmp.lt.s32.totalorder %v6576_v36, 0  ;;  %v3229_v47 = vsel %vm3228_vm3, %v3227_v43, 0 }
 0x2d1   :  { %v3065_v44 = vadd.s32 %v10132_v2, %v10140_v28  ;;  %v3080_v8 = vsel %vm6577_vm8, 0, %v6576_v36  ;;  %v3380_v0 = vsel %vm3378_vm6, %v3379_v22, %v10232_v59  ;;  %v3231_v61 = vand.u32 31, %v3229_v47 }
 0x2d2   :  { %v3193_v48 = vand.u32 2147483647, %v10254_v46  ;;  %v3195_v26 = vcvt.s32.f32 %v10252_v33  ;;  %v3381_v45 = vadd.s32 %v3380_v0, %v3376_v5  ;;  %v10269_v38 = vshll.u32 %v3225_v18, 8 }
 0x2d3   :  { %v3081_v21 = vsub.s32 32, %v3080_v8  ;;  %v3232_v37 = vsub.s32 32, %v3231_v61  ;;  %v10272_v54 = vadd.f32 %v9966_v63, %v268_v34  ;;  %v10275_v29 = vadd.f32 %v9966_v63, %v267_v10 }
 0x2d4   :  { %v3085_v2 = vsub.s32 4294967266, %v3080_v8  ;;  %v3382_v28 = vadd.s32 536870912, %v3381_v45  ;;  %v3234_v59 = vshll.u32 %v12620_v31, %v3231_v61  ;;  %v3237_v53 = vshll.u32 %v12623_v55, %v3231_v61 }
 0x2d5   :  { %v3235_v49 = vshrl.u32 %v12623_v55, %v3232_v37  ;;  %v3238_v50 = vshrl.u32 %v12616_v60, %v3232_v37  ;;  %v3240_v7 = vshll.u32 %v12616_v60, %v3231_v61  ;;  %v3241_v17 = vshrl.u32 %v12617_v25, %v3232_v37 }
 0x2d6   :  { %v10283_v43 = vshrl.u32 %v3382_v28, 30  ;;  %v3230_v33 = vshrl.u32 %v3229_v47, 5  ;;  %v3243_v63 = vshll.u32 %v12617_v25, %v3231_v61  ;;  %v3244_v46 = vshrl.u32 %v12618_v19, %v3232_v37 }
 0x2d7   :  { %v3236_v36 = vor.u32 %v3235_v49, %v3234_v59  ;;  %v3239_v18 = vor.u32 %v3238_v50, %v3237_v53  ;;  %v3242_v22 = vor.u32 %v3241_v17, %v3240_v7  ;;  %v12583_v16 = vand.u32 2147483647, %v10272_v54 }
 0x2d8   :  { %12714 = vst [vmem:[#allocation68_spill] sm:$0xff] %v10283_v43  ;;  %v3082_v34 = vshll.u32 %v10211_v12, %v3080_v8  ;;  %v3086_v10 = vadd.s32 127, %v3085_v2  ;;  %v3384_v5 = vshll.u32 %v10283_v43, 30  ;;  %v3245_v0 = vor.u32 %v3244_v46, %v3243_v63  ;;  %v7387_v43 = vld [vmem:[%s12443_s0 + $0x20] sm:$0xff]  }
 0x2d9   :  { %v3083_v30 = vshrl.u32 %v3065_v44, %v3081_v21  ;;  %v3233_v28 = vshrl.u32 %v12620_v31, %v3232_v37  ;;  %v3246_v47 = vshll.u32 %v12618_v19, %v3231_v61  ;;  %v3247_v24 = vshrl.u32 %v12611_v57, %v3232_v37  ;;  %v7385_v61 = vld [vmem:[%s12443_s0 + $0x10] sm:$0xff]  }
 0x2da   :  { %v10293_v3 = vsub.s32 %v3381_v45, %v3384_v5  ;;  %vm3249_vm2 = vcmp.lt.s32.totalorder %v3230_v33, 1  ;;  %vm3251_vm3 = vcmp.lt.s32.totalorder %v3230_v33, 3  ;;  %vm3252_vm8 = vcmp.lt.s32.totalorder %v3230_v33, 4  ;;  %v7386_v45 = vld [vmem:[%s12443_s0 + $0x18] sm:$0xff]   ;;  %6908 = vmatprep.mubr.msk.bf16.mxu0 %vm3768_vm13, %v7385_v61 }
 0x2db   :  { %v3248_v59 = vor.u32 %v3247_v24, %v3246_v47  ;;  %v3254_v53 = vsel %vm3252_vm8, %v3242_v22, 2102212464  ;;  %v3257_v12 = vsel %vm3249_vm2, %v3236_v36, %v3239_v18  ;;  %v3258_v8 = vsel %vm3252_vm8, %v3245_v0, 920167782  ;;  %6909 = vmatmul.mubr.msk.bf16.gmra.mrb[4].mxu0 %vm3768_vm13, %v7386_v45 }
 0x2dc   :  { %v3087_v2 = vshll.u32 %v3086_v10, 23  ;;  %v3387_v49 = vsub.s32 0, %v10293_v3  ;;  %vm3250_vm6 = vcmp.lt.s32.totalorder %v3230_v33, 2  ;;  %v3259_v44 = vsel %vm3251_vm3, %v3242_v22, %v3258_v8  ;;  %6912 = vmatprep.mubr.msk.bf16.mxu0 %vm3768_vm13, %v7387_v43 }
 0x2dd   :  { %v3084_v21 = vor.u32 %v3083_v30, %v3082_v34  ;;  %v3260_v24 = vsel %vm3250_vm6, %v3257_v12, %v3259_v44  ;;  %v3261_v37 = vsel %vm3249_vm2, %v3239_v18, %v3242_v22  ;;  %v3262_v50 = vsel %vm3252_vm8, %v3248_v59, 1326507024 }
 0x2de   :  { %v6587_v7 = vmin.u32 %v3387_v49, %v10293_v3  ;;  %v3253_v17 = vsel %vm3249_vm2, %v3233_v28, %v3236_v36  ;;  %v3255_v63 = vsel %vm3251_vm3, %v3239_v18, %v3254_v53  ;;  %v3263_v46 = vsel %vm3251_vm3, %v3245_v0, %v3262_v50 }
 0x2df   :  { %v3264_v10 = vsel %vm3250_vm6, %v3261_v37, %v3263_v46  ;;  %v10313_v5 = vmul.u32.u64.low %v10269_v38, %v3260_v24  ;;  %v10314_v30 = vmul.u32.u64.high %v10269_v38, %v3260_v24, %v10313_v5  ;;  %v3532_v22 = vand.u32 2139095040, %v10272_v54 }
 0x2e0   :  { %v3088_v34 = vor.u32 4788187, %v3087_v2  ;;  %v3389_v47 = vclz %v6587_v7  ;;  %v10320_v36 = vmul.u32.u64.low %v10269_v38, %v3264_v10  ;;  %v10321_v18 = vmul.u32.u64.high %v10269_v38, %v3264_v10, %v10320_v36 }
 0x2e1   :  { %v10323_v0 = vmul.f32 %v3195_v26, %v3193_v48  ;;  %v3256_v28 = vsel %vm3250_vm6, %v3253_v17, %v3255_v63  ;;  %v3533_v59 = vshrl.u32 %v3532_v22, 23  ;;  %v3536_v53 = vand.u32 8388607, %v12583_v16 }
 0x2e2   :  { %v6588_v12 = vadd.s32 4294967294, %v3389_v47  ;;  %v12584_v8 = vand.u32 2147483647, %v10275_v29  ;;  %v3428_v49 = vand.u32 2139095040, %v10275_v29  ;;  %v12715_v2 = vand.u32 2147483647, %v8066_v40 }
 0x2e3   :  { %v3091_v61 = vcvt.s32.f32 %v3084_v21  ;;  %v3275_v48 = vadd.s32 1, %v10314_v30  ;;  %v6594_v26 = vadd.s32 4294967169, %v3533_v59  ;;  %v391_v33 = vsub.s32 4, %v8179_v20 }
 0x2e4   :  { %vm10332_vm2 = vcmp.le.f32.partialorder %v12715_v2, 0.7853982  ;;  %v3089_v45 = vand.u32 2147483647, %v3088_v34  ;;  %vm6589_vm3 = vcmp.lt.s32.totalorder %v6588_v12, 0  ;;  %v3272_v24 = vmul.u32 %v10269_v38, %v3256_v28 }
 0x2e5   :  { %vm3274_vm8 = vc.u32 %v10321_v18, %v10313_v5  ;;  %v3392_v37 = vsel %vm6589_vm3, 0, %v6588_v12  ;;  %v3537_v7 = vor.u32 8388608, %v3536_v53  ;;  %v3539_v17 = vadd.s32 1, %v6594_v26 }
 0x2e6   :  { %v3276_v50 = vsel %vm3274_vm8, %v3275_v48, %v10314_v30  ;;  %v3397_v63 = vsub.s32 4294967266, %v3392_v37  ;;  %v3429_v21 = vshrl.u32 %v3428_v49, 23  ;;  %v10344_v10 = vand.u32 8388607, %v12584_v8 }
 0x2e7   :  { %v3277_v46 = vadd.s32 %v3276_v50, %v3272_v24  ;;  %v3377_v22 = vadd.s32 %v10231_v23, %v10240_v51  ;;  %v3393_v34 = vsub.s32 32, %v3392_v37  ;;  %vm3540_vm6 = vcmp.gt.s32.totalorder %v3539_v17, 0 }
 0x2e8   :  { %v10351_v38 = vsel %vm307_vm4, %v391_v33, %v8179_v20  ;;  %v10353_v30 = vmul.f32 %v3091_v61, %v3089_v45  ;;  %v3398_v47 = vadd.s32 127, %v3397_v63  ;;  %v3541_v28 = vsel %vm3540_vm6, %v3539_v17, 0 }
 0x2e9   :  { %v3278_v36 = vadd.s32 536870912, %v3277_v46  ;;  %v3394_v59 = vshll.u32 %v10293_v3, %v3392_v37  ;;  %v3543_v53 = vand.u32 31, %v3541_v28  ;;  %v10356_v12 = vshll.u32 %v3537_v7, 8 }
 0x2ea   :  { %v10362_v23 = vsel %vm10332_vm2, %v8066_v40, %v8552_v14  ;;  %v6590_v20 = vadd.s32 4294967169, %v3429_v21  ;;  %v394_v2 = vsel %vm10332_vm2, 0, %v10351_v38  ;;  %v3395_v61 = vshrl.u32 %v3377_v22, %v3393_v34 }
 0x2eb   :  { %v10364_v51 = vshrl.u32 %v3278_v36, 30  ;;  %v3399_v3 = vshll.u32 %v3398_v47, 23  ;;  %v3542_v48 = vshrl.u32 %v3541_v28, 5  ;;  %v3544_v26 = vsub.s32 32, %v3543_v53 }
 0x2ec   :  { %v3546_v45 = vshll.u32 %v12620_v31, %v3543_v53  ;;  %v3549_v14 = vshll.u32 %v12623_v55, %v3543_v53  ;;  %7439 = vcosq.f32 %v10362_v23  ;;  %v3552_v50 = vshll.u32 %v12616_v60, %v3543_v53 }
 0x2ed   :  { %v3280_v33 = vshll.u32 %v10364_v51, 30  ;;  %v3547_v24 = vshrl.u32 %v12623_v55, %v3544_v26  ;;  %v3550_v37 = vshrl.u32 %v12616_v60, %v3544_v26  ;;  %v3553_v44 = vshrl.u32 %v12617_v25, %v3544_v26 }
 0x2ee   :  { %v3555_v17 = vshll.u32 %v12617_v25, %v3543_v53  ;;  %v3556_v63 = vshrl.u32 %v12618_v19, %v3544_v26  ;;  %v3558_v21 = vshll.u32 %v12618_v19, %v3543_v53  ;;  %v3559_v47 = vshrl.u32 %v12611_v57, %v3544_v26  ;;  %v7388_v53 = vld [vmem:[%s12443_s0 + $0x28] sm:$0xff]  }
 0x2ef   :  { %v10378_v7 = vsub.s32 %v3277_v46, %v3280_v33  ;;  %v3548_v22 = vor.u32 %v3547_v24, %v3546_v45  ;;  %v3551_v34 = vor.u32 %v3550_v37, %v3549_v14  ;;  %v3554_v38 = vor.u32 %v3553_v44, %v3552_v50  ;;  %6913 = vmatmul.mubr.msk.bf16.gmra.mrb[8].mxu0 %vm3768_vm13, %v7388_v53 }
 0x2f0   :  { %v3396_v36 = vor.u32 %v3395_v61, %v3394_v59  ;;  %v3557_v16 = vor.u32 %v3556_v63, %v3555_v17  ;;  %v3435_v8 = vadd.s32 1, %v6590_v20  ;;  %v3400_v49 = vor.u32 4788187, %v3399_v3 }
 0x2f1   :  { %v3283_v28 = vsub.s32 0, %v10378_v7  ;;  %v3545_v46 = vshrl.u32 %v12620_v31, %v3544_v26  ;;  %v3560_v33 = vor.u32 %v3559_v47, %v3558_v21  ;;  %vm3564_vm4 = vcmp.lt.s32.totalorder %v3542_v48, 4 }
 0x2f2   :  { %vm3561_vm2 = vcmp.lt.s32.totalorder %v3542_v48, 1  ;;  %vm3562_vm3 = vcmp.lt.s32.totalorder %v3542_v48, 2  ;;  %v3566_v59 = vsel %vm3564_vm4, %v3554_v38, 2102212464  ;;  %vm3563_vm8 = vcmp.lt.s32.totalorder %v3542_v48, 3 }
 0x2f3   :  { %v6583_v45 = vmin.u32 %v3283_v28, %v10378_v7  ;;  %v3565_v20 = vsel %vm3561_vm2, %v3545_v46, %v3548_v22  ;;  %v3569_v61 = vsel %vm3561_vm2, %v3548_v22, %v3551_v34  ;;  %v3570_v3 = vsel %vm3564_vm4, %v3557_v16, 920167782 }
 0x2f4   :  { %v3567_v14 = vsel %vm3563_vm8, %v3551_v34, %v3566_v59  ;;  %v3571_v24 = vsel %vm3563_vm8, %v3554_v38, %v3570_v3  ;;  %v3573_v37 = vsel %vm3561_vm2, %v3551_v34, %v3554_v38  ;;  %v3401_v50 = vand.u32 2147483647, %v3400_v49 }
 0x2f5   :  { %v3285_v26 = vclz %v6583_v45  ;;  %v3572_v44 = vsel %vm3562_vm3, %v3569_v61, %v3571_v24  ;;  %v3574_v17 = vsel %vm3564_vm4, %v3560_v33, 1326507024  ;;  %vm3436_vm6 = vcmp.gt.s32.totalorder %v3435_v8, 0 }
 0x2f6   :  { %v10401_v63 = vpop.eup %7439  ;;  %v3575_v22 = vsel %vm3563_vm8, %v3557_v16, %v3574_v17  ;;  %v10405_v43 = vmul.u32.u64.low %v10356_v12, %v3572_v44  ;;  %v10406_v47 = vmul.u32.u64.high %v10356_v12, %v3572_v44, %v10405_v43  ;;  %v3568_v34 = vsel %vm3562_vm3, %v3565_v20, %v3567_v14 }
 0x2f7   :  { %v6584_v21 = vadd.s32 4294967294, %v3285_v26  ;;  %v3576_v38 = vsel %vm3562_vm3, %v3573_v37, %v3575_v22  ;;  %v3437_v49 = vsel %vm3436_vm6, %v3435_v8, 0  ;;  %v398_v28 = vadd.s32 3, %v394_v2 }
 0x2f8   :  { %v3403_v46 = vcvt.s32.f32 %v3396_v36  ;;  %v10412_v33 = vmul.u32.u64.low %v10356_v12, %v3576_v38  ;;  %v10413_v53 = vmul.u32.u64.high %v10356_v12, %v3576_v38, %v10412_v33  ;;  %v3273_v16 = vadd.s32 %v10313_v5, %v10321_v18 }
 0x2f9   :  { %vm6585_vm2 = vcmp.lt.s32.totalorder %v6584_v21, 0  ;;  %v3439_v59 = vand.u32 31, %v3437_v49  ;;  %v12718_v61 = vor.u32 8388608, %v10344_v10  ;;  %v3584_v8 = vmul.u32 %v10356_v12, %v3568_v34 }
 0x2fa   :  { %v3288_v45 = vsel %vm6585_vm2, 0, %v6584_v21  ;;  %v10421_v20 = vmul.f32 %v3403_v46, %v3401_v50  ;;  %v3587_v2 = vadd.s32 1, %v10406_v47  ;;  %v3438_v36 = vshrl.u32 %v3437_v49, 5 }
 0x2fb   :  { %v10419_v3 = vshll.u32 %v12718_v61, 8  ;;  %v3293_v48 = vsub.s32 4294967266, %v3288_v45  ;;  %v3440_v26 = vsub.s32 32, %v3439_v59  ;;  %7441 = vsinq.f32 %v10362_v23 }
 0x2fc   :  { %v10426_v14 = vand.u32 3, %v398_v28  ;;  %v3289_v5 = vsub.s32 32, %v3288_v45  ;;  %vm3586_vm4 = vc.u32 %v10413_v53, %v10405_v43  ;;  %v3442_v18 = vshll.u32 %v12620_v31, %v3439_v59 }
 0x2fd   :  { %v405_v10 = vxor.u32 2147483648, %v10401_v63  ;;  %v3588_v24 = vsel %vm3586_vm4, %v3587_v2, %v10406_v47  ;;  %v3443_v12 = vshrl.u32 %v12623_v55, %v3440_v26  ;;  %v3445_v37 = vshll.u32 %v12623_v55, %v3439_v59 }
 0x2fe   :  { %v3446_v50 = vshrl.u32 %v12616_v60, %v3440_v26  ;;  %v3294_v44 = vadd.s32 127, %v3293_v48  ;;  %v3589_v23 = vadd.s32 %v3588_v24, %v3584_v8  ;;  %v3448_v17 = vshll.u32 %v12616_v60, %v3439_v59 }
 0x2ff   :  { %v3449_v21 = vshrl.u32 %v12617_v25, %v3440_v26  ;;  %v3444_v22 = vor.u32 %v3443_v12, %v3442_v18  ;;  %v3451_v38 = vshll.u32 %v12617_v25, %v3439_v59  ;;  %v3452_v49 = vshrl.u32 %v12618_v19, %v3440_v26 }
 0x300   :  { %v3447_v34 = vor.u32 %v3446_v50, %v3445_v37  ;;  %v3290_v47 = vshll.u32 %v10378_v7, %v3288_v45  ;;  %v3291_v28 = vshrl.u32 %v3273_v16, %v3289_v5  ;;  %v3590_v46 = vadd.s32 536870912, %v3589_v23  ;;  %v7389_v7 = vld [vmem:[%s12443_s0 + $0x30] sm:$0xff]  }
 0x301   :  { %v3450_v33 = vor.u32 %v3449_v21, %v3448_v17  ;;  %v3441_v55 = vshrl.u32 %v12620_v31, %v3440_v26  ;;  %v3453_v61 = vor.u32 %v3452_v49, %v3451_v38  ;;  %v3454_v48 = vshll.u32 %v12618_v19, %v3439_v59  ;;  %v7390_v31 = vld [vmem:[%s12443_s0 + $0x38] sm:$0xff]   ;;  %6916 = vmatprep.mubr.msk.bf16.mxu0 %vm3768_vm13, %v7389_v7 }
 0x302   :  { %v3455_v60 = vshrl.u32 %v12611_v57, %v3440_v26  ;;  %v3295_v8 = vshll.u32 %v3294_v44, 23  ;;  %v10444_v2 = vshrl.u32 %v3590_v46, 30  ;;  %vm3457_vm3 = vcmp.lt.s32.totalorder %v3438_v36, 1  ;;  %6917 = vmatmul.mubr.msk.bf16.gmra.mrb[12].mxu0 %vm3768_vm13, %v7390_v31 }
 0x303   :  { %vm3458_vm8 = vcmp.lt.s32.totalorder %v3438_v36, 2  ;;  %vm3459_vm6 = vcmp.lt.s32.totalorder %v3438_v36, 3  ;;  %vm3460_vm2 = vcmp.lt.s32.totalorder %v3438_v36, 4  ;;  %v3465_v18 = vsel %vm3457_vm3, %v3444_v22, %v3447_v34  ;;  %v12723_v36 = vld [vmem:[#allocation7_spill] sm:$0xff] }
 0x304   :  { %v3456_v25 = vor.u32 %v3455_v60, %v3454_v48  ;;  %v3592_v19 = vshll.u32 %v10444_v2, 30  ;;  %v3461_v57 = vsel %vm3457_vm3, %v3441_v55, %v3444_v22  ;;  %v3462_v16 = vsel %vm3460_vm2, %v3450_v33, 2102212464 }
 0x305   :  { %v3466_v45 = vsel %vm3460_vm2, %v3453_v61, 920167782  ;;  %v7442_v59 = vpop.eup %7441  ;;  %v3463_v26 = vsel %vm3459_vm6, %v3447_v34, %v3462_v16  ;;  %v3469_v24 = vsel %vm3457_vm3, %v3447_v34, %v3450_v33  ;;  %v10456_v37 = vor.u32 %v3291_v28, %v3290_v47 }
 0x306   :  { %v3467_v5 = vsel %vm3459_vm6, %v3450_v33, %v3466_v45  ;;  %v3470_v12 = vsel %vm3460_vm2, %v3456_v25, 1326507024  ;;  %v3585_v50 = vadd.s32 %v10405_v43, %v10413_v53  ;;  %v10460_v44 = vsub.s32 %v3589_v23, %v3592_v19  ;;  %v12719_v33 = vld [vmem:[#allocation4_spill] sm:$0xff] }
 0x307   :  { %v3468_v17 = vsel %vm3458_vm8, %v3465_v18, %v3467_v5  ;;  %vm397_vm4 = vweird.f32 %v8066_v40  ;;  %v10465_v21 = vor.u32 4788187, %v3295_v8  ;;  %v3471_v22 = vsel %vm3459_vm6, %v3453_v61, %v3470_v12  ;;  %v12724_v18 = vld [vmem:[#allocation25_spill] sm:$0xff]  ;;  %v12725_v12 = vld [vmem:[#allocation2_spill] sm:$0xff] }
 0x308   :  { %v10469_v34 = vmul.u32.u64.low %v10419_v3, %v3468_v17  ;;  %v10470_v38 = vmul.u32.u64.high %v10419_v3, %v3468_v17, %v10469_v34  ;;  %v3595_v49 = vsub.s32 0, %v10460_v44  ;;  %v3464_v43 = vsel %vm3458_vm8, %v3461_v57, %v3463_v26  ;;  %v12727_v17 = vld [vmem:[#allocation14_spill] sm:$0xff] }
 0x309   :  { %v3472_v53 = vsel %vm3458_vm8, %v3469_v24, %v3471_v22  ;;  %vm400_vm3 = vcmp.lt.s32.totalorder %v10426_v14, 2  ;;  %vm401_vm13 = vcmp.eq.s32.totalorder %v10426_v14, 0  ;;  %v402_v28 = vxor.u32 2147483648, %v7442_v59 }
 0x30a   :  { %v10478_v23 = vmul.u32.u64.low %v10419_v3, %v3472_v53  ;;  %v10479_v47 = vmul.u32.u64.high %v10419_v3, %v3472_v53, %v10478_v23  ;;  %v6595_v46 = vmin.u32 %v3595_v49, %v10460_v44  ;;  %vm404_vm6 = vcmp.eq.s32.totalorder %v10426_v14, 2 }
 0x30b   :  { %v12720_v55 = vand.u32 2147483647, %v12719_v33  ;;  %v495_v48 = vsub.s32 4, %v12723_v36  ;;  %v3483_v60 = vadd.s32 1, %v10470_v38  ;;  %v403_v8 = vsel %vm401_vm13, %v10401_v63, %v402_v28 }
 0x30c   :  { %v406_v25 = vsel %vm404_vm6, %v405_v10, %v7442_v59  ;;  %v3597_v7 = vclz %v6595_v46  ;;  %v3299_v57 = vcvt.s32.f32 %v10456_v37  ;;  %v3480_v16 = vmul.u32 %v10419_v3, %v3464_v43  ;;  %v12726_v3 = vld [vmem:[#allocation11_spill] sm:$0xff] }
 0x30d   :  { %vm10486_vm2 = vcmp.le.f32.partialorder %v12720_v55, 0.7853982  ;;  %v407_v31 = vsel %vm400_vm3, %v403_v8, %v406_v25  ;;  %v496_v19 = vsel %vm411_vm10, %v495_v48, %v12723_v36  ;;  %vm3482_vm8 = vc.u32 %v10479_v47, %v10469_v34 }
 0x30e   :  { %v497_v14 = vsel %vm10486_vm2, %v12719_v33, %v12724_v18  ;;  %v498_v63 = vsel %vm10486_vm2, 0, %v496_v19  ;;  %v3297_v10 = vand.u32 2147483647, %v10465_v21  ;;  %v6596_v45 = vadd.s32 4294967294, %v3597_v7  ;;  %v12729_v18 = vld [vmem:[#allocation3_spill] sm:$0xff] }
 0x30f   :  { %7443 = vcosq.f32 %v497_v14  ;;  %v3484_v59 = vsel %vm3482_vm8, %v3483_v60, %v10470_v38  ;;  %v10512_v5 = vsel %vm397_vm4, nan, %v407_v31  ;;  %v502_v24 = vadd.s32 3, %v498_v63  ;;  %v12728_v38 = vld [vmem:[#allocation13_spill] sm:$0xff] }
 0x310   :  { %7445 = vsinq.f32 %v497_v14  ;;  %v3485_v26 = vadd.s32 %v3484_v59, %v3480_v16  ;;  %vm605_vm10 = vweird.f32 %v12725_v12  ;;  %vm6597_vm3 = vcmp.lt.s32.totalorder %v6596_v45, 0  ;;  %v12730_v14 = vld [vmem:[#allocation15_spill] sm:$0xff]  ;;  %v12732_v59 = vld [vmem:[#allocation20_spill] sm:$0xff] }
 0x311   :  { %vm608_vm13 = vcmp.lt.s32.totalorder %v12726_v3, 2  ;;  %vm609_vm6 = vcmp.eq.s32.totalorder %v12726_v3, 0  ;;  %v610_v22 = vxor.u32 2147483648, %v12727_v17  ;;  %v3600_v49 = vsel %vm6597_vm3, 0, %v6596_v45 }
 0x312   :  { %v3486_v43 = vadd.s32 536870912, %v3485_v26  ;;  %v503_v53 = vand.u32 3, %v502_v24  ;;  %v613_v23 = vxor.u32 2147483648, %v12728_v38  ;;  %v3601_v28 = vsub.s32 32, %v3600_v49 }
 0x313   :  { %v3605_v46 = vsub.s32 4294967266, %v3600_v49  ;;  %v611_v40 = vsel %vm609_vm6, %v12728_v38, %v610_v22  ;;  %vm612_vm4 = vcmp.eq.s32.totalorder %v12726_v3, 2  ;;  %v3602_v55 = vshll.u32 %v10460_v44, %v3600_v49  ;;  %v12733_v49 = vld [vmem:[#allocation6_spill] sm:$0xff] }
 0x314   :  { %v10522_v61 = vshrl.u32 %v3486_v43, 30  ;;  %vm504_vm2 = vcmp.lt.s32.totalorder %v503_v53, 2  ;;  %vm505_vm8 = vcmp.eq.s32.totalorder %v503_v53, 0  ;;  %v3603_v36 = vshrl.u32 %v3585_v50, %v3601_v28  ;;  %v12731_v50 = vld [vmem:[#allocation21_spill] sm:$0xff]  ;;  %v12743_v38 = vld [vmem:[#allocation10_spill] sm:$0xff] }
 0x315   :  { %v3606_v48 = vadd.s32 127, %v3605_v46  ;;  %vm501_vm3 = vweird.f32 %v12719_v33  ;;  %vm508_vm5 = vcmp.eq.s32.totalorder %v503_v53, 2  ;;  %v614_v60 = vsel %vm612_vm4, %v613_v23, %v12727_v17 }
 0x316   :  { %v3488_v8 = vshll.u32 %v10522_v61, 30  ;;  %v615_v25 = vsel %vm608_vm13, %v611_v40, %v614_v60  ;;  %vm709_vm6 = vweird.f32 %v12729_v18  ;;  %vm712_vm14 = vcmp.lt.s32.totalorder %v12730_v14, 2 }
 0x317   :  { %v3604_v7 = vor.u32 %v3603_v36, %v3602_v55  ;;  %v3607_v31 = vshll.u32 %v3606_v48, 23  ;;  %vm713_vm9 = vcmp.eq.s32.totalorder %v12730_v14, 0  ;;  %v714_v19 = vxor.u32 2147483648, %v12731_v50  ;;  %v12737_v55 = vld [vmem:[#allocation12_spill] sm:$0xff]  ;;  %v12738_v48 = vld [vmem:[#allocation31_spill] sm:$0xff] }
 0x318   :  { %vm2803_vm1 = vcmp.lt.s32.totalorder %v9829_v52, 0  ;;  %v10534_v16 = vsub.s32 %v3485_v26, %v3488_v8  ;;  %v616_v45 = vsel %vm605_vm10, nan, %v615_v25  ;;  %v717_v24 = vxor.u32 2147483648, %v12732_v59 }
 0x319   :  { %v7444_v44 = vpop.eup %7443  ;;  %v3608_v17 = vor.u32 4788187, %v3607_v31  ;;  %v715_v22 = vsel %vm713_vm9, %v12732_v59, %v714_v19  ;;  %vm716_vm13 = vcmp.eq.s32.totalorder %v12730_v14, 2  ;;  %v12734_v43 = vand.u32 2147483647, %v12733_v49 }
 0x31a   :  { %v509_v63 = vxor.u32 2147483648, %v7444_v44  ;;  %v7446_v3 = vpop.eup %7445  ;;  %vm3115_vm11 = vcmp.lt.s32.totalorder %v9848_v13, 0  ;;  %v3491_v26 = vsub.s32 0, %v10534_v16  ;;  %v718_v28 = vsel %vm716_vm13, %v717_v24, %v12731_v50 }
 0x31b   :  { %vm10543_vm4 = vcmp.le.f32.partialorder %v12734_v43, 0.7853982  ;;  %v506_v12 = vxor.u32 2147483648, %v7446_v3  ;;  %v3609_v46 = vand.u32 2147483647, %v3608_v17  ;;  %v719_v40 = vsel %vm712_vm14, %v715_v22, %v718_v28  ;;  %v12739_v22 = vld [vmem:[#allocation5_spill] sm:$0xff] }
 0x31c   :  { %v510_v23 = vsel %vm508_vm5, %v509_v63, %v7446_v3  ;;  %v807_v36 = vsub.s32 4, %v12737_v55  ;;  %v809_v60 = vsel %vm10543_vm4, %v12733_v49, %v12738_v48  ;;  %v6591_v8 = vmin.u32 %v3491_v26, %v10534_v16  ;;  %v12746_v28 = vld [vmem:[#allocation19_spill] sm:$0xff] }
 0x31d   :  { %v507_v25 = vsel %vm505_vm8, %v7444_v44, %v506_v12  ;;  %v720_v31 = vsel %vm709_vm6, nan, %v719_v40  ;;  %7447 = vcosq.f32 %v809_v60  ;;  %vm3011_vm9 = vcmp.lt.s32.totalorder %v9920_v42, 0 }
 0x31e   :  { %vm3323_vm5 = vcmp.lt.s32.totalorder %v9970_v32, 0  ;;  %v3611_v14 = vcvt.s32.f32 %v3604_v7  ;;  %v511_v50 = vsel %vm504_vm2, %v507_v25, %v510_v23  ;;  %v3979_v19 = vpack.c.bf16 %v720_v31, %v616_v45 }
 0x31f   :  { %v808_v63 = vsel %vm723_vm12, %v807_v36, %v12737_v55  ;;  %vm3219_vm14 = vcmp.lt.s32.totalorder %v10154_v1, 0  ;;  %v3493_v59 = vclz %v6591_v8  ;;  %v512_v18 = vsel %vm501_vm3, nan, %v511_v50  ;;  %v12747_v8 = vld [vmem:[#allocation9_spill] sm:$0xff]  ;;  %v12751_v50 = vld [vmem:[#allocation34_spill] sm:$0xff] }
 0x320   :  { %v810_v44 = vsel %vm10543_vm4, 0, %v808_v63  ;;  %7449 = vsinq.f32 %v809_v60  ;;  %v3197_v24 = vxor.u32 2147483648, %v10323_v0  ;;  %v3300_v53 = vmul.f32 %v3299_v57, %v3297_v10  ;;  %v12745_v10 = vld [vmem:[#allocation26_spill] sm:$0xff] }
 0x321   :  { %v3612_v7 = vmul.f32 %v3611_v14, %v3609_v46  ;;  %v3978_v45 = vpack.c.bf16 %v512_v18, %v10512_v5  ;;  %v6592_v3 = vadd.s32 4294967294, %v3493_v59  ;;  %v814_v17 = vadd.s32 3, %v810_v44 }
 0x322   :  { %v12740_v43 = vand.u32 2147483647, %v12739_v22  ;;  %v911_v26 = vsub.s32 4, %v12743_v38  ;;  %v12744_v12 = vxor.u32 2147483648, %v10201_v27  ;;  %v3093_v21 = vxor.u32 2147483648, %v10353_v30 }
 0x323   :  { %v3405_v57 = vxor.u32 2147483648, %v10421_v20  ;;  %6952 = vmatprep.mubr.bf16.mxu1 %v3978_v45  ;;  %vm6593_vm10 = vcmp.lt.s32.totalorder %v6592_v3, 0  ;;  %v10606_v46 = vsel %vm3115_vm11, %v3197_v24, %v10323_v0  ;;  %v3301_v40 = vxor.u32 2147483648, %v3300_v53 }
 0x324   :  { %vm10581_vm12 = vcmp.le.f32.partialorder %v12740_v43, 0.7853982  ;;  %v10591_v37 = vsel %vm2803_vm1, %v12744_v12, %v10201_v27  ;;  %6953 = vmatmul.mubr.bf16.vlgmr.msra.gmra.mrb[16].mxu1 %v3979_v19  ;;  %v912_v23 = vsel %vm827_vm7, %v911_v26, %v12743_v38  ;;  %v1015_v27 = vsub.s32 4, %v12746_v28 }
 0x325   :  { %v913_v5 = vsel %vm10581_vm12, %v12739_v22, %v12745_v10  ;;  %vm3531_vm2 = vcmp.lt.s32.totalorder %v10272_v54, 0  ;;  %v3613_v55 = vxor.u32 2147483648, %v3612_v7  ;;  %v10609_v36 = vsel %vm6593_vm10, 0, %v6592_v3 }
 0x326   :  { %7451 = vcosq.f32 %v913_v5  ;;  %v815_v48 = vand.u32 3, %v814_v17  ;;  %v914_v60 = vsel %vm10581_vm12, 0, %v912_v23  ;;  %v12748_v25 = vand.u32 2147483647, %v12747_v8 }
 0x327   :  { %7453 = vsinq.f32 %v913_v5  ;;  %v918_v14 = vadd.s32 3, %v914_v60  ;;  %v1016_v0 = vsel %vm931_vm0, %v1015_v27, %v12746_v28  ;;  %v7448_v63 = vpop.eup %7447  ;;  %v10629_v59 = vsel %vm3011_vm9, %v3093_v21, %v10353_v30  ;;  %v12757_v5 = vld [vmem:[#allocation33_spill] sm:$0xff] }
 0x328   :  { %vm10615_vm7 = vcmp.le.f32.partialorder %v12748_v25, 0.7853982  ;;  %v10634_v18 = vsel %vm3323_vm5, %v3405_v57, %v10421_v20  ;;  %v10640_v24 = vsel %vm3219_vm14, %v3301_v40, %v3300_v53  ;;  %v3481_v45 = vadd.s32 %v10469_v34, %v10479_v47  ;;  %v12752_v47 = vld [vmem:[#allocation8_spill] sm:$0xff]  ;;  %v12758_v25 = vld [vmem:[#allocation18_spill] sm:$0xff] }
 0x329   :  { %v1017_v19 = vsel %vm10615_vm7, %v12747_v8, %v12751_v50  ;;  %v1018_v44 = vsel %vm10615_vm7, 0, %v1016_v0  ;;  %v821_v3 = vxor.u32 2147483648, %v7448_v63  ;;  %v3497_v17 = vsub.s32 32, %v10609_v36 }
 0x32a   :  { %7455 = vcosq.f32 %v1017_v19  ;;  %v7450_v30 = vpop.eup %7449  ;;  %v3501_v43 = vsub.s32 4294967266, %v10609_v36  ;;  %vm813_vm0 = vweird.f32 %v12733_v49  ;;  %v919_v20 = vand.u32 3, %v918_v14 }
 0x32b   :  { %7457 = vsinq.f32 %v1017_v19  ;;  %v10649_v33 = vsel %vm3531_vm2, %v3613_v55, %v3612_v7  ;;  %v818_v38 = vxor.u32 2147483648, %v7450_v30  ;;  %vm820_vm8 = vcmp.eq.s32.totalorder %v815_v48, 2  ;;  %v12756_v7 = vld [vmem:[#allocation17_spill] sm:$0xff]  ;;  %v12762_v19 = vld [vmem:[#allocation27_spill] sm:$0xff] }
 0x32c   :  { %v1022_v53 = vadd.s32 3, %v1018_v44  ;;  %vm816_vm3 = vcmp.lt.s32.totalorder %v815_v48, 2  ;;  %vm817_vm6 = vcmp.eq.s32.totalorder %v815_v48, 0  ;;  %v822_v34 = vsel %vm820_vm8, %v821_v3, %v7450_v30  ;;  %v12763_v44 = vld [vmem:[#allocation38_spill] sm:$0xff] }
 0x32d   :  { %v12753_v26 = vand.u32 2147483647, %v12752_v47  ;;  %v3498_v21 = vshll.u32 %v10534_v16, %v10609_v36  ;;  %v819_v57 = vsel %vm817_vm6, %v7448_v63, %v818_v38  ;;  %vm917_vm4 = vweird.f32 %v12739_v22 }
 0x32e   :  { %v1119_v10 = vsub.s32 4, %v12756_v7  ;;  %v3499_v27 = vshrl.u32 %v3481_v45, %v3497_v17  ;;  %v10665_v40 = vadd.s32 127, %v3501_v43  ;;  %vm920_vm12 = vcmp.lt.s32.totalorder %v919_v20, 2 }
 0x32f   :  { %vm10653_vm13 = vcmp.le.f32.partialorder %v12753_v26, 0.7853982  ;;  %vm921_vm10 = vcmp.eq.s32.totalorder %v919_v20, 0  ;;  %v823_v55 = vsel %vm816_vm3, %v819_v57, %v822_v34  ;;  %v1023_v60 = vand.u32 3, %v1022_v53 }
 0x330   :  { %v1121_v23 = vsel %vm10653_vm13, %v12752_v47, %v12757_v5  ;;  %v7452_v28 = vpop.eup %7451  ;;  %v1120_v16 = vsel %vm1035_vm15, %v1119_v10, %v12756_v7  ;;  %vm924_vm7 = vcmp.eq.s32.totalorder %v919_v20, 2  ;;  %v12759_v31 = vand.u32 2147483647, %v12758_v25 }
 0x331   :  { %v925_v48 = vxor.u32 2147483648, %v7452_v28  ;;  %v1122_v36 = vsel %vm10653_vm13, 0, %v1120_v16  ;;  %7459 = vcosq.f32 %v1121_v23  ;;  %v7454_v0 = vpop.eup %7453  ;;  %v1223_v63 = vsub.s32 4, %v12762_v19 }
 0x332   :  { %vm10674_vm8 = vcmp.le.f32.partialorder %v12759_v31, 0.7853982  ;;  %7461 = vsinq.f32 %v1121_v23  ;;  %v1126_v50 = vadd.s32 3, %v1122_v36  ;;  %v824_v30 = vsel %vm813_vm0, nan, %v823_v55  ;;  %v12765_v36 = vld [vmem:[#allocation16_spill] sm:$0xff] }
 0x333   :  { %v1225_v45 = vsel %vm10674_vm8, %v12758_v25, %v12763_v44  ;;  %v922_v17 = vxor.u32 2147483648, %v7454_v0  ;;  %v926_v43 = vsel %vm924_vm7, %v925_v48, %v7454_v0  ;;  %vm1028_vm15 = vcmp.eq.s32.totalorder %v1023_v60, 2  ;;  %v12771_v0 = vld [vmem:[#allocation24_spill] sm:$0xff] }
 0x334   :  { %v7456_v3 = vpop.eup %7455  ;;  %7463 = vcosq.f32 %v1225_v45  ;;  %vm12764_vm3 = vcmp.lt.s32.totalorder %v12758_v25, 0  ;;  %v1127_v57 = vand.u32 3, %v1126_v50  ;;  %vm1021_vm0 = vweird.f32 %v12747_v8 }
 0x335   :  { %v7458_v38 = vpop.eup %7457  ;;  %v1029_v53 = vxor.u32 2147483648, %v7456_v3  ;;  %v1224_v34 = vsel %vm12764_vm3, %v1223_v63, %v12762_v19  ;;  %7465 = vsinq.f32 %v1225_v45  ;;  %v923_v26 = vsel %vm921_vm10, %v7452_v28, %v922_v17  ;;  %v12775_v63 = vld [vmem:[#allocation32_spill] sm:$0xff] }
 0x336   :  { %v1026_v12 = vxor.u32 2147483648, %v7458_v38  ;;  %v1226_v7 = vsel %vm10674_vm8, 0, %v1224_v34  ;;  %v927_v49 = vsel %vm920_vm12, %v923_v26, %v926_v43  ;;  %vm1025_vm6 = vcmp.eq.s32.totalorder %v1023_v60, 0 }
 0x337   :  { %v1030_v10 = vsel %vm1028_vm15, %v1029_v53, %v7458_v38  ;;  %v10693_v5 = vor.u32 %v3499_v27, %v3498_v21  ;;  %v3503_v23 = vshll.u32 %v10665_v40, 23  ;;  %v928_v55 = vsel %vm917_vm4, nan, %v927_v49  ;;  %v12769_v21 = vld [vmem:[#allocation23_spill] sm:$0xff] }
 0x338   :  { %v1027_v48 = vsel %vm1025_vm6, %v7456_v3, %v1026_v12  ;;  %v3980_v28 = vpack.c.bf16 %v928_v55, %v824_v30  ;;  %vm1024_vm13 = vcmp.lt.s32.totalorder %v1023_v60, 2  ;;  %vm1125_vm10 = vweird.f32 %v12752_v47  ;;  %v12770_v40 = vld [vmem:[#allocation35_spill] sm:$0xff]  ;;  %v12777_v30 = vld [vmem:[#allocation41_spill] sm:$0xff] }
 0x339   :  { %v1230_v16 = vadd.s32 3, %v1226_v7  ;;  %v12766_v20 = vand.u32 2147483647, %v12765_v36  ;;  %v1031_v14 = vsel %vm1024_vm13, %v1027_v48, %v1030_v10  ;;  %vm1128_vm7 = vcmp.lt.s32.totalorder %v1127_v57, 2 }
 0x33a   :  { %v1327_v27 = vsub.s32 4, %v12769_v21  ;;  %6956 = vmatprep.mubr.bf16.mxu1 %v3980_v28  ;;  %v12772_v50 = vand.u32 2147483647, %v12771_v0  ;;  %v1431_v44 = vsub.s32 4, %v12775_v63  ;;  %vm1129_vm8 = vcmp.eq.s32.totalorder %v1127_v57, 0 }
 0x33b   :  { %vm10701_vm12 = vcmp.le.f32.partialorder %v12766_v20, 0.7853982  ;;  %v1231_v60 = vand.u32 3, %v1230_v16  ;;  %v7460_v45 = vpop.eup %7459  ;;  %vm12776_vm15 = vcmp.lt.s32.totalorder %v12765_v36, 0  ;;  %v1032_v38 = vsel %vm1021_vm0, nan, %v1031_v14 }
 0x33c   :  { %v1329_v22 = vsel %vm10701_vm12, %v12765_v36, %v12770_v40  ;;  %vm10712_vm4 = vcmp.le.f32.partialorder %v12772_v50, 0.7853982  ;;  %v1328_v3 = vsel %vm12776_vm15, %v1327_v27, %v12769_v21  ;;  %v7462_v43 = vpop.eup %7461  ;;  %vm1132_vm3 = vcmp.eq.s32.totalorder %v1127_v57, 2  ;;  %v12779_v50 = vld [vmem:[#allocation29_spill] sm:$0xff] }
 0x33d   :  { %7467 = vcosq.f32 %v1329_v22  ;;  %v1433_v17 = vsel %vm10712_vm4, %v12771_v0, %v12777_v30  ;;  %v1133_v53 = vxor.u32 2147483648, %v7460_v45  ;;  %vm1236_vm6 = vcmp.eq.s32.totalorder %v1231_v60, 2 }
 0x33e   :  { %7469 = vsinq.f32 %v1329_v22  ;;  %v7464_v34 = vpop.eup %7463  ;;  %v1130_v26 = vxor.u32 2147483648, %v7462_v43  ;;  %v1330_v12 = vsel %vm10701_vm12, 0, %v1328_v3  ;;  %vm12778_vm13 = vcmp.lt.s32.totalorder %v12771_v0, 0  ;;  %v12780_v3 = vld [vmem:[#allocation22_spill] sm:$0xff] }
 0x33f   :  { %v1432_v7 = vsel %vm12778_vm13, %v1431_v44, %v12775_v63  ;;  %7471 = vcosq.f32 %v1433_v17  ;;  %v7466_v49 = vpop.eup %7465  ;;  %v1134_v10 = vsel %vm1132_vm3, %v1133_v53, %v7462_v43  ;;  %v1237_v55 = vxor.u32 2147483648, %v7464_v34  ;;  %v12785_v43 = vld [vmem:[#allocation40_spill] sm:$0xff] }
 0x340   :  { %v1334_v48 = vadd.s32 3, %v1330_v12  ;;  %v1434_v8 = vsel %vm10712_vm4, 0, %v1432_v7  ;;  %v1131_v28 = vsel %vm1129_vm8, %v7460_v45, %v1130_v26  ;;  %v1234_v16 = vxor.u32 2147483648, %v7466_v49  ;;  %v12786_v12 = vld [vmem:[#allocation30_spill] sm:$0xff] }
 0x341   :  { %7473 = vsinq.f32 %v1433_v17  ;;  %v1438_v20 = vadd.s32 3, %v1434_v8  ;;  %v1135_v31 = vsel %vm1128_vm7, %v1131_v28, %v1134_v10  ;;  %vm1233_vm0 = vcmp.eq.s32.totalorder %v1231_v60, 0  ;;  %v12790_v10 = vld [vmem:[#allocation37_spill] sm:$0xff] }
 0x342   :  { %v1238_v14 = vsel %vm1236_vm6, %v1237_v55, %v7466_v49  ;;  %v1335_v21 = vand.u32 3, %v1334_v48  ;;  %v10736_v27 = vor.u32 4788187, %v3503_v23  ;;  %v1136_v40 = vsel %vm1125_vm10, nan, %v1135_v31 }
 0x343   :  { %v1235_v22 = vsel %vm1233_vm0, %v7464_v34, %v1234_v16  ;;  %v1535_v19 = vsub.s32 4, %v12779_v50  ;;  %v3507_v63 = vcvt.s32.f32 %v10693_v5  ;;  %v3981_v44 = vpack.c.bf16 %v1136_v40, %v1032_v38 }
 0x344   :  { %vm1229_vm12 = vweird.f32 %v12758_v25  ;;  %vm1232_vm4 = vcmp.lt.s32.totalorder %v1231_v60, 2  ;;  %vm1333_vm7 = vweird.f32 %v12765_v36  ;;  %v1439_v45 = vand.u32 3, %v1438_v20  ;;  %v12791_v20 = vld [vmem:[#allocation48_spill] sm:$0xff] }
 0x345   :  { %v1239_v57 = vsel %vm1232_vm4, %v1235_v22, %v1238_v14  ;;  %v12781_v30 = vand.u32 2147483647, %v12780_v3  ;;  %6957 = vmatmul.mubr.bf16.gmra.mrb[20].mxu1 %v3981_v44  ;;  %vm1336_vm10 = vcmp.lt.s32.totalorder %v1335_v21, 2  ;;  %vm1337_vm15 = vcmp.eq.s32.totalorder %v1335_v21, 0  ;;  %v12793_v44 = vld [vmem:[#allocation36_spill] sm:$0xff] }
 0x346   :  { %vm12784_vm3 = vcmp.lt.s32.totalorder %v12780_v3, 0  ;;  %vm1340_vm6 = vcmp.eq.s32.totalorder %v1335_v21, 2  ;;  %v12787_v7 = vand.u32 2147483647, %v12786_v12  ;;  %v1639_v55 = vsub.s32 4, %v12790_v10 }
 0x347   :  { %vm10746_vm8 = vcmp.le.f32.partialorder %v12781_v30, 0.7853982  ;;  %v7468_v47 = vpop.eup %7467  ;;  %v1536_v17 = vsel %vm12784_vm3, %v1535_v19, %v12779_v50  ;;  %v1240_v8 = vsel %vm1229_vm12, nan, %v1239_v57  ;;  %vm1441_vm0 = vcmp.eq.s32.totalorder %v1439_v45, 0 }
 0x348   :  { %v1537_v60 = vsel %vm10746_vm8, %v12780_v3, %v12785_v43  ;;  %v7470_v38 = vpop.eup %7469  ;;  %v1341_v53 = vxor.u32 2147483648, %v7468_v47  ;;  %v1538_v34 = vsel %vm10746_vm8, 0, %v1536_v17  ;;  %vm10761_vm13 = vcmp.le.f32.partialorder %v12787_v7, 0.7853982 }
 0x349   :  { %7475 = vcosq.f32 %v1537_v60  ;;  %v1338_v26 = vxor.u32 2147483648, %v7470_v38  ;;  %v7472_v48 = vpop.eup %7471  ;;  %v1542_v16 = vadd.s32 3, %v1538_v34  ;;  %v1641_v31 = vsel %vm10761_vm13, %v12786_v12, %v12791_v20 }
 0x34a   :  { %7477 = vsinq.f32 %v1537_v60  ;;  %v1342_v28 = vsel %vm1340_vm6, %v1341_v53, %v7470_v38  ;;  %v1445_v40 = vxor.u32 2147483648, %v7472_v48  ;;  %vm12792_vm4 = vcmp.lt.s32.totalorder %v12786_v12, 0 }
 0x34b   :  { %v1339_v14 = vsel %vm1337_vm15, %v7468_v47, %v1338_v26  ;;  %v1640_v22 = vsel %vm12792_vm4, %v1639_v55, %v12790_v10  ;;  %v7474_v50 = vpop.eup %7473  ;;  %7479 = vcosq.f32 %v1641_v31  ;;  %v1743_v57 = vsub.s32 4, %v12793_v44  ;;  %v12794_v47 = vld [vmem:[#allocation28_spill] sm:$0xff]  ;;  %v12799_v26 = vld [vmem:[#allocation47_spill] sm:$0xff] }
 0x34c   :  { %v1343_v19 = vsel %vm1336_vm10, %v1339_v14, %v1342_v28  ;;  %v1642_v25 = vsel %vm10761_vm13, 0, %v1640_v22  ;;  %v1442_v23 = vxor.u32 2147483648, %v7474_v50  ;;  %vm1444_vm12 = vcmp.eq.s32.totalorder %v1439_v45, 2 }
 0x34d   :  { %v1344_v30 = vsel %vm1333_vm7, nan, %v1343_v19  ;;  %v12795_v17 = vand.u32 2147483647, %v12794_v47  ;;  %v1446_v21 = vsel %vm1444_vm12, %v1445_v40, %v7474_v50  ;;  %v1543_v38 = vand.u32 3, %v1542_v16  ;;  %v12800_v16 = vld [vmem:[#allocation42_spill] sm:$0xff] }
 0x34e   :  { %v3982_v60 = vpack.c.bf16 %v1344_v30, %v1240_v8  ;;  %7481 = vsinq.f32 %v1641_v31  ;;  %v1443_v53 = vsel %vm1441_vm0, %v7472_v48, %v1442_v23  ;;  %v1646_v34 = vadd.s32 3, %v1642_v25 }
 0x34f   :  { %vm10784_vm8 = vcmp.le.f32.partialorder %v12795_v17, 0.7853982  ;;  %vm12798_vm10 = vcmp.lt.s32.totalorder %v12794_v47, 0  ;;  %v3505_v49 = vand.u32 2147483647, %v10736_v27  ;;  %vm1440_vm7 = vcmp.lt.s32.totalorder %v1439_v45, 2 }
 0x350   :  { %v1744_v36 = vsel %vm12798_vm10, %v1743_v57, %v12793_v44  ;;  %v1745_v7 = vsel %vm10784_vm8, %v12794_v47, %v12799_v26  ;;  %6960 = vmatprep.mubr.bf16.mxu1 %v3982_v60  ;;  %vm1437_vm15 = vweird.f32 %v12771_v0  ;;  %v1447_v55 = vsel %vm1440_vm7, %v1443_v53, %v1446_v21  ;;  %v12805_v57 = vld [vmem:[#allocation39_spill] sm:$0xff] }
 0x351   :  { %v1746_v10 = vsel %vm10784_vm8, 0, %v1744_v36  ;;  %7483 = vcosq.f32 %v1745_v7  ;;  %vm1541_vm3 = vweird.f32 %v12780_v3  ;;  %vm1544_vm6 = vcmp.lt.s32.totalorder %v1543_v38, 2 }
 0x352   :  { %7485 = vsinq.f32 %v1745_v7  ;;  %v1647_v8 = vand.u32 3, %v1646_v34  ;;  %v1750_v28 = vadd.s32 3, %v1746_v10  ;;  %v1847_v20 = vsub.s32 4, %v12800_v16 }
 0x353   :  { %v7476_v48 = vpop.eup %7475  ;;  %vm1545_vm13 = vcmp.eq.s32.totalorder %v1543_v38, 0  ;;  %vm1548_vm0 = vcmp.eq.s32.totalorder %v1543_v38, 2  ;;  %v12801_v14 = vand.u32 2147483647, %v8985_v15  ;;  %v1448_v0 = vsel %vm1437_vm15, nan, %v1447_v55 }
 0x354   :  { %v7478_v31 = vpop.eup %7477  ;;  %v1549_v45 = vxor.u32 2147483648, %v7476_v48  ;;  %vm12804_vm12 = vcmp.lt.s32.totalorder %v8985_v15, 0  ;;  %vm1645_vm8 = vweird.f32 %v12786_v12  ;;  %v1951_v30 = vsub.s32 4, %v12805_v57 }
 0x355   :  { %vm10804_vm4 = vcmp.le.f32.partialorder %v12801_v14, 0.7853982  ;;  %v1546_v22 = vxor.u32 2147483648, %v7478_v31  ;;  %v1848_v50 = vsel %vm12804_vm12, %v1847_v20, %v12800_v16  ;;  %v7480_v23 = vpop.eup %7479  ;;  %vm1648_vm10 = vcmp.lt.s32.totalorder %v1647_v8, 2  ;;  %v12810_v16 = vld [vmem:[#allocation46_spill] sm:$0xff] }
 0x356   :  { %v1849_v19 = vsel %vm10804_vm4, %v8985_v15, %v9719_v62  ;;  %v1550_v25 = vsel %vm1548_vm0, %v1549_v45, %v7478_v31  ;;  %v1850_v44 = vsel %vm10804_vm4, 0, %v1848_v50  ;;  %v1751_v43 = vand.u32 3, %v1750_v28 }
 0x357   :  { %7487 = vcosq.f32 %v1849_v19  ;;  %v1547_v17 = vsel %vm1545_vm13, %v7476_v48, %v1546_v22  ;;  %v12806_v60 = vand.u32 2147483647, %v8953_v9  ;;  %vm1652_vm15 = vcmp.eq.s32.totalorder %v1647_v8, 2 }
 0x358   :  { %v1551_v62 = vsel %vm1544_vm6, %v1547_v17, %v1550_v25  ;;  %v1653_v53 = vxor.u32 2147483648, %v7480_v23  ;;  %7489 = vsinq.f32 %v1849_v19  ;;  %v7482_v34 = vpop.eup %7481  ;;  %v1854_v26 = vadd.s32 3, %v1850_v44 }
 0x359   :  { %vm10821_vm7 = vcmp.le.f32.partialorder %v12806_v60, 0.7853982  ;;  %v1552_v36 = vsel %vm1541_vm3, nan, %v1551_v62  ;;  %vm12809_vm13 = vcmp.lt.s32.totalorder %v8953_v9, 0  ;;  %vm1649_vm0 = vcmp.eq.s32.totalorder %v1647_v8, 0 }
 0x35a   :  { %v1952_v7 = vsel %vm12809_vm13, %v1951_v30, %v12805_v57  ;;  %v1953_v10 = vsel %vm10821_vm7, %v8953_v9, %v9703_v11  ;;  %v3983_v55 = vpack.c.bf16 %v1552_v36, %v1448_v0  ;;  %v1650_v38 = vxor.u32 2147483648, %v7482_v34 }
 0x35b   :  { %v1654_v48 = vsel %vm1652_vm15, %v1653_v53, %v7482_v34  ;;  %v7484_v28 = vpop.eup %7483  ;;  %vm1752_vm6 = vcmp.lt.s32.totalorder %v1751_v43, 2  ;;  %v1954_v3 = vsel %vm10821_vm7, 0, %v1952_v7  ;;  %7491 = vcosq.f32 %v1953_v10 }
 0x35c   :  { %v2055_v20 = vsub.s32 4, %v12810_v16  ;;  %v7486_v31 = vpop.eup %7485  ;;  %6961 = vmatmul.mubr.bf16.gmra.mrb[24].mxu1 %v3983_v55  ;;  %v1651_v45 = vsel %vm1649_vm0, %v7480_v23, %v1650_v38  ;;  %vm1753_vm3 = vcmp.eq.s32.totalorder %v1751_v43, 0  ;;  %vm1756_vm4 = vcmp.eq.s32.totalorder %v1751_v43, 2  ;;  %v12818_v38 = vld [vmem:[#allocation52_spill] sm:$0xff] }
 0x35d   :  { %v1757_v14 = vxor.u32 2147483648, %v7484_v28  ;;  %v1655_v11 = vsel %vm1648_vm10, %v1651_v45, %v1654_v48  ;;  %v1754_v40 = vxor.u32 2147483648, %v7486_v31  ;;  %v1855_v0 = vand.u32 3, %v1854_v26  ;;  %v12816_v26 = vld [vmem:[#allocation44_spill] sm:$0xff] }
 0x35e   :  { %7493 = vsinq.f32 %v1953_v10  ;;  %v1958_v50 = vadd.s32 3, %v1954_v3  ;;  %v12811_v19 = vand.u32 2147483647, %v9169_v4  ;;  %vm12812_vm7 = vcmp.lt.s32.totalorder %v9169_v4, 0  ;;  %v12817_v10 = vld [vmem:[#allocation55_spill] sm:$0xff] }
 0x35f   :  { %v1758_v22 = vsel %vm1756_vm4, %v1757_v14, %v7486_v31  ;;  %v2056_v25 = vsel %vm12812_vm7, %v2055_v20, %v12810_v16  ;;  %v1656_v44 = vsel %vm1645_vm8, nan, %v1655_v11  ;;  %v1755_v57 = vsel %vm1753_vm3, %v7484_v28, %v1754_v40  ;;  %v12820_v40 = vld [vmem:[#allocation45_spill] sm:$0xff] }
 0x360   :  { %vm1970_vm12 = vcmp.le.f32.partialorder %v12811_v19, 0.7853982  ;;  %vm1749_vm10 = vweird.f32 %v12794_v47  ;;  %v1759_v17 = vsel %vm1752_vm6, %v1755_v57, %v1758_v22  ;;  %v1959_v60 = vand.u32 3, %v1958_v50 }
 0x361   :  { %v2057_v8 = vsel %vm1970_vm12, %v9169_v4, %v9747_v35  ;;  %v2058_v30 = vsel %vm1970_vm12, 0, %v2056_v25  ;;  %v7488_v23 = vpop.eup %7487  ;;  %v1760_v21 = vsel %vm1749_vm10, nan, %v1759_v17  ;;  %vm1853_vm8 = vweird.f32 %v8985_v15  ;;  %v12828_v15 = vld [vmem:[#allocation50_spill] sm:$0xff] }
 0x362   :  { %7495 = vcosq.f32 %v2057_v8  ;;  %v1861_v62 = vxor.u32 2147483648, %v7488_v23  ;;  %v2062_v53 = vadd.s32 3, %v2058_v30  ;;  %v7490_v34 = vpop.eup %7489  ;;  %v3984_v36 = vpack.c.bf16 %v1760_v21, %v1656_v44  ;;  %v12823_v44 = vld [vmem:[#allocation58_spill] sm:$0xff] }
 0x363   :  { %7497 = vsinq.f32 %v2057_v8  ;;  %vm1856_vm15 = vcmp.lt.s32.totalorder %v1855_v0, 2  ;;  %vm1860_vm13 = vcmp.eq.s32.totalorder %v1855_v0, 2  ;;  %v1858_v12 = vxor.u32 2147483648, %v7490_v34 }
 0x364   :  { %v1862_v35 = vsel %vm1860_vm13, %v1861_v62, %v7490_v34  ;;  %vm1957_vm0 = vweird.f32 %v8953_v9  ;;  %v12813_v47 = vand.u32 2147483647, %v9092_v41  ;;  %v2159_v7 = vsub.s32 4, %v12816_v26  ;;  %6964 = vmatprep.mubr.bf16.mxu1 %v3984_v36 }
 0x365   :  { %vm1857_vm6 = vcmp.eq.s32.totalorder %v1855_v0, 0  ;;  %vm1960_vm4 = vcmp.lt.s32.totalorder %v1959_v60, 2  ;;  %v2263_v48 = vsub.s32 4, %v12818_v38  ;;  %v7492_v28 = vpop.eup %7491  ;;  %vm1961_vm12 = vcmp.eq.s32.totalorder %v1959_v60, 0 }
 0x366   :  { %vm10854_vm3 = vcmp.le.f32.partialorder %v12813_v47, 0.7853982  ;;  %v1859_v3 = vsel %vm1857_vm6, %v7488_v23, %v1858_v12  ;;  %vm1964_vm7 = vcmp.eq.s32.totalorder %v1959_v60, 2  ;;  %v2063_v16 = vand.u32 3, %v2062_v53  ;;  %v12824_v23 = vld [vmem:[#allocation43_spill] sm:$0xff] }
 0x367   :  { %v2161_v55 = vsel %vm10854_vm3, %v9092_v41, %v12817_v10  ;;  %v1863_v20 = vsel %vm1856_vm15, %v1859_v3, %v1862_v35  ;;  %v1965_v31 = vxor.u32 2147483648, %v7492_v28  ;;  %vm12819_vm10 = vcmp.lt.s32.totalorder %v9092_v41, 0 }
 0x368   :  { %v2160_v45 = vsel %vm12819_vm10, %v2159_v7, %v12816_v26  ;;  %7499 = vcosq.f32 %v2161_v55  ;;  %v7494_v14 = vpop.eup %7493  ;;  %v12821_v22 = vand.u32 2147483647, %v12820_v40  ;;  %vm12822_vm6 = vcmp.lt.s32.totalorder %v12820_v40, 0  ;;  %v12829_v26 = vld [vmem:[#allocation57_spill] sm:$0xff] }
 0x369   :  { %v2162_v11 = vsel %vm10854_vm3, 0, %v2160_v45  ;;  %7501 = vsinq.f32 %v2161_v55  ;;  %v2264_v50 = vsel %vm12822_vm6, %v2263_v48, %v12818_v38  ;;  %v1962_v0 = vxor.u32 2147483648, %v7494_v14 }
 0x36a   :  { %vm2178_vm13 = vcmp.le.f32.partialorder %v12821_v22, 0.7853982  ;;  %v1966_v19 = vsel %vm1964_vm7, %v1965_v31, %v7494_v14  ;;  %v2166_v25 = vadd.s32 3, %v2162_v11  ;;  %v1864_v8 = vsel %vm1853_vm8, nan, %v1863_v20  ;;  %v12836_v22 = vld [vmem:[#allocation61_spill] sm:$0xff] }
 0x36b   :  { %v2265_v57 = vsel %vm2178_vm13, %v12820_v40, %v12823_v44  ;;  %v2266_v30 = vsel %vm2178_vm13, 0, %v2264_v50  ;;  %v12825_v17 = vand.u32 2147483647, %v12824_v23  ;;  %v1963_v53 = vsel %vm1961_vm12, %v7492_v28, %v1962_v0 }
 0x36c   :  { %7503 = vcosq.f32 %v2265_v57  ;;  %v7496_v62 = vpop.eup %7495  ;;  %v2167_v34 = vand.u32 3, %v2166_v25  ;;  %v2270_v36 = vadd.s32 3, %v2266_v30  ;;  %v1967_v35 = vsel %vm1960_vm4, %v1963_v53, %v1966_v19  ;;  %v12838_v53 = vld [vmem:[#allocation53_spill] sm:$0xff] }
 0x36d   :  { %vm10881_vm15 = vcmp.le.f32.partialorder %v12825_v17, 0.7853982  ;;  %7505 = vsinq.f32 %v2265_v57  ;;  %v7498_v12 = vpop.eup %7497  ;;  %v2069_v47 = vxor.u32 2147483648, %v7496_v62  ;;  %v2367_v43 = vsub.s32 4, %v12828_v15 }
 0x36e   :  { %v2369_v7 = vsel %vm10881_vm15, %v12824_v23, %v12829_v26  ;;  %v10896_v10 = vmul.f32 %v3507_v63, %v3505_v49  ;;  %v1968_v55 = vsel %vm1957_vm0, nan, %v1967_v35  ;;  %v2066_v38 = vxor.u32 2147483648, %v7498_v12  ;;  %v12831_v49 = vld [vmem:[#allocation51_spill] sm:$0xff]  ;;  %v12839_v35 = vld [vmem:[#allocation49_spill] sm:$0xff] }
 0x36f   :  { %vm2068_vm8 = vcmp.eq.s32.totalorder %v2063_v16, 2  ;;  %v3985_v60 = vpack.c.bf16 %v1968_v55, %v1864_v8  ;;  %vm2061_vm3 = vweird.f32 %v9169_v4  ;;  %vm2065_vm4 = vcmp.eq.s32.totalorder %v2063_v16, 0 }
 0x370   :  { %v2070_v48 = vsel %vm2068_vm8, %v2069_v47, %v7498_v12  ;;  %v2067_v28 = vsel %vm2065_vm4, %v7496_v62, %v2066_v38  ;;  %v2271_v3 = vand.u32 3, %v2270_v36  ;;  %vm12830_vm12 = vcmp.lt.s32.totalorder %v12824_v23, 0 }
 0x371   :  { %v2368_v27 = vsel %vm12830_vm12, %v2367_v43, %v12828_v15  ;;  %7507 = vcosq.f32 %v2369_v7  ;;  %6965 = vmatmul.mubr.bf16.gmra.mrb[28].mxu1 %v3985_v60  ;;  %vm2064_vm7 = vcmp.lt.s32.totalorder %v2063_v16, 2  ;;  %vm2165_vm10 = vweird.f32 %v9092_v41  ;;  %v12835_v16 = vld [vmem:[#allocation54_spill] sm:$0xff]  ;;  %v12853_v15 = vld [vmem:[#allocation56_spill] sm:$0xff] }
 0x372   :  { %vm2168_vm13 = vcmp.lt.s32.totalorder %v2167_v34, 2  ;;  %vm2169_vm0 = vcmp.eq.s32.totalorder %v2167_v34, 0  ;;  %v7500_v9 = vpop.eup %7499  ;;  %v2071_v5 = vsel %vm2064_vm7, %v2067_v28, %v2070_v48  ;;  %v2370_v63 = vsel %vm10881_vm15, 0, %v2368_v27  ;;  %v12844_v48 = vld [vmem:[#allocation60_spill] sm:$0xff] }
 0x373   :  { %7509 = vsinq.f32 %v2369_v7  ;;  %v12832_v20 = vand.u32 2147483647, %v12831_v49  ;;  %v7502_v45 = vpop.eup %7501  ;;  %vm2172_vm8 = vcmp.eq.s32.totalorder %v2167_v34, 2  ;;  %v2173_v14 = vxor.u32 2147483648, %v7500_v9 }
 0x374   :  { %v2471_v11 = vsub.s32 4, %v12835_v16  ;;  %v2170_v0 = vxor.u32 2147483648, %v7502_v45  ;;  %vm2273_vm4 = vcmp.eq.s32.totalorder %v2271_v3, 0  ;;  %v2374_v19 = vadd.s32 3, %v2370_v63 }
 0x375   :  { %vm10909_vm6 = vcmp.le.f32.partialorder %v12832_v20, 0.7853982  ;;  %v2072_v44 = vsel %vm2061_vm3, nan, %v2071_v5  ;;  %v2174_v57 = vsel %vm2172_vm8, %v2173_v14, %v7502_v45  ;;  %vm2269_vm15 = vweird.f32 %v12820_v40 }
 0x376   :  { %v2473_v50 = vsel %vm10909_vm6, %v12831_v49, %v12836_v22  ;;  %v7504_v25 = vpop.eup %7503  ;;  %vm12837_vm12 = vcmp.lt.s32.totalorder %v12831_v49, 0  ;;  %v2171_v17 = vsel %vm2169_vm0, %v7500_v9, %v2170_v0  ;;  %v2575_v36 = vsub.s32 4, %v12838_v53 }
 0x377   :  { %7511 = vcosq.f32 %v2473_v50  ;;  %v2472_v8 = vsel %vm12837_vm12, %v2471_v11, %v12835_v16  ;;  %v7506_v30 = vpop.eup %7505  ;;  %v2277_v21 = vxor.u32 2147483648, %v7504_v25  ;;  %v2175_v4 = vsel %vm2168_vm13, %v2171_v17, %v2174_v57  ;;  %v12848_v11 = vld [vmem:[#allocation59_spill] sm:$0xff] }
 0x378   :  { %7513 = vsinq.f32 %v2473_v50  ;;  %v2474_v62 = vsel %vm10909_vm6, 0, %v2472_v8  ;;  %v2274_v12 = vxor.u32 2147483648, %v7506_v30  ;;  %vm2276_vm3 = vcmp.eq.s32.totalorder %v2271_v3, 2 }
 0x379   :  { %v12840_v47 = vand.u32 2147483647, %v12839_v35  ;;  %v2176_v43 = vsel %vm2165_vm10, nan, %v2175_v4  ;;  %v2278_v26 = vsel %vm2276_vm3, %v2277_v21, %v7506_v30  ;;  %v2375_v7 = vand.u32 3, %v2374_v19 }
 0x37a   :  { %v2478_v55 = vadd.s32 3, %v2474_v62  ;;  %v3986_v38 = vpack.c.bf16 %v2176_v43, %v2072_v44  ;;  %v2275_v60 = vsel %vm2273_vm4, %v7504_v25, %v2274_v12  ;;  %vm12843_vm13 = vcmp.lt.s32.totalorder %v12839_v35, 0 }
 0x37b   :  { %vm10931_vm7 = vcmp.le.f32.partialorder %v12840_v47, 0.7853982  ;;  %v2576_v34 = vsel %vm12843_vm13, %v2575_v36, %v12838_v53  ;;  %v7508_v27 = vpop.eup %7507  ;;  %vm2272_vm0 = vcmp.lt.s32.totalorder %v2271_v3, 2  ;;  %vm2373_vm10 = vweird.f32 %v12824_v23 }
 0x37c   :  { %v2577_v28 = vsel %vm10931_vm7, %v12839_v35, %v12844_v48  ;;  %v2479_v9 = vand.u32 3, %v2478_v55  ;;  %v2578_v41 = vsel %vm10931_vm7, 0, %v2576_v34  ;;  %6968 = vmatprep.mubr.bf16.mxu1 %v3986_v38  ;;  %v2279_v5 = vsel %vm2272_vm0, %v2275_v60, %v2278_v26  ;;  %v12854_v26 = vld [vmem:[#allocation65_spill] sm:$0xff]  ;;  %v12856_v48 = vld [vmem:[#allocation63_spill] sm:$0xff] }
 0x37d   :  { %7515 = vcosq.f32 %v2577_v28  ;;  %v2381_v63 = vxor.u32 2147483648, %v7508_v27  ;;  %v7510_v20 = vpop.eup %7509  ;;  %vm2376_vm6 = vcmp.lt.s32.totalorder %v2375_v7, 2  ;;  %vm2377_vm8 = vcmp.eq.s32.totalorder %v2375_v7, 0 }
 0x37e   :  { %7517 = vsinq.f32 %v2577_v28  ;;  %vm2380_vm4 = vcmp.eq.s32.totalorder %v2375_v7, 2  ;;  %v2582_v31 = vadd.s32 3, %v2578_v41  ;;  %v2378_v45 = vxor.u32 2147483648, %v7510_v20 }
 0x37f   :  { %v2382_v14 = vsel %vm2380_vm4, %v2381_v63, %v7510_v20  ;;  %v12845_v3 = vand.u32 2147483647, %v9600_v39  ;;  %v2679_v22 = vsub.s32 4, %v12848_v11  ;;  %v2280_v0 = vsel %vm2269_vm15, nan, %v2279_v5 }
 0x380   :  { %vm2480_vm3 = vcmp.lt.s32.totalorder %v2479_v9, 2  ;;  %vm2481_vm7 = vcmp.eq.s32.totalorder %v2479_v9, 0  ;;  %v2379_v44 = vsel %vm2377_vm8, %v7508_v27, %v2378_v45  ;;  %vm12849_vm13 = vcmp.lt.s32.totalorder %v9600_v39, 0  ;;  %v10987_v27 = vpop.f32.mrb[0].mxu1 }
 0x381   :  { %vm10950_vm12 = vcmp.le.f32.partialorder %v12845_v3, 0.7853982  ;;  %v7512_v50 = vpop.eup %7511  ;;  %v2680_v8 = vsel %vm12849_vm13, %v2679_v22, %v12848_v11  ;;  %v2383_v30 = vsel %vm2376_vm6, %v2379_v44, %v2382_v14  ;;  %vm2484_vm0 = vcmp.eq.s32.totalorder %v2479_v9, 2 }
 0x382   :  { %v2681_v19 = vsel %vm10950_vm12, %v9600_v39, %v10162_v58  ;;  %v7514_v25 = vpop.eup %7513  ;;  %v2485_v57 = vxor.u32 2147483648, %v7512_v50  ;;  %v2583_v40 = vand.u32 3, %v2582_v31  ;;  %v2384_v21 = vsel %vm2373_vm10, nan, %v2383_v30  ;;  %v10997_v31 = vpop.f32.mrb[1].mxu1 }
 0x383   :  { %7519 = vcosq.f32 %v2681_v19  ;;  %v2482_v17 = vxor.u32 2147483648, %v7514_v25  ;;  %v2682_v58 = vsel %vm10950_vm12, 0, %v2680_v8  ;;  %v12850_v53 = vand.u32 2147483647, %v9545_v6  ;;  %v11008_v16 = vpop.f32.mrb[2].mxu1 }
 0x384   :  { %v2486_v62 = vsel %vm2484_vm0, %v2485_v57, %v7514_v25  ;;  %v3987_v4 = vpack.c.bf16 %v2384_v21, %v2280_v0  ;;  %7521 = vsinq.f32 %v2681_v19  ;;  %v2686_v47 = vadd.s32 3, %v2682_v58  ;;  %v11013_v0 = vpop.f32.mrb[3].mxu1 }
 0x385   :  { %vm10971_vm15 = vcmp.le.f32.partialorder %v12850_v53, 0.7853982  ;;  %v2483_v12 = vsel %vm2481_vm7, %v7512_v50, %v2482_v17  ;;  %vm2477_vm6 = vweird.f32 %v12831_v49  ;;  %v2783_v43 = vsub.s32 4, %v12853_v15  ;;  %v12864_v53 = vld [vmem:[#allocation67_spill] sm:$0xff] }
 0x386   :  { %v2487_v23 = vsel %vm2480_vm3, %v2483_v12, %v2486_v62  ;;  %v2785_v7 = vsel %vm10971_vm15, %v9545_v6, %v12854_v26  ;;  %6969 = vmatmul.mubr.bf16.gmra.mrb[32].mxu1 %v3987_v4  ;;  %vm2584_vm10 = vcmp.lt.s32.totalorder %v2583_v40, 2  ;;  %vm2585_vm8 = vcmp.eq.s32.totalorder %v2583_v40, 0  ;;  %v12863_v62 = vld [vmem:[#allocation62_spill] sm:$0xff] }
 0x387   :  { %v7516_v55 = vpop.eup %7515  ;;  %vm2588_vm4 = vcmp.eq.s32.totalorder %v2583_v40, 2  ;;  %7523 = vcosq.f32 %v2785_v7  ;;  %vm12855_vm12 = vcmp.lt.s32.totalorder %v9545_v6, 0  ;;  %v2887_v28 = vsub.s32 4, %v12856_v48 }
 0x388   :  { %v7518_v38 = vpop.eup %7517  ;;  %v2589_v60 = vxor.u32 2147483648, %v7516_v55  ;;  %v2784_v34 = vsel %vm12855_vm12, %v2783_v43, %v12853_v15  ;;  %7525 = vsinq.f32 %v2785_v7  ;;  %v2488_v9 = vsel %vm2477_vm6, nan, %v2487_v23 }
 0x389   :  { %v2586_v41 = vxor.u32 2147483648, %v7518_v38  ;;  %v2687_v5 = vand.u32 3, %v2686_v47  ;;  %v12857_v63 = vand.u32 2147483647, %v9829_v52  ;;  %v2786_v14 = vsel %vm10971_vm15, 0, %v2784_v34  ;;  %v11030_v47 = vpop.f32.mrb[4].mxu1 }
 0x38a   :  { %v2590_v45 = vsel %vm2588_vm4, %v2589_v60, %v7518_v38  ;;  %v2888_v3 = vsel %vm2803_vm1, %v2887_v28, %v12856_v48  ;;  %v2790_v22 = vadd.s32 3, %v2786_v14  ;;  %vm2581_vm7 = vweird.f32 %v12839_v35  ;;  %v11035_v43 = vpop.f32.mrb[5].mxu1 }
 0x38b   :  { %vm10993_vm3 = vcmp.le.f32.partialorder %v12857_v63, 0.7853982  ;;  %v2587_v11 = vsel %vm2585_vm8, %v7516_v55, %v2586_v41  ;;  %v12860_v30 = vand.u32 2147483647, %v9612_v56  ;;  %vm2685_vm13 = vweird.f32 %v9600_v39  ;;  %v11045_v48 = vpop.f32.mrb[6].mxu1  ;;  %v12869_v63 = vld [vmem:[#allocation66_spill] sm:$0xff] }
 0x38c   :  { %v2889_v49 = vsel %vm10993_vm3, %v9829_v52, %v10591_v37  ;;  %v2890_v50 = vsel %vm10993_vm3, 0, %v2888_v3  ;;  %v2591_v25 = vsel %vm2584_vm10, %v2587_v11, %v2590_v45  ;;  %v2791_v8 = vand.u32 3, %v2790_v22  ;;  %v11049_v45 = vpop.f32.mrb[7].mxu1 }
 0x38d   :  { %7527 = vcosq.f32 %v2889_v49  ;;  %v7520_v19 = vpop.eup %7519  ;;  %v2894_v44 = vadd.s32 3, %v2890_v50  ;;  %v2592_v57 = vsel %vm2581_vm7, nan, %v2591_v25  ;;  %vm11019_vm1 = vcmp.le.f32.partialorder %v12860_v30, 0.7853982 }
 0x38e   :  { %7529 = vsinq.f32 %v2889_v49  ;;  %v2693_v37 = vxor.u32 2147483648, %v7520_v19  ;;  %v3988_v21 = vpack.c.bf16 %v2592_v57, %v2488_v9  ;;  %v2991_v58 = vsub.s32 4, %v12863_v62  ;;  %v7522_v40 = vpop.eup %7521 }
 0x38f   :  { %v2993_v35 = vsel %vm11019_vm1, %v9612_v56, %v12864_v53  ;;  %vm2688_vm0 = vcmp.lt.s32.totalorder %v2687_v5, 2  ;;  %vm2692_vm15 = vcmp.eq.s32.totalorder %v2687_v5, 2  ;;  %vm2789_vm6 = vweird.f32 %v9545_v6  ;;  %v12873_v6 = vld [vmem:[#allocation64_spill] sm:$0xff] }
 0x390   :  { %7531 = vcosq.f32 %v2993_v35  ;;  %6972 = vmatprep.mubr.bf16.mxu1 %v3988_v21  ;;  %vm2689_vm10 = vcmp.eq.s32.totalorder %v2687_v5, 0  ;;  %v2690_v36 = vxor.u32 2147483648, %v7522_v40  ;;  %v2694_v4 = vsel %vm2692_vm15, %v2693_v37, %v7522_v40 }
 0x391   :  { %v2895_v12 = vand.u32 3, %v2894_v44  ;;  %v7524_v23 = vpop.eup %7523  ;;  %vm2792_vm8 = vcmp.lt.s32.totalorder %v2791_v8, 2  ;;  %vm2796_vm4 = vcmp.eq.s32.totalorder %v2791_v8, 2  ;;  %vm12865_vm12 = vcmp.lt.s32.totalorder %v9612_v56, 0 }
 0x392   :  { %v2992_v15 = vsel %vm12865_vm12, %v2991_v58, %v12863_v62  ;;  %7533 = vsinq.f32 %v2993_v35  ;;  %v7526_v26 = vpop.eup %7525  ;;  %v2691_v7 = vsel %vm2689_vm10, %v7520_v19, %v2690_v36  ;;  %v2797_v55 = vxor.u32 2147483648, %v7524_v23  ;;  %v11067_v62 = vpop.f32.mrb[8].mxu1 }
 0x393   :  { %v2994_v38 = vsel %vm11019_vm1, 0, %v2992_v15  ;;  %v12866_v60 = vand.u32 2147483647, %v9920_v42  ;;  %v2695_v28 = vsel %vm2688_vm0, %v2691_v7, %v2694_v4  ;;  %v2794_v9 = vxor.u32 2147483648, %v7526_v26  ;;  %v11078_v36 = vpop.f32.mrb[9].mxu1 }
 0x394   :  { %v2998_v41 = vadd.s32 3, %v2994_v38  ;;  %v3095_v20 = vsub.s32 4, %v12869_v63  ;;  %v2696_v14 = vsel %vm2685_vm13, nan, %v2695_v28  ;;  %vm2793_vm7 = vcmp.eq.s32.totalorder %v2791_v8, 0  ;;  %v11084_v15 = vpop.f32.mrb[10].mxu1 }
 0x395   :  { %vm11041_vm3 = vcmp.le.f32.partialorder %v12866_v60, 0.7853982  ;;  %v2798_v3 = vsel %vm2796_vm4, %v2797_v55, %v7526_v26  ;;  %v2795_v5 = vsel %vm2793_vm7, %v7524_v23, %v2794_v9  ;;  %v3509_v57 = vxor.u32 2147483648, %v10896_v10  ;;  %v11089_v38 = vpop.f32.mrb[11].mxu1 }
 0x396   :  { %v3097_v49 = vsel %vm11041_vm3, %v9920_v42, %v10629_v59  ;;  %v2999_v22 = vand.u32 3, %v2998_v41  ;;  %v3096_v50 = vsel %vm3011_vm9, %v3095_v20, %v12869_v63  ;;  %v2799_v39 = vsel %vm2792_vm8, %v2795_v5, %v2798_v3 }
 0x397   :  { %v7528_v11 = vpop.eup %7527  ;;  %7535 = vcosq.f32 %v3097_v49  ;;  %v3098_v44 = vsel %vm11041_vm3, 0, %v3096_v50  ;;  %v2800_v59 = vsel %vm2789_vm6, nan, %v2799_v39  ;;  %vm2900_vm1 = vcmp.eq.s32.totalorder %v2895_v12, 2 }
 0x398   :  { %v7530_v19 = vpop.eup %7529  ;;  %v2901_v25 = vxor.u32 2147483648, %v7528_v11  ;;  %7537 = vsinq.f32 %v3097_v49  ;;  %v3989_v30 = vpack.c.bf16 %v2800_v59, %v2696_v14  ;;  %vm2897_vm13 = vcmp.eq.s32.totalorder %v2895_v12, 0 }
 0x399   :  { %v2898_v37 = vxor.u32 2147483648, %v7530_v19  ;;  %v3102_v21 = vadd.s32 3, %v3098_v44  ;;  %vm3427_vm9 = vcmp.lt.s32.totalorder %v10275_v29, 0  ;;  %vm2893_vm0 = vweird.f32 %v9829_v52  ;;  %v11113_v44 = vpop.f32.mrb[12].mxu1 }
 0x39a   :  { %v2902_v17 = vsel %vm2900_vm1, %v2901_v25, %v7530_v19  ;;  %v7532_v8 = vpop.eup %7531  ;;  %v12870_v53 = vand.u32 2147483647, %v9848_v13  ;;  %v3199_v40 = vsub.s32 4, %v12873_v6  ;;  %6973 = vmatmul.mubr.bf16.gmra.mrb[36].mxu1 %v3989_v30  ;;  %vm2896_vm6 = vcmp.lt.s32.totalorder %v2895_v12, 2 }
 0x39b   :  { %v2899_v58 = vsel %vm2897_vm13, %v7528_v11, %v2898_v37  ;;  %vm3000_vm10 = vcmp.lt.s32.totalorder %v2999_v22, 2  ;;  %v3005_v4 = vxor.u32 2147483648, %v7532_v8  ;;  %vm3004_vm8 = vcmp.eq.s32.totalorder %v2999_v22, 2 }
 0x39c   :  { %vm11073_vm15 = vcmp.le.f32.partialorder %v12870_v53, 0.7853982  ;;  %v7534_v26 = vpop.eup %7533  ;;  %v2903_v7 = vsel %vm2896_vm6, %v2899_v58, %v2902_v17  ;;  %v3200_v55 = vsel %vm3115_vm11, %v3199_v40, %v12873_v6  ;;  %vm3001_vm4 = vcmp.eq.s32.totalorder %v2999_v22, 0  ;;  %v12880_v58 = vld [vmem:[#allocation68_spill] sm:$0xff] }
 0x39d   :  { %v3201_v23 = vsel %vm11073_vm15, %v9848_v13, %v10606_v46  ;;  %v3002_v12 = vxor.u32 2147483648, %v7534_v26  ;;  %v3006_v60 = vsel %vm3004_vm8, %v3005_v4, %v7534_v26  ;;  %v3103_v34 = vand.u32 3, %v3102_v21 }
 0x39e   :  { %7539 = vcosq.f32 %v3201_v23  ;;  %v3202_v28 = vsel %vm11073_vm15, 0, %v3200_v55  ;;  %v12874_v46 = vand.u32 2147483647, %v10154_v1  ;;  %v3303_v41 = vsub.s32 4, %v10364_v51 }
 0x39f   :  { %7541 = vsinq.f32 %v3201_v23  ;;  %v2904_v63 = vsel %vm2893_vm0, nan, %v2903_v7  ;;  %v3003_v20 = vsel %vm3001_vm4, %v7532_v8, %v3002_v12  ;;  %v3206_v14 = vadd.s32 3, %v3202_v28  ;;  %v11179_v28 = vpop.f32.mrb[0].mxu0 }
 0x3a0   :  { %vm11095_vm12 = vcmp.le.f32.partialorder %v12874_v46, 0.7853982  ;;  %vm2997_vm11 = vweird.f32 %v9612_v56  ;;  %v3007_v11 = vsel %vm3000_vm10, %v3003_v20, %v3006_v60  ;;  %v3304_v5 = vsel %vm3219_vm14, %v3303_v41, %v10364_v51  ;;  %v11115_v56 = vpop.f32.mrb[13].mxu1 }
 0x3a1   :  { %v3305_v3 = vsel %vm11095_vm12, %v10154_v1, %v10640_v24  ;;  %v7536_v49 = vpop.eup %7535  ;;  %v3008_v52 = vsel %vm2997_vm11, nan, %v3007_v11  ;;  %v3207_v39 = vand.u32 3, %v3206_v14  ;;  %v3306_v25 = vsel %vm11095_vm12, 0, %v3304_v5  ;;  %v11126_v17 = vpop.f32.mrb[14].mxu1 }
 0x3a2   :  { %7543 = vcosq.f32 %v3305_v3  ;;  %v7538_v50 = vpop.eup %7537  ;;  %v3109_v19 = vxor.u32 2147483648, %v7536_v49  ;;  %v3990_v24 = vpack.c.bf16 %v3008_v52, %v2904_v63  ;;  %vm3108_vm3 = vcmp.eq.s32.totalorder %v3103_v34, 2 }
 0x3a3   :  { %v3106_v59 = vxor.u32 2147483648, %v7538_v50  ;;  %7545 = vsinq.f32 %v3305_v3  ;;  %v3510_v51 = vsel %vm3427_vm9, %v3509_v57, %v10896_v10  ;;  %vm3105_vm14 = vcmp.eq.s32.totalorder %v3103_v34, 0  ;;  %v11133_v57 = vpop.f32.mrb[15].mxu1 }
 0x3a4   :  { %v3110_v22 = vsel %vm3108_vm3, %v3109_v19, %v7538_v50  ;;  %v12877_v37 = vand.u32 2147483647, %v9970_v32  ;;  %6976 = vmatprep.mubr.bf16.mxu1 %v3990_v24  ;;  %v3310_v8 = vadd.s32 3, %v3306_v25  ;;  %v3407_v53 = vsub.s32 4, %v12880_v58 }
 0x3a5   :  { %v3107_v21 = vsel %vm3105_vm14, %v7536_v49, %v3106_v59  ;;  %vm3101_vm1 = vweird.f32 %v9920_v42  ;;  %vm3104_vm13 = vcmp.lt.s32.totalorder %v3103_v34, 2  ;;  %vm3208_vm0 = vcmp.lt.s32.totalorder %v3207_v39, 2 }
 0x3a6   :  { %vm11122_vm7 = vcmp.le.f32.partialorder %v12877_v37, 0.7853982  ;;  %v3111_v6 = vsel %vm3104_vm13, %v3107_v21, %v3110_v22  ;;  %vm3209_vm15 = vcmp.eq.s32.totalorder %v3207_v39, 0  ;;  %vm3212_vm6 = vcmp.eq.s32.totalorder %v3207_v39, 2 }
 0x3a7   :  { %v3409_v10 = vsel %vm11122_vm7, %v9970_v32, %v10634_v18  ;;  %v12881_v40 = vand.u32 2147483647, %v10275_v29  ;;  %v3408_v18 = vsel %vm3323_vm5, %v3407_v53, %v12880_v58  ;;  %v3511_v26 = vsub.s32 4, %v10522_v61 }
 0x3a8   :  { %7547 = vcosq.f32 %v3409_v10  ;;  %v7540_v35 = vpop.eup %7539  ;;  %v3311_v55 = vand.u32 3, %v3310_v8  ;;  %v3410_v12 = vsel %vm11122_vm7, 0, %v3408_v18  ;;  %v12884_v34 = vand.u32 2147483647, %v10272_v54 }
 0x3a9   :  { %vm11138_vm10 = vcmp.le.f32.partialorder %v12881_v40, 0.7853982  ;;  %v3213_v23 = vxor.u32 2147483648, %v7540_v35  ;;  %7549 = vsinq.f32 %v3409_v10  ;;  %v7542_v7 = vpop.eup %7541  ;;  %v3414_v41 = vadd.s32 3, %v3410_v12 }
 0x3aa   :  { %v3513_v60 = vsel %vm11138_vm10, %v10275_v29, %v3510_v51  ;;  %vm11153_vm8 = vcmp.le.f32.partialorder %v12884_v34, 0.7853982  ;;  %v3210_v46 = vxor.u32 2147483648, %v7542_v7  ;;  %v3512_v63 = vsel %vm3427_vm9, %v3511_v26, %v10522_v61 }
 0x3ab   :  { %v3214_v9 = vsel %vm3212_vm6, %v3213_v23, %v7542_v7  ;;  %v3112_v14 = vsel %vm3101_vm1, nan, %v3111_v6  ;;  %7551 = vcosq.f32 %v3513_v60  ;;  %v3615_v3 = vsub.s32 4, %v10444_v2 }
 0x3ac   :  { %v7544_v20 = vpop.eup %7543  ;;  %v3617_v49 = vsel %vm11153_vm8, %v10272_v54, %v10649_v33  ;;  %v3211_v11 = vsel %vm3209_vm15, %v7540_v35, %v3210_v46  ;;  %v3514_v50 = vsel %vm11138_vm10, 0, %v3512_v63  ;;  %7553 = vsinq.f32 %v3513_v60 }
 0x3ad   :  { %v3317_v5 = vxor.u32 2147483648, %v7544_v20  ;;  %v7546_v61 = vpop.eup %7545  ;;  %vm3205_vm5 = vweird.f32 %v9848_v13  ;;  %v3215_v42 = vsel %vm3208_vm0, %v3211_v11, %v3214_v9  ;;  %v3616_v52 = vsel %vm3531_vm2, %v3615_v3, %v10444_v2  ;;  %v11183_v11 = vpop.f32.mrb[1].mxu0 }
 0x3ae   :  { %7555 = vcosq.f32 %v3617_v49  ;;  %v3216_v19 = vsel %vm3205_vm5, nan, %v3215_v42  ;;  %v3314_v25 = vxor.u32 2147483648, %v7546_v61  ;;  %vm3316_vm9 = vcmp.eq.s32.totalorder %v3311_v55, 2  ;;  %v7393_v42 = vld [vmem:[%s12445_s7 + $0x10] sm:$0xff]  }
 0x3af   :  { %v3415_v33 = vand.u32 3, %v3414_v41  ;;  %v3991_v24 = vpack.c.bf16 %v3216_v19, %v3112_v14  ;;  %vm3313_vm4 = vcmp.eq.s32.totalorder %v3311_v55, 0  ;;  %v3318_v59 = vsel %vm3316_vm9, %v3317_v5, %v7546_v61  ;;  %v7391_v5 = vld [vmem:[%s12445_s7] sm:$0xff]  }
 0x3b0   :  { %v3518_v51 = vadd.s32 3, %v3514_v50  ;;  %v3315_v37 = vsel %vm3313_vm4, %v7544_v20, %v3314_v25  ;;  %v3618_v13 = vsel %vm11153_vm8, 0, %v3616_v52  ;;  %7557 = vsinq.f32 %v3617_v49  ;;  %v11188_v50 = vpop.f32.mrb[2].mxu0  ;;  %6984 = vmatprep.subr.bf16.mxu0 %v7391_v5 }
 0x3b1   :  { %6977 = vmatmul.mubr.bf16.gmra.mrb[40].mxu1 %v3991_v24  ;;  %vm3312_vm12 = vcmp.lt.s32.totalorder %v3311_v55, 2  ;;  %vm3420_vm2 = vcmp.eq.s32.totalorder %v3415_v33, 2  ;;  %v3622_v21 = vadd.s32 3, %v3618_v13  ;;  %vm3309_vm11 = vweird.f32 %v10154_v1  ;;  %v11190_v61 = vpop.f32.mrb[3].mxu0  ;;  %6985 = vmatpush3.bf16.msra.mxu0 %v7391_v5  ;;  %v7396_v13 = vld [vmem:[%s12445_s7 + $0x28] sm:$0xff]  }
 0x3b2   :  { %v7548_v22 = vpop.eup %7547  ;;  %v3319_v2 = vsel %vm3312_vm12, %v3315_v37, %v3318_v59  ;;  %v3519_v53 = vand.u32 3, %v3518_v51  ;;  %vm3417_vm3 = vcmp.eq.s32.totalorder %v3415_v33, 0  ;;  %vm3416_vm14 = vcmp.lt.s32.totalorder %v3415_v33, 2  ;;  %v7394_v33 = vld [vmem:[%s12445_s7 + $0x18] sm:$0xff]   ;;  %v7395_v59 = vld [vmem:[%s12445_s7 + $0x20] sm:$0xff]  }
 0x3b3   :  { %v3421_v39 = vxor.u32 2147483648, %v7548_v22  ;;  %v7550_v30 = vpop.eup %7549  ;;  %v3320_v35 = vsel %vm3309_vm11, nan, %v3319_v2  ;;  %vm3413_vm7 = vweird.f32 %v9970_v32  ;;  %v3623_v18 = vand.u32 3, %v3622_v21 }
 0x3b4   :  { %v3418_v8 = vxor.u32 2147483648, %v7550_v30  ;;  %vm3524_vm1 = vcmp.eq.s32.totalorder %v3519_v53, 2  ;;  %vm3521_vm13 = vcmp.eq.s32.totalorder %v3519_v53, 0  ;;  %vm3520_vm0 = vcmp.lt.s32.totalorder %v3519_v53, 2 }
 0x3b5   :  { %v3422_v58 = vsel %vm3420_vm2, %v3421_v39, %v7550_v30  ;;  %v7552_v10 = vpop.eup %7551  ;;  %vm3628_vm15 = vcmp.eq.s32.totalorder %v3623_v18, 2  ;;  %vm3517_vm6 = vweird.f32 %v10275_v29  ;;  %vm3625_vm10 = vcmp.eq.s32.totalorder %v3623_v18, 0  ;;  %v7392_v29 = vld [vmem:[%s12445_s7 + $0x8] sm:$0xff]   ;;  %v11228_v30 = vld [vmem:[%s12446_s6] ss:$0 sm:$0xff] }
 0x3b6   :  { %v3419_v6 = vsel %vm3417_vm3, %v7548_v22, %v3418_v8  ;;  %v7554_v40 = vpop.eup %7553  ;;  %v3525_v23 = vxor.u32 2147483648, %v7552_v10  ;;  %vm3624_vm8 = vcmp.lt.s32.totalorder %v3623_v18, 2  ;;  %vm3621_vm5 = vweird.f32 %v10272_v54  ;;  %v11195_v54 = vpop.f32.mrb[4].mxu0  ;;  %6986 = vmatprep.subr.bf16.mxu0 %v7392_v29 }
 0x3b7   :  { %v3423_v4 = vsel %vm3416_vm14, %v3419_v6, %v3422_v58  ;;  %v3522_v55 = vxor.u32 2147483648, %v7554_v40  ;;  %6987 = vmatpush3.bf16.msra.mxu0 %v7392_v29  ;;  %v11200_v52 = vpop.f32.mrb[5].mxu0 }
 0x3b8   :  { %v7556_v26 = vpop.eup %7555  ;;  %v3424_v7 = vsel %vm3413_vm7, nan, %v3423_v4  ;;  %v3526_v60 = vsel %vm3524_vm1, %v3525_v23, %v7554_v40  ;;  %v11202_v19 = vpop.f32.mrb[6].mxu0  ;;  %6988 = vmatprep.subr.bf16.mxu0 %v7393_v42 }
 0x3b9   :  { %v3992_v12 = vpack.c.bf16 %v3424_v7, %v3320_v35  ;;  %v3629_v34 = vxor.u32 2147483648, %v7556_v26  ;;  %v3523_v1 = vsel %vm3521_vm13, %v7552_v10, %v3522_v55  ;;  %v11204_v25 = vpop.f32.mrb[7].mxu0 }
 0x3ba   :  { %v7558_v46 = vpop.eup %7557  ;;  %v3527_v9 = vsel %vm3520_vm0, %v3523_v1, %v3526_v60  ;;  %v7398_v60 = vld [vmem:[%s12445_s7 + $0x38] sm:$0xff]  }
 0x3bb   :  { %6980 = vmatprep.mubr.bf16.mxu1 %v3992_v12  ;;  %v3626_v32 = vxor.u32 2147483648, %v7558_v46  ;;  %v3630_v41 = vsel %vm3628_vm15, %v3629_v34, %v7558_v46  ;;  %v3528_v63 = vsel %vm3517_vm6, nan, %v3527_v9  ;;  %6989 = vmatpush3.bf16.msra.mxu0 %v7393_v42 }
 0x3bc   :  { %6990 = vmatprep.subr.bf16.mxu0 %v7394_v33 }
 0x3bd   :  { %v3627_v20 = vsel %vm3625_vm10, %v7556_v26, %v3626_v32  ;;  %v7397_v26 = vld [vmem:[%s12445_s7 + $0x30] sm:$0xff]   ;;  %v11249_v32 = vld [vmem:[%s12447_s4] ss:$0 sm:$0xff] }
 0x3be   :  { %v3631_v14 = vsel %vm3624_vm8, %v3627_v20, %v3630_v41  ;;  %v3852_v29 = vadd.f32 %v11249_v32, %v11183_v11 }
 0x3bf   :  { %v3632_v3 = vsel %vm3621_vm5, nan, %v3631_v14  ;;  %6991 = vmatpush3.bf16.msra.mxu0 %v7394_v33 }
 0x3c0   :  { %v3993_v49 = vpack.c.bf16 %v3632_v3, %v3528_v63  ;;  %6992 = vmatprep.subr.bf16.mxu0 %v7395_v59  ;;  %v3860_v3 = vadd.f32 %v11179_v28, %v11249_v32  ;;  %v3855_v28 = vadd.f32 %v11249_v32, %v11190_v61 }
 0x3c2   :  { %6981 = vmatmul.mubr.bf16.gmra.mrb[44].mxu1 %v3993_v49  ;;  %v11209_v24 = vpop.f32.mrb[8].mxu0 }
 0x3c3   :  { %v11214_v51 = vpop.f32.mrb[9].mxu0  ;;  %6993 = vmatpush3.bf16.msra.mxu0 %v7395_v59 }
 0x3c4   :  { %v11216_v22 = vpop.f32.mrb[10].mxu0  ;;  %6994 = vmatprep.subr.bf16.mxu0 %v7396_v13 }
 0x3c5   :  { %v11218_v37 = vpop.f32.mrb[11].mxu0 }
 0x3c7   :  { %6995 = vmatpush3.bf16.msra.mxu0 %v7396_v13 }
 0x3c8   :  { %6996 = vmatprep.subr.bf16.mxu0 %v7397_v26 }
 0x3cb   :  { %6997 = vmatpush3.bf16.msra.mxu0 %v7397_v26 }
 0x3cc   :  { %6998 = vmatprep.subr.bf16.mxu0 %v7398_v60 }
 0x3cf   :  { %6999 = vmatpush3.bf16.msra.mxu0 %v7398_v60 }
 0x3d5   :  { %v11223_v39 = vpop.f32.mrb[12].mxu0 }
 0x3d6   :  { %v11237_v7 = vpop.f32.mrb[13].mxu0 }
 0x3d7   :  { %v11239_v55 = vpop.f32.mrb[14].mxu0 }
 0x3d8   :  { %v11241_v12 = vpop.f32.mrb[15].mxu0 }
 0x3f7   :  { %v6954_v2 = vpop.f32.mrb[16].mxu1 }
 0x3f8   :  { %v4108_v21 = vadd.f32 %v6954_v2, %v11228_v30  ;;  %v4099_v8 = vpop.f32.mrb[17].mxu1 }
 0x3f9   :  { %v4100_v58 = vadd.f32 %v11228_v30, %v4099_v8  ;;  %v6955_v53 = vpop.f32.mrb[18].mxu1 }
 0x3fa   :  { %v4228_v10 = vmul.f32 0.5, %v4108_v21  ;;  %v4111_v35 = vadd.f32 %v6955_v53, %v11228_v30  ;;  %v4102_v6 = vpop.f32.mrb[19].mxu1  ;;  %v3863_v53 = vadd.f32 %v11188_v50, %v11249_v32 }
 0x3fb   :  { %v4226_v40 = vmul.f32 0.5, %v4100_v58  ;;  %v4103_v4 = vadd.f32 %v11228_v30, %v4102_v6 }
 0x3fc   :  { %7559 = vtanh.f32 %v4228_v10  ;;  %v4229_v23 = vmul.f32 0.5, %v4111_v35 }
 0x3fd   :  { %7561 = vtanh.f32 %v4226_v40  ;;  %v4227_v18 = vmul.f32 0.5, %v4103_v4 }
 0x3fe   :  { %7563 = vtanh.f32 %v4229_v23 }
 0x3ff   :  { %7565 = vtanh.f32 %v4227_v18 }
 0x406   :  { %v7560_v34 = vpop.eup %7559 }
 0x407   :  { %v7562_v1 = vpop.eup %7561  ;;  %v4292_v46 = vmul.f32 0.5, %v7560_v34 }
 0x408   :  { %v7564_v9 = vpop.eup %7563  ;;  %v4290_v41 = vmul.f32 0.5, %v7562_v1 }
 0x409   :  { %v7566_v63 = vpop.eup %7565  ;;  %v4324_v20 = vadd.f32 0.5, %v4292_v46  ;;  %v4293_v14 = vmul.f32 0.5, %v7564_v9 }
 0x40a   :  { %v4322_v49 = vadd.f32 0.5, %v4290_v41  ;;  %v4291_v5 = vmul.f32 0.5, %v7566_v63 }
 0x40b   :  { %v4356_v42 = vmul.f32 %v4324_v20, %v4108_v21  ;;  %v4325_v33 = vadd.f32 0.5, %v4293_v14 }
 0x40c   :  { %v4354_v59 = vmul.f32 %v4322_v49, %v4100_v58  ;;  %v4323_v13 = vadd.f32 0.5, %v4291_v5 }
 0x40d   :  { %v4357_v2 = vmul.f32 %v4325_v33, %v4111_v35  ;;  %v11255_v8 = vadd.f32 %v4356_v42, %v3860_v3 }
 0x40e   :  { %v4355_v10 = vmul.f32 %v4323_v13, %v4103_v4  ;;  %v11259_v6 = vadd.f32 %v4354_v59, %v3852_v29 }
 0x40f   :  { %v4420_v40 = vmul.f32 0.5, %v11255_v8  ;;  %v11264_v23 = vadd.f32 %v4357_v2, %v3863_v53 }
 0x410   :  { %v4418_v11 = vmul.f32 0.5, %v11259_v6  ;;  %v11267_v21 = vadd.f32 %v4355_v10, %v3855_v28 }
 0x411   :  { %7567 = vtanh.f32 %v4420_v40  ;;  %v4421_v58 = vmul.f32 0.5, %v11264_v23 }
 0x412   :  { %7569 = vtanh.f32 %v4418_v11  ;;  %v4419_v50 = vmul.f32 0.5, %v11267_v21 }
 0x413   :  { %7571 = vtanh.f32 %v4421_v58 }
 0x414   :  { %7573 = vtanh.f32 %v4419_v50 }
 0x418   :  { %v6958_v35 = vpop.f32.mrb[20].mxu1 }
 0x419   :  { %v4124_v4 = vadd.f32 %v6958_v35, %v11228_v30  ;;  %v4115_v61 = vpop.f32.mrb[21].mxu1 }
 0x41a   :  { %v4116_v18 = vadd.f32 %v11228_v30, %v4115_v61  ;;  %v6959_v26 = vpop.f32.mrb[22].mxu1 }
 0x41b   :  { %v4232_v60 = vmul.f32 0.5, %v4124_v4  ;;  %v4127_v34 = vadd.f32 %v6959_v26, %v11228_v30  ;;  %v4118_v1 = vpop.f32.mrb[23].mxu1  ;;  %v7568_v41 = vpop.eup %7567 }
 0x41c   :  { %v4230_v46 = vmul.f32 0.5, %v4116_v18  ;;  %v4119_v9 = vadd.f32 %v11228_v30, %v4118_v1  ;;  %v7570_v20 = vpop.eup %7569  ;;  %v4484_v3 = vmul.f32 0.5, %v7568_v41 }
 0x41d   :  { %7575 = vtanh.f32 %v4232_v60  ;;  %v4233_v63 = vmul.f32 0.5, %v4127_v34  ;;  %v7572_v49 = vpop.eup %7571  ;;  %v4482_v5 = vmul.f32 0.5, %v7570_v20  ;;  %v3876_v20 = vadd.f32 %v11195_v54, %v11249_v32 }
 0x41e   :  { %7577 = vtanh.f32 %v4230_v46  ;;  %v4231_v14 = vmul.f32 0.5, %v4119_v9  ;;  %v7574_v29 = vpop.eup %7573  ;;  %v4485_v42 = vmul.f32 0.5, %v7572_v49  ;;  %v4516_v13 = vadd.f32 0.5, %v4484_v3 }
 0x41f   :  { %7579 = vtanh.f32 %v4233_v63  ;;  %v4483_v33 = vmul.f32 0.5, %v7574_v29  ;;  %v4514_v59 = vadd.f32 0.5, %v4482_v5  ;;  %v3868_v49 = vadd.f32 %v11249_v32, %v11200_v52 }
 0x420   :  { %7581 = vtanh.f32 %v4231_v14  ;;  %v4517_v2 = vadd.f32 0.5, %v4485_v42  ;;  %v4548_v11 = vmul.f32 %v4516_v13, %v11255_v8  ;;  %v3871_v52 = vadd.f32 %v11249_v32, %v11204_v25 }
 0x421   :  { %v4515_v53 = vadd.f32 0.5, %v4483_v33  ;;  %v4546_v28 = vmul.f32 %v4514_v59, %v11259_v6 }
 0x422   :  { %v4549_v10 = vmul.f32 %v4517_v2, %v11264_v23 }
 0x423   :  { %v4547_v40 = vmul.f32 %v4515_v53, %v11267_v21  ;;  %v3879_v53 = vadd.f32 %v11202_v19, %v11249_v32 }
 0x424   :  { %v4579_v26 = vpack.c.bf16 %v4549_v10, %v4548_v11 }
 0x425   :  { %v4578_v50 = vpack.c.bf16 %v4547_v40, %v4546_v28 }
 0x427   :  { %v7576_v58 = vpop.eup %7575  ;;  %7000 = vmatprep.mubr.bf16.mxu0 %v4578_v50 }
 0x428   :  { %v7578_v35 = vpop.eup %7577  ;;  %v4296_v61 = vmul.f32 0.5, %v7576_v58  ;;  %7001 = vmatmul.mubr.bf16.vlgmr.msra.gmra.mrb[16].mxu0 %v4579_v26 }
 0x429   :  { %v7580_v60 = vpop.eup %7579  ;;  %v4294_v1 = vmul.f32 0.5, %v7578_v35 }
 0x42a   :  { %v7582_v46 = vpop.eup %7581  ;;  %v4328_v41 = vadd.f32 0.5, %v4296_v61  ;;  %v4297_v63 = vmul.f32 0.5, %v7580_v60 }
 0x42b   :  { %v4326_v14 = vadd.f32 0.5, %v4294_v1  ;;  %v4295_v3 = vmul.f32 0.5, %v7582_v46 }
 0x42c   :  { %v4360_v5 = vmul.f32 %v4328_v41, %v4124_v4  ;;  %v4329_v29 = vadd.f32 0.5, %v4297_v63 }
 0x42d   :  { %v4358_v33 = vmul.f32 %v4326_v14, %v4116_v18  ;;  %v4327_v59 = vadd.f32 0.5, %v4295_v3  ;;  %v7399_v14 = vld [vmem:[%s12445_s7 + $0x40] sm:$0xff]   ;;  %v7400_v3 = vld [vmem:[%s12445_s7 + $0x48] sm:$0xff]  }
 0x42e   :  { %v4361_v10 = vmul.f32 %v4329_v29, %v4127_v34  ;;  %v11287_v40 = vadd.f32 %v4360_v5, %v3876_v20  ;;  %7032 = vmatprep.subr.bf16.mxu1 %v7399_v14 }
 0x42f   :  { %v6962_v42 = vpop.f32.mrb[24].mxu1  ;;  %v4359_v4 = vmul.f32 %v4327_v59, %v4119_v9  ;;  %v11292_v50 = vadd.f32 %v4358_v33, %v3868_v49  ;;  %v3892_v59 = vadd.f32 %v11209_v24, %v11249_v32  ;;  %7033 = vmatpush3.bf16.msra.mxu1 %v7399_v14 }
 0x430   :  { %v4140_v13 = vadd.f32 %v6962_v42, %v11228_v30  ;;  %v4131_v2 = vpop.f32.mrb[25].mxu1  ;;  %v11295_v19 = vadd.f32 %v4361_v10, %v3879_v53  ;;  %v4424_v26 = vmul.f32 0.5, %v11287_v40  ;;  %7034 = vmatprep.subr.bf16.mxu1 %v7400_v3 }
 0x431   :  { %v4132_v54 = vadd.f32 %v11228_v30, %v4131_v2  ;;  %v6963_v28 = vpop.f32.mrb[26].mxu1  ;;  %v11298_v60 = vadd.f32 %v4359_v4, %v3871_v52  ;;  %v4422_v9 = vmul.f32 0.5, %v11292_v50  ;;  %v3884_v2 = vadd.f32 %v11249_v32, %v11214_v51 }
 0x432   :  { %v4236_v11 = vmul.f32 0.5, %v4140_v13  ;;  %v4143_v18 = vadd.f32 %v6963_v28, %v11228_v30  ;;  %v4134_v58 = vpop.f32.mrb[27].mxu1  ;;  %v4425_v46 = vmul.f32 0.5, %v11295_v19  ;;  %v3895_v4 = vadd.f32 %v11216_v22, %v11249_v32 }
 0x433   :  { %v4234_v35 = vmul.f32 0.5, %v4132_v54  ;;  %v4135_v61 = vadd.f32 %v11228_v30, %v4134_v58  ;;  %v4423_v1 = vmul.f32 0.5, %v11298_v60  ;;  %7035 = vmatpush3.bf16.msra.mxu1 %v7400_v3 }
 0x434   :  { %7583 = vtanh.f32 %v4236_v11  ;;  %v4237_v34 = vmul.f32 0.5, %v4143_v18  ;;  %v3887_v11 = vadd.f32 %v11249_v32, %v11218_v37 }
 0x435   :  { %7585 = vtanh.f32 %v4234_v35  ;;  %v4235_v25 = vmul.f32 0.5, %v4135_v61 }
 0x436   :  { %7587 = vtanh.f32 %v4237_v34 }
 0x437   :  { %7589 = vtanh.f32 %v4235_v25  ;;  %v7401_v25 = vld [vmem:[%s12445_s7 + $0x50] sm:$0xff]  }
 0x438   :  { %7591 = vtanh.f32 %v4424_v26  ;;  %7036 = vmatprep.subr.bf16.mxu1 %v7401_v25 }
 0x439   :  { %7593 = vtanh.f32 %v4422_v9  ;;  %7037 = vmatpush3.bf16.msra.mxu1 %v7401_v25 }
 0x43a   :  { %7595 = vtanh.f32 %v4423_v1 }
 0x43b   :  { %7597 = vtanh.f32 %v4425_v46 }
 0x43e   :  { %v7584_v41 = vpop.eup %7583 }
 0x43f   :  { %v7586_v63 = vpop.eup %7585  ;;  %v4300_v20 = vmul.f32 0.5, %v7584_v41 }
 0x440   :  { %v7588_v49 = vpop.eup %7587  ;;  %v4298_v5 = vmul.f32 0.5, %v7586_v63 }
 0x441   :  { %v7590_v29 = vpop.eup %7589  ;;  %v4332_v42 = vadd.f32 0.5, %v4300_v20  ;;  %v4301_v33 = vmul.f32 0.5, %v7588_v49 }
 0x442   :  { %v7592_v53 = vpop.eup %7591  ;;  %v4330_v10 = vadd.f32 0.5, %v4298_v5  ;;  %v4299_v28 = vmul.f32 0.5, %v7590_v29 }
 0x443   :  { %v7594_v58 = vpop.eup %7593  ;;  %v4364_v35 = vmul.f32 %v4332_v42, %v4140_v13  ;;  %v4333_v34 = vadd.f32 0.5, %v4301_v33  ;;  %v4488_v51 = vmul.f32 0.5, %v7592_v53 }
 0x444   :  { %v6966_v52 = vpop.f32.mrb[28].mxu1  ;;  %v4362_v9 = vmul.f32 %v4330_v10, %v4132_v54  ;;  %v4331_v1 = vadd.f32 0.5, %v4299_v28  ;;  %v4486_v46 = vmul.f32 0.5, %v7594_v58  ;;  %v7596_v49 = vpop.eup %7595 }
 0x445   :  { %v11318_v24 = vadd.f32 %v6966_v52, %v11228_v30  ;;  %v4147_v26 = vpop.f32.mrb[29].mxu1  ;;  %v4365_v41 = vmul.f32 %v4333_v34, %v4143_v18  ;;  %v11330_v14 = vadd.f32 %v4364_v35, %v3892_v59  ;;  %v7598_v33 = vpop.eup %7597  ;;  %v4487_v3 = vmul.f32 0.5, %v7596_v49 }
 0x446   :  { %v11324_v22 = vadd.f32 %v11228_v30, %v4147_v26  ;;  %v6967_v37 = vpop.f32.mrb[30].mxu1  ;;  %v4363_v5 = vmul.f32 %v4331_v1, %v4135_v61  ;;  %v11336_v42 = vadd.f32 %v4362_v9, %v3884_v2  ;;  %v7402_v61 = vld [vmem:[%s12445_s7 + $0x58] sm:$0xff]   ;;  %v4518_v52 = vadd.f32 0.5, %v4486_v46  ;;  %v7403_v26 = vld [vmem:[%s12445_s7 + $0x60] sm:$0xff]  }
 0x447   :  { %v4240_v13 = vmul.f32 0.5, %v11318_v24  ;;  %v11328_v63 = vadd.f32 %v6967_v37, %v11228_v30  ;;  %v4150_v20 = vpop.f32.mrb[31].mxu1  ;;  %v4428_v53 = vmul.f32 0.5, %v11330_v14  ;;  %v11340_v10 = vadd.f32 %v4365_v41, %v3895_v4  ;;  %7038 = vmatprep.subr.bf16.mxu1 %v7402_v61 }
 0x448   :  { %v4238_v29 = vmul.f32 0.5, %v11324_v22  ;;  %v11334_v54 = vadd.f32 %v11228_v30, %v4150_v20  ;;  %v4426_v2 = vmul.f32 0.5, %v11336_v42  ;;  %v11347_v28 = vadd.f32 %v4363_v5, %v3887_v11  ;;  %7039 = vmatpush3.bf16.msra.mxu1 %v7402_v61 }
 0x449   :  { %7599 = vtanh.f32 %v4240_v13  ;;  %v4241_v18 = vmul.f32 0.5, %v11328_v63  ;;  %v4489_v58 = vmul.f32 0.5, %v7598_v33  ;;  %v4520_v35 = vadd.f32 0.5, %v4488_v51  ;;  %7040 = vmatprep.subr.bf16.mxu1 %v7403_v26 }
 0x44a   :  { %7601 = vtanh.f32 %v4238_v29  ;;  %v4239_v59 = vmul.f32 0.5, %v11334_v54  ;;  %v4427_v4 = vmul.f32 0.5, %v11347_v28  ;;  %v4519_v34 = vadd.f32 0.5, %v4487_v3 }
 0x44b   :  { %7603 = vtanh.f32 %v4241_v18  ;;  %v4429_v11 = vmul.f32 0.5, %v11340_v10  ;;  %v4521_v9 = vadd.f32 0.5, %v4489_v58  ;;  %v4550_v1 = vmul.f32 %v4518_v52, %v11292_v50 }
 0x44c   :  { %7605 = vtanh.f32 %v4239_v59  ;;  %v4551_v37 = vmul.f32 %v4519_v34, %v11298_v60  ;;  %v4552_v51 = vmul.f32 %v4520_v35, %v11287_v40  ;;  %7041 = vmatpush3.bf16.msra.mxu1 %v7403_v26  ;;  %v3908_v59 = vadd.f32 %v11223_v39, %v11249_v32 }
 0x44d   :  { %7607 = vtanh.f32 %v4428_v53  ;;  %v4553_v25 = vmul.f32 %v4521_v9, %v11295_v19  ;;  %v3900_v61 = vadd.f32 %v11249_v32, %v11237_v7  ;;  %v3911_v35 = vadd.f32 %v11239_v55, %v11249_v32 }
 0x44e   :  { %7609 = vtanh.f32 %v4426_v2  ;;  %v4580_v46 = vpack.c.bf16 %v4551_v37, %v4550_v1 }
 0x44f   :  { %7611 = vtanh.f32 %v4427_v4  ;;  %v4581_v41 = vpack.c.bf16 %v4553_v25, %v4552_v51  ;;  %v3903_v4 = vadd.f32 %v11249_v32, %v11241_v12 }
 0x450   :  { %7613 = vtanh.f32 %v4429_v11  ;;  %7004 = vmatprep.mubr.bf16.mxu0 %v4580_v46 }
 0x451   :  { %7005 = vmatmul.mubr.bf16.gmra.mrb[20].mxu0 %v4581_v41 }
 0x453   :  { %v7600_v13 = vpop.eup %7599 }
 0x454   :  { %v7602_v20 = vpop.eup %7601  ;;  %v4304_v49 = vmul.f32 0.5, %v7600_v13 }
 0x455   :  { %v7604_v5 = vpop.eup %7603  ;;  %v4302_v29 = vmul.f32 0.5, %v7602_v20 }
 0x456   :  { %v7606_v33 = vpop.eup %7605  ;;  %v4336_v18 = vadd.f32 0.5, %v4304_v49  ;;  %v4305_v53 = vmul.f32 0.5, %v7604_v5 }
 0x457   :  { %v7608_v2 = vpop.eup %7607  ;;  %v4334_v3 = vadd.f32 0.5, %v4302_v29  ;;  %v4303_v52 = vmul.f32 0.5, %v7606_v33 }
 0x458   :  { %v7610_v34 = vpop.eup %7609  ;;  %v4368_v26 = vmul.f32 %v4336_v18, %v11318_v24  ;;  %v4337_v11 = vadd.f32 0.5, %v4305_v53  ;;  %v4492_v1 = vmul.f32 0.5, %v7608_v2 }
 0x459   :  { %v6970_v58 = vpop.f32.mrb[32].mxu1  ;;  %v4366_v7 = vmul.f32 %v4334_v3, %v11324_v22  ;;  %v4335_v37 = vadd.f32 0.5, %v4303_v52  ;;  %v4490_v55 = vmul.f32 0.5, %v7610_v34  ;;  %v7612_v20 = vpop.eup %7611 }
 0x45a   :  { %v11368_v9 = vadd.f32 %v6970_v58, %v11228_v30  ;;  %v4163_v39 = vpop.f32.mrb[33].mxu1  ;;  %v4369_v46 = vmul.f32 %v4337_v11, %v11328_v63  ;;  %v11379_v13 = vadd.f32 %v4368_v26, %v3908_v59  ;;  %v7614_v33 = vpop.eup %7613  ;;  %v4491_v3 = vmul.f32 0.5, %v7612_v20 }
 0x45b   :  { %v11372_v51 = vadd.f32 %v11228_v30, %v4163_v39  ;;  %v6971_v25 = vpop.f32.mrb[34].mxu1  ;;  %v4367_v49 = vmul.f32 %v4335_v37, %v11334_v54  ;;  %v11386_v29 = vadd.f32 %v4366_v7, %v3900_v61  ;;  %v4522_v52 = vadd.f32 0.5, %v4490_v55 }
 0x45c   :  { %v4244_v12 = vmul.f32 0.5, %v11368_v9  ;;  %v11377_v24 = vadd.f32 %v6971_v25, %v11228_v30  ;;  %v4166_v41 = vpop.f32.mrb[35].mxu1  ;;  %v4432_v18 = vmul.f32 0.5, %v11379_v13  ;;  %v11390_v53 = vadd.f32 %v4369_v46, %v3911_v35 }
 0x45d   :  { %v4242_v22 = vmul.f32 0.5, %v11372_v51  ;;  %v11384_v5 = vadd.f32 %v11228_v30, %v4166_v41  ;;  %v4430_v54 = vmul.f32 0.5, %v11386_v29  ;;  %v11394_v2 = vadd.f32 %v4367_v49, %v3903_v4 }
 0x45e   :  { %7615 = vtanh.f32 %v4244_v12  ;;  %v4245_v63 = vmul.f32 0.5, %v11377_v24  ;;  %v4493_v61 = vmul.f32 0.5, %v7614_v33  ;;  %v4524_v58 = vadd.f32 0.5, %v4492_v1 }
 0x45f   :  { %7617 = vtanh.f32 %v4242_v22  ;;  %v4243_v59 = vmul.f32 0.5, %v11384_v5  ;;  %v4431_v34 = vmul.f32 0.5, %v11394_v2  ;;  %v4523_v26 = vadd.f32 0.5, %v4491_v3 }
 0x460   :  { %7619 = vtanh.f32 %v4245_v63  ;;  %v4433_v35 = vmul.f32 0.5, %v11390_v53  ;;  %v4525_v11 = vadd.f32 0.5, %v4493_v61  ;;  %v4554_v39 = vmul.f32 %v4522_v52, %v11336_v42 }
 0x461   :  { %7621 = vtanh.f32 %v4243_v59  ;;  %v4555_v7 = vmul.f32 %v4523_v26, %v11347_v28  ;;  %v4556_v4 = vmul.f32 %v4524_v58, %v11330_v14  ;;  %v3924_v22 = vadd.f32 %v10987_v27, %v11249_v32 }
 0x462   :  { %7623 = vtanh.f32 %v4432_v18  ;;  %v4557_v37 = vmul.f32 %v4525_v11, %v11340_v10  ;;  %v3916_v33 = vadd.f32 %v11249_v32, %v10997_v31  ;;  %v3919_v3 = vadd.f32 %v11249_v32, %v11013_v0 }
 0x463   :  { %7625 = vtanh.f32 %v4430_v54  ;;  %v4582_v25 = vpack.c.bf16 %v4555_v7, %v4554_v39  ;;  %v3927_v54 = vadd.f32 %v11008_v16, %v11249_v32 }
 0x464   :  { %7627 = vtanh.f32 %v4431_v34  ;;  %v4583_v1 = vpack.c.bf16 %v4557_v37, %v4556_v4 }
 0x465   :  { %7629 = vtanh.f32 %v4433_v35  ;;  %7008 = vmatprep.mubr.bf16.mxu0 %v4582_v25 }
 0x466   :  { %7009 = vmatmul.mubr.bf16.gmra.mrb[24].mxu0 %v4583_v1 }
 0x468   :  { %v7616_v55 = vpop.eup %7615 }
 0x469   :  { %v7618_v46 = vpop.eup %7617  ;;  %v4308_v12 = vmul.f32 0.5, %v7616_v55 }
 0x46a   :  { %v7620_v41 = vpop.eup %7619  ;;  %v4306_v20 = vmul.f32 0.5, %v7618_v46 }
 0x46b   :  { %v7622_v49 = vpop.eup %7621  ;;  %v4340_v63 = vadd.f32 0.5, %v4308_v12  ;;  %v4309_v18 = vmul.f32 0.5, %v7620_v41 }
 0x46c   :  { %v7624_v59 = vpop.eup %7623  ;;  %v4338_v52 = vadd.f32 0.5, %v4306_v20  ;;  %v4307_v61 = vmul.f32 0.5, %v7622_v49 }
 0x46d   :  { %v6974_v58 = vpop.f32.mrb[36].mxu1  ;;  %v7626_v34 = vpop.eup %7625  ;;  %v4372_v26 = vmul.f32 %v4340_v63, %v11368_v9  ;;  %v4341_v35 = vadd.f32 0.5, %v4309_v18  ;;  %v4496_v11 = vmul.f32 0.5, %v7624_v59 }
 0x46e   :  { %v11412_v27 = vadd.f32 %v6974_v58, %v11228_v30  ;;  %v4179_v31 = vpop.f32.mrb[37].mxu1  ;;  %v4370_v39 = vmul.f32 %v4338_v52, %v11372_v51  ;;  %v4339_v7 = vadd.f32 0.5, %v4307_v61  ;;  %v4494_v0 = vmul.f32 0.5, %v7626_v34  ;;  %v7628_v46 = vpop.eup %7627 }
 0x46f   :  { %v11416_v16 = vadd.f32 %v11228_v30, %v4179_v31  ;;  %v6975_v4 = vpop.f32.mrb[38].mxu1  ;;  %v11418_v37 = vadd.f32 %v4372_v26, %v3924_v22  ;;  %v4373_v25 = vmul.f32 %v4341_v35, %v11377_v24  ;;  %v7630_v49 = vpop.eup %7629  ;;  %v4495_v52 = vmul.f32 0.5, %v7628_v46 }
 0x470   :  { %v4248_v9 = vmul.f32 0.5, %v11412_v27  ;;  %v11423_v1 = vadd.f32 %v6975_v4, %v11228_v30  ;;  %v4182_v55 = vpop.f32.mrb[39].mxu1  ;;  %v11425_v12 = vadd.f32 %v4370_v39, %v3916_v33  ;;  %v4371_v51 = vmul.f32 %v4339_v7, %v11384_v5 }
 0x471   :  { %v4246_v41 = vmul.f32 0.5, %v11416_v16  ;;  %v11430_v20 = vadd.f32 %v11228_v30, %v4182_v55  ;;  %v4436_v22 = vmul.f32 0.5, %v11418_v37  ;;  %v11433_v24 = vadd.f32 %v4373_v25, %v3927_v54 }
 0x472   :  { %7631 = vtanh.f32 %v4248_v9  ;;  %v4249_v63 = vmul.f32 0.5, %v11423_v1  ;;  %v4434_v18 = vmul.f32 0.5, %v11425_v12  ;;  %v11437_v59 = vadd.f32 %v4371_v51, %v3919_v3 }
 0x473   :  { %7633 = vtanh.f32 %v4246_v41  ;;  %v4247_v5 = vmul.f32 0.5, %v11430_v20  ;;  %v4437_v33 = vmul.f32 0.5, %v11433_v24  ;;  %v4526_v61 = vadd.f32 0.5, %v4494_v0 }
 0x474   :  { %7635 = vtanh.f32 %v4436_v22  ;;  %v4435_v58 = vmul.f32 0.5, %v11437_v59  ;;  %v4497_v54 = vmul.f32 0.5, %v7630_v49  ;;  %v4528_v34 = vadd.f32 0.5, %v4496_v11 }
 0x475   :  { %7637 = vtanh.f32 %v4434_v18  ;;  %v4527_v26 = vadd.f32 0.5, %v4495_v52  ;;  %v4558_v3 = vmul.f32 %v4526_v61, %v11386_v29  ;;  %v3932_v18 = vadd.f32 %v11249_v32, %v11035_v43 }
 0x476   :  { %7639 = vtanh.f32 %v4437_v33  ;;  %v4529_v35 = vadd.f32 0.5, %v4497_v54  ;;  %v4560_v39 = vmul.f32 %v4528_v34, %v11379_v13  ;;  %v3943_v61 = vadd.f32 %v11045_v48, %v11249_v32 }
 0x477   :  { %7641 = vtanh.f32 %v4435_v58  ;;  %v4559_v31 = vmul.f32 %v4527_v26, %v11394_v2  ;;  %v3935_v58 = vadd.f32 %v11249_v32, %v11049_v45 }
 0x478   :  { %7643 = vtanh.f32 %v4249_v63  ;;  %v4561_v7 = vmul.f32 %v4529_v35, %v11390_v53  ;;  %v3940_v63 = vadd.f32 %v11030_v47, %v11249_v32 }
 0x479   :  { %7645 = vtanh.f32 %v4247_v5  ;;  %v4584_v4 = vpack.c.bf16 %v4559_v31, %v4558_v3 }
 0x47a   :  { %v4585_v0 = vpack.c.bf16 %v4561_v7, %v4560_v39 }
 0x47b   :  { %7012 = vmatprep.mubr.bf16.mxu0 %v4584_v4 }
 0x47c   :  { %v7632_v25 = vpop.eup %7631  ;;  %7013 = vmatmul.mubr.bf16.gmra.mrb[28].mxu0 %v4585_v0 }
 0x47d   :  { %v7634_v9 = vpop.eup %7633  ;;  %v4312_v11 = vmul.f32 0.5, %v7632_v25 }
 0x47e   :  { %v7636_v55 = vpop.eup %7635  ;;  %v4310_v46 = vmul.f32 0.5, %v7634_v9 }
 0x47f   :  { %v7638_v51 = vpop.eup %7637  ;;  %v4344_v41 = vadd.f32 0.5, %v4312_v11  ;;  %v4500_v49 = vmul.f32 0.5, %v7636_v55 }
 0x480   :  { %v7640_v22 = vpop.eup %7639  ;;  %v4342_v5 = vadd.f32 0.5, %v4310_v46  ;;  %v4498_v33 = vmul.f32 0.5, %v7638_v51 }
 0x481   :  { %v7642_v52 = vpop.eup %7641  ;;  %v4376_v54 = vmul.f32 %v4344_v41, %v11412_v27  ;;  %v4501_v34 = vmul.f32 0.5, %v7640_v22  ;;  %v4532_v39 = vadd.f32 0.5, %v4500_v49 }
 0x482   :  { %v7644_v26 = vpop.eup %7643  ;;  %v4374_v35 = vmul.f32 %v4342_v5, %v11416_v16  ;;  %v4499_v47 = vmul.f32 0.5, %v7642_v52  ;;  %v4530_v31 = vadd.f32 0.5, %v4498_v33 }
 0x483   :  { %v7646_v43 = vpop.eup %7645  ;;  %v11456_v7 = vadd.f32 %v4376_v54, %v3940_v63  ;;  %v4313_v4 = vmul.f32 0.5, %v7644_v26  ;;  %v4533_v25 = vadd.f32 0.5, %v4501_v34 }
 0x484   :  { %v6978_v3 = vpop.f32.mrb[40].mxu1  ;;  %v11461_v45 = vadd.f32 %v4374_v35, %v3932_v18  ;;  %v4311_v27 = vmul.f32 0.5, %v7646_v43  ;;  %v4531_v11 = vadd.f32 0.5, %v4499_v47  ;;  %v4562_v54 = vmul.f32 %v4530_v31, %v11425_v12 }
 0x485   :  { %v11459_v0 = vadd.f32 %v6978_v3, %v11228_v30  ;;  %v4195_v48 = vpop.f32.mrb[41].mxu1  ;;  %v4440_v55 = vmul.f32 0.5, %v11456_v7  ;;  %v4345_v46 = vadd.f32 0.5, %v4313_v4  ;;  %v4564_v47 = vmul.f32 %v4532_v39, %v11418_v37 }
 0x486   :  { %v11464_v9 = vadd.f32 %v11228_v30, %v4195_v48  ;;  %v6979_v16 = vpop.f32.mrb[42].mxu1  ;;  %v4438_v22 = vmul.f32 0.5, %v11461_v45  ;;  %v4343_v63 = vadd.f32 0.5, %v4311_v27  ;;  %v4563_v35 = vmul.f32 %v4531_v11, %v11437_v59 }
 0x487   :  { %v4252_v51 = vmul.f32 0.5, %v11459_v0  ;;  %v11469_v41 = vadd.f32 %v6979_v16, %v11228_v30  ;;  %v4198_v49 = vpop.f32.mrb[43].mxu1  ;;  %7647 = vtanh.f32 %v4440_v55  ;;  %v4377_v33 = vmul.f32 %v4345_v46, %v11423_v1 }
 0x488   :  { %v4250_v18 = vmul.f32 0.5, %v11464_v9  ;;  %v11474_v5 = vadd.f32 %v11228_v30, %v4198_v49  ;;  %7649 = vtanh.f32 %v4438_v22  ;;  %v4375_v34 = vmul.f32 %v4343_v63, %v11430_v20 }
 0x489   :  { %v4253_v52 = vmul.f32 0.5, %v11469_v41  ;;  %v11482_v3 = vadd.f32 %v4377_v33, %v3943_v61  ;;  %7651 = vtanh.f32 %v4252_v51  ;;  %v4565_v43 = vmul.f32 %v4533_v25, %v11433_v24 }
 0x48a   :  { %v4251_v26 = vmul.f32 0.5, %v11474_v5  ;;  %v11486_v4 = vadd.f32 %v4375_v34, %v3935_v58  ;;  %7653 = vtanh.f32 %v4250_v18  ;;  %v4586_v1 = vpack.c.bf16 %v4563_v35, %v4562_v54 }
 0x48b   :  { %v4441_v31 = vmul.f32 0.5, %v11482_v3  ;;  %7655 = vtanh.f32 %v4253_v52  ;;  %v4587_v48 = vpack.c.bf16 %v4565_v43, %v4564_v47  ;;  %v3956_v58 = vadd.f32 %v11067_v62, %v11249_v32 }
 0x48c   :  { %v4439_v20 = vmul.f32 0.5, %v11486_v4  ;;  %7657 = vtanh.f32 %v4251_v26  ;;  %7016 = vmatprep.mubr.bf16.mxu0 %v4586_v1  ;;  %v3948_v25 = vadd.f32 %v11249_v32, %v11078_v36  ;;  %v3959_v46 = vadd.f32 %v11084_v15, %v11249_v32 }
 0x48d   :  { %7017 = vmatmul.mubr.bf16.gmra.mrb[32].mxu0 %v4587_v48  ;;  %v3951_v51 = vadd.f32 %v11249_v32, %v11089_v38 }
 0x48e   :  { %7659 = vtanh.f32 %v4439_v20 }
 0x48f   :  { %7661 = vtanh.f32 %v4441_v31 }
 0x491   :  { %v7648_v61 = vpop.eup %7647 }
 0x492   :  { %v7650_v27 = vpop.eup %7649  ;;  %v4504_v54 = vmul.f32 0.5, %v7648_v61 }
 0x493   :  { %v7652_v39 = vpop.eup %7651  ;;  %v4502_v11 = vmul.f32 0.5, %v7650_v27 }
 0x494   :  { %v7654_v55 = vpop.eup %7653  ;;  %v4316_v49 = vmul.f32 0.5, %v7652_v39 }
 0x495   :  { %v6982_v16 = vpop.f32.mrb[44].mxu1  ;;  %v7656_v18 = vpop.eup %7655  ;;  %v4314_v33 = vmul.f32 0.5, %v7654_v55  ;;  %v4534_v52 = vadd.f32 0.5, %v4502_v11 }
 0x496   :  { %v11499_v22 = vadd.f32 %v6982_v16, %v11228_v30  ;;  %v4211_v63 = vpop.f32.mrb[45].mxu1  ;;  %v7658_v34 = vpop.eup %7657  ;;  %v4348_v26 = vadd.f32 0.5, %v4316_v49  ;;  %v4317_v35 = vmul.f32 0.5, %v7656_v18 }
 0x497   :  { %v11502_v62 = vadd.f32 %v11228_v30, %v4211_v63  ;;  %v6983_v36 = vpop.f32.mrb[46].mxu1  ;;  %v4346_v43 = vadd.f32 0.5, %v4314_v33  ;;  %v4315_v1 = vmul.f32 0.5, %v7658_v34 }
 0x498   :  { %v4256_v15 = vmul.f32 0.5, %v11499_v22  ;;  %v11506_v38 = vadd.f32 %v6983_v36, %v11228_v30  ;;  %v4214_v47 = vpop.f32.mrb[47].mxu1  ;;  %v7660_v20 = vpop.eup %7659  ;;  %v4380_v27 = vmul.f32 %v4348_v26, %v11459_v0  ;;  %v4349_v61 = vadd.f32 0.5, %v4317_v35 }
 0x499   :  { %v4254_v31 = vmul.f32 0.5, %v11502_v62  ;;  %v11510_v48 = vadd.f32 %v11228_v30, %v4214_v47  ;;  %v7662_v16 = vpop.eup %7661  ;;  %v4378_v11 = vmul.f32 %v4346_v43, %v11464_v9  ;;  %v4347_v55 = vadd.f32 0.5, %v4315_v1 }
 0x49a   :  { %7663 = vtanh.f32 %v4256_v15  ;;  %v4257_v39 = vmul.f32 0.5, %v11506_v38  ;;  %v11516_v63 = vadd.f32 %v4380_v27, %v3956_v58  ;;  %v4381_v18 = vmul.f32 %v4349_v61, %v11469_v41 }
 0x49b   :  { %7665 = vtanh.f32 %v4254_v31  ;;  %v4255_v49 = vmul.f32 0.5, %v11510_v48  ;;  %v4503_v30 = vmul.f32 0.5, %v7660_v20  ;;  %v11519_v33 = vadd.f32 %v4378_v11, %v3948_v25 }
 0x49c   :  { %7667 = vtanh.f32 %v4257_v39  ;;  %v4379_v0 = vmul.f32 %v4347_v55, %v11474_v5  ;;  %v4536_v36 = vadd.f32 0.5, %v4504_v54  ;;  %v4444_v34 = vmul.f32 0.5, %v11516_v63 }
 0x49d   :  { %7669 = vtanh.f32 %v4255_v49  ;;  %v11523_v26 = vadd.f32 %v4381_v18, %v3959_v46  ;;  %v4535_v9 = vadd.f32 0.5, %v4503_v30  ;;  %v4505_v35 = vmul.f32 0.5, %v7662_v16  ;;  %v7404_v46 = vld [vmem:[%s12445_s7 + $0x68] sm:$0xff]  }
 0x49e   :  { %v4442_v15 = vmul.f32 0.5, %v11519_v33  ;;  %v11526_v58 = vadd.f32 %v4379_v0, %v3951_v51  ;;  %v4566_v41 = vmul.f32 %v4534_v52, %v11461_v45  ;;  %7671 = vtanh.f32 %v4444_v34  ;;  %7042 = vmatprep.subr.bf16.mxu1 %v7404_v46 }
 0x49f   :  { %v4445_v25 = vmul.f32 0.5, %v11523_v26  ;;  %v4567_v47 = vmul.f32 %v4535_v9, %v11486_v4  ;;  %v4537_v5 = vadd.f32 0.5, %v4505_v35  ;;  %v4568_v51 = vmul.f32 %v4536_v36, %v11456_v7  ;;  %7043 = vmatpush3.bf16.msra.mxu1 %v7404_v46 }
 0x4a0   :  { %7673 = vtanh.f32 %v4442_v15  ;;  %v4443_v54 = vmul.f32 0.5, %v11526_v58  ;;  %v3972_v30 = vadd.f32 %v11113_v44, %v11249_v32  ;;  %v3964_v9 = vadd.f32 %v11249_v32, %v11115_v56 }
 0x4a1   :  { %7675 = vtanh.f32 %v4445_v25  ;;  %v4588_v43 = vpack.c.bf16 %v4567_v47, %v4566_v41  ;;  %v4569_v1 = vmul.f32 %v4537_v5, %v11482_v3  ;;  %v3975_v25 = vadd.f32 %v11126_v17, %v11249_v32 }
 0x4a2   :  { %7677 = vtanh.f32 %v4443_v54 }
 0x4a3   :  { %7020 = vmatprep.mubr.bf16.mxu0 %v4588_v43  ;;  %v4589_v31 = vpack.c.bf16 %v4569_v1, %v4568_v51 }
 0x4a4   :  { %v7664_v52 = vpop.eup %7663 }
 0x4a5   :  { %v7666_v20 = vpop.eup %7665  ;;  %v4320_v27 = vmul.f32 0.5, %v7664_v52  ;;  %7021 = vmatmul.mubr.bf16.gmra.mrb[36].mxu0 %v4589_v31 }
 0x4a6   :  { %v7668_v61 = vpop.eup %7667  ;;  %v4318_v39 = vmul.f32 0.5, %v7666_v20 }
 0x4a7   :  { %v7670_v16 = vpop.eup %7669  ;;  %v4352_v11 = vadd.f32 0.5, %v4320_v27  ;;  %v4321_v55 = vmul.f32 0.5, %v7668_v61 }
 0x4a8   :  { %v4350_v49 = vadd.f32 0.5, %v4318_v39  ;;  %v4319_v18 = vmul.f32 0.5, %v7670_v16  ;;  %v7672_v34 = vpop.eup %7671 }
 0x4a9   :  { %v4384_v0 = vmul.f32 %v4352_v11, %v11499_v22  ;;  %v4353_v36 = vadd.f32 0.5, %v4321_v55  ;;  %v4508_v54 = vmul.f32 0.5, %v7672_v34  ;;  %v3967_v22 = vadd.f32 %v11249_v32, %v11133_v57 }
 0x4aa   :  { %v4382_v35 = vmul.f32 %v4350_v49, %v11502_v62  ;;  %v4351_v15 = vadd.f32 0.5, %v4319_v18  ;;  %v7674_v41 = vpop.eup %7673 }
 0x4ab   :  { %v11545_v47 = vadd.f32 %v4384_v0, %v3972_v30  ;;  %v4385_v5 = vmul.f32 %v4353_v36, %v11506_v38  ;;  %v7676_v44 = vpop.eup %7675  ;;  %v4506_v43 = vmul.f32 0.5, %v7674_v41  ;;  %v4540_v32 = vadd.f32 0.5, %v4508_v54  ;;  %v7405_v30 = vld [vmem:[%s12445_s7 + $0x70] sm:$0xff]  }
 0x4ac   :  { %v11550_v46 = vadd.f32 %v4382_v35, %v3964_v9  ;;  %v4383_v56 = vmul.f32 %v4351_v15, %v11510_v48  ;;  %v7678_v62 = vpop.eup %7677  ;;  %v4509_v17 = vmul.f32 0.5, %v7676_v44  ;;  %7044 = vmatprep.subr.bf16.mxu1 %v7405_v30 }
 0x4ad   :  { %v4448_v51 = vmul.f32 0.5, %v11545_v47  ;;  %v11554_v1 = vadd.f32 %v4385_v5, %v3975_v25  ;;  %v4507_v38 = vmul.f32 0.5, %v7678_v62  ;;  %v4538_v20 = vadd.f32 0.5, %v4506_v43  ;;  %7045 = vmatpush3.bf16.msra.mxu1 %v7405_v30 }
 0x4ae   :  { %v4446_v52 = vmul.f32 0.5, %v11550_v46  ;;  %v11557_v31 = vadd.f32 %v4383_v56, %v3967_v22  ;;  %v4541_v27 = vadd.f32 0.5, %v4509_v17  ;;  %v4572_v55 = vmul.f32 %v4540_v32, %v11516_v63 }
 0x4af   :  { %7679 = vtanh.f32 %v4448_v51  ;;  %v4449_v57 = vmul.f32 0.5, %v11554_v1  ;;  %v4539_v61 = vadd.f32 0.5, %v4507_v38  ;;  %v4570_v16 = vmul.f32 %v4538_v20, %v11519_v33  ;;  %v7406_v38 = vld [vmem:[%s12445_s7 + $0x78] sm:$0xff]   ;;  %v11578_v20 = vld [vmem:[%s12448_s8] ss:$0 sm:$0xff] }
 0x4b0   :  { %7681 = vtanh.f32 %v4446_v52  ;;  %v4447_v48 = vmul.f32 0.5, %v11557_v31  ;;  %v4573_v39 = vmul.f32 %v4541_v27, %v11523_v26  ;;  %7046 = vmatprep.subr.bf16.mxu1 %v7406_v38 }
 0x4b1   :  { %7683 = vtanh.f32 %v4449_v57  ;;  %v4571_v11 = vmul.f32 %v4539_v61, %v11526_v58  ;;  %7047 = vmatpush3.bf16.msra.mxu1 %v7406_v38 }
 0x4b2   :  { %7685 = vtanh.f32 %v4447_v48  ;;  %v4591_v18 = vpack.c.bf16 %v4573_v39, %v4572_v55 }
 0x4b3   :  { %v4590_v49 = vpack.c.bf16 %v4571_v11, %v4570_v16 }
 0x4b5   :  { %7024 = vmatprep.mubr.bf16.mxu0 %v4590_v49 }
 0x4b6   :  { %7025 = vmatmul.mubr.bf16.gmra.mrb[40].mxu0 %v4591_v18 }
 0x4b9   :  { %v7680_v0 = vpop.eup %7679 }
 0x4ba   :  { %v7682_v36 = vpop.eup %7681  ;;  %v4512_v34 = vmul.f32 0.5, %v7680_v0 }
 0x4bb   :  { %v7684_v9 = vpop.eup %7683  ;;  %v4510_v35 = vmul.f32 0.5, %v7682_v36 }
 0x4bc   :  { %v7686_v15 = vpop.eup %7685  ;;  %v4513_v41 = vmul.f32 0.5, %v7684_v9  ;;  %v4544_v54 = vadd.f32 0.5, %v4512_v34 }
 0x4bd   :  { %v4511_v25 = vmul.f32 0.5, %v7686_v15  ;;  %v4542_v5 = vadd.f32 0.5, %v4510_v35 }
 0x4be   :  { %v4545_v44 = vadd.f32 0.5, %v4513_v41  ;;  %v4576_v51 = vmul.f32 %v4544_v54, %v11545_v47 }
 0x4bf   :  { %v4543_v22 = vadd.f32 0.5, %v4511_v25  ;;  %v4574_v43 = vmul.f32 %v4542_v5, %v11550_v46 }
 0x4c0   :  { %v4577_v56 = vmul.f32 %v4545_v44, %v11554_v1 }
 0x4c1   :  { %v4575_v62 = vmul.f32 %v4543_v22, %v11557_v31 }
 0x4c2   :  { %v4593_v52 = vpack.c.bf16 %v4577_v56, %v4576_v51 }
 0x4c3   :  { %v4592_v17 = vpack.c.bf16 %v4575_v62, %v4574_v43 }
 0x4c5   :  { %7028 = vmatprep.mubr.bf16.mxu0 %v4592_v17 }
 0x4c6   :  { %7029 = vmatmul.mubr.bf16.gmra.mrb[44].mxu0 %v4593_v52 }
 0x4fb   :  { %v7002_v57 = vpop.f32.mrb[16].mxu0 }
 0x4fc   :  { %v4708_v32 = vadd.f32 %v7002_v57, %v11578_v20  ;;  %v4699_v27 = vpop.f32.mrb[17].mxu0 }
 0x4fd   :  { %v4700_v48 = vadd.f32 %v11578_v20, %v4699_v27  ;;  %v7003_v61 = vpop.f32.mrb[18].mxu0 }
 0x4fe   :  { %v11583_v39 = vadd.f32 %v4708_v32, %v11255_v8  ;;  %v4711_v16 = vadd.f32 %v7003_v61, %v11578_v20  ;;  %v4702_v11 = vpop.f32.mrb[19].mxu0 }
 0x4ff   :  { %v11587_v55 = vadd.f32 %v4700_v48, %v11259_v6  ;;  %v4703_v49 = vadd.f32 %v11578_v20, %v4702_v11 }
 0x500   :  { %v4860_v18 = vmul.f32 0.5, %v11583_v39  ;;  %v11592_v30 = vadd.f32 %v4711_v16, %v11264_v23 }
 0x501   :  { %v4858_v0 = vmul.f32 0.5, %v11587_v55  ;;  %v11596_v36 = vadd.f32 %v4703_v49, %v11267_v21 }
 0x502   :  { %7687 = vtanh.f32 %v4860_v18  ;;  %v4861_v8 = vmul.f32 0.5, %v11592_v30 }
 0x503   :  { %7689 = vtanh.f32 %v4858_v0  ;;  %v4859_v34 = vmul.f32 0.5, %v11596_v36 }
 0x504   :  { %7691 = vtanh.f32 %v4861_v8 }
 0x505   :  { %7693 = vtanh.f32 %v4859_v34 }
 0x50c   :  { %v7688_v6 = vpop.eup %7687 }
 0x50d   :  { %v7690_v9 = vpop.eup %7689  ;;  %v4924_v35 = vmul.f32 0.5, %v7688_v6 }
 0x50e   :  { %v7692_v15 = vpop.eup %7691  ;;  %v4922_v41 = vmul.f32 0.5, %v7690_v9 }
 0x50f   :  { %v7694_v23 = vpop.eup %7693  ;;  %v4925_v25 = vmul.f32 0.5, %v7692_v15  ;;  %v4956_v44 = vadd.f32 0.5, %v4924_v35 }
 0x510   :  { %v4923_v5 = vmul.f32 0.5, %v7694_v23  ;;  %v4954_v54 = vadd.f32 0.5, %v4922_v41 }
 0x511   :  { %v4957_v21 = vadd.f32 0.5, %v4925_v25  ;;  %v4988_v51 = vmul.f32 %v4956_v44, %v11583_v39 }
 0x512   :  { %v4955_v22 = vadd.f32 0.5, %v4923_v5  ;;  %v4986_v43 = vmul.f32 %v4954_v54, %v11587_v55  ;;  %v7410_v54 = vld [vmem:[%s12445_s7 + $0x98] sm:$0xff]  }
 0x513   :  { %v4989_v56 = vmul.f32 %v4957_v21, %v11592_v30 }
 0x514   :  { %v4987_v62 = vmul.f32 %v4955_v22, %v11596_v36 }
 0x515   :  { %v5019_v52 = vpack.c.bf16 %v4989_v56, %v4988_v51 }
 0x516   :  { %v5018_v17 = vpack.c.bf16 %v4987_v62, %v4986_v43 }
 0x518   :  { %7048 = vmatprep.mubr.bf16.mxu1 %v5018_v17 }
 0x519   :  { %7049 = vmatmul.mubr.bf16.vlgmr.msra.gmra.mrb[48].mxu1 %v5019_v52 }
 0x524   :  { %v7006_v38 = vpop.f32.mrb[20].mxu0 }
 0x525   :  { %v4724_v57 = vadd.f32 %v7006_v38, %v11578_v20  ;;  %v4715_v32 = vpop.f32.mrb[21].mxu0 }
 0x526   :  { %v4716_v27 = vadd.f32 %v11578_v20, %v4715_v32  ;;  %v7007_v48 = vpop.f32.mrb[22].mxu0 }
 0x527   :  { %v11607_v61 = vadd.f32 %v4724_v57, %v11287_v40  ;;  %v4727_v16 = vadd.f32 %v7007_v48, %v11578_v20  ;;  %v4718_v11 = vpop.f32.mrb[23].mxu0 }
 0x528   :  { %v11611_v49 = vadd.f32 %v4716_v27, %v11292_v50  ;;  %v4719_v18 = vadd.f32 %v11578_v20, %v4718_v11  ;;  %v7407_v50 = vld [vmem:[%s12445_s7 + $0x80] sm:$0xff]  }
 0x529   :  { %v4864_v0 = vmul.f32 0.5, %v11607_v61  ;;  %v11616_v8 = vadd.f32 %v4727_v16, %v11295_v19  ;;  %v7408_v19 = vld [vmem:[%s12445_s7 + $0x88] sm:$0xff]   ;;  %7080 = vmatprep.subr.bf16.mxu0 %v7407_v50 }
 0x52a   :  { %v4862_v34 = vmul.f32 0.5, %v11611_v49  ;;  %v11620_v6 = vadd.f32 %v4719_v18, %v11298_v60  ;;  %7081 = vmatpush3.bf16.msra.mxu0 %v7407_v50  ;;  %v7409_v60 = vld [vmem:[%s12445_s7 + $0x90] sm:$0xff]   ;;  %v7411_v18 = vld [vmem:[%s12445_s7 + $0xa0] sm:$0xff]  }
 0x52b   :  { %7695 = vtanh.f32 %v4864_v0  ;;  %v4865_v40 = vmul.f32 0.5, %v11616_v8  ;;  %7082 = vmatprep.subr.bf16.mxu0 %v7408_v19 }
 0x52c   :  { %7697 = vtanh.f32 %v4862_v34  ;;  %v4863_v9 = vmul.f32 0.5, %v11620_v6 }
 0x52d   :  { %7699 = vtanh.f32 %v4865_v40 }
 0x52e   :  { %7701 = vtanh.f32 %v4863_v9  ;;  %7083 = vmatpush3.bf16.msra.mxu0 %v7408_v19 }
 0x52f   :  { %7084 = vmatprep.subr.bf16.mxu0 %v7409_v60 }
 0x532   :  { %7085 = vmatpush3.bf16.msra.mxu0 %v7409_v60 }
 0x533   :  { %7086 = vmatprep.subr.bf16.mxu0 %v7410_v54 }
 0x535   :  { %v7696_v35 = vpop.eup %7695 }
 0x536   :  { %v7698_v15 = vpop.eup %7697  ;;  %v4928_v41 = vmul.f32 0.5, %v7696_v35  ;;  %7087 = vmatpush3.bf16.msra.mxu0 %v7410_v54 }
 0x537   :  { %v7700_v23 = vpop.eup %7699  ;;  %v4926_v5 = vmul.f32 0.5, %v7698_v15  ;;  %7088 = vmatprep.subr.bf16.mxu0 %v7411_v18 }
 0x538   :  { %v7702_v44 = vpop.eup %7701  ;;  %v4929_v56 = vmul.f32 0.5, %v7700_v23  ;;  %v4960_v32 = vadd.f32 0.5, %v4928_v41 }
 0x539   :  { %v7010_v25 = vpop.f32.mrb[24].mxu0  ;;  %v4927_v51 = vmul.f32 0.5, %v7702_v44  ;;  %v4958_v17 = vadd.f32 0.5, %v4926_v5 }
 0x53a   :  { %v4740_v21 = vadd.f32 %v7010_v25, %v11578_v20  ;;  %v4731_v22 = vpop.f32.mrb[25].mxu0  ;;  %v4961_v27 = vadd.f32 0.5, %v4929_v56  ;;  %v4992_v60 = vmul.f32 %v4960_v32, %v11607_v61  ;;  %7089 = vmatpush3.bf16.msra.mxu0 %v7411_v18 }
 0x53b   :  { %v4732_v43 = vadd.f32 %v11578_v20, %v4731_v22  ;;  %v7011_v62 = vpop.f32.mrb[26].mxu0  ;;  %v4959_v11 = vadd.f32 0.5, %v4927_v51  ;;  %v4990_v9 = vmul.f32 %v4958_v17, %v11611_v49 }
 0x53c   :  { %v11639_v52 = vadd.f32 %v4740_v21, %v11330_v14  ;;  %v4743_v38 = vadd.f32 %v7011_v62, %v11578_v20  ;;  %v4734_v57 = vpop.f32.mrb[27].mxu0  ;;  %v4993_v34 = vmul.f32 %v4961_v27, %v11616_v8 }
 0x53d   :  { %v11643_v48 = vadd.f32 %v4732_v43, %v11336_v42  ;;  %v4735_v16 = vadd.f32 %v11578_v20, %v4734_v57  ;;  %v4991_v50 = vmul.f32 %v4959_v11, %v11620_v6 }
 0x53e   :  { %v4868_v14 = vmul.f32 0.5, %v11639_v52  ;;  %v11651_v0 = vadd.f32 %v4743_v38, %v11340_v10  ;;  %v5021_v15 = vpack.c.bf16 %v4993_v34, %v4992_v60 }
 0x53f   :  { %v4866_v40 = vmul.f32 0.5, %v11643_v48  ;;  %v11656_v42 = vadd.f32 %v4735_v16, %v11347_v28  ;;  %v5020_v35 = vpack.c.bf16 %v4991_v50, %v4990_v9 }
 0x540   :  { %7703 = vtanh.f32 %v4868_v14  ;;  %v4869_v19 = vmul.f32 0.5, %v11651_v0 }
 0x541   :  { %7705 = vtanh.f32 %v4866_v40  ;;  %v4867_v10 = vmul.f32 0.5, %v11656_v42  ;;  %7052 = vmatprep.mubr.bf16.mxu1 %v5020_v35 }
 0x542   :  { %7707 = vtanh.f32 %v4869_v19  ;;  %7053 = vmatmul.mubr.bf16.gmra.mrb[52].mxu1 %v5021_v15 }
 0x543   :  { %7709 = vtanh.f32 %v4867_v10 }
 0x54a   :  { %v7704_v28 = vpop.eup %7703 }
 0x54b   :  { %v7706_v41 = vpop.eup %7705  ;;  %v4932_v23 = vmul.f32 0.5, %v7704_v28 }
 0x54c   :  { %v7708_v25 = vpop.eup %7707  ;;  %v4930_v44 = vmul.f32 0.5, %v7706_v41 }
 0x54d   :  { %v7710_v21 = vpop.eup %7709  ;;  %v4933_v56 = vmul.f32 0.5, %v7708_v25  ;;  %v4964_v27 = vadd.f32 0.5, %v4932_v23 }
 0x54e   :  { %v4931_v51 = vmul.f32 0.5, %v7710_v21  ;;  %v4962_v17 = vadd.f32 0.5, %v4930_v44 }
 0x54f   :  { %v7014_v5 = vpop.f32.mrb[28].mxu0  ;;  %v4965_v16 = vadd.f32 0.5, %v4933_v56  ;;  %v4996_v10 = vmul.f32 %v4964_v27, %v11639_v52 }
 0x550   :  { %v4756_v54 = vadd.f32 %v7014_v5, %v11578_v20  ;;  %v4747_v22 = vpop.f32.mrb[29].mxu0  ;;  %v4963_v14 = vadd.f32 0.5, %v4931_v51  ;;  %v4994_v19 = vmul.f32 %v4962_v17, %v11643_v48 }
 0x551   :  { %v4748_v43 = vadd.f32 %v11578_v20, %v4747_v22  ;;  %v7015_v62 = vpop.f32.mrb[30].mxu0  ;;  %v4997_v9 = vmul.f32 %v4965_v16, %v11651_v0 }
 0x552   :  { %v11666_v38 = vadd.f32 %v4756_v54, %v11379_v13  ;;  %v4759_v57 = vadd.f32 %v7015_v62, %v11578_v20  ;;  %v4750_v32 = vpop.f32.mrb[31].mxu0 }
 0x553   :  { %v11670_v11 = vadd.f32 %v4748_v43, %v11386_v29  ;;  %v4751_v18 = vadd.f32 %v11578_v20, %v4750_v32  ;;  %v4995_v29 = vmul.f32 %v4963_v14, %v11656_v42  ;;  %v5023_v15 = vpack.c.bf16 %v4997_v9, %v4996_v10 }
 0x554   :  { %v4872_v34 = vmul.f32 0.5, %v11666_v38  ;;  %v11675_v40 = vadd.f32 %v4759_v57, %v11390_v53 }
 0x555   :  { %v4870_v13 = vmul.f32 0.5, %v11670_v11  ;;  %v11680_v50 = vadd.f32 %v4751_v18, %v11394_v2  ;;  %v5022_v35 = vpack.c.bf16 %v4995_v29, %v4994_v19 }
 0x556   :  { %7711 = vtanh.f32 %v4872_v34  ;;  %v4873_v60 = vmul.f32 0.5, %v11675_v40 }
 0x557   :  { %7713 = vtanh.f32 %v4870_v13  ;;  %v4871_v53 = vmul.f32 0.5, %v11680_v50  ;;  %7056 = vmatprep.mubr.bf16.mxu1 %v5022_v35 }
 0x558   :  { %7715 = vtanh.f32 %v4873_v60  ;;  %7057 = vmatmul.mubr.bf16.gmra.mrb[56].mxu1 %v5023_v15 }
 0x559   :  { %7717 = vtanh.f32 %v4871_v53 }
 0x560   :  { %v7018_v2 = vpop.f32.mrb[32].mxu0  ;;  %v7712_v28 = vpop.eup %7711 }
 0x561   :  { %v4772_v41 = vadd.f32 %v7018_v2, %v11578_v20  ;;  %v4763_v23 = vpop.f32.mrb[33].mxu0  ;;  %v7714_v25 = vpop.eup %7713  ;;  %v4936_v21 = vmul.f32 0.5, %v7712_v28 }
 0x562   :  { %v4764_v5 = vadd.f32 %v11578_v20, %v4763_v23  ;;  %v7019_v44 = vpop.f32.mrb[34].mxu0  ;;  %v7716_v54 = vpop.eup %7715  ;;  %v4934_v62 = vmul.f32 0.5, %v7714_v25 }
 0x563   :  { %v11690_v22 = vadd.f32 %v4772_v41, %v11418_v37  ;;  %v4775_v56 = vadd.f32 %v7019_v44, %v11578_v20  ;;  %v4766_v43 = vpop.f32.mrb[35].mxu0  ;;  %v7718_v51 = vpop.eup %7717  ;;  %v4937_v32 = vmul.f32 0.5, %v7716_v54  ;;  %v4968_v9 = vadd.f32 0.5, %v4936_v21 }
 0x564   :  { %v11694_v17 = vadd.f32 %v4764_v5, %v11425_v12  ;;  %v4767_v57 = vadd.f32 %v11578_v20, %v4766_v43  ;;  %v4935_v18 = vmul.f32 0.5, %v7718_v51  ;;  %v4966_v14 = vadd.f32 0.5, %v4934_v62 }
 0x565   :  { %v4876_v27 = vmul.f32 0.5, %v11690_v22  ;;  %v11699_v16 = vadd.f32 %v4775_v56, %v11433_v24  ;;  %v4969_v13 = vadd.f32 0.5, %v4937_v32 }
 0x566   :  { %v4874_v37 = vmul.f32 0.5, %v11694_v17  ;;  %v11703_v34 = vadd.f32 %v4767_v57, %v11437_v59  ;;  %v4967_v19 = vadd.f32 0.5, %v4935_v18  ;;  %v4998_v24 = vmul.f32 %v4966_v14, %v11670_v11 }
 0x567   :  { %7719 = vtanh.f32 %v4876_v27  ;;  %v4877_v12 = vmul.f32 0.5, %v11699_v16  ;;  %v5001_v60 = vmul.f32 %v4969_v13, %v11675_v40  ;;  %v5000_v59 = vmul.f32 %v4968_v9, %v11666_v38 }
 0x568   :  { %7721 = vtanh.f32 %v4874_v37  ;;  %v4875_v29 = vmul.f32 0.5, %v11703_v34  ;;  %v4999_v10 = vmul.f32 %v4967_v19, %v11680_v50 }
 0x569   :  { %7723 = vtanh.f32 %v4877_v12  ;;  %v5025_v35 = vpack.c.bf16 %v5001_v60, %v5000_v59 }
 0x56a   :  { %7725 = vtanh.f32 %v4875_v29  ;;  %v5024_v53 = vpack.c.bf16 %v4999_v10, %v4998_v24 }
 0x56c   :  { %7060 = vmatprep.mubr.bf16.mxu1 %v5024_v53 }
 0x56d   :  { %7061 = vmatmul.mubr.bf16.gmra.mrb[60].mxu1 %v5025_v35 }
 0x571   :  { %v7720_v15 = vpop.eup %7719 }
 0x572   :  { %v7722_v2 = vpop.eup %7721  ;;  %v4940_v28 = vmul.f32 0.5, %v7720_v15 }
 0x573   :  { %v7724_v41 = vpop.eup %7723  ;;  %v4938_v23 = vmul.f32 0.5, %v7722_v2 }
 0x574   :  { %v7726_v25 = vpop.eup %7725  ;;  %v4941_v5 = vmul.f32 0.5, %v7724_v41  ;;  %v4972_v54 = vadd.f32 0.5, %v4940_v28 }
 0x575   :  { %v4939_v44 = vmul.f32 0.5, %v7726_v25  ;;  %v4970_v21 = vadd.f32 0.5, %v4938_v23 }
 0x576   :  { %v4973_v56 = vadd.f32 0.5, %v4941_v5  ;;  %v5004_v19 = vmul.f32 %v4972_v54, %v11690_v22 }
 0x577   :  { %v4971_v62 = vadd.f32 0.5, %v4939_v44  ;;  %v5002_v14 = vmul.f32 %v4970_v21, %v11694_v17 }
 0x578   :  { %v7022_v43 = vpop.f32.mrb[36].mxu0  ;;  %v5005_v32 = vmul.f32 %v4973_v56, %v11699_v16 }
 0x579   :  { %v4788_v51 = vadd.f32 %v7022_v43, %v11578_v20  ;;  %v4779_v57 = vpop.f32.mrb[37].mxu0  ;;  %v5003_v37 = vmul.f32 %v4971_v62, %v11703_v34 }
 0x57a   :  { %v4780_v27 = vadd.f32 %v11578_v20, %v4779_v57  ;;  %v7023_v18 = vpop.f32.mrb[38].mxu0  ;;  %v5027_v53 = vpack.c.bf16 %v5005_v32, %v5004_v19 }
 0x57b   :  { %v11717_v9 = vadd.f32 %v4788_v51, %v11456_v7  ;;  %v4791_v13 = vadd.f32 %v7023_v18, %v11578_v20  ;;  %v4782_v12 = vpop.f32.mrb[39].mxu0  ;;  %v5026_v24 = vpack.c.bf16 %v5003_v37, %v5002_v14 }
 0x57c   :  { %v11722_v29 = vadd.f32 %v4780_v27, %v11461_v45  ;;  %v4783_v60 = vadd.f32 %v11578_v20, %v4782_v12 }
 0x57d   :  { %v4880_v10 = vmul.f32 0.5, %v11717_v9  ;;  %v11727_v59 = vadd.f32 %v4791_v13, %v11482_v3  ;;  %7064 = vmatprep.mubr.bf16.mxu1 %v5026_v24 }
 0x57e   :  { %v4878_v7 = vmul.f32 0.5, %v11722_v29  ;;  %v11731_v35 = vadd.f32 %v4783_v60, %v11486_v4  ;;  %7065 = vmatmul.mubr.bf16.gmra.mrb[64].mxu1 %v5027_v53 }
 0x57f   :  { %7727 = vtanh.f32 %v4880_v10  ;;  %v4881_v15 = vmul.f32 0.5, %v11727_v59 }
 0x580   :  { %7729 = vtanh.f32 %v4878_v7  ;;  %v4879_v45 = vmul.f32 0.5, %v11731_v35  ;;  %v7412_v7 = vld [vmem:[%s12445_s7 + $0xa8] sm:$0xff]  }
 0x581   :  { %7731 = vtanh.f32 %v4881_v15  ;;  %7090 = vmatprep.subr.bf16.mxu0 %v7412_v7 }
 0x582   :  { %7733 = vtanh.f32 %v4879_v45  ;;  %7091 = vmatpush3.bf16.msra.mxu0 %v7412_v7 }
 0x589   :  { %v7728_v2 = vpop.eup %7727  ;;  %v7026_v28 = vpop.f32.mrb[40].mxu0 }
 0x58a   :  { %v7730_v3 = vpop.eup %7729  ;;  %v4804_v41 = vadd.f32 %v7026_v28, %v11578_v20  ;;  %v4795_v23 = vpop.f32.mrb[41].mxu0  ;;  %v4944_v25 = vmul.f32 0.5, %v7728_v2 }
 0x58b   :  { %v7732_v5 = vpop.eup %7731  ;;  %v4796_v4 = vadd.f32 %v11578_v20, %v4795_v23  ;;  %v7027_v44 = vpop.f32.mrb[42].mxu0  ;;  %v4942_v21 = vmul.f32 0.5, %v7730_v3 }
 0x58c   :  { %v7734_v54 = vpop.eup %7733  ;;  %v11738_v56 = vadd.f32 %v4804_v41, %v11516_v63  ;;  %v4807_v43 = vadd.f32 %v7027_v44, %v11578_v20  ;;  %v4798_v62 = vpop.f32.mrb[43].mxu0  ;;  %v4945_v51 = vmul.f32 0.5, %v7732_v5  ;;  %v4976_v13 = vadd.f32 0.5, %v4944_v25 }
 0x58d   :  { %v11742_v57 = vadd.f32 %v4796_v4, %v11519_v33  ;;  %v4799_v32 = vadd.f32 %v11578_v20, %v4798_v62  ;;  %v4943_v27 = vmul.f32 0.5, %v7734_v54  ;;  %v4974_v18 = vadd.f32 0.5, %v4942_v21 }
 0x58e   :  { %v4884_v14 = vmul.f32 0.5, %v11738_v56  ;;  %v11747_v37 = vadd.f32 %v4807_v43, %v11523_v26  ;;  %v4977_v12 = vadd.f32 0.5, %v4945_v51 }
 0x58f   :  { %v4882_v63 = vmul.f32 0.5, %v11742_v57  ;;  %v11751_v19 = vadd.f32 %v4799_v32, %v11526_v58  ;;  %v4975_v60 = vadd.f32 0.5, %v4943_v27  ;;  %v5006_v53 = vmul.f32 %v4974_v18, %v11722_v29 }
 0x590   :  { %7735 = vtanh.f32 %v4884_v14  ;;  %v4885_v33 = vmul.f32 0.5, %v11747_v37  ;;  %v5009_v24 = vmul.f32 %v4977_v12, %v11727_v59  ;;  %v5008_v58 = vmul.f32 %v4976_v13, %v11717_v9 }
 0x591   :  { %7737 = vtanh.f32 %v4882_v63  ;;  %v4883_v10 = vmul.f32 0.5, %v11751_v19  ;;  %v5007_v26 = vmul.f32 %v4975_v60, %v11731_v35 }
 0x592   :  { %7739 = vtanh.f32 %v4885_v33  ;;  %v5029_v45 = vpack.c.bf16 %v5009_v24, %v5008_v58 }
 0x593   :  { %7741 = vtanh.f32 %v4883_v10  ;;  %v5028_v15 = vpack.c.bf16 %v5007_v26, %v5006_v53 }
 0x595   :  { %7068 = vmatprep.mubr.bf16.mxu1 %v5028_v15  ;;  %v7413_v15 = vld [vmem:[%s12445_s7 + $0xb0] sm:$0xff]  }
 0x596   :  { %7069 = vmatmul.mubr.bf16.gmra.mrb[68].mxu1 %v5029_v45  ;;  %7092 = vmatprep.subr.bf16.mxu0 %v7413_v15 }
 0x597   :  { %7093 = vmatpush3.bf16.msra.mxu0 %v7413_v15 }
 0x599   :  { %v7030_v2 = vpop.f32.mrb[44].mxu0 }
 0x59a   :  { %v4820_v28 = vadd.f32 %v7030_v2, %v11578_v20  ;;  %v4811_v3 = vpop.f32.mrb[45].mxu0  ;;  %v7736_v41 = vpop.eup %7735 }
 0x59b   :  { %v4812_v23 = vadd.f32 %v11578_v20, %v4811_v3  ;;  %v7031_v25 = vpop.f32.mrb[46].mxu0  ;;  %v7738_v5 = vpop.eup %7737  ;;  %v4948_v54 = vmul.f32 0.5, %v7736_v41 }
 0x59c   :  { %v11765_v4 = vadd.f32 %v4820_v28, %v11545_v47  ;;  %v4823_v44 = vadd.f32 %v7031_v25, %v11578_v20  ;;  %v4814_v21 = vpop.f32.mrb[47].mxu0  ;;  %v7740_v43 = vpop.eup %7739  ;;  %v4946_v32 = vmul.f32 0.5, %v7738_v5 }
 0x59d   :  { %v11769_v62 = vadd.f32 %v4812_v23, %v11550_v46  ;;  %v4815_v51 = vadd.f32 %v11578_v20, %v4814_v21  ;;  %v7742_v27 = vpop.eup %7741  ;;  %v4949_v13 = vmul.f32 0.5, %v7740_v43  ;;  %v4980_v33 = vadd.f32 0.5, %v4948_v54 }
 0x59e   :  { %v4888_v18 = vmul.f32 0.5, %v11765_v4  ;;  %v11774_v14 = vadd.f32 %v4823_v44, %v11554_v1  ;;  %v4947_v63 = vmul.f32 0.5, %v7742_v27  ;;  %v4978_v60 = vadd.f32 0.5, %v4946_v32 }
 0x59f   :  { %v4886_v47 = vmul.f32 0.5, %v11769_v62  ;;  %v11778_v12 = vadd.f32 %v4815_v51, %v11557_v31  ;;  %v4981_v20 = vadd.f32 0.5, %v4949_v13  ;;  %v5012_v26 = vmul.f32 %v4980_v33, %v11738_v56 }
 0x5a0   :  { %7743 = vtanh.f32 %v4888_v18  ;;  %v4889_v46 = vmul.f32 0.5, %v11774_v14  ;;  %v4979_v10 = vadd.f32 0.5, %v4947_v63  ;;  %v5010_v53 = vmul.f32 %v4978_v60, %v11742_v57  ;;  %v7414_v63 = vld [vmem:[%s12445_s7 + $0xb8] sm:$0xff]   ;;  %v11799_v60 = vld [vmem:[%s12448_s8 + $0x1] ss:$0 sm:$0xff] }
 0x5a1   :  { %7745 = vtanh.f32 %v4886_v47  ;;  %v4887_v24 = vmul.f32 0.5, %v11778_v12  ;;  %v5013_v1 = vmul.f32 %v4981_v20, %v11747_v37  ;;  %7094 = vmatprep.subr.bf16.mxu0 %v7414_v63 }
 0x5a2   :  { %7747 = vtanh.f32 %v4889_v46  ;;  %v5011_v31 = vmul.f32 %v4979_v10, %v11751_v19  ;;  %7095 = vmatpush3.bf16.msra.mxu0 %v7414_v63 }
 0x5a3   :  { %7749 = vtanh.f32 %v4887_v24  ;;  %v5031_v58 = vpack.c.bf16 %v5013_v1, %v5012_v26 }
 0x5a4   :  { %v5030_v7 = vpack.c.bf16 %v5011_v31, %v5010_v53 }
 0x5a6   :  { %7072 = vmatprep.mubr.bf16.mxu1 %v5030_v7 }
 0x5a7   :  { %7073 = vmatmul.mubr.bf16.gmra.mrb[72].mxu1 %v5031_v58 }
 0x5aa   :  { %v7744_v45 = vpop.eup %7743 }
 0x5ab   :  { %v7746_v2 = vpop.eup %7745  ;;  %v4952_v28 = vmul.f32 0.5, %v7744_v45 }
 0x5ac   :  { %v7748_v3 = vpop.eup %7747  ;;  %v4950_v41 = vmul.f32 0.5, %v7746_v2 }
 0x5ad   :  { %v7750_v23 = vpop.eup %7749  ;;  %v4953_v25 = vmul.f32 0.5, %v7748_v3  ;;  %v4984_v21 = vadd.f32 0.5, %v4952_v28 }
 0x5ae   :  { %v4951_v5 = vmul.f32 0.5, %v7750_v23  ;;  %v4982_v44 = vadd.f32 0.5, %v4950_v41 }
 0x5af   :  { %v4985_v54 = vadd.f32 0.5, %v4953_v25  ;;  %v5016_v18 = vmul.f32 %v4984_v21, %v11765_v4 }
 0x5b0   :  { %v4983_v43 = vadd.f32 0.5, %v4951_v5  ;;  %v5014_v32 = vmul.f32 %v4982_v44, %v11769_v62 }
 0x5b1   :  { %v5017_v51 = vmul.f32 %v4985_v54, %v11774_v14 }
 0x5b2   :  { %v5015_v27 = vmul.f32 %v4983_v43, %v11778_v12 }
 0x5b3   :  { %v5033_v47 = vpack.c.bf16 %v5017_v51, %v5016_v18 }
 0x5b4   :  { %v5032_v13 = vpack.c.bf16 %v5015_v27, %v5014_v32 }
 0x5b6   :  { %7076 = vmatprep.mubr.bf16.mxu1 %v5032_v13 }
 0x5b7   :  { %7077 = vmatmul.mubr.bf16.gmra.mrb[76].mxu1 %v5033_v47 }
 0x5ec   :  { %v7050_v46 = vpop.f32.mrb[48].mxu1 }
 0x5ed   :  { %v5150_v33 = vadd.f32 %v7050_v46, %v11799_v60  ;;  %v5141_v20 = vpop.f32.mrb[49].mxu1 }
 0x5ee   :  { %v5142_v24 = vadd.f32 %v11799_v60, %v5141_v20  ;;  %v7051_v10 = vpop.f32.mrb[50].mxu1 }
 0x5ef   :  { %v11804_v1 = vadd.f32 %v5150_v33, %v11583_v39  ;;  %v5153_v53 = vadd.f32 %v7051_v10, %v11799_v60  ;;  %v5144_v31 = vpop.f32.mrb[51].mxu1 }
 0x5f0   :  { %v11808_v26 = vadd.f32 %v5142_v24, %v11587_v55  ;;  %v5145_v7 = vadd.f32 %v11799_v60, %v5144_v31 }
 0x5f1   :  { %v5302_v58 = vmul.f32 0.5, %v11804_v1  ;;  %v11813_v15 = vadd.f32 %v5153_v53, %v11592_v30 }
 0x5f2   :  { %v5300_v45 = vmul.f32 0.5, %v11808_v26  ;;  %v11817_v2 = vadd.f32 %v5145_v7, %v11596_v36 }
 0x5f3   :  { %7751 = vtanh.f32 %v5302_v58  ;;  %v5303_v39 = vmul.f32 0.5, %v11813_v15 }
 0x5f4   :  { %7753 = vtanh.f32 %v5300_v45  ;;  %v5301_v28 = vmul.f32 0.5, %v11817_v2 }
 0x5f5   :  { %7755 = vtanh.f32 %v5303_v39 }
 0x5f6   :  { %7757 = vtanh.f32 %v5301_v28 }
 0x5fd   :  { %v7752_v55 = vpop.eup %7751 }
 0x5fe   :  { %v7754_v3 = vpop.eup %7753  ;;  %v5366_v41 = vmul.f32 0.5, %v7752_v55 }
 0x5ff   :  { %v7756_v23 = vpop.eup %7755  ;;  %v5364_v25 = vmul.f32 0.5, %v7754_v3 }
 0x600   :  { %v7758_v30 = vpop.eup %7757  ;;  %v5367_v5 = vmul.f32 0.5, %v7756_v23  ;;  %v5398_v54 = vadd.f32 0.5, %v5366_v41 }
 0x601   :  { %v5365_v44 = vmul.f32 0.5, %v7758_v30  ;;  %v5396_v21 = vadd.f32 0.5, %v5364_v25 }
 0x602   :  { %v5399_v36 = vadd.f32 0.5, %v5367_v5  ;;  %v5430_v18 = vmul.f32 %v5398_v54, %v11804_v1 }
 0x603   :  { %v5397_v43 = vadd.f32 0.5, %v5365_v44  ;;  %v5428_v32 = vmul.f32 %v5396_v21, %v11808_v26  ;;  %v7418_v21 = vld [vmem:[%s12445_s7 + $0xd8] sm:$0xff]  }
 0x604   :  { %v5431_v51 = vmul.f32 %v5399_v36, %v11813_v15 }
 0x605   :  { %v5429_v27 = vmul.f32 %v5397_v43, %v11817_v2 }
 0x606   :  { %v5461_v47 = vpack.c.bf16 %v5431_v51, %v5430_v18 }
 0x607   :  { %v5460_v13 = vpack.c.bf16 %v5429_v27, %v5428_v32 }
 0x609   :  { %7096 = vmatprep.mubr.bf16.mxu0 %v5460_v13 }
 0x60a   :  { %7097 = vmatmul.mubr.bf16.vlgmr.msra.gmra.mrb[48].mxu0 %v5461_v47 }
 0x615   :  { %v7054_v63 = vpop.f32.mrb[52].mxu1 }
 0x616   :  { %v5166_v46 = vadd.f32 %v7054_v63, %v11799_v60  ;;  %v5157_v33 = vpop.f32.mrb[53].mxu1 }
 0x617   :  { %v5158_v20 = vadd.f32 %v11799_v60, %v5157_v33  ;;  %v7055_v24 = vpop.f32.mrb[54].mxu1 }
 0x618   :  { %v11828_v10 = vadd.f32 %v5166_v46, %v11607_v61  ;;  %v5169_v53 = vadd.f32 %v7055_v24, %v11799_v60  ;;  %v5160_v31 = vpop.f32.mrb[55].mxu1 }
 0x619   :  { %v11832_v7 = vadd.f32 %v5158_v20, %v11611_v49  ;;  %v5161_v58 = vadd.f32 %v11799_v60, %v5160_v31  ;;  %v7415_v49 = vld [vmem:[%s12445_s7 + $0xc0] sm:$0xff]  }
 0x61a   :  { %v5306_v45 = vmul.f32 0.5, %v11828_v10  ;;  %v11837_v39 = vadd.f32 %v5169_v53, %v11616_v8  ;;  %v7416_v8 = vld [vmem:[%s12445_s7 + $0xc8] sm:$0xff]   ;;  %7128 = vmatprep.subr.bf16.mxu1 %v7415_v49 }
 0x61b   :  { %v5304_v28 = vmul.f32 0.5, %v11832_v7  ;;  %v11841_v55 = vadd.f32 %v5161_v58, %v11620_v6  ;;  %7129 = vmatpush3.bf16.msra.mxu1 %v7415_v49  ;;  %v7417_v6 = vld [vmem:[%s12445_s7 + $0xd0] sm:$0xff]   ;;  %v7419_v58 = vld [vmem:[%s12445_s7 + $0xe0] sm:$0xff]  }
 0x61c   :  { %7759 = vtanh.f32 %v5306_v45  ;;  %v5307_v61 = vmul.f32 0.5, %v11837_v39  ;;  %7130 = vmatprep.subr.bf16.mxu1 %v7416_v8 }
 0x61d   :  { %7761 = vtanh.f32 %v5304_v28  ;;  %v5305_v3 = vmul.f32 0.5, %v11841_v55 }
 0x61e   :  { %7763 = vtanh.f32 %v5307_v61 }
 0x61f   :  { %7765 = vtanh.f32 %v5305_v3  ;;  %7131 = vmatpush3.bf16.msra.mxu1 %v7416_v8 }
 0x620   :  { %7132 = vmatprep.subr.bf16.mxu1 %v7417_v6 }
 0x623   :  { %7133 = vmatpush3.bf16.msra.mxu1 %v7417_v6 }
 0x624   :  { %7134 = vmatprep.subr.bf16.mxu1 %v7418_v21 }
 0x626   :  { %v7760_v41 = vpop.eup %7759 }
 0x627   :  { %v7762_v23 = vpop.eup %7761  ;;  %v5370_v25 = vmul.f32 0.5, %v7760_v41  ;;  %7135 = vmatpush3.bf16.msra.mxu1 %v7418_v21 }
 0x628   :  { %v7764_v30 = vpop.eup %7763  ;;  %v5368_v44 = vmul.f32 0.5, %v7762_v23  ;;  %7136 = vmatprep.subr.bf16.mxu1 %v7419_v58 }
 0x629   :  { %v7766_v54 = vpop.eup %7765  ;;  %v5371_v51 = vmul.f32 0.5, %v7764_v30  ;;  %v5402_v33 = vadd.f32 0.5, %v5370_v25 }
 0x62a   :  { %v5369_v18 = vmul.f32 0.5, %v7766_v54  ;;  %v5400_v13 = vadd.f32 0.5, %v5368_v44 }
 0x62b   :  { %v7058_v5 = vpop.f32.mrb[56].mxu1  ;;  %v5403_v20 = vadd.f32 0.5, %v5371_v51  ;;  %v5434_v6 = vmul.f32 %v5402_v33, %v11828_v10  ;;  %7137 = vmatpush3.bf16.msra.mxu1 %v7419_v58 }
 0x62c   :  { %v5182_v36 = vadd.f32 %v7058_v5, %v11799_v60  ;;  %v5173_v43 = vpop.f32.mrb[57].mxu1  ;;  %v5401_v31 = vadd.f32 0.5, %v5369_v18  ;;  %v5432_v3 = vmul.f32 %v5400_v13, %v11832_v7 }
 0x62d   :  { %v5174_v32 = vadd.f32 %v11799_v60, %v5173_v43  ;;  %v7059_v27 = vpop.f32.mrb[58].mxu1  ;;  %v5435_v28 = vmul.f32 %v5403_v20, %v11837_v39 }
 0x62e   :  { %v11860_v47 = vadd.f32 %v5182_v36, %v11639_v52  ;;  %v5185_v63 = vadd.f32 %v7059_v27, %v11799_v60  ;;  %v5176_v46 = vpop.f32.mrb[59].mxu1  ;;  %v5433_v49 = vmul.f32 %v5401_v31, %v11841_v55 }
 0x62f   :  { %v11864_v24 = vadd.f32 %v5174_v32, %v11643_v48  ;;  %v5177_v53 = vadd.f32 %v11799_v60, %v5176_v46  ;;  %v5463_v23 = vpack.c.bf16 %v5435_v28, %v5434_v6 }
 0x630   :  { %v5310_v52 = vmul.f32 0.5, %v11860_v47  ;;  %v11872_v45 = vadd.f32 %v5185_v63, %v11651_v0  ;;  %v5462_v41 = vpack.c.bf16 %v5433_v49, %v5432_v3 }
 0x631   :  { %v5308_v61 = vmul.f32 0.5, %v11864_v24  ;;  %v11877_v48 = vadd.f32 %v5177_v53, %v11656_v42 }
 0x632   :  { %7767 = vtanh.f32 %v5310_v52  ;;  %v5311_v8 = vmul.f32 0.5, %v11872_v45  ;;  %7100 = vmatprep.mubr.bf16.mxu0 %v5462_v41 }
 0x633   :  { %7769 = vtanh.f32 %v5308_v61  ;;  %v5309_v0 = vmul.f32 0.5, %v11877_v48  ;;  %7101 = vmatmul.mubr.bf16.gmra.mrb[52].mxu0 %v5463_v23 }
 0x634   :  { %7771 = vtanh.f32 %v5311_v8 }
 0x635   :  { %7773 = vtanh.f32 %v5309_v0 }
 0x63c   :  { %v7768_v42 = vpop.eup %7767 }
 0x63d   :  { %v7770_v25 = vpop.eup %7769  ;;  %v5374_v30 = vmul.f32 0.5, %v7768_v42 }
 0x63e   :  { %v7772_v5 = vpop.eup %7771  ;;  %v5372_v54 = vmul.f32 0.5, %v7770_v25 }
 0x63f   :  { %v7774_v36 = vpop.eup %7773  ;;  %v5375_v51 = vmul.f32 0.5, %v7772_v5  ;;  %v5406_v20 = vadd.f32 0.5, %v5374_v30 }
 0x640   :  { %v7062_v44 = vpop.f32.mrb[60].mxu1  ;;  %v5373_v18 = vmul.f32 0.5, %v7774_v36  ;;  %v5404_v13 = vadd.f32 0.5, %v5372_v54 }
 0x641   :  { %v5198_v21 = vadd.f32 %v7062_v44, %v11799_v60  ;;  %v5189_v43 = vpop.f32.mrb[61].mxu1  ;;  %v5407_v53 = vadd.f32 0.5, %v5375_v51  ;;  %v5438_v0 = vmul.f32 %v5406_v20, %v11860_v47 }
 0x642   :  { %v5190_v32 = vadd.f32 %v11799_v60, %v5189_v43  ;;  %v7063_v27 = vpop.f32.mrb[62].mxu1  ;;  %v5405_v52 = vadd.f32 0.5, %v5373_v18  ;;  %v5436_v8 = vmul.f32 %v5404_v13, %v11864_v24 }
 0x643   :  { %v11887_v63 = vadd.f32 %v5198_v21, %v11666_v38  ;;  %v5201_v46 = vadd.f32 %v7063_v27, %v11799_v60  ;;  %v5192_v33 = vpop.f32.mrb[63].mxu1  ;;  %v5439_v3 = vmul.f32 %v5407_v53, %v11872_v45 }
 0x644   :  { %v11891_v31 = vadd.f32 %v5190_v32, %v11670_v11  ;;  %v5193_v58 = vadd.f32 %v11799_v60, %v5192_v33  ;;  %v5437_v11 = vmul.f32 %v5405_v52, %v11877_v48 }
 0x645   :  { %v5314_v28 = vmul.f32 0.5, %v11887_v63  ;;  %v11896_v61 = vadd.f32 %v5201_v46, %v11675_v40  ;;  %v5465_v23 = vpack.c.bf16 %v5439_v3, %v5438_v0 }
 0x646   :  { %v5312_v38 = vmul.f32 0.5, %v11891_v31  ;;  %v11901_v49 = vadd.f32 %v5193_v58, %v11680_v50  ;;  %v5464_v41 = vpack.c.bf16 %v5437_v11, %v5436_v8 }
 0x647   :  { %7775 = vtanh.f32 %v5314_v28  ;;  %v5315_v6 = vmul.f32 0.5, %v11896_v61 }
 0x648   :  { %7777 = vtanh.f32 %v5312_v38  ;;  %v5313_v40 = vmul.f32 0.5, %v11901_v49  ;;  %7104 = vmatprep.mubr.bf16.mxu0 %v5464_v41 }
 0x649   :  { %7779 = vtanh.f32 %v5315_v6  ;;  %7105 = vmatmul.mubr.bf16.gmra.mrb[56].mxu0 %v5465_v23 }
 0x64a   :  { %7781 = vtanh.f32 %v5313_v40 }
 0x651   :  { %v7066_v50 = vpop.f32.mrb[64].mxu1  ;;  %v7776_v42 = vpop.eup %7775 }
 0x652   :  { %v5214_v25 = vadd.f32 %v7066_v50, %v11799_v60  ;;  %v5205_v30 = vpop.f32.mrb[65].mxu1  ;;  %v7778_v5 = vpop.eup %7777  ;;  %v5378_v36 = vmul.f32 0.5, %v7776_v42 }
 0x653   :  { %v5206_v44 = vadd.f32 %v11799_v60, %v5205_v30  ;;  %v7067_v54 = vpop.f32.mrb[66].mxu1  ;;  %v7780_v21 = vpop.eup %7779  ;;  %v5376_v27 = vmul.f32 0.5, %v7778_v5 }
 0x654   :  { %v11911_v43 = vadd.f32 %v5214_v25, %v11690_v22  ;;  %v5217_v51 = vadd.f32 %v7067_v54, %v11799_v60  ;;  %v5208_v32 = vpop.f32.mrb[67].mxu1  ;;  %v7782_v18 = vpop.eup %7781  ;;  %v5379_v33 = vmul.f32 0.5, %v7780_v21  ;;  %v5410_v3 = vadd.f32 0.5, %v5378_v36 }
 0x655   :  { %v11915_v13 = vadd.f32 %v5206_v44, %v11694_v17  ;;  %v5209_v46 = vadd.f32 %v11799_v60, %v5208_v32  ;;  %v5377_v58 = vmul.f32 0.5, %v7782_v18  ;;  %v5408_v52 = vadd.f32 0.5, %v5376_v27 }
 0x656   :  { %v5318_v20 = vmul.f32 0.5, %v11911_v43  ;;  %v11920_v53 = vadd.f32 %v5217_v51, %v11699_v16  ;;  %v5411_v38 = vadd.f32 0.5, %v5379_v33 }
 0x657   :  { %v5316_v22 = vmul.f32 0.5, %v11915_v13  ;;  %v11924_v28 = vadd.f32 %v5209_v46, %v11703_v34  ;;  %v5409_v8 = vadd.f32 0.5, %v5377_v58  ;;  %v5440_v16 = vmul.f32 %v5408_v52, %v11891_v31 }
 0x658   :  { %7783 = vtanh.f32 %v5318_v20  ;;  %v5319_v17 = vmul.f32 0.5, %v11920_v53  ;;  %v5443_v6 = vmul.f32 %v5411_v38, %v11896_v61  ;;  %v5442_v34 = vmul.f32 %v5410_v3, %v11887_v63 }
 0x659   :  { %7785 = vtanh.f32 %v5316_v22  ;;  %v5317_v11 = vmul.f32 0.5, %v11924_v28  ;;  %v5441_v0 = vmul.f32 %v5409_v8, %v11901_v49 }
 0x65a   :  { %7787 = vtanh.f32 %v5319_v17  ;;  %v5467_v41 = vpack.c.bf16 %v5443_v6, %v5442_v34 }
 0x65b   :  { %7789 = vtanh.f32 %v5317_v11  ;;  %v5466_v40 = vpack.c.bf16 %v5441_v0, %v5440_v16 }
 0x65d   :  { %7108 = vmatprep.mubr.bf16.mxu0 %v5466_v40 }
 0x65e   :  { %7109 = vmatmul.mubr.bf16.gmra.mrb[60].mxu0 %v5467_v41 }
 0x662   :  { %v7784_v23 = vpop.eup %7783 }
 0x663   :  { %v7786_v50 = vpop.eup %7785  ;;  %v5382_v42 = vmul.f32 0.5, %v7784_v23 }
 0x664   :  { %v7788_v25 = vpop.eup %7787  ;;  %v5380_v30 = vmul.f32 0.5, %v7786_v50 }
 0x665   :  { %v7790_v5 = vpop.eup %7789  ;;  %v5383_v44 = vmul.f32 0.5, %v7788_v25  ;;  %v5414_v21 = vadd.f32 0.5, %v5382_v42 }
 0x666   :  { %v5381_v54 = vmul.f32 0.5, %v7790_v5  ;;  %v5412_v36 = vadd.f32 0.5, %v5380_v30 }
 0x667   :  { %v5415_v51 = vadd.f32 0.5, %v5383_v44  ;;  %v5446_v8 = vmul.f32 %v5414_v21, %v11911_v43 }
 0x668   :  { %v5413_v27 = vadd.f32 0.5, %v5381_v54  ;;  %v5444_v52 = vmul.f32 %v5412_v36, %v11915_v13 }
 0x669   :  { %v7070_v32 = vpop.f32.mrb[68].mxu1  ;;  %v5447_v33 = vmul.f32 %v5415_v51, %v11920_v53 }
 0x66a   :  { %v5230_v18 = vadd.f32 %v7070_v32, %v11799_v60  ;;  %v5221_v46 = vpop.f32.mrb[69].mxu1  ;;  %v5445_v22 = vmul.f32 %v5413_v27, %v11924_v28 }
 0x66b   :  { %v5222_v20 = vadd.f32 %v11799_v60, %v5221_v46  ;;  %v7071_v58 = vpop.f32.mrb[70].mxu1  ;;  %v5469_v40 = vpack.c.bf16 %v5447_v33, %v5446_v8 }
 0x66c   :  { %v11938_v3 = vadd.f32 %v5230_v18, %v11717_v9  ;;  %v5233_v38 = vadd.f32 %v7071_v58, %v11799_v60  ;;  %v5224_v17 = vpop.f32.mrb[71].mxu1  ;;  %v5468_v16 = vpack.c.bf16 %v5445_v22, %v5444_v52 }
 0x66d   :  { %v11943_v11 = vadd.f32 %v5222_v20, %v11722_v29  ;;  %v5225_v6 = vadd.f32 %v11799_v60, %v5224_v17 }
 0x66e   :  { %v5322_v0 = vmul.f32 0.5, %v11938_v3  ;;  %v11948_v34 = vadd.f32 %v5233_v38, %v11727_v59  ;;  %7112 = vmatprep.mubr.bf16.mxu0 %v5468_v16 }
 0x66f   :  { %v5320_v9 = vmul.f32 0.5, %v11943_v11  ;;  %v11952_v41 = vadd.f32 %v5225_v6, %v11731_v35  ;;  %7113 = vmatmul.mubr.bf16.gmra.mrb[64].mxu0 %v5469_v40 }
 0x670   :  { %7791 = vtanh.f32 %v5322_v0  ;;  %v5323_v23 = vmul.f32 0.5, %v11948_v34 }
 0x671   :  { %7793 = vtanh.f32 %v5320_v9  ;;  %v5321_v29 = vmul.f32 0.5, %v11952_v41  ;;  %v7420_v9 = vld [vmem:[%s12445_s7 + $0xe8] sm:$0xff]  }
 0x672   :  { %7795 = vtanh.f32 %v5323_v23  ;;  %7138 = vmatprep.subr.bf16.mxu1 %v7420_v9 }
 0x673   :  { %7797 = vtanh.f32 %v5321_v29  ;;  %7139 = vmatpush3.bf16.msra.mxu1 %v7420_v9 }
 0x67a   :  { %v7792_v50 = vpop.eup %7791  ;;  %v7074_v42 = vpop.f32.mrb[72].mxu1 }
 0x67b   :  { %v7794_v59 = vpop.eup %7793  ;;  %v5246_v25 = vadd.f32 %v7074_v42, %v11799_v60  ;;  %v5237_v30 = vpop.f32.mrb[73].mxu1  ;;  %v5386_v5 = vmul.f32 0.5, %v7792_v50 }
 0x67c   :  { %v7796_v44 = vpop.eup %7795  ;;  %v5238_v35 = vadd.f32 %v11799_v60, %v5237_v30  ;;  %v7075_v54 = vpop.f32.mrb[74].mxu1  ;;  %v5384_v36 = vmul.f32 0.5, %v7794_v59 }
 0x67d   :  { %v7798_v21 = vpop.eup %7797  ;;  %v11959_v51 = vadd.f32 %v5246_v25, %v11738_v56  ;;  %v5249_v32 = vadd.f32 %v7075_v54, %v11799_v60  ;;  %v5240_v27 = vpop.f32.mrb[75].mxu1  ;;  %v5387_v18 = vmul.f32 0.5, %v7796_v44  ;;  %v5418_v38 = vadd.f32 0.5, %v5386_v5 }
 0x67e   :  { %v11963_v46 = vadd.f32 %v5238_v35, %v11742_v57  ;;  %v5241_v33 = vadd.f32 %v11799_v60, %v5240_v27  ;;  %v5385_v20 = vmul.f32 0.5, %v7798_v21  ;;  %v5416_v58 = vadd.f32 0.5, %v5384_v36 }
 0x67f   :  { %v5326_v52 = vmul.f32 0.5, %v11959_v51  ;;  %v11968_v22 = vadd.f32 %v5249_v32, %v11747_v37  ;;  %v5419_v17 = vadd.f32 0.5, %v5387_v18 }
 0x680   :  { %v5324_v56 = vmul.f32 0.5, %v11963_v46  ;;  %v11972_v8 = vadd.f32 %v5241_v33, %v11751_v19  ;;  %v5417_v6 = vadd.f32 0.5, %v5385_v20  ;;  %v5448_v40 = vmul.f32 %v5416_v58, %v11943_v11 }
 0x681   :  { %7799 = vtanh.f32 %v5326_v52  ;;  %v5327_v57 = vmul.f32 0.5, %v11968_v22  ;;  %v5451_v16 = vmul.f32 %v5419_v17, %v11948_v34  ;;  %v5450_v19 = vmul.f32 %v5418_v38, %v11938_v3 }
 0x682   :  { %7801 = vtanh.f32 %v5324_v56  ;;  %v5325_v0 = vmul.f32 0.5, %v11972_v8  ;;  %v5449_v37 = vmul.f32 %v5417_v6, %v11952_v41 }
 0x683   :  { %7803 = vtanh.f32 %v5327_v57  ;;  %v5471_v29 = vpack.c.bf16 %v5451_v16, %v5450_v19 }
 0x684   :  { %7805 = vtanh.f32 %v5325_v0  ;;  %v5470_v23 = vpack.c.bf16 %v5449_v37, %v5448_v40 }
 0x686   :  { %7116 = vmatprep.mubr.bf16.mxu0 %v5470_v23  ;;  %v7421_v23 = vld [vmem:[%s12445_s7 + $0xf0] sm:$0xff]  }
 0x687   :  { %7117 = vmatmul.mubr.bf16.gmra.mrb[68].mxu0 %v5471_v29  ;;  %7140 = vmatprep.subr.bf16.mxu1 %v7421_v23 }
 0x688   :  { %7141 = vmatpush3.bf16.msra.mxu1 %v7421_v23 }
 0x68a   :  { %v7078_v50 = vpop.f32.mrb[76].mxu1 }
 0x68b   :  { %v5262_v42 = vadd.f32 %v7078_v50, %v11799_v60  ;;  %v5253_v59 = vpop.f32.mrb[77].mxu1  ;;  %v7800_v25 = vpop.eup %7799 }
 0x68c   :  { %v5254_v30 = vadd.f32 %v11799_v60, %v5253_v59  ;;  %v7079_v5 = vpop.f32.mrb[78].mxu1  ;;  %v7802_v44 = vpop.eup %7801  ;;  %v5390_v21 = vmul.f32 0.5, %v7800_v25 }
 0x68d   :  { %v11986_v35 = vadd.f32 %v5262_v42, %v11765_v4  ;;  %v5265_v54 = vadd.f32 %v7079_v5, %v11799_v60  ;;  %v5256_v36 = vpop.f32.mrb[79].mxu1  ;;  %v7804_v32 = vpop.eup %7803  ;;  %v5388_v33 = vmul.f32 0.5, %v7802_v44 }
 0x68e   :  { %v11990_v27 = vadd.f32 %v5254_v30, %v11769_v62  ;;  %v5257_v18 = vadd.f32 %v11799_v60, %v5256_v36  ;;  %v7806_v20 = vpop.eup %7805  ;;  %v5391_v38 = vmul.f32 0.5, %v7804_v32  ;;  %v5422_v57 = vadd.f32 0.5, %v5390_v21 }
 0x68f   :  { %v5330_v58 = vmul.f32 0.5, %v11986_v35  ;;  %v11995_v52 = vadd.f32 %v5265_v54, %v11774_v14  ;;  %v5389_v56 = vmul.f32 0.5, %v7806_v20  ;;  %v5420_v6 = vadd.f32 0.5, %v5388_v33 }
 0x690   :  { %v5328_v4 = vmul.f32 0.5, %v11990_v27  ;;  %v11999_v17 = vadd.f32 %v5257_v18, %v11778_v12  ;;  %v5423_v60 = vadd.f32 0.5, %v5391_v38  ;;  %v5454_v37 = vmul.f32 %v5422_v57, %v11959_v51 }
 0x691   :  { %7807 = vtanh.f32 %v5330_v58  ;;  %v5331_v62 = vmul.f32 0.5, %v11995_v52  ;;  %v5421_v0 = vadd.f32 0.5, %v5389_v56  ;;  %v5452_v40 = vmul.f32 %v5420_v6, %v11963_v46  ;;  %v7422_v56 = vld [vmem:[%s12445_s7 + $0xf8] sm:$0xff]   ;;  %v12020_v6 = vld [vmem:[%s12448_s8 + $0x2] ss:$0 sm:$0xff] }
 0x692   :  { %7809 = vtanh.f32 %v5328_v4  ;;  %v5329_v16 = vmul.f32 0.5, %v11999_v17  ;;  %v5455_v14 = vmul.f32 %v5423_v60, %v11968_v22  ;;  %7142 = vmatprep.subr.bf16.mxu1 %v7422_v56 }
 0x693   :  { %7811 = vtanh.f32 %v5331_v62  ;;  %v5453_v12 = vmul.f32 %v5421_v0, %v11972_v8  ;;  %7143 = vmatpush3.bf16.msra.mxu1 %v7422_v56 }
 0x694   :  { %7813 = vtanh.f32 %v5329_v16  ;;  %v5473_v19 = vpack.c.bf16 %v5455_v14, %v5454_v37 }
 0x695   :  { %v5472_v9 = vpack.c.bf16 %v5453_v12, %v5452_v40 }
 0x697   :  { %7120 = vmatprep.mubr.bf16.mxu0 %v5472_v9 }
 0x698   :  { %7121 = vmatmul.mubr.bf16.gmra.mrb[72].mxu0 %v5473_v19 }
 0x69b   :  { %v7808_v29 = vpop.eup %7807 }
 0x69c   :  { %v7810_v50 = vpop.eup %7809  ;;  %v5394_v42 = vmul.f32 0.5, %v7808_v29 }
 0x69d   :  { %v7812_v59 = vpop.eup %7811  ;;  %v5392_v25 = vmul.f32 0.5, %v7810_v50 }
 0x69e   :  { %v7814_v30 = vpop.eup %7813  ;;  %v5395_v5 = vmul.f32 0.5, %v7812_v59  ;;  %v5426_v36 = vadd.f32 0.5, %v5394_v42 }
 0x69f   :  { %v5393_v44 = vmul.f32 0.5, %v7814_v30  ;;  %v5424_v54 = vadd.f32 0.5, %v5392_v25 }
 0x6a0   :  { %v5427_v21 = vadd.f32 0.5, %v5395_v5  ;;  %v5458_v58 = vmul.f32 %v5426_v36, %v11986_v35 }
 0x6a1   :  { %v5425_v32 = vadd.f32 0.5, %v5393_v44  ;;  %v5456_v33 = vmul.f32 %v5424_v54, %v11990_v27 }
 0x6a2   :  { %v5459_v18 = vmul.f32 %v5427_v21, %v11995_v52 }
 0x6a3   :  { %v5457_v20 = vmul.f32 %v5425_v32, %v11999_v17 }
 0x6a4   :  { %v5475_v4 = vpack.c.bf16 %v5459_v18, %v5458_v58 }
 0x6a5   :  { %v5474_v38 = vpack.c.bf16 %v5457_v20, %v5456_v33 }
 0x6a7   :  { %7124 = vmatprep.mubr.bf16.mxu0 %v5474_v38 }
 0x6a8   :  { %7125 = vmatmul.mubr.bf16.gmra.mrb[76].mxu0 %v5475_v4 }
 0x6dd   :  { %v7098_v62 = vpop.f32.mrb[48].mxu0 }
 0x6de   :  { %v5592_v57 = vadd.f32 %v7098_v62, %v12020_v6  ;;  %v5583_v60 = vpop.f32.mrb[49].mxu0 }
 0x6df   :  { %v5584_v16 = vadd.f32 %v12020_v6, %v5583_v60  ;;  %v7099_v0 = vpop.f32.mrb[50].mxu0 }
 0x6e0   :  { %v12025_v14 = vadd.f32 %v5592_v57, %v11804_v1  ;;  %v5595_v40 = vadd.f32 %v7099_v0, %v12020_v6  ;;  %v5586_v12 = vpop.f32.mrb[51].mxu0 }
 0x6e1   :  { %v12029_v37 = vadd.f32 %v5584_v16, %v11808_v26  ;;  %v5587_v9 = vadd.f32 %v12020_v6, %v5586_v12 }
 0x6e2   :  { %v5744_v19 = vmul.f32 0.5, %v12025_v14  ;;  %v12034_v23 = vadd.f32 %v5595_v40, %v11813_v15 }
 0x6e3   :  { %v5742_v29 = vmul.f32 0.5, %v12029_v37  ;;  %v12038_v50 = vadd.f32 %v5587_v9, %v11817_v2 }
 0x6e4   :  { %7815 = vtanh.f32 %v5744_v19  ;;  %v5745_v1 = vmul.f32 0.5, %v12034_v23 }
 0x6e5   :  { %7817 = vtanh.f32 %v5742_v29  ;;  %v5743_v42 = vmul.f32 0.5, %v12038_v50 }
 0x6e6   :  { %7819 = vtanh.f32 %v5745_v1 }
 0x6e7   :  { %7821 = vtanh.f32 %v5743_v42 }
 0x6ee   :  { %v7816_v26 = vpop.eup %7815 }
 0x6ef   :  { %v7818_v59 = vpop.eup %7817  ;;  %v5808_v25 = vmul.f32 0.5, %v7816_v26 }
 0x6f0   :  { %v7820_v30 = vpop.eup %7819  ;;  %v5806_v5 = vmul.f32 0.5, %v7818_v59 }
 0x6f1   :  { %v7822_v15 = vpop.eup %7821  ;;  %v5809_v44 = vmul.f32 0.5, %v7820_v30  ;;  %v5840_v21 = vadd.f32 0.5, %v5808_v25 }
 0x6f2   :  { %v5807_v54 = vmul.f32 0.5, %v7822_v15  ;;  %v5838_v36 = vadd.f32 0.5, %v5806_v5 }
 0x6f3   :  { %v5841_v2 = vadd.f32 0.5, %v5809_v44  ;;  %v5872_v58 = vmul.f32 %v5840_v21, %v12025_v14 }
 0x6f4   :  { %v5839_v32 = vadd.f32 0.5, %v5807_v54  ;;  %v5870_v33 = vmul.f32 %v5838_v36, %v12029_v37 }
 0x6f5   :  { %v5873_v18 = vmul.f32 %v5841_v2, %v12034_v23 }
 0x6f6   :  { %v5871_v20 = vmul.f32 %v5839_v32, %v12038_v50 }
 0x6f7   :  { %v5903_v4 = vpack.c.bf16 %v5873_v18, %v5872_v58  ;;  %v7426_v18 = vld [vmem:[%s12449_s9 + $0x18] sm:$0xff]  }
 0x6f8   :  { %v5902_v38 = vpack.c.bf16 %v5871_v20, %v5870_v33 }
 0x6fa   :  { %7144 = vmatprep.mubr.bf16.mxu1 %v5902_v38 }
 0x6fb   :  { %7145 = vmatmul.mubr.bf16.vlgmr.msra.gmra.mrb[80].mxu1 %v5903_v4 }
 0x706   :  { %v7102_v56 = vpop.f32.mrb[52].mxu0 }
 0x707   :  { %v5608_v62 = vadd.f32 %v7102_v56, %v12020_v6  ;;  %v5599_v57 = vpop.f32.mrb[53].mxu0 }
 0x708   :  { %v5600_v60 = vadd.f32 %v12020_v6, %v5599_v57  ;;  %v7103_v16 = vpop.f32.mrb[54].mxu0 }
 0x709   :  { %v12049_v0 = vadd.f32 %v5608_v62, %v11828_v10  ;;  %v5611_v40 = vadd.f32 %v7103_v16, %v12020_v6  ;;  %v5602_v12 = vpop.f32.mrb[55].mxu0 }
 0x70a   :  { %v12053_v9 = vadd.f32 %v5600_v60, %v11832_v7  ;;  %v5603_v19 = vadd.f32 %v12020_v6, %v5602_v12  ;;  %v7423_v7 = vld [vmem:[%s12449_s9] sm:$0xff]  }
 0x70b   :  { %v5748_v29 = vmul.f32 0.5, %v12049_v0  ;;  %v12058_v1 = vadd.f32 %v5611_v40, %v11837_v39  ;;  %v7424_v39 = vld [vmem:[%s12449_s9 + $0x8] sm:$0xff]   ;;  %7176 = vmatprep.subr.bf16.mxu0 %v7423_v7 }
 0x70c   :  { %v5746_v42 = vmul.f32 0.5, %v12053_v9  ;;  %v12062_v26 = vadd.f32 %v5603_v19, %v11841_v55  ;;  %7177 = vmatpush3.bf16.msra.mxu0 %v7423_v7  ;;  %v7425_v55 = vld [vmem:[%s12449_s9 + $0x10] sm:$0xff]  }
 0x70d   :  { %7823 = vtanh.f32 %v5748_v29  ;;  %v5749_v10 = vmul.f32 0.5, %v12058_v1  ;;  %7178 = vmatprep.subr.bf16.mxu0 %v7424_v39 }
 0x70e   :  { %7825 = vtanh.f32 %v5746_v42  ;;  %v5747_v59 = vmul.f32 0.5, %v12062_v26  ;;  %v7427_v42 = vld [vmem:[%s12449_s9 + $0x20] sm:$0xff]  }
 0x70f   :  { %7827 = vtanh.f32 %v5749_v10 }
 0x710   :  { %7829 = vtanh.f32 %v5747_v59  ;;  %7179 = vmatpush3.bf16.msra.mxu0 %v7424_v39 }
 0x711   :  { %7180 = vmatprep.subr.bf16.mxu0 %v7425_v55 }
 0x714   :  { %7181 = vmatpush3.bf16.msra.mxu0 %v7425_v55 }
 0x715   :  { %7182 = vmatprep.subr.bf16.mxu0 %v7426_v18 }
 0x717   :  { %v7824_v25 = vpop.eup %7823 }
 0x718   :  { %v7826_v30 = vpop.eup %7825  ;;  %v5812_v5 = vmul.f32 0.5, %v7824_v25  ;;  %7183 = vmatpush3.bf16.msra.mxu0 %v7426_v18 }
 0x719   :  { %v7828_v15 = vpop.eup %7827  ;;  %v5810_v54 = vmul.f32 0.5, %v7826_v30  ;;  %7184 = vmatprep.subr.bf16.mxu0 %v7427_v42 }
 0x71a   :  { %v7830_v36 = vpop.eup %7829  ;;  %v5813_v32 = vmul.f32 0.5, %v7828_v15  ;;  %v5844_v57 = vadd.f32 0.5, %v5812_v5  ;;  %v7429_v5 = vld [vmem:[%s12449_s9 + $0x30] sm:$0xff]  }
 0x71b   :  { %v5811_v58 = vmul.f32 0.5, %v7830_v36  ;;  %v5842_v38 = vadd.f32 0.5, %v5810_v54 }
 0x71c   :  { %v7106_v44 = vpop.f32.mrb[56].mxu0  ;;  %v5845_v60 = vadd.f32 0.5, %v5813_v32  ;;  %v5876_v39 = vmul.f32 %v5844_v57, %v12049_v0  ;;  %7185 = vmatpush3.bf16.msra.mxu0 %v7427_v42 }
 0x71d   :  { %v5624_v21 = vadd.f32 %v7106_v44, %v12020_v6  ;;  %v5615_v2 = vpop.f32.mrb[57].mxu0  ;;  %v5843_v12 = vadd.f32 0.5, %v5811_v58  ;;  %v5874_v59 = vmul.f32 %v5842_v38, %v12053_v9 }
 0x71e   :  { %v5616_v33 = vadd.f32 %v12020_v6, %v5615_v2  ;;  %v7107_v20 = vpop.f32.mrb[58].mxu0 }
 0x71f   :  { %v12081_v4 = vadd.f32 %v5624_v21, %v11860_v47  ;;  %v5627_v56 = vadd.f32 %v7107_v20, %v12020_v6  ;;  %v5618_v62 = vpop.f32.mrb[59].mxu0  ;;  %v5877_v47 = vmul.f32 %v5845_v60, %v12058_v1  ;;  %v5875_v7 = vmul.f32 %v5843_v12, %v12062_v26 }
 0x720   :  { %v12085_v16 = vadd.f32 %v5616_v33, %v11864_v24  ;;  %v5619_v40 = vadd.f32 %v12020_v6, %v5618_v62 }
 0x721   :  { %v5752_v19 = vmul.f32 0.5, %v12081_v4  ;;  %v12090_v29 = vadd.f32 %v5627_v56, %v11872_v45  ;;  %v5904_v25 = vpack.c.bf16 %v5875_v7, %v5874_v59  ;;  %v5905_v30 = vpack.c.bf16 %v5877_v47, %v5876_v39 }
 0x722   :  { %v5750_v10 = vmul.f32 0.5, %v12085_v16  ;;  %v12098_v24 = vadd.f32 %v5619_v40, %v11877_v48  ;;  %v7428_v48 = vld [vmem:[%s12449_s9 + $0x28] sm:$0xff]  }
 0x723   :  { %7831 = vtanh.f32 %v5752_v19  ;;  %v5753_v45 = vmul.f32 0.5, %v12090_v29  ;;  %7148 = vmatprep.mubr.bf16.mxu1 %v5904_v25  ;;  %7186 = vmatprep.subr.bf16.mxu0 %v7428_v48 }
 0x724   :  { %7833 = vtanh.f32 %v5750_v10  ;;  %v5751_v55 = vmul.f32 0.5, %v12098_v24  ;;  %7149 = vmatmul.mubr.bf16.gmra.mrb[84].mxu1 %v5905_v30  ;;  %7187 = vmatpush3.bf16.msra.mxu0 %v7428_v48 }
 0x725   :  { %7835 = vtanh.f32 %v5753_v45  ;;  %7188 = vmatprep.subr.bf16.mxu0 %v7429_v5 }
 0x726   :  { %7837 = vtanh.f32 %v5751_v55 }
 0x728   :  { %7189 = vmatpush3.bf16.msra.mxu0 %v7429_v5 }
 0x72d   :  { %v7832_v15 = vpop.eup %7831 }
 0x72e   :  { %v7834_v44 = vpop.eup %7833  ;;  %v5816_v54 = vmul.f32 0.5, %v7832_v15 }
 0x72f   :  { %v7836_v36 = vpop.eup %7835  ;;  %v5814_v2 = vmul.f32 0.5, %v7834_v44 }
 0x730   :  { %v7838_v32 = vpop.eup %7837  ;;  %v5817_v20 = vmul.f32 0.5, %v7836_v36  ;;  %v5848_v12 = vadd.f32 0.5, %v5816_v54 }
 0x731   :  { %v7110_v21 = vpop.f32.mrb[60].mxu0  ;;  %v5815_v56 = vmul.f32 0.5, %v7838_v32  ;;  %v5846_v62 = vadd.f32 0.5, %v5814_v2 }
 0x732   :  { %v5640_v18 = vadd.f32 %v7110_v21, %v12020_v6  ;;  %v5631_v33 = vpop.f32.mrb[61].mxu0  ;;  %v5849_v19 = vadd.f32 0.5, %v5817_v20  ;;  %v5880_v30 = vmul.f32 %v5848_v12, %v12081_v4 }
 0x733   :  { %v5632_v58 = vadd.f32 %v12020_v6, %v5631_v33  ;;  %v7111_v38 = vpop.f32.mrb[62].mxu0  ;;  %v5847_v10 = vadd.f32 0.5, %v5815_v56  ;;  %v5878_v55 = vmul.f32 %v5846_v62, %v12085_v16 }
 0x734   :  { %v12114_v57 = vadd.f32 %v5640_v18, %v11887_v63  ;;  %v5643_v60 = vadd.f32 %v7111_v38, %v12020_v6  ;;  %v5634_v40 = vpop.f32.mrb[63].mxu0  ;;  %v5881_v45 = vmul.f32 %v5849_v19, %v12090_v29 }
 0x735   :  { %v12118_v47 = vadd.f32 %v5632_v58, %v11891_v31  ;;  %v5635_v42 = vadd.f32 %v12020_v6, %v5634_v40  ;;  %v5879_v31 = vmul.f32 %v5847_v10, %v12098_v24 }
 0x736   :  { %v5756_v59 = vmul.f32 0.5, %v12114_v57  ;;  %v12123_v7 = vadd.f32 %v5643_v60, %v11896_v61  ;;  %v5907_v5 = vpack.c.bf16 %v5881_v45, %v5880_v30 }
 0x737   :  { %v5754_v63 = vmul.f32 0.5, %v12118_v47  ;;  %v12128_v39 = vadd.f32 %v5635_v42, %v11901_v49  ;;  %v5906_v48 = vpack.c.bf16 %v5879_v31, %v5878_v55 }
 0x738   :  { %7839 = vtanh.f32 %v5756_v59  ;;  %v5757_v25 = vmul.f32 0.5, %v12123_v7 }
 0x739   :  { %7841 = vtanh.f32 %v5754_v63  ;;  %v5755_v61 = vmul.f32 0.5, %v12128_v39  ;;  %7152 = vmatprep.mubr.bf16.mxu1 %v5906_v48 }
 0x73a   :  { %7843 = vtanh.f32 %v5757_v25  ;;  %7153 = vmatmul.mubr.bf16.gmra.mrb[88].mxu1 %v5907_v5 }
 0x73b   :  { %7845 = vtanh.f32 %v5755_v61 }
 0x742   :  { %v7114_v49 = vpop.f32.mrb[64].mxu0  ;;  %v7840_v15 = vpop.eup %7839 }
 0x743   :  { %v5656_v44 = vadd.f32 %v7114_v49, %v12020_v6  ;;  %v5647_v54 = vpop.f32.mrb[65].mxu0  ;;  %v7842_v36 = vpop.eup %7841  ;;  %v5820_v32 = vmul.f32 0.5, %v7840_v15 }
 0x744   :  { %v5648_v21 = vadd.f32 %v12020_v6, %v5647_v54  ;;  %v7115_v2 = vpop.f32.mrb[66].mxu0  ;;  %v7844_v18 = vpop.eup %7843  ;;  %v5818_v38 = vmul.f32 0.5, %v7842_v36 }
 0x745   :  { %v12138_v33 = vadd.f32 %v5656_v44, %v11911_v43  ;;  %v5659_v20 = vadd.f32 %v7115_v2, %v12020_v6  ;;  %v5650_v58 = vpop.f32.mrb[67].mxu0  ;;  %v7846_v56 = vpop.eup %7845  ;;  %v5821_v40 = vmul.f32 0.5, %v7844_v18  ;;  %v5852_v45 = vadd.f32 0.5, %v5820_v32 }
 0x746   :  { %v12142_v62 = vadd.f32 %v5648_v21, %v11915_v13  ;;  %v5651_v60 = vadd.f32 %v12020_v6, %v5650_v58  ;;  %v5819_v42 = vmul.f32 0.5, %v7846_v56  ;;  %v5850_v10 = vadd.f32 0.5, %v5818_v38 }
 0x747   :  { %v5760_v12 = vmul.f32 0.5, %v12138_v33  ;;  %v12147_v19 = vadd.f32 %v5659_v20, %v11920_v53  ;;  %v5853_v63 = vadd.f32 0.5, %v5821_v40 }
 0x748   :  { %v5758_v43 = vmul.f32 0.5, %v12142_v62  ;;  %v12151_v59 = vadd.f32 %v5651_v60, %v11924_v28  ;;  %v5851_v55 = vadd.f32 0.5, %v5819_v42  ;;  %v5882_v53 = vmul.f32 %v5850_v10, %v12118_v47 }
 0x749   :  { %7847 = vtanh.f32 %v5760_v12  ;;  %v5761_v13 = vmul.f32 0.5, %v12147_v19  ;;  %v5885_v25 = vmul.f32 %v5853_v63, %v12123_v7  ;;  %v5884_v28 = vmul.f32 %v5852_v45, %v12114_v57 }
 0x74a   :  { %7849 = vtanh.f32 %v5758_v43  ;;  %v5759_v31 = vmul.f32 0.5, %v12151_v59  ;;  %v5883_v30 = vmul.f32 %v5851_v55, %v12128_v39 }
 0x74b   :  { %7851 = vtanh.f32 %v5761_v13  ;;  %v5909_v48 = vpack.c.bf16 %v5885_v25, %v5884_v28 }
 0x74c   :  { %7853 = vtanh.f32 %v5759_v31  ;;  %v5908_v61 = vpack.c.bf16 %v5883_v30, %v5882_v53 }
 0x74e   :  { %7156 = vmatprep.mubr.bf16.mxu1 %v5908_v61 }
 0x74f   :  { %7157 = vmatmul.mubr.bf16.gmra.mrb[92].mxu1 %v5909_v48 }
 0x753   :  { %v7848_v5 = vpop.eup %7847 }
 0x754   :  { %v7850_v49 = vpop.eup %7849  ;;  %v5824_v15 = vmul.f32 0.5, %v7848_v5 }
 0x755   :  { %v7852_v44 = vpop.eup %7851  ;;  %v5822_v54 = vmul.f32 0.5, %v7850_v49 }
 0x756   :  { %v7854_v36 = vpop.eup %7853  ;;  %v5825_v21 = vmul.f32 0.5, %v7852_v44  ;;  %v5856_v18 = vadd.f32 0.5, %v5824_v15 }
 0x757   :  { %v5823_v2 = vmul.f32 0.5, %v7854_v36  ;;  %v5854_v32 = vadd.f32 0.5, %v5822_v54 }
 0x758   :  { %v5857_v20 = vadd.f32 0.5, %v5825_v21  ;;  %v5888_v55 = vmul.f32 %v5856_v18, %v12138_v33 }
 0x759   :  { %v5855_v38 = vadd.f32 0.5, %v5823_v2  ;;  %v5886_v10 = vmul.f32 %v5854_v32, %v12142_v62 }
 0x75a   :  { %v7118_v58 = vpop.f32.mrb[68].mxu0  ;;  %v5889_v40 = vmul.f32 %v5857_v20, %v12147_v19 }
 0x75b   :  { %v5672_v56 = vadd.f32 %v7118_v58, %v12020_v6  ;;  %v5663_v60 = vpop.f32.mrb[69].mxu0  ;;  %v5887_v43 = vmul.f32 %v5855_v38, %v12151_v59 }
 0x75c   :  { %v5664_v12 = vadd.f32 %v12020_v6, %v5663_v60  ;;  %v7119_v42 = vpop.f32.mrb[70].mxu0  ;;  %v5911_v61 = vpack.c.bf16 %v5889_v40, %v5888_v55 }
 0x75d   :  { %v12165_v45 = vadd.f32 %v5672_v56, %v11938_v3  ;;  %v5675_v63 = vadd.f32 %v7119_v42, %v12020_v6  ;;  %v5666_v13 = vpop.f32.mrb[71].mxu0  ;;  %v5910_v53 = vpack.c.bf16 %v5887_v43, %v5886_v10 }
 0x75e   :  { %v12170_v31 = vadd.f32 %v5664_v12, %v11943_v11  ;;  %v5667_v25 = vadd.f32 %v12020_v6, %v5666_v13  ;;  %v7430_v11 = vld [vmem:[%s12449_s9 + $0x38] sm:$0xff]  }
 0x75f   :  { %v5764_v30 = vmul.f32 0.5, %v12165_v45  ;;  %v12175_v28 = vadd.f32 %v5675_v63, %v11948_v34  ;;  %7160 = vmatprep.mubr.bf16.mxu1 %v5910_v53  ;;  %7190 = vmatprep.subr.bf16.mxu0 %v7430_v11 }
 0x760   :  { %v5762_v3 = vmul.f32 0.5, %v12170_v31  ;;  %v12179_v48 = vadd.f32 %v5667_v25, %v11952_v41  ;;  %7161 = vmatmul.mubr.bf16.gmra.mrb[96].mxu1 %v5911_v61  ;;  %7191 = vmatpush3.bf16.msra.mxu0 %v7430_v11 }
 0x761   :  { %7855 = vtanh.f32 %v5764_v30  ;;  %v5765_v5 = vmul.f32 0.5, %v12175_v28 }
 0x762   :  { %7857 = vtanh.f32 %v5762_v3  ;;  %v5763_v49 = vmul.f32 0.5, %v12179_v48 }
 0x763   :  { %7859 = vtanh.f32 %v5765_v5 }
 0x764   :  { %7861 = vtanh.f32 %v5763_v49 }
 0x76b   :  { %v7856_v34 = vpop.eup %7855  ;;  %v7122_v15 = vpop.f32.mrb[72].mxu0 }
 0x76c   :  { %v7858_v41 = vpop.eup %7857  ;;  %v5688_v44 = vadd.f32 %v7122_v15, %v12020_v6  ;;  %v5679_v54 = vpop.f32.mrb[73].mxu0  ;;  %v5828_v36 = vmul.f32 0.5, %v7856_v34 }
 0x76d   :  { %v7860_v21 = vpop.eup %7859  ;;  %v5680_v2 = vadd.f32 %v12020_v6, %v5679_v54  ;;  %v7123_v32 = vpop.f32.mrb[74].mxu0  ;;  %v5826_v18 = vmul.f32 0.5, %v7858_v41 }
 0x76e   :  { %v7862_v20 = vpop.eup %7861  ;;  %v12189_v58 = vadd.f32 %v5688_v44, %v11959_v51  ;;  %v5691_v38 = vadd.f32 %v7123_v32, %v12020_v6  ;;  %v5682_v56 = vpop.f32.mrb[75].mxu0  ;;  %v5829_v60 = vmul.f32 0.5, %v7860_v21  ;;  %v5860_v13 = vadd.f32 0.5, %v5828_v36 }
 0x76f   :  { %v12193_v40 = vadd.f32 %v5680_v2, %v11963_v46  ;;  %v5683_v12 = vadd.f32 %v12020_v6, %v5682_v56  ;;  %v5827_v42 = vmul.f32 0.5, %v7862_v20  ;;  %v5858_v10 = vadd.f32 0.5, %v5826_v18 }
 0x770   :  { %v5768_v43 = vmul.f32 0.5, %v12189_v58  ;;  %v12198_v63 = vadd.f32 %v5691_v38, %v11968_v22  ;;  %v5861_v55 = vadd.f32 0.5, %v5829_v60  ;;  %v5892_v11 = vmul.f32 %v5860_v13, %v12165_v45 }
 0x771   :  { %v5766_v51 = vmul.f32 0.5, %v12193_v40  ;;  %v12202_v25 = vadd.f32 %v5683_v12, %v11972_v8  ;;  %v5859_v53 = vadd.f32 0.5, %v5827_v42  ;;  %v5890_v3 = vmul.f32 %v5858_v10, %v12170_v31 }
 0x772   :  { %7863 = vtanh.f32 %v5768_v43  ;;  %v5769_v46 = vmul.f32 0.5, %v12198_v63  ;;  %v5893_v30 = vmul.f32 %v5861_v55, %v12175_v28 }
 0x773   :  { %7865 = vtanh.f32 %v5766_v51  ;;  %v5767_v61 = vmul.f32 0.5, %v12202_v25  ;;  %v5891_v22 = vmul.f32 %v5859_v53, %v12179_v48 }
 0x774   :  { %7867 = vtanh.f32 %v5769_v46  ;;  %v5913_v8 = vpack.c.bf16 %v5893_v30, %v5892_v11 }
 0x775   :  { %7869 = vtanh.f32 %v5767_v61  ;;  %v5912_v5 = vpack.c.bf16 %v5891_v22, %v5890_v3 }
 0x777   :  { %7164 = vmatprep.mubr.bf16.mxu1 %v5912_v5 }
 0x778   :  { %7165 = vmatmul.mubr.bf16.gmra.mrb[100].mxu1 %v5913_v8 }
 0x77b   :  { %v7126_v49 = vpop.f32.mrb[76].mxu0 }
 0x77c   :  { %v5704_v34 = vadd.f32 %v7126_v49, %v12020_v6  ;;  %v5695_v15 = vpop.f32.mrb[77].mxu0  ;;  %v7864_v41 = vpop.eup %7863 }
 0x77d   :  { %v5696_v44 = vadd.f32 %v12020_v6, %v5695_v15  ;;  %v7127_v54 = vpop.f32.mrb[78].mxu0  ;;  %v7866_v36 = vpop.eup %7865  ;;  %v5832_v18 = vmul.f32 0.5, %v7864_v41 }
 0x77e   :  { %v12213_v21 = vadd.f32 %v5704_v34, %v11986_v35  ;;  %v5707_v2 = vadd.f32 %v7127_v54, %v12020_v6  ;;  %v5698_v32 = vpop.f32.mrb[79].mxu0  ;;  %v7868_v20 = vpop.eup %7867  ;;  %v5830_v60 = vmul.f32 0.5, %v7866_v36 }
 0x77f   :  { %v12217_v38 = vadd.f32 %v5696_v44, %v11990_v27  ;;  %v5699_v56 = vadd.f32 %v12020_v6, %v5698_v32  ;;  %v7870_v12 = vpop.eup %7869  ;;  %v5833_v43 = vmul.f32 0.5, %v7868_v20  ;;  %v5864_v53 = vadd.f32 0.5, %v5832_v18 }
 0x780   :  { %v5772_v42 = vmul.f32 0.5, %v12213_v21  ;;  %v12222_v10 = vadd.f32 %v5707_v2, %v11995_v52  ;;  %v5831_v55 = vmul.f32 0.5, %v7870_v12  ;;  %v5862_v51 = vadd.f32 0.5, %v5830_v60 }
 0x781   :  { %v5770_v35 = vmul.f32 0.5, %v12217_v38  ;;  %v12226_v13 = vadd.f32 %v5699_v56, %v11999_v17  ;;  %v5865_v6 = vadd.f32 0.5, %v5833_v43  ;;  %v5896_v3 = vmul.f32 %v5864_v53, %v12189_v58 }
 0x782   :  { %7871 = vtanh.f32 %v5772_v42  ;;  %v5773_v27 = vmul.f32 0.5, %v12222_v10  ;;  %v5863_v30 = vadd.f32 0.5, %v5831_v55  ;;  %v5894_v61 = vmul.f32 %v5862_v51, %v12193_v40 }
 0x783   :  { %7873 = vtanh.f32 %v5770_v35  ;;  %v5771_v46 = vmul.f32 0.5, %v12226_v13  ;;  %v5897_v52 = vmul.f32 %v5865_v6, %v12198_v63  ;;  %v12241_v35 = vld [vmem:[%s12448_s8 + $0x3] ss:$0 sm:$0xff] }
 0x784   :  { %7875 = vtanh.f32 %v5773_v27  ;;  %v5895_v17 = vmul.f32 %v5863_v30, %v12202_v25 }
 0x785   :  { %7877 = vtanh.f32 %v5771_v46  ;;  %v5915_v11 = vpack.c.bf16 %v5897_v52, %v5896_v3 }
 0x786   :  { %v5914_v22 = vpack.c.bf16 %v5895_v17, %v5894_v61 }
 0x788   :  { %7168 = vmatprep.mubr.bf16.mxu1 %v5914_v22 }
 0x789   :  { %7169 = vmatmul.mubr.bf16.gmra.mrb[104].mxu1 %v5915_v11 }
 0x78c   :  { %v7872_v5 = vpop.eup %7871 }
 0x78d   :  { %v7874_v8 = vpop.eup %7873  ;;  %v5836_v49 = vmul.f32 0.5, %v7872_v5 }
 0x78e   :  { %v7876_v34 = vpop.eup %7875  ;;  %v5834_v15 = vmul.f32 0.5, %v7874_v8 }
 0x78f   :  { %v7878_v41 = vpop.eup %7877  ;;  %v5837_v44 = vmul.f32 0.5, %v7876_v34  ;;  %v5868_v2 = vadd.f32 0.5, %v5836_v49 }
 0x790   :  { %v5835_v54 = vmul.f32 0.5, %v7878_v41  ;;  %v5866_v36 = vadd.f32 0.5, %v5834_v15 }
 0x791   :  { %v5869_v32 = vadd.f32 0.5, %v5837_v44  ;;  %v5900_v12 = vmul.f32 %v5868_v2, %v12213_v21 }
 0x792   :  { %v5867_v18 = vadd.f32 0.5, %v5835_v54  ;;  %v5898_v56 = vmul.f32 %v5866_v36, %v12217_v38 }
 0x793   :  { %v5901_v20 = vmul.f32 %v5869_v32, %v12222_v10 }
 0x794   :  { %v5899_v60 = vmul.f32 %v5867_v18, %v12226_v13 }
 0x795   :  { %v5917_v43 = vpack.c.bf16 %v5901_v20, %v5900_v12 }
 0x796   :  { %v5916_v42 = vpack.c.bf16 %v5899_v60, %v5898_v56 }
 0x798   :  { %7172 = vmatprep.mubr.bf16.mxu1 %v5916_v42 }
 0x799   :  { %7173 = vmatmul.mubr.bf16.gmra.mrb[108].mxu1 %v5917_v43 }
 0x7ce   :  { %v7146_v55 = vpop.f32.mrb[80].mxu1 }
 0x7cf   :  { %v6034_v51 = vadd.f32 %v7146_v55, %v12241_v35  ;;  %v6025_v27 = vpop.f32.mrb[81].mxu1 }
 0x7d0   :  { %v6026_v53 = vadd.f32 %v12241_v35, %v6025_v27  ;;  %v7147_v6 = vpop.f32.mrb[82].mxu1 }
 0x7d1   :  { %v6037_v46 = vadd.f32 %v7147_v6, %v12241_v35  ;;  %v6028_v30 = vpop.f32.mrb[83].mxu1  ;;  %v6154_v61 = vadd.f32 %v6034_v51, %v12025_v14 }
 0x7d2   :  { %v6029_v52 = vadd.f32 %v12241_v35, %v6028_v30  ;;  %v6152_v3 = vadd.f32 %v6026_v53, %v12029_v37 }
 0x7d3   :  { %v6155_v17 = vadd.f32 %v6037_v46, %v12034_v23 }
 0x7d4   :  { %v6153_v22 = vadd.f32 %v6029_v52, %v12038_v50 }
 0x7d5   :  { %v6185_v11 = vpack.c.bf16 %v6155_v17, %v6154_v61 }
 0x7d6   :  { %v6184_v5 = vpack.c.bf16 %v6153_v22, %v6152_v3 }
 0x7d8   :  { %7192 = vmatprep.mubr.bf16.mxu0 %v6184_v5 }
 0x7d9   :  { %7193 = vmatmul.mubr.bf16.vlgmr.msra.gmra.mrb[80].mxu0 %v6185_v11 }
 0x7f7   :  { %v7150_v8 = vpop.f32.mrb[84].mxu1 }
 0x7f8   :  { %v6050_v49 = vadd.f32 %v7150_v8, %v12241_v35  ;;  %v6041_v34 = vpop.f32.mrb[85].mxu1 }
 0x7f9   :  { %v6042_v15 = vadd.f32 %v12241_v35, %v6041_v34  ;;  %v7151_v41 = vpop.f32.mrb[86].mxu1 }
 0x7fa   :  { %v6053_v44 = vadd.f32 %v7151_v41, %v12241_v35  ;;  %v6044_v14 = vpop.f32.mrb[87].mxu1  ;;  %v6158_v37 = vadd.f32 %v6050_v49, %v12049_v0 }
 0x7fb   :  { %v6045_v23 = vadd.f32 %v12241_v35, %v6044_v14  ;;  %v6156_v54 = vadd.f32 %v6042_v15, %v12053_v9 }
 0x7fc   :  { %v6159_v50 = vadd.f32 %v6053_v44, %v12058_v1 }
 0x7fd   :  { %v6157_v36 = vadd.f32 %v6045_v23, %v12062_v26 }
 0x7fe   :  { %v6187_v2 = vpack.c.bf16 %v6159_v50, %v6158_v37 }
 0x7ff   :  { %v6186_v32 = vpack.c.bf16 %v6157_v36, %v6156_v54 }
 0x801   :  { %7196 = vmatprep.mubr.bf16.mxu0 %v6186_v32 }
 0x802   :  { %7197 = vmatmul.mubr.bf16.gmra.mrb[84].mxu0 %v6187_v2 }
 0x80d   :  { %v7154_v18 = vpop.f32.mrb[88].mxu1 }
 0x80e   :  { %v6066_v20 = vadd.f32 %v7154_v18, %v12241_v35  ;;  %v6057_v56 = vpop.f32.mrb[89].mxu1 }
 0x80f   :  { %v6058_v60 = vadd.f32 %v12241_v35, %v6057_v56  ;;  %v7155_v12 = vpop.f32.mrb[90].mxu1 }
 0x810   :  { %v6069_v42 = vadd.f32 %v7155_v12, %v12241_v35  ;;  %v6060_v0 = vpop.f32.mrb[91].mxu1  ;;  %v6162_v9 = vadd.f32 %v6066_v20, %v12081_v4 }
 0x811   :  { %v6061_v1 = vadd.f32 %v12241_v35, %v6060_v0  ;;  %v6160_v43 = vadd.f32 %v6058_v60, %v12085_v16 }
 0x812   :  { %v6163_v26 = vadd.f32 %v6069_v42, %v12090_v29 }
 0x813   :  { %v6161_v55 = vadd.f32 %v6061_v1, %v12098_v24 }
 0x814   :  { %v6189_v51 = vpack.c.bf16 %v6163_v26, %v6162_v9 }
 0x815   :  { %v6188_v27 = vpack.c.bf16 %v6161_v55, %v6160_v43 }
 0x817   :  { %7200 = vmatprep.mubr.bf16.mxu0 %v6188_v27 }
 0x818   :  { %7201 = vmatmul.mubr.bf16.gmra.mrb[88].mxu0 %v6189_v51 }
 0x822   :  { %v7158_v53 = vpop.f32.mrb[92].mxu1 }
 0x823   :  { %v6082_v6 = vadd.f32 %v7158_v53, %v12241_v35  ;;  %v6073_v46 = vpop.f32.mrb[93].mxu1 }
 0x824   :  { %v6074_v30 = vadd.f32 %v12241_v35, %v6073_v46  ;;  %v7159_v52 = vpop.f32.mrb[94].mxu1 }
 0x825   :  { %v6085_v61 = vadd.f32 %v7159_v52, %v12241_v35  ;;  %v6076_v4 = vpop.f32.mrb[95].mxu1  ;;  %v6166_v16 = vadd.f32 %v6082_v6, %v12114_v57 }
 0x826   :  { %v6077_v29 = vadd.f32 %v12241_v35, %v6076_v4  ;;  %v6164_v17 = vadd.f32 %v6074_v30, %v12118_v47 }
 0x827   :  { %v6167_v24 = vadd.f32 %v6085_v61, %v12123_v7 }
 0x828   :  { %v6165_v3 = vadd.f32 %v6077_v29, %v12128_v39 }
 0x829   :  { %v6191_v22 = vpack.c.bf16 %v6167_v24, %v6166_v16 }
 0x82a   :  { %v6190_v11 = vpack.c.bf16 %v6165_v3, %v6164_v17  ;;  %v12310_v3 = vld [vmem:[%s12450_s10] ss:$0 sm:$0xff] }
 0x82c   :  { %7204 = vmatprep.mubr.bf16.mxu0 %v6190_v11 }
 0x82d   :  { %7205 = vmatmul.mubr.bf16.gmra.mrb[92].mxu0 %v6191_v22 }
 0x833   :  { %v7162_v5 = vpop.f32.mrb[96].mxu1 }
 0x834   :  { %v6098_v8 = vadd.f32 %v7162_v5, %v12241_v35  ;;  %v6089_v49 = vpop.f32.mrb[97].mxu1 }
 0x835   :  { %v6090_v34 = vadd.f32 %v12241_v35, %v6089_v49  ;;  %v7163_v15 = vpop.f32.mrb[98].mxu1 }
 0x836   :  { %v6101_v41 = vadd.f32 %v7163_v15, %v12241_v35  ;;  %v6092_v57 = vpop.f32.mrb[99].mxu1  ;;  %v6170_v47 = vadd.f32 %v6098_v8, %v12138_v33 }
 0x837   :  { %v6093_v7 = vadd.f32 %v12241_v35, %v6092_v57  ;;  %v6168_v44 = vadd.f32 %v6090_v34, %v12142_v62 }
 0x838   :  { %v6171_v39 = vadd.f32 %v6101_v41, %v12147_v19 }
 0x839   :  { %v6169_v14 = vadd.f32 %v6093_v7, %v12151_v59 }
 0x83a   :  { %v6193_v23 = vpack.c.bf16 %v6171_v39, %v6170_v47 }
 0x83b   :  { %v6192_v37 = vpack.c.bf16 %v6169_v14, %v6168_v44 }
 0x83d   :  { %7208 = vmatprep.mubr.bf16.mxu0 %v6192_v37 }
 0x83e   :  { %7209 = vmatmul.mubr.bf16.gmra.mrb[96].mxu0 %v6193_v23 }
 0x84b   :  { %v7166_v50 = vpop.f32.mrb[100].mxu1 }
 0x84c   :  { %v6114_v54 = vadd.f32 %v7166_v50, %v12241_v35  ;;  %v6105_v36 = vpop.f32.mrb[101].mxu1 }
 0x84d   :  { %v6106_v2 = vadd.f32 %v12241_v35, %v6105_v36  ;;  %v7167_v32 = vpop.f32.mrb[102].mxu1 }
 0x84e   :  { %v6117_v18 = vadd.f32 %v7167_v32, %v12241_v35  ;;  %v6108_v33 = vpop.f32.mrb[103].mxu1  ;;  %v6174_v62 = vadd.f32 %v6114_v54, %v12165_v45 }
 0x84f   :  { %v6109_v19 = vadd.f32 %v12241_v35, %v6108_v33  ;;  %v6172_v20 = vadd.f32 %v6106_v2, %v12170_v31 }
 0x850   :  { %v6175_v59 = vadd.f32 %v6117_v18, %v12175_v28 }
 0x851   :  { %v6173_v56 = vadd.f32 %v6109_v19, %v12179_v48 }
 0x852   :  { %v6195_v60 = vpack.c.bf16 %v6175_v59, %v6174_v62 }
 0x853   :  { %v6194_v12 = vpack.c.bf16 %v6173_v56, %v6172_v20 }
 0x855   :  { %7212 = vmatprep.mubr.bf16.mxu0 %v6194_v12 }
 0x856   :  { %7213 = vmatmul.mubr.bf16.gmra.mrb[100].mxu0 %v6195_v60 }
 0x85c   :  { %v7170_v42 = vpop.f32.mrb[104].mxu1 }
 0x85d   :  { %v6130_v0 = vadd.f32 %v7170_v42, %v12241_v35  ;;  %v6121_v1 = vpop.f32.mrb[105].mxu1 }
 0x85e   :  { %v6122_v9 = vadd.f32 %v12241_v35, %v6121_v1  ;;  %v7171_v26 = vpop.f32.mrb[106].mxu1 }
 0x85f   :  { %v6133_v43 = vadd.f32 %v7171_v26, %v12241_v35  ;;  %v6124_v45 = vpop.f32.mrb[107].mxu1  ;;  %v6178_v31 = vadd.f32 %v6130_v0, %v12189_v58 }
 0x860   :  { %v6125_v28 = vadd.f32 %v12241_v35, %v6124_v45  ;;  %v6176_v55 = vadd.f32 %v6122_v9, %v12193_v40 }
 0x861   :  { %v6179_v48 = vadd.f32 %v6133_v43, %v12198_v63 }
 0x862   :  { %v6177_v51 = vadd.f32 %v6125_v28, %v12202_v25 }
 0x863   :  { %v6197_v27 = vpack.c.bf16 %v6179_v48, %v6178_v31 }
 0x864   :  { %v6196_v53 = vpack.c.bf16 %v6177_v51, %v6176_v55 }
 0x866   :  { %7216 = vmatprep.mubr.bf16.mxu0 %v6196_v53 }
 0x867   :  { %7217 = vmatmul.mubr.bf16.gmra.mrb[104].mxu0 %v6197_v27 }
 0x86c   :  { %v7174_v6 = vpop.f32.mrb[108].mxu1 }
 0x86d   :  { %v6146_v46 = vadd.f32 %v7174_v6, %v12241_v35  ;;  %v6137_v30 = vpop.f32.mrb[109].mxu1 }
 0x86e   :  { %v6138_v52 = vadd.f32 %v12241_v35, %v6137_v30  ;;  %v7175_v61 = vpop.f32.mrb[110].mxu1 }
 0x86f   :  { %v6149_v4 = vadd.f32 %v7175_v61, %v12241_v35  ;;  %v6140_v58 = vpop.f32.mrb[111].mxu1  ;;  %v6182_v40 = vadd.f32 %v6146_v46, %v12213_v21 }
 0x870   :  { %v6141_v63 = vadd.f32 %v12241_v35, %v6140_v58  ;;  %v6180_v29 = vadd.f32 %v6138_v52, %v12217_v38 }
 0x871   :  { %v6183_v25 = vadd.f32 %v6149_v4, %v12222_v10 }
 0x872   :  { %v6181_v16 = vadd.f32 %v6141_v63, %v12226_v13 }
 0x873   :  { %v6199_v24 = vpack.c.bf16 %v6183_v25, %v6182_v40 }
 0x874   :  { %v6198_v17 = vpack.c.bf16 %v6181_v16, %v6180_v29 }
 0x876   :  { %7220 = vmatprep.mubr.bf16.mxu0 %v6198_v17 }
 0x877   :  { %7221 = vmatmul.mubr.bf16.gmra.mrb[108].mxu0 %v6199_v24 }
 0x8ac   :  { %v7194_v22 = vpop.f32.mrb[80].mxu0 }
 0x8ad   :  { %v6314_v35 = vadd.f32 %v7194_v22, %v12310_v3  ;;  %v6305_v11 = vpop.f32.mrb[81].mxu0 }
 0x8ae   :  { %v6306_v21 = vadd.f32 %v12310_v3, %v6305_v11  ;;  %v7195_v10 = vpop.f32.mrb[82].mxu0 }
 0x8af   :  { %6434 = vst [vmem:[%s12451_s11 + $0x10] sm:$0xff] %v6314_v35  ;;  %v6317_v38 = vadd.f32 %v7195_v10, %v12310_v3  ;;  %v6308_v13 = vpop.f32.mrb[83].mxu0 }
 0x8b0   :  { %6432 = vst [vmem:[%s12451_s11] sm:$0xff] %v6306_v21  ;;  %v6309_v5 = vadd.f32 %v12310_v3, %v6308_v13 }
 0x8b1   :  { %6435 = vst [vmem:[%s12451_s11 + $0x18] sm:$0xff] %v6317_v38 }
 0x8b2   :  { %6433 = vst [vmem:[%s12451_s11 + $0x8] sm:$0xff] %v6309_v5 }
 0x8d5   :  { %v7198_v8 = vpop.f32.mrb[84].mxu0 }
 0x8d6   :  { %v6330_v49 = vadd.f32 %v7198_v8, %v12310_v3  ;;  %v6321_v34 = vpop.f32.mrb[85].mxu0 }
 0x8d7   :  { %v6322_v15 = vadd.f32 %v12310_v3, %v6321_v34  ;;  %v7199_v41 = vpop.f32.mrb[86].mxu0 }
 0x8d8   :  { %6438 = vst [vmem:[%s12451_s11 + $0x30] sm:$0xff] %v6330_v49  ;;  %v6333_v57 = vadd.f32 %v7199_v41, %v12310_v3  ;;  %v6324_v7 = vpop.f32.mrb[87].mxu0 }
 0x8d9   :  { %6436 = vst [vmem:[%s12451_s11 + $0x20] sm:$0xff] %v6322_v15  ;;  %v6325_v47 = vadd.f32 %v12310_v3, %v6324_v7 }
 0x8da   :  { %6439 = vst [vmem:[%s12451_s11 + $0x38] sm:$0xff] %v6333_v57 }
 0x8db   :  { %6437 = vst [vmem:[%s12451_s11 + $0x28] sm:$0xff] %v6325_v47 }
 0x8eb   :  { %v7202_v39 = vpop.f32.mrb[88].mxu0 }
 0x8ec   :  { %v6346_v44 = vadd.f32 %v7202_v39, %v12310_v3  ;;  %v6337_v14 = vpop.f32.mrb[89].mxu0 }
 0x8ed   :  { %v6338_v23 = vadd.f32 %v12310_v3, %v6337_v14  ;;  %v7203_v37 = vpop.f32.mrb[90].mxu0 }
 0x8ee   :  { %6442 = vst [vmem:[%s12451_s11 + $0x50] sm:$0xff] %v6346_v44  ;;  %v6349_v50 = vadd.f32 %v7203_v37, %v12310_v3  ;;  %v6340_v54 = vpop.f32.mrb[91].mxu0 }
 0x8ef   :  { %6440 = vst [vmem:[%s12451_s11 + $0x40] sm:$0xff] %v6338_v23  ;;  %v6341_v36 = vadd.f32 %v12310_v3, %v6340_v54 }
 0x8f0   :  { %6443 = vst [vmem:[%s12451_s11 + $0x58] sm:$0xff] %v6349_v50 }
 0x8f1   :  { %6441 = vst [vmem:[%s12451_s11 + $0x48] sm:$0xff] %v6341_v36 }
 0x900   :  { %v7206_v2 = vpop.f32.mrb[92].mxu0 }
 0x901   :  { %v6362_v32 = vadd.f32 %v7206_v2, %v12310_v3  ;;  %v6353_v18 = vpop.f32.mrb[93].mxu0 }
 0x902   :  { %v6354_v33 = vadd.f32 %v12310_v3, %v6353_v18  ;;  %v7207_v19 = vpop.f32.mrb[94].mxu0 }
 0x903   :  { %6446 = vst [vmem:[%s12451_s11 + $0x70] sm:$0xff] %v6362_v32  ;;  %v6365_v62 = vadd.f32 %v7207_v19, %v12310_v3  ;;  %v6356_v59 = vpop.f32.mrb[95].mxu0 }
 0x904   :  { %6444 = vst [vmem:[%s12451_s11 + $0x60] sm:$0xff] %v6354_v33  ;;  %v6357_v20 = vadd.f32 %v12310_v3, %v6356_v59 }
 0x905   :  { %6447 = vst [vmem:[%s12451_s11 + $0x78] sm:$0xff] %v6365_v62 }
 0x906   :  { %6445 = vst [vmem:[%s12451_s11 + $0x68] sm:$0xff] %v6357_v20 }
 0x911   :  { %v7210_v56 = vpop.f32.mrb[96].mxu0 }
 0x912   :  { %v6378_v60 = vadd.f32 %v7210_v56, %v12310_v3  ;;  %v6369_v12 = vpop.f32.mrb[97].mxu0 }
 0x913   :  { %v6370_v42 = vadd.f32 %v12310_v3, %v6369_v12  ;;  %v7211_v0 = vpop.f32.mrb[98].mxu0 }
 0x914   :  { %6450 = vst [vmem:[%s12451_s11 + $0x90] sm:$0xff] %v6378_v60  ;;  %v6381_v1 = vadd.f32 %v7211_v0, %v12310_v3  ;;  %v6372_v9 = vpop.f32.mrb[99].mxu0 }
 0x915   :  { %6448 = vst [vmem:[%s12451_s11 + $0x80] sm:$0xff] %v6370_v42  ;;  %v6373_v26 = vadd.f32 %v12310_v3, %v6372_v9 }
 0x916   :  { %6451 = vst [vmem:[%s12451_s11 + $0x98] sm:$0xff] %v6381_v1 }
 0x917   :  { %6449 = vst [vmem:[%s12451_s11 + $0x88] sm:$0xff] %v6373_v26 }
 0x929   :  { %v7214_v43 = vpop.f32.mrb[100].mxu0 }
 0x92a   :  { %v6394_v45 = vadd.f32 %v7214_v43, %v12310_v3  ;;  %v6385_v28 = vpop.f32.mrb[101].mxu0 }
 0x92b   :  { %v6386_v31 = vadd.f32 %v12310_v3, %v6385_v28  ;;  %v7215_v48 = vpop.f32.mrb[102].mxu0 }
 0x92c   :  { %6454 = vst [vmem:[%s12451_s11 + $0xb0] sm:$0xff] %v6394_v45  ;;  %v6397_v55 = vadd.f32 %v7215_v48, %v12310_v3  ;;  %v6388_v51 = vpop.f32.mrb[103].mxu0 }
 0x92d   :  { %6452 = vst [vmem:[%s12451_s11 + $0xa0] sm:$0xff] %v6386_v31  ;;  %v6389_v27 = vadd.f32 %v12310_v3, %v6388_v51 }
 0x92e   :  { %6455 = vst [vmem:[%s12451_s11 + $0xb8] sm:$0xff] %v6397_v55 }
 0x92f   :  { %6453 = vst [vmem:[%s12451_s11 + $0xa8] sm:$0xff] %v6389_v27 }
 0x93a   :  { %v7218_v53 = vpop.f32.mrb[104].mxu0 }
 0x93b   :  { %v6410_v6 = vadd.f32 %v7218_v53, %v12310_v3  ;;  %v6401_v46 = vpop.f32.mrb[105].mxu0 }
 0x93c   :  { %v6402_v30 = vadd.f32 %v12310_v3, %v6401_v46  ;;  %v7219_v52 = vpop.f32.mrb[106].mxu0 }
 0x93d   :  { %6458 = vst [vmem:[%s12451_s11 + $0xd0] sm:$0xff] %v6410_v6  ;;  %v6413_v61 = vadd.f32 %v7219_v52, %v12310_v3  ;;  %v6404_v4 = vpop.f32.mrb[107].mxu0 }
 0x93e   :  { %6456 = vst [vmem:[%s12451_s11 + $0xc0] sm:$0xff] %v6402_v30  ;;  %v6405_v58 = vadd.f32 %v12310_v3, %v6404_v4 }
 0x93f   :  { %6459 = vst [vmem:[%s12451_s11 + $0xd8] sm:$0xff] %v6413_v61 }
 0x940   :  { %6457 = vst [vmem:[%s12451_s11 + $0xc8] sm:$0xff] %v6405_v58 }
 0x94a   :  { %v7222_v63 = vpop.f32.mrb[108].mxu0 }
 0x94b   :  { %v6426_v40 = vadd.f32 %v7222_v63, %v12310_v3  ;;  %v6417_v25 = vpop.f32.mrb[109].mxu0 }
 0x94c   :  { %v6418_v29 = vadd.f32 %v12310_v3, %v6417_v25  ;;  %v7223_v16 = vpop.f32.mrb[110].mxu0 }
 0x94d   :  { %6462 = vst [vmem:[%s12451_s11 + $0xf0] sm:$0xff] %v6426_v40  ;;  %v6429_v24 = vadd.f32 %v7223_v16, %v12310_v3  ;;  %v6420_v17 = vpop.f32.mrb[111].mxu0 }
 0x94e   :  { %6460 = vst [vmem:[%s12451_s11 + $0xe0] sm:$0xff] %v6418_v29  ;;  %v6421_v22 = vadd.f32 %v12310_v3, %v6420_v17 }
 0x94f   :  { %6463 = vst [vmem:[%s12451_s11 + $0xf8] sm:$0xff] %v6429_v24 }
 0x950   :  { %6461 = vst [vmem:[%s12451_s11 + $0xe8] sm:$0xff] %v6421_v22 }

</bundles_post_ra>
